<compile_context>
chip_gen: v5e
topology: v5e:2x2
jax: 0.10.0
libtpu: 0.0.40
codegen_flags: <defaults>
</compile_context>

<pallas_src>
import jax
import jax.numpy as jnp
from jax import lax
from jax.experimental import pallas as pl
from jax.experimental.pallas import tpu as pltpu


# ---------------------------------------------------------------------------
# static layout constants
# ---------------------------------------------------------------------------
S1 = 256            # pooled spatial positions per image after pool1 (16*16)
G1 = 4 * S1         # p1 columns per image (4 pool taps x 256)
S2 = 56             # pooled spatial rows per image after pool2 (49 real + 7 zero pad)
R2 = 4 * S2         # p2 rows per image (4 pool taps x 56)
VMEM_LIMIT = 32 * 1024 * 1024


def _pick_bt(B):
    """Images per grid step.  Always a multiple of 8 (keeps every second-to-last
    block dim sublane-aligned); batch is padded up to a multiple of it so any B
    works.  Caps keep the lane-padded conv2 patch block (+double buffering) well
    under the 32 MiB scoped-VMEM budget on v5e/v6e/v7x, and B >= 2*bt for real
    batches keeps >= 2 grid steps so both v7x TensorCores get work."""
    if B >= 64:
        return 32
    if B >= 16:
        return 16
    return 8


# ---------------------------------------------------------------------------
# One-time parameter packing (hoisted out of the forward hot path).
# ---------------------------------------------------------------------------
def prepare_params(params):
    """Repack PyTorch-layout weights once: bf16 matmul weights, fc padded to 128."""
    w1, b1, w2, b2, wfc, bfc = params
    cin = w1.shape[1]
    nc = wfc.shape[0]
    assert nc <= 128

    # conv1 is computed transposed: acc = w1m (32, C*9) @ p1 (C*9, bt*1024)
    w1m = w1.reshape(32, cin * 9).astype(jnp.bfloat16)            # (32, C*9)
    b1m = b1.reshape(32, 1).astype(jnp.float32)                   # (32, 1)

    # conv2 stays row-major: acc = p2 (bt*224, 288) @ w2m (288, 64)
    w2m = w2.reshape(64, 32 * 9).T.astype(jnp.bfloat16)           # (288, 64)
    b2m = b2.reshape(1, 64).astype(jnp.float32)                   # (1, 64)

    # torch flatten order is (c, y, x): feature = c*49 + s.  Our feat layout is
    # s*64 + c over 56 (padded) spatial rows, so permute and zero-pad rows/cols.
    wfcm = wfc.reshape(nc, 64, 49).transpose(2, 1, 0).reshape(49 * 64, nc)
    wfcm = jnp.pad(wfcm, ((0, 7 * 64), (0, 128 - nc))).astype(jnp.bfloat16)  # (3584,128)
    bfcp = jnp.pad(bfc, (0, 128 - nc)).reshape(1, 128).astype(jnp.float32)

    return (w1m, b1m, w2m, b2m, wfcm, bfcp)


# ---------------------------------------------------------------------------
# Pallas kernels / wrappers
# ---------------------------------------------------------------------------
def _conv1_pool(p1, w, b, *, bt):
    """conv1-as-matmul (transposed) + 2x2 max-pool + bias + ReLU.

    p1: (C*9, B*1024) bf16, column = b*1024 + g*256 + s (g = pool tap, s = pi*16+pj)
    w:  (32, C*9) bf16,  b: (32, 1) f32
    returns h1: (32, B*256) bf16, column = b*256 + s   (lane-dense stores)
    """
    K, total = p1.shape
    B = total // G1
    cout = w.shape[0]
    assert B % bt == 0

    def kernel(p_ref, w_ref, b_ref, o_ref):
        # single MXU stream per grid step: (32, C*9) @ (C*9, bt*1024) -> f32
        acc = jnp.dot(w_ref[...], p_ref[...], preferred_element_type=jnp.float32)
        bias = jnp.broadcast_to(b_ref[...], (cout, S1))     # hoisted, once per step
        for i in range(bt):                                  # static, 128-aligned slices
            base = i * G1
            t0 = acc[:, base + 0 * S1: base + 1 * S1]
            t1 = acc[:, base + 1 * S1: base + 2 * S1]
            t2 = acc[:, base + 2 * S1: base + 3 * S1]
            t3 = acc[:, base + 3 * S1: base + 4 * S1]
            pooled = jnp.maximum(jnp.maximum(t0, t1), jnp.maximum(t2, t3))
            o_ref[:, i * S1:(i + 1) * S1] = jnp.maximum(pooled + bias, 0.0
                                                        ).astype(o_ref.dtype)

    return pl.pallas_call(
        kernel,
        out_shape=jax.ShapeDtypeStruct((cout, B * S1), jnp.bfloat16),
        grid=(B // bt,),
        in_specs=[
            pl.BlockSpec((K, bt * G1), lambda g: (0, g)),
            pl.BlockSpec((cout, K), lambda g: (0, 0)),
            pl.BlockSpec((cout, 1), lambda g: (0, 0)),
        ],
        out_specs=pl.BlockSpec((cout, bt * S1), lambda g: (0, g)),
        compiler_params=pltpu.CompilerParams(
            dimension_semantics=("parallel",),
            vmem_limit_bytes=VMEM_LIMIT,
        ),
    )(p1, w, b)


def _conv2_pool(p2, w, b, *, bt):
    """conv2-as-matmul + 2x2 max-pool + bias + ReLU.

    p2: (B*224, 288) bf16, row = b*224 + g*56 + s (s = pi*7+pj, rows 49..55 zero)
    w:  (288, 64) bf16,  b: (1, 64) f32
    returns h2: (B*56, 64) bf16
    """
    total, K = p2.shape
    B = total // R2
    cout = w.shape[1]
    assert B % bt == 0

    def kernel(p_ref, w_ref, b_ref, o_ref):
        # single MXU stream per grid step: (bt*224, 288) @ (288, 64) -> f32
        acc = jnp.dot(p_ref[...], w_ref[...], preferred_element_type=jnp.float32)
        bias = jnp.broadcast_to(b_ref[...], (S2, cout))      # hoisted, once per step
        for i in range(bt):                                  # static, sublane-aligned slices
            base = i * R2
            t0 = acc[base + 0 * S2: base + 1 * S2]
            t1 = acc[base + 1 * S2: base + 2 * S2]
            t2 = acc[base + 2 * S2: base + 3 * S2]
            t3 = acc[base + 3 * S2: base + 4 * S2]
            pooled = jnp.maximum(jnp.maximum(t0, t1), jnp.maximum(t2, t3))
            o_ref[i * S2:(i + 1) * S2, :] = jnp.maximum(pooled + bias, 0.0
                                                        ).astype(o_ref.dtype)

    return pl.pallas_call(
        kernel,
        out_shape=jax.ShapeDtypeStruct((B * S2, cout), jnp.bfloat16),
        grid=(B // bt,),
        in_specs=[
            pl.BlockSpec((bt * R2, K), lambda g: (g, 0)),
            pl.BlockSpec((K, cout), lambda g: (0, 0)),
            pl.BlockSpec((1, cout), lambda g: (0, 0)),
        ],
        out_specs=pl.BlockSpec((bt * S2, cout), lambda g: (g, 0)),
        compiler_params=pltpu.CompilerParams(
            dimension_semantics=("parallel",),
            vmem_limit_bytes=VMEM_LIMIT,
        ),
    )(p2, w, b)


def _fc(x, w, b, *, bt):
    """Dense layer; output padded to 128 lanes so stores are unmasked."""
    B, K = x.shape
    N = w.shape[1]
    assert B % bt == 0

    def kernel(x_ref, w_ref, b_ref, o_ref):
        o_ref[...] = (
            jnp.dot(x_ref[...], w_ref[...], preferred_element_type=jnp.float32)
            + b_ref[...]
        )

    return pl.pallas_call(
        kernel,
        out_shape=jax.ShapeDtypeStruct((B, N), jnp.float32),
        grid=(B // bt,),
        in_specs=[
            pl.BlockSpec((bt, K), lambda g: (g, 0)),
            pl.BlockSpec((K, N), lambda g: (0, 0)),
            pl.BlockSpec((1, N), lambda g: (0, 0)),
        ],
        out_specs=pl.BlockSpec((bt, N), lambda g: (g, 0)),
        compiler_params=pltpu.CompilerParams(
            dimension_semantics=("parallel",),
            vmem_limit_bytes=VMEM_LIMIT,
        ),
    )(x, w, b)


# ---------------------------------------------------------------------------
# XLA glue: im2col patch extraction (fused by XLA into a couple of fusions)
# ---------------------------------------------------------------------------
def _conv1_patches(x_nchw):
    """NCHW (batch already padded) -> transposed im2col (C*9, B*1024) bf16.

    Row r = ci*9 + kh*3 + kw; column per image = g*256 + s with g = 2*dy+dx the
    2x2-pool tap and s = pi*16 + pj the pooled position.  K on sublanes keeps the
    VMEM tile lane-dense and the pool taps 128-aligned."""
    B, C, H, W = x_nchw.shape
    assert H == 32 and W == 32, "fc1 = 7*7*64 implies 32x32 spatial input"
    xp = jnp.pad(x_nchw.astype(jnp.bfloat16), ((0, 0), (0, 0), (1, 1), (1, 1)))
    taps = jnp.stack([xp[:, :, kh:kh + H, kw:kw + W]
                      for kh in range(3) for kw in range(3)], axis=2)  # (B,C,9,32,32)
    t = taps.reshape(B, C * 9, 16, 2, 16, 2)        # (B, K, pi, dy, pj, dx)
    t = t.transpose(1, 0, 3, 5, 2, 4)               # (K, B, dy, dx, pi, pj)
    return t.reshape(C * 9, B * 1024)


def _conv2_patches(h1, B):
    """h1 (32, B*256) bf16 -> conv2 im2col (B*224, 288) bf16, pool-grouped rows.

    Row per image = g*56 + s with s = pi*7 + pj; rows 49..55 are zero-padded (the
    matching fc-weight rows are zero, so the padding never reaches the logits)."""
    h = h1.reshape(32, B, 16, 16).transpose(1, 2, 3, 0)            # (B,16,16,32)
    taps = [h[:, kh:kh + 14, kw:kw + 14, :] for kh in range(3) for kw in range(3)]
    full = jnp.stack(taps, axis=-1).reshape(B, 14, 14, 32 * 9)     # col = c*9+kh*3+kw
    r = full.reshape(B, 7, 2, 7, 2, 288).transpose(0, 2, 4, 1, 3, 5).reshape(B, 4, 49, 288)
    r = jnp.pad(r, ((0, 0), (0, 0), (0, 7), (0, 0)))               # 49 -> 56 rows
    return r.reshape(B * R2, 288)                                  # (B*224, 288)


# ---------------------------------------------------------------------------
# Forward pass
# ---------------------------------------------------------------------------
def model_forward(packed, x_nchw, num_classes):
    w1m, b1m, w2m, b2m, wfcm, bfcp = packed
    B = x_nchw.shape[0]
    bt = _pick_bt(B)
    B_pad = ((B + bt - 1) // bt) * bt
    if B_pad != B:
        x_nchw = jnp.pad(x_nchw, ((0, B_pad - B), (0, 0), (0, 0), (0, 0)))

    # conv1 (3x3, pad=1) + maxpool(2) + bias + ReLU: 32x32 -> 16x16, 32 ch
    p1 = _conv1_patches(x_nchw)                       # (C*9, B_pad*1024) bf16
    h1 = _conv1_pool(p1, w1m, b1m, bt=bt)             # (32, B_pad*256)  bf16

    # conv2 (3x3, valid) + maxpool(2) + bias + ReLU: 16x16 -> 7x7, 64 ch
    p2 = _conv2_patches(h1, B_pad)                    # (B_pad*224, 288) bf16
    h2 = _conv2_pool(p2, w2m, b2m, bt=bt)             # (B_pad*56, 64)   bf16

    # flatten is a free bitcast; padded rows hit zero fc-weight rows.
    feat = h2.reshape(B_pad, S2 * 64)                 # (B_pad, 3584) bf16
    logits = _fc(feat, wfcm, bfcp, bt=bt)             # (B_pad, 128) f32
    return logits[:B, :num_classes]


# ---------------------------------------------------------------------------
# Pure-JAX (XLA) reference matching the PyTorch forward exactly
# ---------------------------------------------------------------------------
def reference_forward(params, x):
    w1, b1, w2, b2, wfc, bfc = params
    dn = ("NCHW", "OIHW", "NCHW")
    hp = lax.Precision.HIGHEST
    h = lax.conv_general_dilated(x, w1, (1, 1), ((1, 1), (1, 1)),
                                 dimension_numbers=dn, precision=hp)
    h = jnp.maximum(h + b1[None, :, None, None], 0.0)
    h = lax.reduce_window(h, -jnp.inf, lax.max, (1, 1, 2, 2), (1, 1, 2, 2), "VALID")
    h = lax.conv_general_dilated(h, w2, (1, 1), "VALID",
                                 dimension_numbers=dn, precision=hp)
    h = jnp.maximum(h + b2[None, :, None, None], 0.0)
    h = lax.reduce_window(h, -jnp.inf, lax.max, (1, 1, 2, 2), (1, 1, 2, 2), "VALID")
    h = h.reshape(h.shape[0], -1)                                  # torch.flatten: (C,H,W)
    return jnp.dot(h, wfc.T, precision=hp) + bfc[None, :]


if __name__ == "__main__":
    num_channels, num_classes, batch = 3, 10, 2    # fc1 (7*7*64) implies 32x32 input
    key = jax.random.PRNGKey(0)
    k = jax.random.split(key, 7)
    w1 = 0.10 * jax.random.normal(k[0], (32, num_channels, 3, 3), jnp.float32)
    b1 = 0.10 * jax.random.normal(k[1], (32,), jnp.float32)
    w2 = 0.05 * jax.random.normal(k[2], (64, 32, 3, 3), jnp.float32)
    b2 = 0.05 * jax.random.normal(k[3], (64,), jnp.float32)
    wfc = 0.02 * jax.random.normal(k[4], (num_classes, 7 * 7 * 64), jnp.float32)
    bfc = 0.02 * jax.random.normal(k[5], (num_classes,), jnp.float32)
    params = (w1, b1, w2, b2, wfc, bfc)

    x = jax.random.normal(k[6], (batch, num_channels, 32, 32), jnp.float32)

    packed = prepare_params(params)                 # one-time weight repacking (hoisted)
    fwd = jax.jit(lambda pp, xx: model_forward(pp, xx, num_classes))
    out = jax.block_until_ready(fwd(packed, x))
    ref = reference_forward(params, x)

    assert out.shape == (batch, num_classes)
    max_err = float(jnp.max(jnp.abs(out - ref)))
    # bf16 MXU inputs with f32 accumulation -> slightly looser tolerance than pure f32.
    assert jnp.allclose(out, ref, atol=3e-2, rtol=3e-2), max_err
    print("KERNEL_OK")
</pallas_src>

<mosaic_0001>
module attributes {stable_mosaic.version = 11 : i64} {
  func.func @kernel(%arg0: i32, %arg1: memref<27x8192xbf16, #tpu.memory_space<vmem>>, %arg2: memref<32x27xbf16, #tpu.memory_space<vmem>>, %arg3: memref<32x1xf32, #tpu.memory_space<vmem>>, %arg4: memref<32x2048xbf16, #tpu.memory_space<vmem>>) attributes {dimension_semantics = [#tpu.dimension_semantics<parallel>], iteration_bounds = array<i64: 1>, scalar_prefetch = 0 : i64, scratch_operands = 0 : i64, tpu.core_type = #tpu.core_type<tc>, window_params = [{transform_indices = @transform_0, window_bounds = array<i64: 27, 8192>}, {pipeline_mode = #tpu.pipeline_mode<synchronous>, transform_indices = @transform_1, window_bounds = array<i64: 32, 27>}, {pipeline_mode = #tpu.pipeline_mode<synchronous>, transform_indices = @transform_2, window_bounds = array<i64: 32, 1>}, {transform_indices = @transform_3, window_bounds = array<i64: 32, 2048>}]} {
    %c0 = arith.constant 0 : index
    %c0_0 = arith.constant 0 : index
    %0 = vector.load %arg2[%c0, %c0_0] : memref<32x27xbf16, #tpu.memory_space<vmem>>, vector<32x27xbf16>
    %c0_1 = arith.constant 0 : index
    %c0_2 = arith.constant 0 : index
    %1 = vector.load %arg1[%c0_1, %c0_2] : memref<27x8192xbf16, #tpu.memory_space<vmem>>, vector<27x8192xbf16>
    %cst = arith.constant dense<0.000000e+00> : vector<32x8192xf32>
    %2 = tpu.matmul %0, %1, %cst {dimension_numbers = #tpu.dot_dimension_numbers<[1], [0], [0], [1], [0, 0, 1, 1], [], []>} : vector<32x27xbf16>, vector<27x8192xbf16>, vector<32x8192xf32> -> vector<32x8192xf32>
    %c0_3 = arith.constant 0 : index
    %c0_4 = arith.constant 0 : index
    %3 = vector.load %arg3[%c0_3, %c0_4] : memref<32x1xf32, #tpu.memory_space<vmem>>, vector<32x1xf32>
    %4 = vector.shape_cast %3 : vector<32x1xf32> to vector<32x1xf32>
    %5 = vector.broadcast %4 : vector<32x1xf32> to vector<32x256xf32>
    %6 = vector.extract_strided_slice %2 {offsets = [0, 0], sizes = [32, 256], strides = [1, 1]} : vector<32x8192xf32> to vector<32x256xf32>
    %7 = vector.extract_strided_slice %2 {offsets = [0, 256], sizes = [32, 256], strides = [1, 1]} : vector<32x8192xf32> to vector<32x256xf32>
    %8 = vector.extract_strided_slice %2 {offsets = [0, 512], sizes = [32, 256], strides = [1, 1]} : vector<32x8192xf32> to vector<32x256xf32>
    %9 = vector.extract_strided_slice %2 {offsets = [0, 768], sizes = [32, 256], strides = [1, 1]} : vector<32x8192xf32> to vector<32x256xf32>
    %10 = arith.maximumf %6, %7 : vector<32x256xf32>
    %11 = arith.maximumf %8, %9 : vector<32x256xf32>
    %12 = arith.maximumf %10, %11 : vector<32x256xf32>
    %13 = arith.addf %12, %5 : vector<32x256xf32>
    %cst_5 = arith.constant 0.000000e+00 : f32
    %14 = vector.broadcast %cst_5 : f32 to vector<32x256xf32>
    %15 = arith.maximumf %13, %14 : vector<32x256xf32>
    %16 = arith.truncf %15 : vector<32x256xf32> to vector<32x256xbf16>
    %c0_6 = arith.constant 0 : index
    %c0_7 = arith.constant 0 : index
    %17 = vector.load %arg4[%c0_6, %c0_7] : memref<32x2048xbf16, #tpu.memory_space<vmem>>, vector<32x256xbf16>
    tpu.vector_store %arg4[%c0_6, %c0_7], %16 {strides = array<i32>} : memref<32x2048xbf16, #tpu.memory_space<vmem>>, vector<32x256xbf16>,
    %18 = vector.extract_strided_slice %2 {offsets = [0, 1024], sizes = [32, 256], strides = [1, 1]} : vector<32x8192xf32> to vector<32x256xf32>
    %19 = vector.extract_strided_slice %2 {offsets = [0, 1280], sizes = [32, 256], strides = [1, 1]} : vector<32x8192xf32> to vector<32x256xf32>
    %20 = vector.extract_strided_slice %2 {offsets = [0, 1536], sizes = [32, 256], strides = [1, 1]} : vector<32x8192xf32> to vector<32x256xf32>
    %21 = vector.extract_strided_slice %2 {offsets = [0, 1792], sizes = [32, 256], strides = [1, 1]} : vector<32x8192xf32> to vector<32x256xf32>
    %22 = arith.maximumf %18, %19 : vector<32x256xf32>
    %23 = arith.maximumf %20, %21 : vector<32x256xf32>
    %24 = arith.maximumf %22, %23 : vector<32x256xf32>
    %25 = arith.addf %24, %5 : vector<32x256xf32>
    %cst_8 = arith.constant 0.000000e+00 : f32
    %26 = vector.broadcast %cst_8 : f32 to vector<32x256xf32>
    %27 = arith.maximumf %25, %26 : vector<32x256xf32>
    %28 = arith.truncf %27 : vector<32x256xf32> to vector<32x256xbf16>
    %c0_9 = arith.constant 0 : index
    %c256 = arith.constant 256 : index
    %29 = vector.load %arg4[%c0_9, %c256] : memref<32x2048xbf16, #tpu.memory_space<vmem>>, vector<32x256xbf16>
    tpu.vector_store %arg4[%c0_9, %c256], %28 {strides = array<i32>} : memref<32x2048xbf16, #tpu.memory_space<vmem>>, vector<32x256xbf16>,
    %30 = vector.extract_strided_slice %2 {offsets = [0, 2048], sizes = [32, 256], strides = [1, 1]} : vector<32x8192xf32> to vector<32x256xf32>
    %31 = vector.extract_strided_slice %2 {offsets = [0, 2304], sizes = [32, 256], strides = [1, 1]} : vector<32x8192xf32> to vector<32x256xf32>
    %32 = vector.extract_strided_slice %2 {offsets = [0, 2560], sizes = [32, 256], strides = [1, 1]} : vector<32x8192xf32> to vector<32x256xf32>
    %33 = vector.extract_strided_slice %2 {offsets = [0, 2816], sizes = [32, 256], strides = [1, 1]} : vector<32x8192xf32> to vector<32x256xf32>
    %34 = arith.maximumf %30, %31 : vector<32x256xf32>
    %35 = arith.maximumf %32, %33 : vector<32x256xf32>
    %36 = arith.maximumf %34, %35 : vector<32x256xf32>
    %37 = arith.addf %36, %5 : vector<32x256xf32>
    %cst_10 = arith.constant 0.000000e+00 : f32
    %38 = vector.broadcast %cst_10 : f32 to vector<32x256xf32>
    %39 = arith.maximumf %37, %38 : vector<32x256xf32>
    %40 = arith.truncf %39 : vector<32x256xf32> to vector<32x256xbf16>
    %c0_11 = arith.constant 0 : index
    %c512 = arith.constant 512 : index
    %41 = vector.load %arg4[%c0_11, %c512] : memref<32x2048xbf16, #tpu.memory_space<vmem>>, vector<32x256xbf16>
    tpu.vector_store %arg4[%c0_11, %c512], %40 {strides = array<i32>} : memref<32x2048xbf16, #tpu.memory_space<vmem>>, vector<32x256xbf16>,
    %42 = vector.extract_strided_slice %2 {offsets = [0, 3072], sizes = [32, 256], strides = [1, 1]} : vector<32x8192xf32> to vector<32x256xf32>
    %43 = vector.extract_strided_slice %2 {offsets = [0, 3328], sizes = [32, 256], strides = [1, 1]} : vector<32x8192xf32> to vector<32x256xf32>
    %44 = vector.extract_strided_slice %2 {offsets = [0, 3584], sizes = [32, 256], strides = [1, 1]} : vector<32x8192xf32> to vector<32x256xf32>
    %45 = vector.extract_strided_slice %2 {offsets = [0, 3840], sizes = [32, 256], strides = [1, 1]} : vector<32x8192xf32> to vector<32x256xf32>
    %46 = arith.maximumf %42, %43 : vector<32x256xf32>
    %47 = arith.maximumf %44, %45 : vector<32x256xf32>
    %48 = arith.maximumf %46, %47 : vector<32x256xf32>
    %49 = arith.addf %48, %5 : vector<32x256xf32>
    %cst_12 = arith.constant 0.000000e+00 : f32
    %50 = vector.broadcast %cst_12 : f32 to vector<32x256xf32>
    %51 = arith.maximumf %49, %50 : vector<32x256xf32>
    %52 = arith.truncf %51 : vector<32x256xf32> to vector<32x256xbf16>
    %c0_13 = arith.constant 0 : index
    %c768 = arith.constant 768 : index
    %53 = vector.load %arg4[%c0_13, %c768] : memref<32x2048xbf16, #tpu.memory_space<vmem>>, vector<32x256xbf16>
    tpu.vector_store %arg4[%c0_13, %c768], %52 {strides = array<i32>} : memref<32x2048xbf16, #tpu.memory_space<vmem>>, vector<32x256xbf16>,
    %54 = vector.extract_strided_slice %2 {offsets = [0, 4096], sizes = [32, 256], strides = [1, 1]} : vector<32x8192xf32> to vector<32x256xf32>
    %55 = vector.extract_strided_slice %2 {offsets = [0, 4352], sizes = [32, 256], strides = [1, 1]} : vector<32x8192xf32> to vector<32x256xf32>
    %56 = vector.extract_strided_slice %2 {offsets = [0, 4608], sizes = [32, 256], strides = [1, 1]} : vector<32x8192xf32> to vector<32x256xf32>
    %57 = vector.extract_strided_slice %2 {offsets = [0, 4864], sizes = [32, 256], strides = [1, 1]} : vector<32x8192xf32> to vector<32x256xf32>
    %58 = arith.maximumf %54, %55 : vector<32x256xf32>
    %59 = arith.maximumf %56, %57 : vector<32x256xf32>
    %60 = arith.maximumf %58, %59 : vector<32x256xf32>
    %61 = arith.addf %60, %5 : vector<32x256xf32>
    %cst_14 = arith.constant 0.000000e+00 : f32
    %62 = vector.broadcast %cst_14 : f32 to vector<32x256xf32>
    %63 = arith.maximumf %61, %62 : vector<32x256xf32>
    %64 = arith.truncf %63 : vector<32x256xf32> to vector<32x256xbf16>
    %c0_15 = arith.constant 0 : index
    %c1024 = arith.constant 1024 : index
    %65 = vector.load %arg4[%c0_15, %c1024] : memref<32x2048xbf16, #tpu.memory_space<vmem>>, vector<32x256xbf16>
    tpu.vector_store %arg4[%c0_15, %c1024], %64 {strides = array<i32>} : memref<32x2048xbf16, #tpu.memory_space<vmem>>, vector<32x256xbf16>,
    %66 = vector.extract_strided_slice %2 {offsets = [0, 5120], sizes = [32, 256], strides = [1, 1]} : vector<32x8192xf32> to vector<32x256xf32>
    %67 = vector.extract_strided_slice %2 {offsets = [0, 5376], sizes = [32, 256], strides = [1, 1]} : vector<32x8192xf32> to vector<32x256xf32>
    %68 = vector.extract_strided_slice %2 {offsets = [0, 5632], sizes = [32, 256], strides = [1, 1]} : vector<32x8192xf32> to vector<32x256xf32>
    %69 = vector.extract_strided_slice %2 {offsets = [0, 5888], sizes = [32, 256], strides = [1, 1]} : vector<32x8192xf32> to vector<32x256xf32>
    %70 = arith.maximumf %66, %67 : vector<32x256xf32>
    %71 = arith.maximumf %68, %69 : vector<32x256xf32>
    %72 = arith.maximumf %70, %71 : vector<32x256xf32>
    %73 = arith.addf %72, %5 : vector<32x256xf32>
    %cst_16 = arith.constant 0.000000e+00 : f32
    %74 = vector.broadcast %cst_16 : f32 to vector<32x256xf32>
    %75 = arith.maximumf %73, %74 : vector<32x256xf32>
    %76 = arith.truncf %75 : vector<32x256xf32> to vector<32x256xbf16>
    %c0_17 = arith.constant 0 : index
    %c1280 = arith.constant 1280 : index
    %77 = vector.load %arg4[%c0_17, %c1280] : memref<32x2048xbf16, #tpu.memory_space<vmem>>, vector<32x256xbf16>
    tpu.vector_store %arg4[%c0_17, %c1280], %76 {strides = array<i32>} : memref<32x2048xbf16, #tpu.memory_space<vmem>>, vector<32x256xbf16>,
    %78 = vector.extract_strided_slice %2 {offsets = [0, 6144], sizes = [32, 256], strides = [1, 1]} : vector<32x8192xf32> to vector<32x256xf32>
    %79 = vector.extract_strided_slice %2 {offsets = [0, 6400], sizes = [32, 256], strides = [1, 1]} : vector<32x8192xf32> to vector<32x256xf32>
    %80 = vector.extract_strided_slice %2 {offsets = [0, 6656], sizes = [32, 256], strides = [1, 1]} : vector<32x8192xf32> to vector<32x256xf32>
    %81 = vector.extract_strided_slice %2 {offsets = [0, 6912], sizes = [32, 256], strides = [1, 1]} : vector<32x8192xf32> to vector<32x256xf32>
    %82 = arith.maximumf %78, %79 : vector<32x256xf32>
    %83 = arith.maximumf %80, %81 : vector<32x256xf32>
    %84 = arith.maximumf %82, %83 : vector<32x256xf32>
    %85 = arith.addf %84, %5 : vector<32x256xf32>
    %cst_18 = arith.constant 0.000000e+00 : f32
    %86 = vector.broadcast %cst_18 : f32 to vector<32x256xf32>
    %87 = arith.maximumf %85, %86 : vector<32x256xf32>
    %88 = arith.truncf %87 : vector<32x256xf32> to vector<32x256xbf16>
    %c0_19 = arith.constant 0 : index
    %c1536 = arith.constant 1536 : index
    %89 = vector.load %arg4[%c0_19, %c1536] : memref<32x2048xbf16, #tpu.memory_space<vmem>>, vector<32x256xbf16>
    tpu.vector_store %arg4[%c0_19, %c1536], %88 {strides = array<i32>} : memref<32x2048xbf16, #tpu.memory_space<vmem>>, vector<32x256xbf16>,
    %90 = vector.extract_strided_slice %2 {offsets = [0, 7168], sizes = [32, 256], strides = [1, 1]} : vector<32x8192xf32> to vector<32x256xf32>
    %91 = vector.extract_strided_slice %2 {offsets = [0, 7424], sizes = [32, 256], strides = [1, 1]} : vector<32x8192xf32> to vector<32x256xf32>
    %92 = vector.extract_strided_slice %2 {offsets = [0, 7680], sizes = [32, 256], strides = [1, 1]} : vector<32x8192xf32> to vector<32x256xf32>
    %93 = vector.extract_strided_slice %2 {offsets = [0, 7936], sizes = [32, 256], strides = [1, 1]} : vector<32x8192xf32> to vector<32x256xf32>
    %94 = arith.maximumf %90, %91 : vector<32x256xf32>
    %95 = arith.maximumf %92, %93 : vector<32x256xf32>
    %96 = arith.maximumf %94, %95 : vector<32x256xf32>
    %97 = arith.addf %96, %5 : vector<32x256xf32>
    %cst_20 = arith.constant 0.000000e+00 : f32
    %98 = vector.broadcast %cst_20 : f32 to vector<32x256xf32>
    %99 = arith.maximumf %97, %98 : vector<32x256xf32>
    %100 = arith.truncf %99 : vector<32x256xf32> to vector<32x256xbf16>
    %c0_21 = arith.constant 0 : index
    %c1792 = arith.constant 1792 : index
    %101 = vector.load %arg4[%c0_21, %c1792] : memref<32x2048xbf16, #tpu.memory_space<vmem>>, vector<32x256xbf16>
    tpu.vector_store %arg4[%c0_21, %c1792], %100 {strides = array<i32>} : memref<32x2048xbf16, #tpu.memory_space<vmem>>, vector<32x256xbf16>,
    return
  }
  func.func @transform_0(%arg0: i32) -> (i32, i32) {
    %c0_i32 = arith.constant 0 : i32
    %c0_i32_0 = arith.constant 0 : i32
    return %c0_i32, %arg0 : i32, i32
  }
  func.func @transform_1(%arg0: i32) -> (i32, i32) {
    %c0_i32 = arith.constant 0 : i32
    %c0_i32_0 = arith.constant 0 : i32
    %c0_i32_1 = arith.constant 0 : i32
    return %c0_i32, %c0_i32_0 : i32, i32
  }
  func.func @transform_2(%arg0: i32) -> (i32, i32) {
    %c0_i32 = arith.constant 0 : i32
    %c0_i32_0 = arith.constant 0 : i32
    %c0_i32_1 = arith.constant 0 : i32
    return %c0_i32, %c0_i32_0 : i32, i32
  }
  func.func @transform_3(%arg0: i32) -> (i32, i32) {
    %c0_i32 = arith.constant 0 : i32
    %c0_i32_0 = arith.constant 0 : i32
    return %c0_i32, %arg0 : i32, i32
  }
}

module attributes {stable_mosaic.version = 11 : i64} {
  func.func @kernel(%arg0: i32, %arg1: memref<1792x288xbf16, #tpu.memory_space<vmem>>, %arg2: memref<288x64xbf16, #tpu.memory_space<vmem>>, %arg3: memref<1x64xf32, #tpu.memory_space<vmem>>, %arg4: memref<448x64xbf16, #tpu.memory_space<vmem>>) attributes {dimension_semantics = [#tpu.dimension_semantics<parallel>], iteration_bounds = array<i64: 1>, scalar_prefetch = 0 : i64, scratch_operands = 0 : i64, tpu.core_type = #tpu.core_type<tc>, window_params = [{transform_indices = @transform_0, window_bounds = array<i64: 1792, 288>}, {pipeline_mode = #tpu.pipeline_mode<synchronous>, transform_indices = @transform_1, window_bounds = array<i64: 288, 64>}, {pipeline_mode = #tpu.pipeline_mode<synchronous>, transform_indices = @transform_2, window_bounds = array<i64: 1, 64>}, {transform_indices = @transform_3, window_bounds = array<i64: 448, 64>}]} {
    %c0 = arith.constant 0 : index
    %c0_0 = arith.constant 0 : index
    %0 = vector.load %arg1[%c0, %c0_0] : memref<1792x288xbf16, #tpu.memory_space<vmem>>, vector<1792x288xbf16>
    %c0_1 = arith.constant 0 : index
    %c0_2 = arith.constant 0 : index
    %1 = vector.load %arg2[%c0_1, %c0_2] : memref<288x64xbf16, #tpu.memory_space<vmem>>, vector<288x64xbf16>
    %cst = arith.constant dense<0.000000e+00> : vector<1792x64xf32>
    %2 = tpu.matmul %0, %1, %cst {dimension_numbers = #tpu.dot_dimension_numbers<[1], [0], [0], [1], [0, 0, 1, 1], [], []>} : vector<1792x288xbf16>, vector<288x64xbf16>, vector<1792x64xf32> -> vector<1792x64xf32>
    %c0_3 = arith.constant 0 : index
    %c0_4 = arith.constant 0 : index
    %3 = vector.load %arg3[%c0_3, %c0_4] : memref<1x64xf32, #tpu.memory_space<vmem>>, vector<1x64xf32>
    %4 = vector.shape_cast %3 : vector<1x64xf32> to vector<1x64xf32>
    %5 = vector.broadcast %4 : vector<1x64xf32> to vector<56x64xf32>
    %6 = vector.extract_strided_slice %2 {offsets = [0, 0], sizes = [56, 64], strides = [1, 1]} : vector<1792x64xf32> to vector<56x64xf32>
    %7 = vector.extract_strided_slice %2 {offsets = [56, 0], sizes = [56, 64], strides = [1, 1]} : vector<1792x64xf32> to vector<56x64xf32>
    %8 = vector.extract_strided_slice %2 {offsets = [112, 0], sizes = [56, 64], strides = [1, 1]} : vector<1792x64xf32> to vector<56x64xf32>
    %9 = vector.extract_strided_slice %2 {offsets = [168, 0], sizes = [56, 64], strides = [1, 1]} : vector<1792x64xf32> to vector<56x64xf32>
    %10 = arith.maximumf %6, %7 : vector<56x64xf32>
    %11 = arith.maximumf %8, %9 : vector<56x64xf32>
    %12 = arith.maximumf %10, %11 : vector<56x64xf32>
    %13 = arith.addf %12, %5 : vector<56x64xf32>
    %cst_5 = arith.constant 0.000000e+00 : f32
    %14 = vector.broadcast %cst_5 : f32 to vector<56x64xf32>
    %15 = arith.maximumf %13, %14 : vector<56x64xf32>
    %16 = arith.truncf %15 : vector<56x64xf32> to vector<56x64xbf16>
    %c0_6 = arith.constant 0 : index
    %c0_7 = arith.constant 0 : index
    %17 = vector.load %arg4[%c0_6, %c0_7] : memref<448x64xbf16, #tpu.memory_space<vmem>>, vector<56x64xbf16>
    tpu.vector_store %arg4[%c0_6, %c0_7], %16 {strides = array<i32>} : memref<448x64xbf16, #tpu.memory_space<vmem>>, vector<56x64xbf16>,
    %18 = vector.extract_strided_slice %2 {offsets = [224, 0], sizes = [56, 64], strides = [1, 1]} : vector<1792x64xf32> to vector<56x64xf32>
    %19 = vector.extract_strided_slice %2 {offsets = [280, 0], sizes = [56, 64], strides = [1, 1]} : vector<1792x64xf32> to vector<56x64xf32>
    %20 = vector.extract_strided_slice %2 {offsets = [336, 0], sizes = [56, 64], strides = [1, 1]} : vector<1792x64xf32> to vector<56x64xf32>
    %21 = vector.extract_strided_slice %2 {offsets = [392, 0], sizes = [56, 64], strides = [1, 1]} : vector<1792x64xf32> to vector<56x64xf32>
    %22 = arith.maximumf %18, %19 : vector<56x64xf32>
    %23 = arith.maximumf %20, %21 : vector<56x64xf32>
    %24 = arith.maximumf %22, %23 : vector<56x64xf32>
    %25 = arith.addf %24, %5 : vector<56x64xf32>
    %cst_8 = arith.constant 0.000000e+00 : f32
    %26 = vector.broadcast %cst_8 : f32 to vector<56x64xf32>
    %27 = arith.maximumf %25, %26 : vector<56x64xf32>
    %28 = arith.truncf %27 : vector<56x64xf32> to vector<56x64xbf16>
    %c56 = arith.constant 56 : index
    %c0_9 = arith.constant 0 : index
    %29 = vector.load %arg4[%c56, %c0_9] : memref<448x64xbf16, #tpu.memory_space<vmem>>, vector<56x64xbf16>
    tpu.vector_store %arg4[%c56, %c0_9], %28 {strides = array<i32>} : memref<448x64xbf16, #tpu.memory_space<vmem>>, vector<56x64xbf16>,
    %30 = vector.extract_strided_slice %2 {offsets = [448, 0], sizes = [56, 64], strides = [1, 1]} : vector<1792x64xf32> to vector<56x64xf32>
    %31 = vector.extract_strided_slice %2 {offsets = [504, 0], sizes = [56, 64], strides = [1, 1]} : vector<1792x64xf32> to vector<56x64xf32>
    %32 = vector.extract_strided_slice %2 {offsets = [560, 0], sizes = [56, 64], strides = [1, 1]} : vector<1792x64xf32> to vector<56x64xf32>
    %33 = vector.extract_strided_slice %2 {offsets = [616, 0], sizes = [56, 64], strides = [1, 1]} : vector<1792x64xf32> to vector<56x64xf32>
    %34 = arith.maximumf %30, %31 : vector<56x64xf32>
    %35 = arith.maximumf %32, %33 : vector<56x64xf32>
    %36 = arith.maximumf %34, %35 : vector<56x64xf32>
    %37 = arith.addf %36, %5 : vector<56x64xf32>
    %cst_10 = arith.constant 0.000000e+00 : f32
    %38 = vector.broadcast %cst_10 : f32 to vector<56x64xf32>
    %39 = arith.maximumf %37, %38 : vector<56x64xf32>
    %40 = arith.truncf %39 : vector<56x64xf32> to vector<56x64xbf16>
    %c112 = arith.constant 112 : index
    %c0_11 = arith.constant 0 : index
    %41 = vector.load %arg4[%c112, %c0_11] : memref<448x64xbf16, #tpu.memory_space<vmem>>, vector<56x64xbf16>
    tpu.vector_store %arg4[%c112, %c0_11], %40 {strides = array<i32>} : memref<448x64xbf16, #tpu.memory_space<vmem>>, vector<56x64xbf16>,
    %42 = vector.extract_strided_slice %2 {offsets = [672, 0], sizes = [56, 64], strides = [1, 1]} : vector<1792x64xf32> to vector<56x64xf32>
    %43 = vector.extract_strided_slice %2 {offsets = [728, 0], sizes = [56, 64], strides = [1, 1]} : vector<1792x64xf32> to vector<56x64xf32>
    %44 = vector.extract_strided_slice %2 {offsets = [784, 0], sizes = [56, 64], strides = [1, 1]} : vector<1792x64xf32> to vector<56x64xf32>
    %45 = vector.extract_strided_slice %2 {offsets = [840, 0], sizes = [56, 64], strides = [1, 1]} : vector<1792x64xf32> to vector<56x64xf32>
    %46 = arith.maximumf %42, %43 : vector<56x64xf32>
    %47 = arith.maximumf %44, %45 : vector<56x64xf32>
    %48 = arith.maximumf %46, %47 : vector<56x64xf32>
    %49 = arith.addf %48, %5 : vector<56x64xf32>
    %cst_12 = arith.constant 0.000000e+00 : f32
    %50 = vector.broadcast %cst_12 : f32 to vector<56x64xf32>
    %51 = arith.maximumf %49, %50 : vector<56x64xf32>
    %52 = arith.truncf %51 : vector<56x64xf32> to vector<56x64xbf16>
    %c168 = arith.constant 168 : index
    %c0_13 = arith.constant 0 : index
    %53 = vector.load %arg4[%c168, %c0_13] : memref<448x64xbf16, #tpu.memory_space<vmem>>, vector<56x64xbf16>
    tpu.vector_store %arg4[%c168, %c0_13], %52 {strides = array<i32>} : memref<448x64xbf16, #tpu.memory_space<vmem>>, vector<56x64xbf16>,
    %54 = vector.extract_strided_slice %2 {offsets = [896, 0], sizes = [56, 64], strides = [1, 1]} : vector<1792x64xf32> to vector<56x64xf32>
    %55 = vector.extract_strided_slice %2 {offsets = [952, 0], sizes = [56, 64], strides = [1, 1]} : vector<1792x64xf32> to vector<56x64xf32>
    %56 = vector.extract_strided_slice %2 {offsets = [1008, 0], sizes = [56, 64], strides = [1, 1]} : vector<1792x64xf32> to vector<56x64xf32>
    %57 = vector.extract_strided_slice %2 {offsets = [1064, 0], sizes = [56, 64], strides = [1, 1]} : vector<1792x64xf32> to vector<56x64xf32>
    %58 = arith.maximumf %54, %55 : vector<56x64xf32>
    %59 = arith.maximumf %56, %57 : vector<56x64xf32>
    %60 = arith.maximumf %58, %59 : vector<56x64xf32>
    %61 = arith.addf %60, %5 : vector<56x64xf32>
    %cst_14 = arith.constant 0.000000e+00 : f32
    %62 = vector.broadcast %cst_14 : f32 to vector<56x64xf32>
    %63 = arith.maximumf %61, %62 : vector<56x64xf32>
    %64 = arith.truncf %63 : vector<56x64xf32> to vector<56x64xbf16>
    %c224 = arith.constant 224 : index
    %c0_15 = arith.constant 0 : index
    %65 = vector.load %arg4[%c224, %c0_15] : memref<448x64xbf16, #tpu.memory_space<vmem>>, vector<56x64xbf16>
    tpu.vector_store %arg4[%c224, %c0_15], %64 {strides = array<i32>} : memref<448x64xbf16, #tpu.memory_space<vmem>>, vector<56x64xbf16>,
    %66 = vector.extract_strided_slice %2 {offsets = [1120, 0], sizes = [56, 64], strides = [1, 1]} : vector<1792x64xf32> to vector<56x64xf32>
    %67 = vector.extract_strided_slice %2 {offsets = [1176, 0], sizes = [56, 64], strides = [1, 1]} : vector<1792x64xf32> to vector<56x64xf32>
    %68 = vector.extract_strided_slice %2 {offsets = [1232, 0], sizes = [56, 64], strides = [1, 1]} : vector<1792x64xf32> to vector<56x64xf32>
    %69 = vector.extract_strided_slice %2 {offsets = [1288, 0], sizes = [56, 64], strides = [1, 1]} : vector<1792x64xf32> to vector<56x64xf32>
    %70 = arith.maximumf %66, %67 : vector<56x64xf32>
    %71 = arith.maximumf %68, %69 : vector<56x64xf32>
    %72 = arith.maximumf %70, %71 : vector<56x64xf32>
    %73 = arith.addf %72, %5 : vector<56x64xf32>
    %cst_16 = arith.constant 0.000000e+00 : f32
    %74 = vector.broadcast %cst_16 : f32 to vector<56x64xf32>
    %75 = arith.maximumf %73, %74 : vector<56x64xf32>
    %76 = arith.truncf %75 : vector<56x64xf32> to vector<56x64xbf16>
    %c280 = arith.constant 280 : index
    %c0_17 = arith.constant 0 : index
    %77 = vector.load %arg4[%c280, %c0_17] : memref<448x64xbf16, #tpu.memory_space<vmem>>, vector<56x64xbf16>
    tpu.vector_store %arg4[%c280, %c0_17], %76 {strides = array<i32>} : memref<448x64xbf16, #tpu.memory_space<vmem>>, vector<56x64xbf16>,
    %78 = vector.extract_strided_slice %2 {offsets = [1344, 0], sizes = [56, 64], strides = [1, 1]} : vector<1792x64xf32> to vector<56x64xf32>
    %79 = vector.extract_strided_slice %2 {offsets = [1400, 0], sizes = [56, 64], strides = [1, 1]} : vector<1792x64xf32> to vector<56x64xf32>
    %80 = vector.extract_strided_slice %2 {offsets = [1456, 0], sizes = [56, 64], strides = [1, 1]} : vector<1792x64xf32> to vector<56x64xf32>
    %81 = vector.extract_strided_slice %2 {offsets = [1512, 0], sizes = [56, 64], strides = [1, 1]} : vector<1792x64xf32> to vector<56x64xf32>
    %82 = arith.maximumf %78, %79 : vector<56x64xf32>
    %83 = arith.maximumf %80, %81 : vector<56x64xf32>
    %84 = arith.maximumf %82, %83 : vector<56x64xf32>
    %85 = arith.addf %84, %5 : vector<56x64xf32>
    %cst_18 = arith.constant 0.000000e+00 : f32
    %86 = vector.broadcast %cst_18 : f32 to vector<56x64xf32>
    %87 = arith.maximumf %85, %86 : vector<56x64xf32>
    %88 = arith.truncf %87 : vector<56x64xf32> to vector<56x64xbf16>
    %c336 = arith.constant 336 : index
    %c0_19 = arith.constant 0 : index
    %89 = vector.load %arg4[%c336, %c0_19] : memref<448x64xbf16, #tpu.memory_space<vmem>>, vector<56x64xbf16>
    tpu.vector_store %arg4[%c336, %c0_19], %88 {strides = array<i32>} : memref<448x64xbf16, #tpu.memory_space<vmem>>, vector<56x64xbf16>,
    %90 = vector.extract_strided_slice %2 {offsets = [1568, 0], sizes = [56, 64], strides = [1, 1]} : vector<1792x64xf32> to vector<56x64xf32>
    %91 = vector.extract_strided_slice %2 {offsets = [1624, 0], sizes = [56, 64], strides = [1, 1]} : vector<1792x64xf32> to vector<56x64xf32>
    %92 = vector.extract_strided_slice %2 {offsets = [1680, 0], sizes = [56, 64], strides = [1, 1]} : vector<1792x64xf32> to vector<56x64xf32>
    %93 = vector.extract_strided_slice %2 {offsets = [1736, 0], sizes = [56, 64], strides = [1, 1]} : vector<1792x64xf32> to vector<56x64xf32>
    %94 = arith.maximumf %90, %91 : vector<56x64xf32>
    %95 = arith.maximumf %92, %93 : vector<56x64xf32>
    %96 = arith.maximumf %94, %95 : vector<56x64xf32>
    %97 = arith.addf %96, %5 : vector<56x64xf32>
    %cst_20 = arith.constant 0.000000e+00 : f32
    %98 = vector.broadcast %cst_20 : f32 to vector<56x64xf32>
    %99 = arith.maximumf %97, %98 : vector<56x64xf32>
    %100 = arith.truncf %99 : vector<56x64xf32> to vector<56x64xbf16>
    %c392 = arith.constant 392 : index
    %c0_21 = arith.constant 0 : index
    %101 = vector.load %arg4[%c392, %c0_21] : memref<448x64xbf16, #tpu.memory_space<vmem>>, vector<56x64xbf16>
    tpu.vector_store %arg4[%c392, %c0_21], %100 {strides = array<i32>} : memref<448x64xbf16, #tpu.memory_space<vmem>>, vector<56x64xbf16>,
    return
  }
  func.func @transform_0(%arg0: i32) -> (i32, i32) {
    %c0_i32 = arith.constant 0 : i32
    %c0_i32_0 = arith.constant 0 : i32
    return %arg0, %c0_i32 : i32, i32
  }
  func.func @transform_1(%arg0: i32) -> (i32, i32) {
    %c0_i32 = arith.constant 0 : i32
    %c0_i32_0 = arith.constant 0 : i32
    %c0_i32_1 = arith.constant 0 : i32
    return %c0_i32, %c0_i32_0 : i32, i32
  }
  func.func @transform_2(%arg0: i32) -> (i32, i32) {
    %c0_i32 = arith.constant 0 : i32
    %c0_i32_0 = arith.constant 0 : i32
    %c0_i32_1 = arith.constant 0 : i32
    return %c0_i32, %c0_i32_0 : i32, i32
  }
  func.func @transform_3(%arg0: i32) -> (i32, i32) {
    %c0_i32 = arith.constant 0 : i32
    %c0_i32_0 = arith.constant 0 : i32
    return %arg0, %c0_i32 : i32, i32
  }
}

module attributes {stable_mosaic.version = 11 : i64} {
  func.func @kernel(%arg0: i32, %arg1: memref<8x3584xbf16, #tpu.memory_space<vmem>>, %arg2: memref<3584x128xbf16, #tpu.memory_space<vmem>>, %arg3: memref<1x128xf32, #tpu.memory_space<vmem>>, %arg4: memref<8x128xf32, #tpu.memory_space<vmem>>) attributes {dimension_semantics = [#tpu.dimension_semantics<parallel>], iteration_bounds = array<i64: 1>, scalar_prefetch = 0 : i64, scratch_operands = 0 : i64, tpu.core_type = #tpu.core_type<tc>, window_params = [{transform_indices = @transform_0, window_bounds = array<i64: 8, 3584>}, {pipeline_mode = #tpu.pipeline_mode<synchronous>, transform_indices = @transform_1, window_bounds = array<i64: 3584, 128>}, {pipeline_mode = #tpu.pipeline_mode<synchronous>, transform_indices = @transform_2, window_bounds = array<i64: 1, 128>}, {transform_indices = @transform_3, window_bounds = array<i64: 8, 128>}]} {
    %c0 = arith.constant 0 : index
    %c0_0 = arith.constant 0 : index
    %0 = vector.load %arg1[%c0, %c0_0] : memref<8x3584xbf16, #tpu.memory_space<vmem>>, vector<8x3584xbf16>
    %c0_1 = arith.constant 0 : index
    %c0_2 = arith.constant 0 : index
    %1 = vector.load %arg2[%c0_1, %c0_2] : memref<3584x128xbf16, #tpu.memory_space<vmem>>, vector<3584x128xbf16>
    %cst = arith.constant dense<0.000000e+00> : vector<8x128xf32>
    %2 = tpu.matmul %0, %1, %cst {dimension_numbers = #tpu.dot_dimension_numbers<[1], [0], [0], [1], [0, 0, 1, 1], [], []>} : vector<8x3584xbf16>, vector<3584x128xbf16>, vector<8x128xf32> -> vector<8x128xf32>
    %c0_3 = arith.constant 0 : index
    %c0_4 = arith.constant 0 : index
    %3 = vector.load %arg3[%c0_3, %c0_4] : memref<1x128xf32, #tpu.memory_space<vmem>>, vector<1x128xf32>
    %4 = vector.broadcast %3 : vector<1x128xf32> to vector<8x128xf32>
    %5 = arith.addf %2, %4 : vector<8x128xf32>
    %c0_5 = arith.constant 0 : index
    %c0_6 = arith.constant 0 : index
    %6 = vector.load %arg4[%c0_5, %c0_6] : memref<8x128xf32, #tpu.memory_space<vmem>>, vector<8x128xf32>
    tpu.vector_store %arg4[%c0_5, %c0_6], %5 {strides = array<i32>} : memref<8x128xf32, #tpu.memory_space<vmem>>, vector<8x128xf32>,
    return
  }
  func.func @transform_0(%arg0: i32) -> (i32, i32) {
    %c0_i32 = arith.constant 0 : i32
    %c0_i32_0 = arith.constant 0 : i32
    return %arg0, %c0_i32 : i32, i32
  }
  func.func @transform_1(%arg0: i32) -> (i32, i32) {
    %c0_i32 = arith.constant 0 : i32
    %c0_i32_0 = arith.constant 0 : i32
    %c0_i32_1 = arith.constant 0 : i32
    return %c0_i32, %c0_i32_0 : i32, i32
  }
  func.func @transform_2(%arg0: i32) -> (i32, i32) {
    %c0_i32 = arith.constant 0 : i32
    %c0_i32_0 = arith.constant 0 : i32
    %c0_i32_1 = arith.constant 0 : i32
    return %c0_i32, %c0_i32_0 : i32, i32
  }
  func.func @transform_3(%arg0: i32) -> (i32, i32) {
    %c0_i32 = arith.constant 0 : i32
    %c0_i32_0 = arith.constant 0 : i32
    return %arg0, %c0_i32 : i32, i32
  }
}

</mosaic_0001>

<bundles_post_ra>
// kernel: _lambda_.3
= control target key start
LH: loop header
LB: loop body
LE: loop exit
PB: predicated region body
PF: predicated region fallthrough
CT: control target
= control target key end

     0   :  { %vm740_vm0 = vcmask 1044480   ;;  %vm741_vm1 = vcmask 1045504   ;;  %v3350_v2 = vmov 65535   ;;  %vm733_vm2 = vcmask 220160   ;;  %s4924_s0 = inlined_call_operand.vmem [shape: bf16[27,8192], index: 0, kind: input, shape index: {}]   ;;  %s4925_s1 = inlined_call_operand.vmem [shape: bf16[32,27], index: 1, kind: input, shape index: {}]   ;;  %s4926_s2 = inlined_call_operand.vmem [shape: f32[32,1], index: 2, kind: input, shape index: {}]   ;;  %s4927_s3 = inlined_call_operand.vmem [shape: bf16[32,2048], index: 3, kind: output, shape index: {}]  }
   0x1   :  { %v2830_v0 = vld [vmem:[%s4924_s0 + $0x200] sm:$0xf]  ;;  %v742_v3 = vsel %vm740_vm0, 4294967295, %v3350_v2  ;;  %v3278_v6 = vld [vmem:[%s4924_s0 + $0x204] sm:$0xf] }
   0x2   :  { %v3310_v1 = vld [vmem:[%s4924_s0 + $0x2fc] sm:$0x30]  ;;  %v3378_v5 = vsel %vm741_vm1, %v742_v3, 0  ;;  %v2832_v7 = vld [vmem:[%s4924_s0 + $0x300] sm:$0x30] }
   0x3   :  { %v2831_v4 = vor.u32 %v3310_v1, %v2830_v0  ;;  %v2835_v8 = vor.u32 %v3278_v6, %v2832_v7  ;;  %v2838_v9 = vld [vmem:[%s4924_s0 + $0x208] sm:$0xf]  ;;  %v3279_v11 = vld [vmem:[%s4924_s0 + $0x20c] sm:$0xf]  ;;  %v2574_v15 = vld [vmem:[%s4924_s0] sm:$0xf] }
   0x4   :  { %v3311_v10 = vld [vmem:[%s4924_s0 + $0x304] sm:$0x30]  ;;  %v2840_v14 = vld [vmem:[%s4924_s0 + $0x308] sm:$0x30]  ;;  %v3246_v16 = vld [vmem:[%s4924_s0 + $0xfc] sm:$0xf0] }
   0x5   :  { %v745_v12 = vand.u32 %v2831_v4, %v3378_v5  ;;  %v2839_v13 = vor.u32 %v3311_v10, %v2838_v9  ;;  %v748_v17 = vand.u32 %v2835_v8, %v3378_v5  ;;  %v2843_v18 = vor.u32 %v3279_v11, %v2840_v14  ;;  %v3214_v19 = vld [vmem:[%s4924_s0 + $0x4] sm:$0xf]  ;;  %v2582_v21 = vld [vmem:[%s4924_s0 + $0x8] sm:$0xf]  ;;  %v3215_v25 = vld [vmem:[%s4924_s0 + $0xc] sm:$0xf] }
   0x6   :  { %v2576_v20 = vld [vmem:[%s4924_s0 + $0x100] sm:$0xf0]  ;;  %v2575_v23 = vor.u32 %v3246_v16, %v2574_v15  ;;  %v3247_v24 = vld [vmem:[%s4924_s0 + $0x104] sm:$0xf0]  ;;  %v2584_v26 = vld [vmem:[%s4924_s0 + $0x108] sm:$0xf0] }
   0x7   :  { %942 = vmatpush.bf16.msra.mxu0 %v745_v12  ;;  %v751_v22 = vand.u32 %v2839_v13, %v3378_v5  ;;  %961 = vmatpush.bf16.msra.mxu1 %v748_v17  ;;  %v754_v27 = vand.u32 %v2843_v18, %v3378_v5  ;;  %v2579_v28 = vor.u32 %v3214_v19, %v2576_v20  ;;  %v2854_v29 = vld [vmem:[%s4924_s0 + $0x218] sm:$0xf]  ;;  %v3281_v31 = vld [vmem:[%s4924_s0 + $0x21c] sm:$0xf]  ;;  %v2846_v35 = vld [vmem:[%s4924_s0 + $0x210] sm:$0xf] }
   0x8   :  { %v3313_v30 = vld [vmem:[%s4924_s0 + $0x314] sm:$0x30]  ;;  %v2583_v32 = vor.u32 %v3247_v24, %v2582_v21  ;;  %v2856_v34 = vld [vmem:[%s4924_s0 + $0x318] sm:$0x30]  ;;  %v3312_v36 = vld [vmem:[%s4924_s0 + $0x30c] sm:$0x30]  ;;  %v2587_v37 = vor.u32 %v3215_v25, %v2584_v26 }
   0x9   :  { %980 = vmatpush.bf16.msra.mxu2 %v751_v22  ;;  %v2855_v33 = vor.u32 %v3313_v30, %v2854_v29  ;;  %999 = vmatpush.bf16.msra.mxu3 %v754_v27  ;;  %v3447_v38 = vld [vmem:[%s4925_s1] sm:$0xff]  ;;  %v2859_v39 = vor.u32 %v3281_v31, %v2856_v34  ;;  %v2847_v40 = vor.u32 %v3312_v36, %v2846_v35  ;;  %v3280_v41 = vld [vmem:[%s4924_s0 + $0x214] sm:$0xf]  ;;  %v2598_v46 = vld [vmem:[%s4924_s0 + $0x18] sm:$0xf]  ;;  %v3351_v22 = vmov 0  }
   0xa   :  { %v2848_v42 = vld [vmem:[%s4924_s0 + $0x310] sm:$0x30]  ;;  %v3249_v47 = vld [vmem:[%s4924_s0 + $0x114] sm:$0xf0]  ;;  %v3217_v49 = vld [vmem:[%s4924_s0 + $0x1c] sm:$0xf]  ;;  %3344 = vset.pattern.permute.xlu0 %v3351_v22  ;;  %3345 = vset.pattern.permute.xlu1 %v3351_v22 }
   0xb   :  { %943 = vmatpush.bf16.msra.mxu0 %v2575_v23  ;;  %v763_v43 = vand.u32 %v2855_v33, %v3378_v5  ;;  %v2851_v44 = vor.u32 %v3280_v41, %v2848_v42  ;;  %962 = vmatpush.bf16.msra.mxu1 %v2579_v28  ;;  %v766_v45 = vand.u32 %v2859_v39, %v3378_v5  ;;  %v2600_v50 = vld [vmem:[%s4924_s0 + $0x118] sm:$0xf0]  ;;  %v2590_v52 = vld [vmem:[%s4924_s0 + $0x10] sm:$0xf]  ;;  %v3216_v55 = vld [vmem:[%s4924_s0 + $0x14] sm:$0xf] }
   0xc   :  { %v757_v48 = vand.u32 %v2847_v40, %v3378_v5  ;;  %v3248_v53 = vld [vmem:[%s4924_s0 + $0x10c] sm:$0xf0]  ;;  %v2599_v54 = vor.u32 %v3249_v47, %v2598_v46  ;;  %v2592_v56 = vld [vmem:[%s4924_s0 + $0x110] sm:$0xf0]  ;;  %v2603_v57 = vor.u32 %v3217_v49, %v2600_v50  ;;  %v2870_v59 = vld [vmem:[%s4924_s0 + $0x228] sm:$0xf] }
   0xd   :  { %981 = vmatpush.bf16.msra.mxu2 %v2583_v32  ;;  %1000 = vmatpush.bf16.msra.mxu3 %v2587_v37  ;;  %v760_v51 = vand.u32 %v2851_v44, %v3378_v5  ;;  %v2591_v58 = vor.u32 %v3248_v53, %v2590_v52  ;;  %v3315_v60 = vld [vmem:[%s4924_s0 + $0x324] sm:$0x30]  ;;  %v3283_v61 = vld [vmem:[%s4924_s0 + $0x22c] sm:$0xf]  ;;  %v2595_v62 = vor.u32 %v3216_v55, %v2592_v56  ;;  %v2862_v1 = vld [vmem:[%s4924_s0 + $0x220] sm:$0xf] }
   0xe   :  { %3084 = vmatmul.msk.bf16.vlgmr.msra.gmra.mxu0 %vm733_vm2, %v3447_v38  ;;  %3086 = vmatmul.msk.bf16.vlgmr.msra.gmra.mxu1 %vm733_vm2, %v3447_v38  ;;  %v2871_v63 = vor.u32 %v3315_v60, %v2870_v59  ;;  %v2872_v0 = vld [vmem:[%s4924_s0 + $0x328] sm:$0x30]  ;;  %v3314_v2 = vld [vmem:[%s4924_s0 + $0x31c] sm:$0x30]  ;;  %v3282_v6 = vld [vmem:[%s4924_s0 + $0x224] sm:$0xf] }
   0xf   :  { %1018 = vmatpush.bf16.msrb.mxu0 %v757_v48  ;;  %1037 = vmatpush.bf16.msrb.mxu1 %v760_v51  ;;  %v2875_v3 = vor.u32 %v3283_v61, %v2872_v0  ;;  %v2863_v4 = vor.u32 %v3314_v2, %v2862_v1  ;;  %v2864_v7 = vld [vmem:[%s4924_s0 + $0x320] sm:$0x30]  ;;  %v3522_v13 = vld [vmem:[%s4925_s1 + $0x8] sm:$0xff]  ;;  %v2606_v20 = vld [vmem:[%s4924_s0 + $0x20] sm:$0xf] }
  0x10   :  { %3088 = vmatmul.msk.bf16.vlgmr.msra.gmra.mxu2 %vm733_vm2, %v3447_v38  ;;  %3090 = vmatmul.msk.bf16.vlgmr.msra.gmra.mxu3 %vm733_vm2, %v3447_v38  ;;  %v775_v8 = vand.u32 %v2871_v63, %v3378_v5  ;;  %v2867_v9 = vor.u32 %v3282_v6, %v2864_v7  ;;  %v2614_v14 = vld [vmem:[%s4924_s0 + $0x28] sm:$0xf]  ;;  %v3219_v16 = vld [vmem:[%s4924_s0 + $0x2c] sm:$0xf]  ;;  %v2152_v19 = vld [vmem:[%s4926_s2] sm:$0xff] }
  0x11   :  { %1056 = vmatpush.bf16.msrb.mxu2 %v763_v43  ;;  %1075 = vmatpush.bf16.msrb.mxu3 %v766_v45  ;;  %v778_v10 = vand.u32 %v2875_v3, %v3378_v5  ;;  %v769_v11 = vand.u32 %v2863_v4, %v3378_v5  ;;  %v3251_v15 = vld [vmem:[%s4924_s0 + $0x124] sm:$0xf0]  ;;  %v2616_v18 = vld [vmem:[%s4924_s0 + $0x128] sm:$0xf0]  ;;  %v3250_v23 = vld [vmem:[%s4924_s0 + $0x11c] sm:$0xf0] }
  0x12   :  { %v772_v12 = vand.u32 %v2867_v9, %v3378_v5  ;;  %v2615_v17 = vor.u32 %v3251_v15, %v2614_v14  ;;  %v2619_v21 = vor.u32 %v3219_v16, %v2616_v18  ;;  %v3218_v24 = vld [vmem:[%s4924_s0 + $0x24] sm:$0xf]  ;;  %2158 = vperm.xlu0 %3344, %v2152_v19   ;;  %v2607_v26 = vor.u32 %v3250_v23, %v2606_v20  ;;  %v2153_v28 = vld [vmem:[%s4926_s2 + $0x8] sm:$0xff]  ;;  %v2886_v29 = vld [vmem:[%s4924_s0 + $0x238] sm:$0xf] }
  0x13   :  { %1019 = vmatpush.bf16.msrb.mxu0 %v2591_v58  ;;  %1038 = vmatpush.bf16.msrb.mxu1 %v2595_v62  ;;  %v2608_v25 = vld [vmem:[%s4924_s0 + $0x120] sm:$0xf0]  ;;  %v3317_v30 = vld [vmem:[%s4924_s0 + $0x334] sm:$0x30]  ;;  %v3285_v31 = vld [vmem:[%s4924_s0 + $0x23c] sm:$0xf] }
  0x14   :  { %v2611_v27 = vor.u32 %v3218_v24, %v2608_v25  ;;  %v2887_v32 = vor.u32 %v3317_v30, %v2886_v29  ;;  %v2888_v33 = vld [vmem:[%s4924_s0 + $0x338] sm:$0x30]  ;;  %v2154_v34 = vld [vmem:[%s4926_s2 + $0x10] sm:$0xff]  ;;  %v2630_v48 = vld [vmem:[%s4924_s0 + $0x38] sm:$0xf] }
  0x15   :  { %1057 = vmatpush.bf16.msrb.mxu2 %v2599_v54  ;;  %1076 = vmatpush.bf16.msrb.mxu3 %v2603_v57  ;;  %v2878_v35 = vld [vmem:[%s4924_s0 + $0x230] sm:$0xf]  ;;  %v2891_v36 = vor.u32 %v3285_v31, %v2888_v33  ;;  %v3284_v39 = vld [vmem:[%s4924_s0 + $0x234] sm:$0xf]  ;;  %v2155_v47 = vld [vmem:[%s4926_s2 + $0x18] sm:$0xff] }
  0x16   :  { %2168 = vperm.xlu1 %3345, %v2154_v34   ;;  %v3316_v37 = vld [vmem:[%s4924_s0 + $0x32c] sm:$0x30]  ;;  %v2880_v40 = vld [vmem:[%s4924_s0 + $0x330] sm:$0x30]  ;;  %v787_v41 = vand.u32 %v2887_v32, %v3378_v5  ;;  %v3253_v49 = vld [vmem:[%s4924_s0 + $0x134] sm:$0xf0] }
  0x17   :  { %1094 = vmatpush.bf16.msra.mxu0 %v769_v11  ;;  %1113 = vmatpush.bf16.msra.mxu1 %v772_v12  ;;  %v2879_v42 = vor.u32 %v3316_v37, %v2878_v35  ;;  %v2883_v43 = vor.u32 %v3284_v39, %v2880_v40  ;;  %v790_v44 = vand.u32 %v2891_v36, %v3378_v5  ;;  %v3221_v50 = vld [vmem:[%s4924_s0 + $0x3c] sm:$0xf]  ;;  %v2622_v53 = vld [vmem:[%s4924_s0 + $0x30] sm:$0xf]  ;;  %v3220_v57 = vld [vmem:[%s4924_s0 + $0x34] sm:$0xf] }
  0x18   :  { %v2631_v51 = vor.u32 %v3253_v49, %v2630_v48  ;;  %v2632_v52 = vld [vmem:[%s4924_s0 + $0x138] sm:$0xf0]  ;;  %v3252_v54 = vld [vmem:[%s4924_s0 + $0x12c] sm:$0xf0]  ;;  %v2624_v58 = vld [vmem:[%s4924_s0 + $0x130] sm:$0xf0] }
  0x19   :  { %1132 = vmatpush.bf16.msra.mxu2 %v775_v8  ;;  %1151 = vmatpush.bf16.msra.mxu3 %v778_v10  ;;  %v781_v45 = vand.u32 %v2879_v42, %v3378_v5  ;;  %v784_v46 = vand.u32 %v2883_v43, %v3378_v5  ;;  %v2635_v55 = vor.u32 %v3221_v50, %v2632_v52  ;;  %v2902_v60 = vld [vmem:[%s4924_s0 + $0x248] sm:$0xf]  ;;  %v3287_v62 = vld [vmem:[%s4924_s0 + $0x24c] sm:$0xf]  ;;  %v2894_v1 = vld [vmem:[%s4924_s0 + $0x240] sm:$0xf] }
  0x1a   :  { %2163 = vperm.xlu0 %3344, %v2153_v28   ;;  %v2623_v56 = vor.u32 %v3252_v54, %v2622_v53  ;;  %v2627_v59 = vor.u32 %v3220_v57, %v2624_v58  ;;  %v3319_v61 = vld [vmem:[%s4924_s0 + $0x344] sm:$0x30]  ;;  %v2904_v0 = vld [vmem:[%s4924_s0 + $0x348] sm:$0x30]  ;;  %v3318_v2 = vld [vmem:[%s4924_s0 + $0x33c] sm:$0x30] }
  0x1b   :  { %1095 = vmatpush.bf16.msra.mxu0 %v2607_v26  ;;  %1114 = vmatpush.bf16.msra.mxu1 %v2611_v27  ;;  %v2903_v63 = vor.u32 %v3319_v61, %v2902_v60  ;;  %v2907_v3 = vor.u32 %v3287_v62, %v2904_v0  ;;  %v2895_v4 = vor.u32 %v3318_v2, %v2894_v1  ;;  %v3286_v6 = vld [vmem:[%s4924_s0 + $0x244] sm:$0xf]  ;;  %v2646_v14 = vld [vmem:[%s4924_s0 + $0x48] sm:$0xf]  ;;  %v3223_v16 = vld [vmem:[%s4924_s0 + $0x4c] sm:$0xf] }
  0x1c   :  { %v2896_v7 = vld [vmem:[%s4924_s0 + $0x340] sm:$0x30]  ;;  %v3255_v15 = vld [vmem:[%s4924_s0 + $0x144] sm:$0xf0]  ;;  %v2648_v18 = vld [vmem:[%s4924_s0 + $0x148] sm:$0xf0] }
  0x1d   :  { %1133 = vmatpush.bf16.msra.mxu2 %v2615_v17  ;;  %1152 = vmatpush.bf16.msra.mxu3 %v2619_v21  ;;  %v799_v8 = vand.u32 %v2903_v63, %v3378_v5  ;;  %v2899_v9 = vor.u32 %v3286_v6, %v2896_v7  ;;  %v802_v10 = vand.u32 %v2907_v3, %v3378_v5  ;;  %v2638_v19 = vld [vmem:[%s4924_s0 + $0x40] sm:$0xf]  ;;  %v3222_v23 = vld [vmem:[%s4924_s0 + $0x44] sm:$0xf]  ;;  %v2918_v26 = vld [vmem:[%s4924_s0 + $0x258] sm:$0xf] }
  0x1e   :  { %3085 = vmatmul.msk.bf16.gmra.mxu0 %vm733_vm2, %v3522_v13  ;;  %3087 = vmatmul.msk.bf16.gmra.mxu1 %vm733_vm2, %v3522_v13  ;;  %v793_v11 = vand.u32 %v2895_v4, %v3378_v5  ;;  %v2647_v17 = vor.u32 %v3255_v15, %v2646_v14  ;;  %v3254_v20 = vld [vmem:[%s4924_s0 + $0x13c] sm:$0xf0]  ;;  %v2651_v21 = vor.u32 %v3223_v16, %v2648_v18  ;;  %v2640_v24 = vld [vmem:[%s4924_s0 + $0x140] sm:$0xf0]  ;;  %v3321_v27 = vld [vmem:[%s4924_s0 + $0x354] sm:$0x30] }
  0x1f   :  { %2173 = vperm.xlu1 %3345, %v2155_v47   ;;  %v796_v12 = vand.u32 %v2899_v9, %v3378_v5  ;;  %v2639_v22 = vor.u32 %v3254_v20, %v2638_v19  ;;  %v2643_v25 = vor.u32 %v3222_v23, %v2640_v24  ;;  %v3289_v28 = vld [vmem:[%s4924_s0 + $0x25c] sm:$0xf]  ;;  %v2919_v29 = vor.u32 %v3321_v27, %v2918_v26  ;;  %v2910_v34 = vld [vmem:[%s4924_s0 + $0x250] sm:$0xf]  ;;  %v3288_v36 = vld [vmem:[%s4924_s0 + $0x254] sm:$0xf] }
  0x20   :  { %3089 = vmatmul.msk.bf16.gmra.mxu2 %vm733_vm2, %v3522_v13  ;;  %3091 = vmatmul.msk.bf16.gmra.mxu3 %vm733_vm2, %v3522_v13  ;;  %v2920_v30 = vld [vmem:[%s4924_s0 + $0x358] sm:$0x30]  ;;  %v3320_v35 = vld [vmem:[%s4924_s0 + $0x34c] sm:$0x30]  ;;  %v2912_v39 = vld [vmem:[%s4924_s0 + $0x350] sm:$0x30] }
  0x21   :  { %v2923_v31 = vor.u32 %v3289_v28, %v2920_v30  ;;  %v811_v32 = vand.u32 %v2919_v29, %v3378_v5  ;;  %v2911_v37 = vor.u32 %v3320_v35, %v2910_v34  ;;  %v2915_v40 = vor.u32 %v3288_v36, %v2912_v39  ;;  %v2662_v43 = vld [vmem:[%s4924_s0 + $0x58] sm:$0xf]  ;;  %v2664_v47 = vld [vmem:[%s4924_s0 + $0x158] sm:$0xf0]  ;;  %v2654_v49 = vld [vmem:[%s4924_s0 + $0x50] sm:$0xf] }
  0x22   :  { %v3256_v50 = vld [vmem:[%s4924_s0 + $0x14c] sm:$0xf0]  ;;  %v2656_v53 = vld [vmem:[%s4924_s0 + $0x150] sm:$0xf0]  ;;  %v2934_v57 = vld [vmem:[%s4924_s0 + $0x268] sm:$0xf] }
  0x23   :  { %v814_v33 = vand.u32 %v2923_v31, %v3378_v5  ;;  %v808_v42 = vand.u32 %v2915_v40, %v3378_v5  ;;  %v2655_v52 = vor.u32 %v3256_v50, %v2654_v49  ;;  %v3323_v58 = vld [vmem:[%s4924_s0 + $0x364] sm:$0x30]  ;;  %v2936_v61 = vld [vmem:[%s4924_s0 + $0x368] sm:$0x30]  ;;  %v2926_v6 = vld [vmem:[%s4924_s0 + $0x260] sm:$0xf] }
  0x24   :  { %v2935_v60 = vor.u32 %v3323_v58, %v2934_v57  ;;  %v3322_v7 = vld [vmem:[%s4924_s0 + $0x35c] sm:$0x30]  ;;  %v2678_v23 = vld [vmem:[%s4924_s0 + $0x68] sm:$0xf]  ;;  %v2680_v27 = vld [vmem:[%s4924_s0 + $0x168] sm:$0xf0] }
  0x25   :  { %v2927_v9 = vor.u32 %v3322_v7, %v2926_v6  ;;  %v3259_v24 = vld [vmem:[%s4924_s0 + $0x164] sm:$0xf0]  ;;  %v2670_v28 = vld [vmem:[%s4924_s0 + $0x60] sm:$0xf]  ;;  %v2942_v57 = vld [vmem:[%s4924_s0 + $0x270] sm:$0xf] }
  0x26   :  { %v823_v3 = vand.u32 %v2935_v60, %v3378_v5  ;;  %v2679_v26 = vor.u32 %v3259_v24, %v2678_v23  ;;  %v3258_v29 = vld [vmem:[%s4924_s0 + $0x15c] sm:$0xf0]  ;;  %v3324_v58 = vld [vmem:[%s4924_s0 + $0x36c] sm:$0x30] }
  0x27   :  { %v2671_v31 = vor.u32 %v3258_v29, %v2670_v28 }
  0x2e   :  { %3092 = vmatmul.msk.bf16.vlgmr.msrb.gmra.mxu0 %vm733_vm2, %v3447_v38  ;;  %3094 = vmatmul.msk.bf16.vlgmr.msrb.gmra.mxu1 %vm733_vm2, %v3447_v38 }
  0x2f   :  { %1170 = vmatpush.bf16.msrb.mxu0 %v781_v45  ;;  %1189 = vmatpush.bf16.msrb.mxu1 %v784_v46  ;;  %v3225_v45 = vld [vmem:[%s4924_s0 + $0x5c] sm:$0xf] }
  0x30   :  { %3096 = vmatmul.msk.bf16.vlgmr.msrb.gmra.mxu2 %vm733_vm2, %v3447_v38  ;;  %3098 = vmatmul.msk.bf16.vlgmr.msrb.gmra.mxu3 %vm733_vm2, %v3447_v38  ;;  %v2667_v48 = vor.u32 %v3225_v45, %v2664_v47 }
  0x31   :  { %1208 = vmatpush.bf16.msrb.mxu2 %v787_v41  ;;  %1227 = vmatpush.bf16.msrb.mxu3 %v790_v44  ;;  %v805_v41 = vand.u32 %v2911_v37, %v3378_v5  ;;  %v3257_v44 = vld [vmem:[%s4924_s0 + $0x154] sm:$0xf0] }
  0x32   :  { %v2663_v46 = vor.u32 %v3257_v44, %v2662_v43 }
  0x33   :  { %1171 = vmatpush.bf16.msrb.mxu0 %v2623_v56  ;;  %1190 = vmatpush.bf16.msrb.mxu1 %v2627_v59  ;;  %v3291_v59 = vld [vmem:[%s4924_s0 + $0x26c] sm:$0xf] }
  0x34   :  { %v2939_v0 = vor.u32 %v3291_v59, %v2936_v61  ;;  %v2943_v61 = vor.u32 %v3324_v58, %v2942_v57 }
  0x35   :  { %1209 = vmatpush.bf16.msrb.mxu2 %v2631_v51  ;;  %1228 = vmatpush.bf16.msrb.mxu3 %v2635_v55  ;;  %v3224_v51 = vld [vmem:[%s4924_s0 + $0x54] sm:$0xf] }
  0x36   :  { %v2659_v54 = vor.u32 %v3224_v51, %v2656_v53  ;;  %v826_v4 = vand.u32 %v2939_v0, %v3378_v5  ;;  %v2950_v51 = vld [vmem:[%s4924_s0 + $0x278] sm:$0xf]  ;;  %v3293_v53 = vld [vmem:[%s4924_s0 + $0x27c] sm:$0xf]  ;;  %v2944_v0 = vld [vmem:[%s4924_s0 + $0x370] sm:$0x30] }
  0x3e   :  { %3093 = vmatmul.msk.bf16.gmra.mxu0 %vm733_vm2, %v3522_v13  ;;  %3095 = vmatmul.msk.bf16.gmra.mxu1 %vm733_vm2, %v3522_v13 }
  0x40   :  { %3097 = vmatmul.msk.bf16.gmra.mxu2 %vm733_vm2, %v3522_v13  ;;  %3099 = vmatmul.msk.bf16.gmra.mxu3 %vm733_vm2, %v3522_v13 }
  0x4e   :  { %3100 = vmatmul.msk.bf16.vlgmr.msra.gmra.mxu0 %vm733_vm2, %v3447_v38  ;;  %3102 = vmatmul.msk.bf16.vlgmr.msra.gmra.mxu1 %vm733_vm2, %v3447_v38 }
  0x4f   :  { %1246 = vmatpush.bf16.msra.mxu0 %v793_v11  ;;  %1265 = vmatpush.bf16.msra.mxu1 %v796_v12  ;;  %v817_v12 = vand.u32 %v2927_v9, %v3378_v5 }
  0x50   :  { %3104 = vmatmul.msk.bf16.vlgmr.msra.gmra.mxu2 %vm733_vm2, %v3447_v38  ;;  %3106 = vmatmul.msk.bf16.vlgmr.msra.gmra.mxu3 %vm733_vm2, %v3447_v38 }
  0x51   :  { %1284 = vmatpush.bf16.msra.mxu2 %v799_v8  ;;  %1303 = vmatpush.bf16.msra.mxu3 %v802_v10  ;;  %v3290_v8 = vld [vmem:[%s4924_s0 + $0x264] sm:$0xf] }
  0x52   :  { %v2928_v10 = vld [vmem:[%s4924_s0 + $0x360] sm:$0x30] }
  0x53   :  { %1247 = vmatpush.bf16.msra.mxu0 %v2639_v22  ;;  %1266 = vmatpush.bf16.msra.mxu1 %v2643_v25  ;;  %v2931_v11 = vor.u32 %v3290_v8, %v2928_v10  ;;  %v3227_v25 = vld [vmem:[%s4924_s0 + $0x6c] sm:$0xf]  ;;  %v829_v10 = vand.u32 %v2943_v61, %v3378_v5 }
  0x54   :  { %v2683_v30 = vor.u32 %v3227_v25, %v2680_v27 }
  0x55   :  { %1285 = vmatpush.bf16.msra.mxu2 %v2647_v17  ;;  %1304 = vmatpush.bf16.msra.mxu3 %v2651_v21  ;;  %v820_v16 = vand.u32 %v2931_v11, %v3378_v5 }
  0x5e   :  { %3101 = vmatmul.msk.bf16.gmra.mxu0 %vm733_vm2, %v3522_v13  ;;  %3103 = vmatmul.msk.bf16.gmra.mxu1 %vm733_vm2, %v3522_v13 }
  0x60   :  { %3105 = vmatmul.msk.bf16.gmra.mxu2 %vm733_vm2, %v3522_v13  ;;  %3107 = vmatmul.msk.bf16.gmra.mxu3 %vm733_vm2, %v3522_v13 }
  0x6e   :  { %3108 = vmatmul.msk.bf16.vlgmr.msrb.gmra.mxu0 %vm733_vm2, %v3447_v38  ;;  %3110 = vmatmul.msk.bf16.vlgmr.msrb.gmra.mxu1 %vm733_vm2, %v3447_v38 }
  0x6f   :  { %1322 = vmatpush.bf16.msrb.mxu0 %v805_v41  ;;  %1341 = vmatpush.bf16.msrb.mxu1 %v808_v42 }
  0x70   :  { %3112 = vmatmul.msk.bf16.vlgmr.msrb.gmra.mxu2 %vm733_vm2, %v3447_v38  ;;  %3114 = vmatmul.msk.bf16.vlgmr.msrb.gmra.mxu3 %vm733_vm2, %v3447_v38 }
  0x71   :  { %1360 = vmatpush.bf16.msrb.mxu2 %v811_v32  ;;  %1379 = vmatpush.bf16.msrb.mxu3 %v814_v33  ;;  %v3226_v32 = vld [vmem:[%s4924_s0 + $0x64] sm:$0xf] }
  0x72   :  { %v2672_v33 = vld [vmem:[%s4924_s0 + $0x160] sm:$0xf0] }
  0x73   :  { %1323 = vmatpush.bf16.msrb.mxu0 %v2655_v52  ;;  %1342 = vmatpush.bf16.msrb.mxu1 %v2659_v54  ;;  %v2675_v34 = vor.u32 %v3226_v32, %v2672_v33  ;;  %v3325_v52 = vld [vmem:[%s4924_s0 + $0x374] sm:$0x30] }
  0x75   :  { %1361 = vmatpush.bf16.msrb.mxu2 %v2663_v46  ;;  %1380 = vmatpush.bf16.msrb.mxu3 %v2667_v48 }
  0x7e   :  { %3109 = vmatmul.msk.bf16.gmra.mxu0 %vm733_vm2, %v3522_v13  ;;  %3111 = vmatmul.msk.bf16.gmra.mxu1 %vm733_vm2, %v3522_v13 }
  0x80   :  { %3113 = vmatmul.msk.bf16.gmra.mxu2 %vm733_vm2, %v3522_v13  ;;  %3115 = vmatmul.msk.bf16.gmra.mxu3 %vm733_vm2, %v3522_v13 }
  0x84   :  { %v3880_v40 = vpop.permute.xlu0 %2158 }
  0x88   :  { %v3944_v33 = vpop.permute.xlu1 %2168 }
  0x8b   :  { %v3772_v55 = vpop.f32.mrf.mxu0  ;;  %v3774_v56 = vpop.f32.mrf.mxu1 }
  0x8c   :  { %v3920_v28 = vpop.permute.xlu0 %2163 }
  0x8e   :  { %3116 = vmatmul.msk.bf16.vlgmr.msra.gmra.mxu0 %vm733_vm2, %v3447_v38  ;;  %3118 = vmatmul.msk.bf16.vlgmr.msra.gmra.mxu1 %vm733_vm2, %v3447_v38 }
  0x8f   :  { %1398 = vmatpush.bf16.msra.mxu0 %v817_v12  ;;  %1417 = vmatpush.bf16.msra.mxu1 %v820_v16 }
  0x90   :  { %3120 = vmatmul.msk.bf16.vlgmr.msra.gmra.mxu2 %vm733_vm2, %v3447_v38  ;;  %3122 = vmatmul.msk.bf16.vlgmr.msra.gmra.mxu3 %vm733_vm2, %v3447_v38 }
  0x91   :  { %1436 = vmatpush.bf16.msra.mxu2 %v823_v3  ;;  %1455 = vmatpush.bf16.msra.mxu3 %v826_v4 }
  0x93   :  { %v3796_v62 = vpop.f32.mrf.mxu2  ;;  %v3798_v63 = vpop.f32.mrf.mxu0  ;;  %1399 = vmatpush.bf16.msra.mxu0 %v2671_v31  ;;  %1418 = vmatpush.bf16.msra.mxu1 %v2675_v34  ;;  %v3229_v31 = vld [vmem:[%s4924_s0 + $0x7c] sm:$0xf] }
  0x94   :  { %v3800_v1 = vpop.f32.mrf.mxu3  ;;  %v3802_v2 = vpop.f32.mrf.mxu1  ;;  %v2176_v43 = vmax.f32 %v3772_v55, %v3796_v62  ;;  %v2951_v55 = vor.u32 %v3325_v52, %v2950_v51  ;;  %v3292_v62 = vld [vmem:[%s4924_s0 + $0x274] sm:$0xf]  ;;  %v2686_v51 = vld [vmem:[%s4924_s0 + $0x70] sm:$0xf] }
  0x95   :  { %1437 = vmatpush.bf16.msra.mxu2 %v2679_v26  ;;  %1456 = vmatpush.bf16.msra.mxu3 %v2683_v30  ;;  %v2177_v47 = vmax.f32 %v3774_v56, %v3800_v1  ;;  %v2952_v56 = vld [vmem:[%s4924_s0 + $0x378] sm:$0x30]  ;;  %v2947_v4 = vor.u32 %v3292_v62, %v2944_v0  ;;  %v3261_v30 = vld [vmem:[%s4924_s0 + $0x174] sm:$0xf0]  ;;  %v3260_v52 = vld [vmem:[%s4924_s0 + $0x16c] sm:$0xf0] }
  0x96   :  { %v2955_v60 = vor.u32 %v3293_v53, %v2952_v56  ;;  %v835_v3 = vand.u32 %v2951_v55, %v3378_v5  ;;  %v2687_v53 = vor.u32 %v3260_v52, %v2686_v51  ;;  %v3263_v51 = vld [vmem:[%s4924_s0 + $0x184] sm:$0xf0]  ;;  %v3231_v52 = vld [vmem:[%s4924_s0 + $0x8c] sm:$0xf] }
  0x97   :  { %v832_v24 = vand.u32 %v2947_v4, %v3378_v5 }
  0x98   :  { %v838_v9 = vand.u32 %v2955_v60, %v3378_v5 }
  0x9b   :  { %v3819_v14 = vpop.f32.mrf.mxu2  ;;  %v3821_v15 = vpop.f32.mrf.mxu0 }
  0x9c   :  { %v3824_v17 = vpop.f32.mrf.mxu3  ;;  %v3826_v18 = vpop.f32.mrf.mxu1  ;;  %v2178_v11 = vmax.f32 %v3798_v63, %v3819_v14 }
  0x9d   :  { %v2179_v25 = vmax.f32 %v3802_v2, %v3824_v17  ;;  %v2694_v17 = vld [vmem:[%s4924_s0 + $0x78] sm:$0xf] }
  0x9e   :  { %3117 = vmatmul.msk.bf16.gmra.mxu0 %vm733_vm2, %v3522_v13  ;;  %3119 = vmatmul.msk.bf16.gmra.mxu1 %vm733_vm2, %v3522_v13  ;;  %v2695_v34 = vor.u32 %v3261_v30, %v2694_v17 }
  0xa0   :  { %3121 = vmatmul.msk.bf16.gmra.mxu2 %vm733_vm2, %v3522_v13  ;;  %3123 = vmatmul.msk.bf16.gmra.mxu3 %vm733_vm2, %v3522_v13 }
  0xa3   :  { %v3836_v19 = vpop.f32.mrf.mxu2  ;;  %v3838_v20 = vpop.f32.mrf.mxu0 }
  0xa4   :  { %v3840_v21 = vpop.f32.mrf.mxu3  ;;  %v3842_v22 = vpop.f32.mrf.mxu1 }
  0xab   :  { %v3868_v35 = vpop.f32.mrf.mxu2  ;;  %v1021_v36 = vpop.f32.mrf.mxu0 }
  0xac   :  { %v3870_v37 = vpop.f32.mrf.mxu3  ;;  %v1040_v39 = vpop.f32.mrf.mxu1  ;;  %v2182_v61 = vmax.f32 %v3838_v20, %v3868_v35 }
  0xae   :  { %3124 = vmatmul.msk.bf16.vlgmr.msrb.gmra.mxu0 %vm733_vm2, %v3447_v38  ;;  %3126 = vmatmul.msk.bf16.vlgmr.msrb.gmra.mxu1 %vm733_vm2, %v3447_v38 }
  0xaf   :  { %1474 = vmatpush.bf16.msrb.mxu0 %v829_v10  ;;  %1493 = vmatpush.bf16.msrb.mxu1 %v832_v24  ;;  %v3295_v10 = vld [vmem:[%s4924_s0 + $0x28c] sm:$0xf] }
  0xb0   :  { %3128 = vmatmul.msk.bf16.vlgmr.msrb.gmra.mxu2 %vm733_vm2, %v3447_v38  ;;  %3130 = vmatmul.msk.bf16.vlgmr.msrb.gmra.mxu3 %vm733_vm2, %v3447_v38 }
  0xb1   :  { %1512 = vmatpush.bf16.msrb.mxu2 %v835_v3  ;;  %1531 = vmatpush.bf16.msrb.mxu3 %v838_v9  ;;  %v2183_v3 = vmax.f32 %v3842_v22, %v3870_v37  ;;  %v2966_v37 = vld [vmem:[%s4924_s0 + $0x288] sm:$0xf] }
  0xb2   :  { %v3327_v9 = vld [vmem:[%s4924_s0 + $0x384] sm:$0x30] }
  0xb3   :  { %v1059_v41 = vpop.f32.mrf.mxu2  ;;  %v1023_v42 = vpop.f32.mrf.mxu0  ;;  %1475 = vmatpush.bf16.msrb.mxu0 %v2687_v53 }
  0xb4   :  { %v2184_v44 = vmax.f32 %v1021_v36, %v1059_v41  ;;  %v1078_v45 = vpop.f32.mrf.mxu3  ;;  %v1042_v46 = vpop.f32.mrf.mxu1  ;;  %v2696_v36 = vld [vmem:[%s4924_s0 + $0x178] sm:$0xf0] }
  0xb5   :  { %v2185_v48 = vmax.f32 %v1040_v39, %v1078_v45  ;;  %1513 = vmatpush.bf16.msrb.mxu2 %v2695_v34  ;;  %v2958_v34 = vld [vmem:[%s4924_s0 + $0x280] sm:$0xf] }
  0xb6   :  { %v2192_v49 = vmax.f32 %v2176_v43, %v2184_v44  ;;  %v2699_v43 = vor.u32 %v3229_v31, %v2696_v36  ;;  %v2180_v44 = vmax.f32 %v3821_v15, %v3836_v19  ;;  %v3228_v15 = vld [vmem:[%s4924_s0 + $0x74] sm:$0xf]  ;;  %v3326_v36 = vld [vmem:[%s4924_s0 + $0x37c] sm:$0x30] }
  0xb7   :  { %v2193_v50 = vmax.f32 %v2177_v47, %v2185_v48  ;;  %v2181_v48 = vmax.f32 %v3826_v18, %v3840_v21  ;;  %v2688_v18 = vld [vmem:[%s4924_s0 + $0x170] sm:$0xf0] }
  0xb8   :  { %v2200_v54 = vadd.f32 %v2192_v49, %v3880_v40  ;;  %1532 = vmatpush.bf16.msrb.mxu3 %v2699_v43 }
  0xb9   :  { %v2201_v59 = vadd.f32 %v2193_v50, %v3880_v40 }
  0xba   :  { %v2208_v1 = vmax.f32 %v2200_v54, 0.0  ;;  %v2691_v54 = vor.u32 %v3228_v15, %v2688_v18 }
  0xbb   :  { %v2209_v6 = vmax.f32 %v2201_v59, 0.0  ;;  %v1061_v7 = vpop.f32.mrf.mxu2  ;;  %v1026_v8 = vpop.f32.mrf.mxu0 }
  0xbc   :  { %v2186_v12 = vmax.f32 %v1023_v42, %v1061_v7  ;;  %v1080_v16 = vpop.f32.mrf.mxu3  ;;  %v1045_v23 = vpop.f32.mrf.mxu1  ;;  %1494 = vmatpush.bf16.msrb.mxu1 %v2691_v54  ;;  %v2702_v54 = vld [vmem:[%s4924_s0 + $0x80] sm:$0xf] }
  0xbd   :  { %v2216_v26 = vpack.c.bf16 %v2209_v6, %v2208_v1  ;;  %v2187_v27 = vmax.f32 %v1042_v46, %v1080_v16  ;;  %v3978_v7 = vpop.permute.xlu1 %2173  ;;  %v2968_v16 = vld [vmem:[%s4924_s0 + $0x388] sm:$0x30] }
  0xbe   :  { %v2194_v29 = vmax.f32 %v2178_v11, %v2186_v12  ;;  %3125 = vmatmul.msk.bf16.gmra.mxu0 %vm733_vm2, %v3522_v13  ;;  %3127 = vmatmul.msk.bf16.gmra.mxu1 %vm733_vm2, %v3522_v13  ;;  %v2967_v12 = vor.u32 %v3327_v9, %v2966_v37 }
  0xbf   :  { %2220 = vst [vmem:[%s4927_s3] sm:$0xff] %v2216_v26  ;;  %v2195_v63 = vmax.f32 %v2179_v25, %v2187_v27  ;;  %v2971_v26 = vor.u32 %v3295_v10, %v2968_v16  ;;  %v2982_v10 = vld [vmem:[%s4924_s0 + $0x298] sm:$0xf]  ;;  %v2974_v16 = vld [vmem:[%s4924_s0 + $0x290] sm:$0xf] }
  0xc0   :  { %v2202_v2 = vadd.f32 %v2194_v29, %v3920_v28  ;;  %3129 = vmatmul.msk.bf16.gmra.mxu2 %vm733_vm2, %v3522_v13  ;;  %3131 = vmatmul.msk.bf16.gmra.mxu3 %vm733_vm2, %v3522_v13 }
  0xc1   :  { %v2203_v14 = vadd.f32 %v2195_v63, %v3920_v28  ;;  %v847_v63 = vand.u32 %v2967_v12, %v3378_v5 }
  0xc2   :  { %v2210_v32 = vmax.f32 %v2202_v2, 0.0 }
  0xc3   :  { %v2211_v39 = vmax.f32 %v2203_v14, 0.0  ;;  %v1064_v41 = vpop.f32.mrf.mxu2  ;;  %v1028_v42 = vpop.f32.mrf.mxu0  ;;  %v850_v14 = vand.u32 %v2971_v26, %v3378_v5 }
  0xc4   :  { %v2188_v45 = vmax.f32 %v1026_v8, %v1064_v41  ;;  %v1083_v46 = vpop.f32.mrf.mxu3  ;;  %v1047_v47 = vpop.f32.mrf.mxu1  ;;  %v2959_v41 = vor.u32 %v3326_v36, %v2958_v34 }
  0xc5   :  { %v2217_v49 = vpack.c.bf16 %v2211_v39, %v2210_v32  ;;  %v2189_v50 = vmax.f32 %v1045_v23, %v1083_v46  ;;  %v3294_v39 = vld [vmem:[%s4924_s0 + $0x284] sm:$0xf] }
  0xc6   :  { %v2196_v19 = vmax.f32 %v2180_v44, %v2188_v45  ;;  %v841_v44 = vand.u32 %v2959_v41, %v3378_v5 }
  0xc7   :  { %2221 = vst [vmem:[%s4927_s3 + $0x40] sm:$0xff] %v2217_v49  ;;  %v2197_v21 = vmax.f32 %v2181_v48, %v2189_v50  ;;  %v2710_v50 = vld [vmem:[%s4924_s0 + $0x88] sm:$0xf] }
  0xc8   :  { %v2204_v55 = vadd.f32 %v2196_v19, %v3944_v33  ;;  %v2711_v15 = vor.u32 %v3263_v51, %v2710_v50  ;;  %v2712_v19 = vld [vmem:[%s4924_s0 + $0x188] sm:$0xf0] }
  0xc9   :  { %v2205_v56 = vadd.f32 %v2197_v21, %v3944_v33  ;;  %v2715_v53 = vor.u32 %v3231_v52, %v2712_v19 }
  0xca   :  { %v2212_v57 = vmax.f32 %v2204_v55, 0.0  ;;  %v3262_v55 = vld [vmem:[%s4924_s0 + $0x17c] sm:$0xf0] }
  0xcb   :  { %v2213_v58 = vmax.f32 %v2205_v56, 0.0  ;;  %v1066_v59 = vpop.f32.mrf.mxu2  ;;  %v3970_v60 = vpop.f32.mrf.mxu0  ;;  %v3230_v56 = vld [vmem:[%s4924_s0 + $0x84] sm:$0xf] }
  0xcc   :  { %v2190_v62 = vmax.f32 %v1028_v42, %v1066_v59  ;;  %v1085_v0 = vpop.f32.mrf.mxu3  ;;  %v3974_v1 = vpop.f32.mrf.mxu1  ;;  %v2960_v42 = vld [vmem:[%s4924_s0 + $0x380] sm:$0x30]  ;;  %v2703_v59 = vor.u32 %v3262_v55, %v2702_v54  ;;  %v3265_v55 = vld [vmem:[%s4924_s0 + $0x194] sm:$0xf0] }
  0xcd   :  { %v2218_v4 = vpack.c.bf16 %v2213_v58, %v2212_v57  ;;  %v2191_v6 = vmax.f32 %v1047_v47, %v1085_v0  ;;  %v2963_v43 = vor.u32 %v3294_v39, %v2960_v42 }
  0xce   :  { %v2198_v8 = vmax.f32 %v2182_v61, %v2190_v62  ;;  %3132 = vmatmul.msk.bf16.vlgmr.msra.gmra.mxu0 %vm733_vm2, %v3447_v38  ;;  %3134 = vmatmul.msk.bf16.vlgmr.msra.gmra.mxu1 %vm733_vm2, %v3447_v38  ;;  %v2704_v61 = vld [vmem:[%s4924_s0 + $0x180] sm:$0xf0] }
  0xcf   :  { %2222 = vst [vmem:[%s4927_s3 + $0x80] sm:$0xff] %v2218_v4  ;;  %v2199_v20 = vmax.f32 %v2183_v3, %v2191_v6  ;;  %v844_v47 = vand.u32 %v2963_v43, %v3378_v5  ;;  %1550 = vmatpush.bf16.msra.mxu0 %v841_v44  ;;  %v2707_v62 = vor.u32 %v3230_v56, %v2704_v61  ;;  %v3233_v56 = vld [vmem:[%s4924_s0 + $0x9c] sm:$0xf] }
  0xd0   :  { %v2206_v35 = vadd.f32 %v2198_v8, %v3978_v7  ;;  %3136 = vmatmul.msk.bf16.vlgmr.msra.gmra.mxu2 %vm733_vm2, %v3447_v38  ;;  %3138 = vmatmul.msk.bf16.vlgmr.msra.gmra.mxu3 %vm733_vm2, %v3447_v38  ;;  %v2728_v61 = vld [vmem:[%s4924_s0 + $0x198] sm:$0xf0] }
  0xd1   :  { %v2207_v22 = vadd.f32 %v2199_v20, %v3978_v7  ;;  %1588 = vmatpush.bf16.msra.mxu2 %v847_v63  ;;  %1607 = vmatpush.bf16.msra.mxu3 %v850_v14  ;;  %v3296_v63 = vld [vmem:[%s4924_s0 + $0x294] sm:$0xf] }
  0xd2   :  { %v2214_v11 = vmax.f32 %v2206_v35, 0.0  ;;  %1569 = vmatpush.bf16.msra.mxu1 %v844_v47 }
  0xd3   :  { %v2215_v23 = vmax.f32 %v2207_v22, 0.0  ;;  %v4005_v24 = vpop.f32.mrf.mxu2  ;;  %v4007_v25 = vpop.f32.mrf.mxu0  ;;  %1551 = vmatpush.bf16.msra.mxu0 %v2703_v59 }
  0xd4   :  { %v4009_v27 = vpop.f32.mrf.mxu3  ;;  %v4011_v29 = vpop.f32.mrf.mxu1  ;;  %v2224_v4 = vmax.f32 %v3970_v60, %v4005_v24  ;;  %v3297_v60 = vld [vmem:[%s4924_s0 + $0x29c] sm:$0xf] }
  0xd5   :  { %v2219_v2 = vpack.c.bf16 %v2215_v23, %v2214_v11  ;;  %1589 = vmatpush.bf16.msra.mxu2 %v2711_v15  ;;  %1608 = vmatpush.bf16.msra.mxu3 %v2715_v53  ;;  %v2225_v35 = vmax.f32 %v3974_v1, %v4009_v27  ;;  %v2984_v1 = vld [vmem:[%s4924_s0 + $0x398] sm:$0x30]  ;;  %v3328_v23 = vld [vmem:[%s4924_s0 + $0x38c] sm:$0x30] }
  0xd6   :  { %1570 = vmatpush.bf16.msra.mxu1 %v2707_v62  ;;  %v2987_v26 = vor.u32 %v3297_v60, %v2984_v1  ;;  %v2975_v27 = vor.u32 %v3328_v23, %v2974_v16 }
  0xd7   :  { %2223 = vst [vmem:[%s4927_s3 + $0xc0] sm:$0xff] %v2219_v2  ;;  %v2976_v2 = vld [vmem:[%s4924_s0 + $0x390] sm:$0x30] }
  0xd8   :  { %v2979_v36 = vor.u32 %v3296_v63, %v2976_v2  ;;  %v862_v43 = vand.u32 %v2987_v26, %v3378_v5  ;;  %v853_v44 = vand.u32 %v2975_v27, %v3378_v5 }
  0xda   :  { %v856_v15 = vand.u32 %v2979_v36, %v3378_v5 }
  0xdb   :  { %v4018_v17 = vpop.f32.mrf.mxu2  ;;  %v4020_v30 = vpop.f32.mrf.mxu0 }
  0xdc   :  { %v4022_v31 = vpop.f32.mrf.mxu3  ;;  %v4024_v32 = vpop.f32.mrf.mxu1  ;;  %v2226_v47 = vmax.f32 %v4007_v25, %v4018_v17 }
  0xdd   :  { %v2227_v19 = vmax.f32 %v4011_v29, %v4022_v31  ;;  %v2726_v31 = vld [vmem:[%s4924_s0 + $0x98] sm:$0xf] }
  0xde   :  { %3133 = vmatmul.msk.bf16.gmra.mxu0 %vm733_vm2, %v3522_v13  ;;  %3135 = vmatmul.msk.bf16.gmra.mxu1 %vm733_vm2, %v3522_v13  ;;  %v2727_v59 = vor.u32 %v3265_v55, %v2726_v31 }
  0xe0   :  { %3137 = vmatmul.msk.bf16.gmra.mxu2 %vm733_vm2, %v3522_v13  ;;  %3139 = vmatmul.msk.bf16.gmra.mxu3 %vm733_vm2, %v3522_v13 }
  0xe3   :  { %v4047_v45 = vpop.f32.mrf.mxu2  ;;  %v4049_v46 = vpop.f32.mrf.mxu0 }
  0xe4   :  { %v4052_v48 = vpop.f32.mrf.mxu3  ;;  %v4054_v49 = vpop.f32.mrf.mxu1 }
  0xeb   :  { %v4068_v18 = vpop.f32.mrf.mxu2  ;;  %v1173_v21 = vpop.f32.mrf.mxu0 }
  0xec   :  { %v4079_v57 = vpop.f32.mrf.mxu3  ;;  %v1192_v58 = vpop.f32.mrf.mxu1  ;;  %v2230_v26 = vmax.f32 %v4049_v46, %v4068_v18 }
  0xee   :  { %3140 = vmatmul.msk.bf16.vlgmr.msrb.gmra.mxu0 %vm733_vm2, %v3447_v38  ;;  %3142 = vmatmul.msk.bf16.vlgmr.msrb.gmra.mxu1 %vm733_vm2, %v3447_v38 }
  0xef   :  { %1626 = vmatpush.bf16.msrb.mxu0 %v853_v44  ;;  %1645 = vmatpush.bf16.msrb.mxu1 %v856_v15 }
  0xf0   :  { %3144 = vmatmul.msk.bf16.vlgmr.msrb.gmra.mxu2 %vm733_vm2, %v3447_v38  ;;  %3146 = vmatmul.msk.bf16.vlgmr.msrb.gmra.mxu3 %vm733_vm2, %v3447_v38  ;;  %v3329_v38 = vld [vmem:[%s4924_s0 + $0x394] sm:$0x30] }
  0xf1   :  { %v2983_v12 = vor.u32 %v3329_v38, %v2982_v10  ;;  %1683 = vmatpush.bf16.msrb.mxu3 %v862_v43  ;;  %v3264_v10 = vld [vmem:[%s4924_s0 + $0x18c] sm:$0xf0]  ;;  %v3299_v43 = vld [vmem:[%s4924_s0 + $0x2ac] sm:$0xf] }
  0xf3   :  { %v1211_v0 = vpop.f32.mrf.mxu2  ;;  %v1175_v3 = vpop.f32.mrf.mxu0  ;;  %v859_v34 = vand.u32 %v2983_v12, %v3378_v5 }
  0xf4   :  { %v2232_v6 = vmax.f32 %v1173_v21, %v1211_v0  ;;  %v1230_v8 = vpop.f32.mrf.mxu3  ;;  %v1194_v20 = vpop.f32.mrf.mxu1 }
  0xf5   :  { %v2233_v22 = vmax.f32 %v1192_v58, %v1230_v8  ;;  %1664 = vmatpush.bf16.msrb.mxu2 %v859_v34 }
  0xf6   :  { %v2240_v37 = vmax.f32 %v2224_v4, %v2232_v6  ;;  %v2228_v4 = vmax.f32 %v4020_v30, %v4047_v45  ;;  %v3232_v30 = vld [vmem:[%s4924_s0 + $0x94] sm:$0xf] }
  0xf7   :  { %v2241_v9 = vmax.f32 %v2225_v35, %v2233_v22  ;;  %v2229_v35 = vmax.f32 %v4024_v32, %v4052_v48  ;;  %v2720_v32 = vld [vmem:[%s4924_s0 + $0x190] sm:$0xf0] }
  0xf8   :  { %v2248_v11 = vadd.f32 %v2240_v37, %v3880_v40  ;;  %v2723_v60 = vor.u32 %v3232_v30, %v2720_v32 }
  0xf9   :  { %v2249_v24 = vadd.f32 %v2241_v9, %v3880_v40  ;;  %1665 = vmatpush.bf16.msrb.mxu2 %v2727_v59  ;;  %v2718_v9 = vld [vmem:[%s4924_s0 + $0x90] sm:$0xf]  ;;  %v2990_v59 = vld [vmem:[%s4924_s0 + $0x2a0] sm:$0xf] }
  0xfa   :  { %v2256_v14 = vmax.f32 %v2248_v11, 0.0  ;;  %v2719_v38 = vor.u32 %v3264_v10, %v2718_v9  ;;  %1646 = vmatpush.bf16.msrb.mxu1 %v2723_v60  ;;  %v3267_v9 = vld [vmem:[%s4924_s0 + $0x1a4] sm:$0xf0]  ;;  %v3235_v10 = vld [vmem:[%s4924_s0 + $0xac] sm:$0xf] }
  0xfb   :  { %v2257_v39 = vmax.f32 %v2249_v24, 0.0  ;;  %v1213_v41 = vpop.f32.mrf.mxu2  ;;  %v1178_v42 = vpop.f32.mrf.mxu0  ;;  %v2734_v60 = vld [vmem:[%s4924_s0 + $0xa0] sm:$0xf] }
  0xfc   :  { %v2234_v50 = vmax.f32 %v1175_v3, %v1213_v41  ;;  %v1232_v51 = vpop.f32.mrf.mxu3  ;;  %v1197_v52 = vpop.f32.mrf.mxu1  ;;  %v2731_v3 = vor.u32 %v3233_v56, %v2728_v61  ;;  %1627 = vmatpush.bf16.msrb.mxu0 %v2719_v38  ;;  %v4187_v41 = vld [vmem:[%s4925_s1] sm:$0xff] }
  0xfd   :  { %v2264_v53 = vpack.c.bf16 %v2257_v39, %v2256_v14  ;;  %v2235_v21 = vmax.f32 %v1194_v20, %v1232_v51  ;;  %v2231_v14 = vmax.f32 %v4054_v49, %v4079_v57  ;;  %v2998_v57 = vld [vmem:[%s4924_s0 + $0x2a8] sm:$0xf]  ;;  %v3330_v61 = vld [vmem:[%s4924_s0 + $0x39c] sm:$0x30] }
  0xfe   :  { %v2242_v54 = vmax.f32 %v2226_v47, %v2234_v50  ;;  %3141 = vmatmul.msk.bf16.gmra.mxu0 %vm733_vm2, %v3522_v13  ;;  %3143 = vmatmul.msk.bf16.gmra.mxu1 %vm733_vm2, %v3522_v13  ;;  %v3000_v50 = vld [vmem:[%s4924_s0 + $0x3a8] sm:$0x30] }
  0xff   :  { %2268 = vst [vmem:[%s4927_s3 + $0x8] sm:$0xff] %v2264_v53  ;;  %v2243_v25 = vmax.f32 %v2227_v19, %v2235_v21  ;;  %1684 = vmatpush.bf16.msrb.mxu3 %v2731_v3  ;;  %v3003_v19 = vor.u32 %v3299_v43, %v3000_v50  ;;  %v3014_v43 = vld [vmem:[%s4924_s0 + $0x2b8] sm:$0xf] }
 0x100   :  { %v2250_v17 = vadd.f32 %v2242_v54, %v3920_v28  ;;  %3145 = vmatmul.msk.bf16.gmra.mxu2 %vm733_vm2, %v3522_v13  ;;  %3147 = vmatmul.msk.bf16.gmra.mxu3 %vm733_vm2, %v3522_v13 }
 0x101   :  { %v2251_v29 = vadd.f32 %v2243_v25, %v3920_v28 }
 0x102   :  { %v2258_v58 = vmax.f32 %v2250_v17, 0.0  ;;  %v874_v17 = vand.u32 %v3003_v19, %v3378_v5 }
 0x103   :  { %v2259_v62 = vmax.f32 %v2251_v29, 0.0  ;;  %v1216_v13 = vpop.f32.mrf.mxu2  ;;  %v1180_v0 = vpop.f32.mrf.mxu0 }
 0x104   :  { %v2236_v6 = vmax.f32 %v1178_v42, %v1216_v13  ;;  %v1235_v8 = vpop.f32.mrf.mxu3  ;;  %v1199_v20 = vpop.f32.mrf.mxu1  ;;  %v3331_v42 = vld [vmem:[%s4924_s0 + $0x3a4] sm:$0x30]  ;;  %v2991_v13 = vor.u32 %v3330_v61, %v2990_v59 }
 0x105   :  { %v2265_v22 = vpack.c.bf16 %v2259_v62, %v2258_v58  ;;  %v2237_v37 = vmax.f32 %v1197_v52, %v1235_v8  ;;  %v2999_v47 = vor.u32 %v3331_v42, %v2998_v57  ;;  %v4238_v58 = vld [vmem:[%s4925_s1 + $0x8] sm:$0xff]  ;;  %v3298_v62 = vld [vmem:[%s4924_s0 + $0x2a4] sm:$0xf] }
 0x106   :  { %v2244_v45 = vmax.f32 %v2228_v4, %v2236_v6  ;;  %v865_v4 = vand.u32 %v2991_v13, %v3378_v5 }
 0x107   :  { %2269 = vst [vmem:[%s4927_s3 + $0x48] sm:$0xff] %v2265_v22  ;;  %v2245_v48 = vmax.f32 %v2229_v35, %v2237_v37  ;;  %v871_v54 = vand.u32 %v2999_v47, %v3378_v5  ;;  %v2742_v37 = vld [vmem:[%s4924_s0 + $0xa8] sm:$0xf] }
 0x108   :  { %v2252_v11 = vadd.f32 %v2244_v45, %v3944_v33  ;;  %v2743_v30 = vor.u32 %v3267_v9, %v2742_v37  ;;  %v2744_v45 = vld [vmem:[%s4924_s0 + $0x1a8] sm:$0xf0] }
 0x109   :  { %v2253_v12 = vadd.f32 %v2245_v48, %v3944_v33  ;;  %v2747_v38 = vor.u32 %v3235_v10, %v2744_v45 }
 0x10a   :  { %v2260_v1 = vmax.f32 %v2252_v11, 0.0  ;;  %v3266_v11 = vld [vmem:[%s4924_s0 + $0x19c] sm:$0xf0] }
 0x10b   :  { %v2261_v16 = vmax.f32 %v2253_v12, 0.0  ;;  %v1218_v23 = vpop.f32.mrf.mxu2  ;;  %v4176_v24 = vpop.f32.mrf.mxu0  ;;  %v3234_v12 = vld [vmem:[%s4924_s0 + $0xa4] sm:$0xf] }
 0x10c   :  { %v2238_v27 = vmax.f32 %v1180_v0, %v1218_v23  ;;  %v1237_v63 = vpop.f32.mrf.mxu3  ;;  %v4180_v2 = vpop.f32.mrf.mxu1  ;;  %v2992_v0 = vld [vmem:[%s4924_s0 + $0x3a0] sm:$0x30]  ;;  %v2735_v23 = vor.u32 %v3266_v11, %v2734_v60 }
 0x10d   :  { %v2266_v34 = vpack.c.bf16 %v2261_v16, %v2260_v1  ;;  %v2239_v36 = vmax.f32 %v1199_v20, %v1237_v63  ;;  %v2995_v3 = vor.u32 %v3298_v62, %v2992_v0 }
 0x10e   :  { %v2246_v39 = vmax.f32 %v2230_v26, %v2238_v27  ;;  %3148 = vmatmul.msk.bf16.vlgmr.msra.gmra.mxu0 %vm733_vm2, %v4187_v41  ;;  %3150 = vmatmul.msk.bf16.vlgmr.msra.gmra.mxu1 %vm733_vm2, %v4187_v41  ;;  %v2736_v26 = vld [vmem:[%s4924_s0 + $0x1a0] sm:$0xf0] }
 0x10f   :  { %2270 = vst [vmem:[%s4927_s3 + $0x88] sm:$0xff] %v2266_v34  ;;  %v2247_v46 = vmax.f32 %v2231_v14, %v2239_v36  ;;  %v868_v20 = vand.u32 %v2995_v3, %v3378_v5  ;;  %1702 = vmatpush.bf16.msra.mxu0 %v865_v4  ;;  %v2739_v27 = vor.u32 %v3234_v12, %v2736_v26  ;;  %v3269_v12 = vld [vmem:[%s4924_s0 + $0x1b4] sm:$0xf0] }
 0x110   :  { %v2254_v49 = vadd.f32 %v2246_v39, %v3978_v7  ;;  %3152 = vmatmul.msk.bf16.vlgmr.msra.gmra.mxu2 %vm733_vm2, %v4187_v41  ;;  %3154 = vmatmul.msk.bf16.vlgmr.msra.gmra.mxu3 %vm733_vm2, %v4187_v41 }
 0x111   :  { %v2255_v18 = vadd.f32 %v2247_v46, %v3978_v7  ;;  %1740 = vmatpush.bf16.msra.mxu2 %v871_v54  ;;  %1759 = vmatpush.bf16.msra.mxu3 %v874_v17  ;;  %v3008_v17 = vld [vmem:[%s4924_s0 + $0x3b0] sm:$0x30] }
 0x112   :  { %v2262_v44 = vmax.f32 %v2254_v49, 0.0  ;;  %1721 = vmatpush.bf16.msra.mxu1 %v868_v20 }
 0x113   :  { %v2263_v51 = vmax.f32 %v2255_v18, 0.0  ;;  %v4214_v52 = vpop.f32.mrf.mxu2  ;;  %v4216_v15 = vpop.f32.mrf.mxu0  ;;  %1703 = vmatpush.bf16.msra.mxu0 %v2735_v23 }
 0x114   :  { %v4218_v53 = vpop.f32.mrf.mxu3  ;;  %v4220_v21 = vpop.f32.mrf.mxu1  ;;  %v2272_v34 = vmax.f32 %v4176_v24, %v4214_v52  ;;  %v3301_v24 = vld [vmem:[%s4924_s0 + $0x2bc] sm:$0xf]  ;;  %v3332_v52 = vld [vmem:[%s4924_s0 + $0x3ac] sm:$0x30] }
 0x115   :  { %v2267_v25 = vpack.c.bf16 %v2263_v51, %v2262_v44  ;;  %1741 = vmatpush.bf16.msra.mxu2 %v2743_v30  ;;  %1760 = vmatpush.bf16.msra.mxu3 %v2747_v38  ;;  %v2273_v49 = vmax.f32 %v4180_v2, %v4218_v53  ;;  %v3333_v44 = vld [vmem:[%s4924_s0 + $0x3b4] sm:$0x30]  ;;  %v3016_v2 = vld [vmem:[%s4924_s0 + $0x3b8] sm:$0x30]  ;;  %v3006_v51 = vld [vmem:[%s4924_s0 + $0x2b0] sm:$0xf] }
 0x116   :  { %1722 = vmatpush.bf16.msra.mxu1 %v2739_v27  ;;  %v3015_v50 = vor.u32 %v3333_v44, %v3014_v43  ;;  %v3019_v53 = vor.u32 %v3301_v24, %v3016_v2  ;;  %v3007_v54 = vor.u32 %v3332_v52, %v3006_v51  ;;  %v2760_v27 = vld [vmem:[%s4924_s0 + $0x1b8] sm:$0xf0]  ;;  %v2750_v44 = vld [vmem:[%s4924_s0 + $0xb0] sm:$0xf] }
 0x117   :  { %2271 = vst [vmem:[%s4927_s3 + $0xc8] sm:$0xff] %v2267_v25  ;;  %v3300_v25 = vld [vmem:[%s4924_s0 + $0x2b4] sm:$0xf]  ;;  %v3268_v24 = vld [vmem:[%s4924_s0 + $0x1ac] sm:$0xf0] }
 0x118   :  { %v883_v61 = vand.u32 %v3015_v50, %v3378_v5  ;;  %v3011_v62 = vor.u32 %v3300_v25, %v3008_v17  ;;  %v886_v4 = vand.u32 %v3019_v53, %v3378_v5  ;;  %v877_v20 = vand.u32 %v3007_v54, %v3378_v5 }
 0x11a   :  { %v880_v45 = vand.u32 %v3011_v62, %v3378_v5 }
 0x11b   :  { %v4227_v29 = vpop.f32.mrf.mxu2  ;;  %v4229_v31 = vpop.f32.mrf.mxu0 }
 0x11c   :  { %v4231_v55 = vpop.f32.mrf.mxu3  ;;  %v4233_v56 = vpop.f32.mrf.mxu1  ;;  %v2274_v37 = vmax.f32 %v4216_v15, %v4227_v29 }
 0x11d   :  { %v2275_v38 = vmax.f32 %v4220_v21, %v4231_v55  ;;  %v2758_v55 = vld [vmem:[%s4924_s0 + $0xb8] sm:$0xf] }
 0x11e   :  { %3149 = vmatmul.msk.bf16.gmra.mxu0 %vm733_vm2, %v4238_v58  ;;  %3151 = vmatmul.msk.bf16.gmra.mxu1 %vm733_vm2, %v4238_v58  ;;  %v2759_v26 = vor.u32 %v3269_v12, %v2758_v55 }
 0x120   :  { %3153 = vmatmul.msk.bf16.gmra.mxu2 %vm733_vm2, %v4238_v58  ;;  %3155 = vmatmul.msk.bf16.gmra.mxu3 %vm733_vm2, %v4238_v58 }
 0x123   :  { %v4261_v6 = vpop.f32.mrf.mxu2  ;;  %v4263_v8 = vpop.f32.mrf.mxu0 }
 0x124   :  { %v4266_v35 = vpop.f32.mrf.mxu3  ;;  %v4268_v22 = vpop.f32.mrf.mxu1 }
 0x12b   :  { %v4282_v32 = vpop.f32.mrf.mxu2  ;;  %v1325_v48 = vpop.f32.mrf.mxu0 }
 0x12c   :  { %v4293_v1 = vpop.f32.mrf.mxu3  ;;  %v1344_v16 = vpop.f32.mrf.mxu1  ;;  %v2278_v25 = vmax.f32 %v4263_v8, %v4282_v32  ;;  %v3030_v32 = vld [vmem:[%s4924_s0 + $0x2c8] sm:$0xf] }
 0x12d   :  { %v2279_v62 = vmax.f32 %v4268_v22, %v4293_v1  ;;  %v3335_v1 = vld [vmem:[%s4924_s0 + $0x3c4] sm:$0x30] }
 0x12e   :  { %3156 = vmatmul.msk.bf16.vlgmr.msrb.gmra.mxu0 %vm733_vm2, %v4187_v41  ;;  %3158 = vmatmul.msk.bf16.vlgmr.msrb.gmra.mxu1 %vm733_vm2, %v4187_v41 }
 0x12f   :  { %1778 = vmatpush.bf16.msrb.mxu0 %v877_v20  ;;  %1797 = vmatpush.bf16.msrb.mxu1 %v880_v45  ;;  %v3303_v20 = vld [vmem:[%s4924_s0 + $0x2cc] sm:$0xf] }
 0x130   :  { %3160 = vmatmul.msk.bf16.vlgmr.msrb.gmra.mxu2 %vm733_vm2, %v4187_v41  ;;  %3162 = vmatmul.msk.bf16.vlgmr.msrb.gmra.mxu3 %vm733_vm2, %v4187_v41 }
 0x131   :  { %1816 = vmatpush.bf16.msrb.mxu2 %v883_v61  ;;  %1835 = vmatpush.bf16.msrb.mxu3 %v886_v4 }
 0x133   :  { %v1363_v63 = vpop.f32.mrf.mxu2  ;;  %v1327_v14 = vpop.f32.mrf.mxu0 }
 0x134   :  { %v2280_v36 = vmax.f32 %v1325_v48, %v1363_v63  ;;  %v1382_v39 = vpop.f32.mrf.mxu3  ;;  %v1346_v46 = vpop.f32.mrf.mxu1 }
 0x135   :  { %v2281_v18 = vmax.f32 %v1344_v16, %v1382_v39  ;;  %v3237_v16 = vld [vmem:[%s4924_s0 + $0xbc] sm:$0xf]  ;;  %v2276_v39 = vmax.f32 %v4229_v31, %v4261_v6  ;;  %1817 = vmatpush.bf16.msrb.mxu2 %v2759_v26  ;;  %v3236_v31 = vld [vmem:[%s4924_s0 + $0xb4] sm:$0xf]  ;;  %v3022_v26 = vld [vmem:[%s4924_s0 + $0x2c0] sm:$0xf] }
 0x136   :  { %v2288_v57 = vmax.f32 %v2272_v34, %v2280_v36  ;;  %v2763_v36 = vor.u32 %v3237_v16, %v2760_v27  ;;  %v3334_v27 = vld [vmem:[%s4924_s0 + $0x3bc] sm:$0x30] }
 0x137   :  { %v2289_v42 = vmax.f32 %v2273_v49, %v2281_v18 }
 0x138   :  { %v2296_v47 = vadd.f32 %v2288_v57, %v3880_v40  ;;  %v2277_v57 = vmax.f32 %v4233_v56, %v4266_v35  ;;  %1836 = vmatpush.bf16.msrb.mxu3 %v2763_v36  ;;  %v2752_v56 = vld [vmem:[%s4924_s0 + $0x1b0] sm:$0xf0] }
 0x139   :  { %v2297_v19 = vadd.f32 %v2289_v42, %v3880_v40  ;;  %v2755_v50 = vor.u32 %v3236_v31, %v2752_v56 }
 0x13a   :  { %v2304_v59 = vmax.f32 %v2296_v47, 0.0  ;;  %v2751_v47 = vor.u32 %v3268_v24, %v2750_v44  ;;  %v3271_v44 = vld [vmem:[%s4924_s0 + $0x1c4] sm:$0xf0]  ;;  %v3239_v24 = vld [vmem:[%s4924_s0 + $0xcc] sm:$0xf] }
 0x13b   :  { %v2305_v13 = vmax.f32 %v2297_v19, 0.0  ;;  %v1365_v0 = vpop.f32.mrf.mxu2  ;;  %v1330_v3 = vpop.f32.mrf.mxu0  ;;  %1798 = vmatpush.bf16.msrb.mxu1 %v2755_v50  ;;  %v2766_v50 = vld [vmem:[%s4924_s0 + $0xc0] sm:$0xf] }
 0x13c   :  { %v2282_v9 = vmax.f32 %v1327_v14, %v1365_v0  ;;  %v1384_v10 = vpop.f32.mrf.mxu3  ;;  %v1349_v30 = vpop.f32.mrf.mxu1  ;;  %1779 = vmatpush.bf16.msrb.mxu0 %v2751_v47 }
 0x13d   :  { %v2312_v48 = vpack.c.bf16 %v2305_v13, %v2304_v59  ;;  %v2283_v60 = vmax.f32 %v1346_v46, %v1384_v10  ;;  %v3032_v10 = vld [vmem:[%s4924_s0 + $0x3c8] sm:$0x30] }
 0x13e   :  { %v2290_v11 = vmax.f32 %v2274_v37, %v2282_v9  ;;  %3157 = vmatmul.msk.bf16.gmra.mxu0 %vm733_vm2, %v4238_v58  ;;  %3159 = vmatmul.msk.bf16.gmra.mxu1 %vm733_vm2, %v4238_v58  ;;  %v3031_v9 = vor.u32 %v3335_v1, %v3030_v32 }
 0x13f   :  { %2316 = vst [vmem:[%s4927_s3 + $0x10] sm:$0xff] %v2312_v48  ;;  %v2291_v15 = vmax.f32 %v2275_v38, %v2283_v60  ;;  %v3035_v48 = vor.u32 %v3303_v20, %v3032_v10  ;;  %v3046_v20 = vld [vmem:[%s4924_s0 + $0x2d8] sm:$0xf] }
 0x140   :  { %v2298_v29 = vadd.f32 %v2290_v11, %v3920_v28  ;;  %3161 = vmatmul.msk.bf16.gmra.mxu2 %vm733_vm2, %v4238_v58  ;;  %3163 = vmatmul.msk.bf16.gmra.mxu3 %vm733_vm2, %v4238_v58 }
 0x141   :  { %v2299_v21 = vadd.f32 %v2291_v15, %v3920_v28  ;;  %v895_v15 = vand.u32 %v3031_v9, %v3378_v5 }
 0x142   :  { %v2306_v23 = vmax.f32 %v2298_v29, 0.0 }
 0x143   :  { %v2307_v63 = vmax.f32 %v2299_v21, 0.0  ;;  %v1368_v14 = vpop.f32.mrf.mxu2  ;;  %v1332_v34 = vpop.f32.mrf.mxu0  ;;  %v898_v21 = vand.u32 %v3035_v48, %v3378_v5 }
 0x144   :  { %v2284_v46 = vmax.f32 %v1330_v3, %v1368_v14  ;;  %v1387_v49 = vpop.f32.mrf.mxu3  ;;  %v1351_v18 = vpop.f32.mrf.mxu1  ;;  %v3023_v14 = vor.u32 %v3334_v27, %v3022_v26 }
 0x145   :  { %v2313_v42 = vpack.c.bf16 %v2307_v63, %v2306_v23  ;;  %v2285_v43 = vmax.f32 %v1349_v30, %v1387_v49  ;;  %v3302_v63 = vld [vmem:[%s4924_s0 + $0x2c4] sm:$0xf] }
 0x146   :  { %v2292_v6 = vmax.f32 %v2276_v39, %v2284_v46  ;;  %v889_v39 = vand.u32 %v3023_v14, %v3378_v5 }
 0x147   :  { %2317 = vst [vmem:[%s4927_s3 + $0x50] sm:$0xff] %v2313_v42  ;;  %v2293_v35 = vmax.f32 %v2277_v57, %v2285_v43  ;;  %v2774_v43 = vld [vmem:[%s4924_s0 + $0xc8] sm:$0xf] }
 0x148   :  { %v2300_v2 = vadd.f32 %v2292_v6, %v3944_v33  ;;  %v2775_v31 = vor.u32 %v3271_v44, %v2774_v43  ;;  %v2776_v6 = vld [vmem:[%s4924_s0 + $0x1c8] sm:$0xf0] }
 0x149   :  { %v2301_v51 = vadd.f32 %v2293_v35, %v3944_v33  ;;  %v2779_v47 = vor.u32 %v3239_v24, %v2776_v6 }
 0x14a   :  { %v2308_v52 = vmax.f32 %v2300_v2, 0.0  ;;  %v3270_v2 = vld [vmem:[%s4924_s0 + $0x1bc] sm:$0xf0] }
 0x14b   :  { %v2309_v19 = vmax.f32 %v2301_v51, 0.0  ;;  %v1370_v53 = vpop.f32.mrf.mxu2  ;;  %v4390_v54 = vpop.f32.mrf.mxu0  ;;  %v3238_v51 = vld [vmem:[%s4924_s0 + $0xc4] sm:$0xf] }
 0x14c   :  { %v2286_v17 = vmax.f32 %v1332_v34, %v1370_v53  ;;  %v1389_v59 = vpop.f32.mrf.mxu3  ;;  %v4394_v61 = vpop.f32.mrf.mxu1  ;;  %v3024_v34 = vld [vmem:[%s4924_s0 + $0x3c0] sm:$0x30]  ;;  %v2767_v53 = vor.u32 %v3270_v2, %v2766_v50 }
 0x14d   :  { %v2314_v13 = vpack.c.bf16 %v2309_v19, %v2308_v52  ;;  %v2287_v0 = vmax.f32 %v1351_v18, %v1389_v59  ;;  %v3027_v36 = vor.u32 %v3302_v63, %v3024_v34 }
 0x14e   :  { %v2294_v3 = vmax.f32 %v2278_v25, %v2286_v17  ;;  %3164 = vmatmul.msk.bf16.vlgmr.msra.gmra.mxu0 %vm733_vm2, %v4187_v41  ;;  %3166 = vmatmul.msk.bf16.vlgmr.msra.gmra.mxu1 %vm733_vm2, %v4187_v41  ;;  %v2768_v25 = vld [vmem:[%s4924_s0 + $0x1c0] sm:$0xf0] }
 0x14f   :  { %2318 = vst [vmem:[%s4927_s3 + $0x90] sm:$0xff] %v2314_v13  ;;  %v2295_v4 = vmax.f32 %v2279_v62, %v2287_v0  ;;  %v892_v18 = vand.u32 %v3027_v36, %v3378_v5  ;;  %1854 = vmatpush.bf16.msra.mxu0 %v889_v39  ;;  %v2771_v17 = vor.u32 %v3238_v51, %v2768_v25  ;;  %v3273_v51 = vld [vmem:[%s4924_s0 + $0x1d4] sm:$0xf0] }
 0x150   :  { %v2302_v8 = vadd.f32 %v2294_v3, %v3978_v7  ;;  %3168 = vmatmul.msk.bf16.vlgmr.msra.gmra.mxu2 %vm733_vm2, %v4187_v41  ;;  %3170 = vmatmul.msk.bf16.vlgmr.msra.gmra.mxu3 %vm733_vm2, %v4187_v41 }
 0x151   :  { %v2303_v22 = vadd.f32 %v2295_v4, %v3978_v7  ;;  %1892 = vmatpush.bf16.msra.mxu2 %v895_v15  ;;  %1911 = vmatpush.bf16.msra.mxu3 %v898_v21  ;;  %v3040_v21 = vld [vmem:[%s4924_s0 + $0x3d0] sm:$0x30] }
 0x152   :  { %v2310_v37 = vmax.f32 %v2302_v8, 0.0  ;;  %1873 = vmatpush.bf16.msra.mxu1 %v892_v18 }
 0x153   :  { %v2311_v30 = vmax.f32 %v2303_v22, 0.0  ;;  %v4423_v45 = vpop.f32.mrf.mxu2  ;;  %v4425_v38 = vpop.f32.mrf.mxu0  ;;  %1855 = vmatpush.bf16.msra.mxu0 %v2767_v53 }
 0x154   :  { %v4427_v60 = vpop.f32.mrf.mxu3  ;;  %v4429_v11 = vpop.f32.mrf.mxu1  ;;  %v2320_v13 = vmax.f32 %v4390_v54, %v4423_v45  ;;  %v3305_v54 = vld [vmem:[%s4924_s0 + $0x2dc] sm:$0xf]  ;;  %v3336_v45 = vld [vmem:[%s4924_s0 + $0x3cc] sm:$0x30] }
 0x155   :  { %v2315_v29 = vpack.c.bf16 %v2311_v30, %v2310_v37  ;;  %1893 = vmatpush.bf16.msra.mxu2 %v2775_v31  ;;  %1912 = vmatpush.bf16.msra.mxu3 %v2779_v47  ;;  %v2321_v8 = vmax.f32 %v4394_v61, %v4427_v60  ;;  %v3337_v37 = vld [vmem:[%s4924_s0 + $0x3d4] sm:$0x30]  ;;  %v3048_v61 = vld [vmem:[%s4924_s0 + $0x3d8] sm:$0x30]  ;;  %v3038_v30 = vld [vmem:[%s4924_s0 + $0x2d0] sm:$0xf] }
 0x156   :  { %1874 = vmatpush.bf16.msra.mxu1 %v2771_v17  ;;  %v3047_v10 = vor.u32 %v3337_v37, %v3046_v20  ;;  %v3051_v60 = vor.u32 %v3305_v54, %v3048_v61  ;;  %v3039_v15 = vor.u32 %v3336_v45, %v3038_v30  ;;  %v2792_v17 = vld [vmem:[%s4924_s0 + $0x1d8] sm:$0xf0]  ;;  %v2782_v37 = vld [vmem:[%s4924_s0 + $0xd0] sm:$0xf] }
 0x157   :  { %2319 = vst [vmem:[%s4927_s3 + $0xd0] sm:$0xff] %v2315_v29  ;;  %v3304_v29 = vld [vmem:[%s4924_s0 + $0x2d4] sm:$0xf]  ;;  %v3272_v54 = vld [vmem:[%s4924_s0 + $0x1cc] sm:$0xf0] }
 0x158   :  { %v907_v27 = vand.u32 %v3047_v10, %v3378_v5  ;;  %v3043_v63 = vor.u32 %v3304_v29, %v3040_v21  ;;  %v910_v39 = vand.u32 %v3051_v60, %v3378_v5  ;;  %v901_v18 = vand.u32 %v3039_v15, %v3378_v5 }
 0x15a   :  { %v904_v6 = vand.u32 %v3043_v63, %v3378_v5 }
 0x15b   :  { %v4436_v55 = vpop.f32.mrf.mxu2  ;;  %v4438_v12 = vpop.f32.mrf.mxu0 }
 0x15c   :  { %v4440_v16 = vpop.f32.mrf.mxu3  ;;  %v4442_v23 = vpop.f32.mrf.mxu1  ;;  %v2322_v43 = vmax.f32 %v4425_v38, %v4436_v55 }
 0x15d   :  { %v2323_v47 = vmax.f32 %v4429_v11, %v4440_v16  ;;  %v2790_v16 = vld [vmem:[%s4924_s0 + $0xd8] sm:$0xf] }
 0x15e   :  { %3165 = vmatmul.msk.bf16.gmra.mxu0 %vm733_vm2, %v4238_v58  ;;  %3167 = vmatmul.msk.bf16.gmra.mxu1 %vm733_vm2, %v4238_v58  ;;  %v2791_v25 = vor.u32 %v3273_v51, %v2790_v16 }
 0x160   :  { %3169 = vmatmul.msk.bf16.gmra.mxu2 %vm733_vm2, %v4238_v58  ;;  %3171 = vmatmul.msk.bf16.gmra.mxu3 %vm733_vm2, %v4238_v58 }
 0x163   :  { %v4465_v46 = vpop.f32.mrf.mxu2  ;;  %v4467_v49 = vpop.f32.mrf.mxu0 }
 0x164   :  { %v4470_v57 = vpop.f32.mrf.mxu3  ;;  %v4472_v42 = vpop.f32.mrf.mxu1 }
 0x16b   :  { %v4486_v56 = vpop.f32.mrf.mxu2  ;;  %v1477_v35 = vpop.f32.mrf.mxu0 }
 0x16c   :  { %v4497_v52 = vpop.f32.mrf.mxu3  ;;  %v1496_v19 = vpop.f32.mrf.mxu1  ;;  %v2326_v29 = vmax.f32 %v4467_v49, %v4486_v56  ;;  %v3062_v56 = vld [vmem:[%s4924_s0 + $0x2e8] sm:$0xf] }
 0x16d   :  { %v2327_v63 = vmax.f32 %v4472_v42, %v4497_v52  ;;  %v3339_v52 = vld [vmem:[%s4924_s0 + $0x3e4] sm:$0x30] }
 0x16e   :  { %3172 = vmatmul.msk.bf16.vlgmr.msrb.gmra.mxu0 %vm733_vm2, %v4187_v41  ;;  %3174 = vmatmul.msk.bf16.vlgmr.msrb.gmra.mxu1 %vm733_vm2, %v4187_v41 }
 0x16f   :  { %1930 = vmatpush.bf16.msrb.mxu0 %v901_v18  ;;  %1949 = vmatpush.bf16.msrb.mxu1 %v904_v6  ;;  %v3307_v18 = vld [vmem:[%s4924_s0 + $0x2ec] sm:$0xf] }
 0x170   :  { %3176 = vmatmul.msk.bf16.vlgmr.msrb.gmra.mxu2 %vm733_vm2, %v4187_v41  ;;  %3178 = vmatmul.msk.bf16.vlgmr.msrb.gmra.mxu3 %vm733_vm2, %v4187_v41 }
 0x171   :  { %1968 = vmatpush.bf16.msrb.mxu2 %v907_v27  ;;  %1987 = vmatpush.bf16.msrb.mxu3 %v910_v39 }
 0x173   :  { %v1515_v59 = vpop.f32.mrf.mxu2  ;;  %v1479_v62 = vpop.f32.mrf.mxu0 }
 0x174   :  { %v2328_v0 = vmax.f32 %v1477_v35, %v1515_v59  ;;  %v1534_v3 = vpop.f32.mrf.mxu3  ;;  %v1498_v4 = vpop.f32.mrf.mxu1 }
 0x175   :  { %v2329_v22 = vmax.f32 %v1496_v19, %v1534_v3  ;;  %v3241_v19 = vld [vmem:[%s4924_s0 + $0xdc] sm:$0xf]  ;;  %v2324_v3 = vmax.f32 %v4438_v12, %v4465_v46  ;;  %1969 = vmatpush.bf16.msrb.mxu2 %v2791_v25  ;;  %v3240_v12 = vld [vmem:[%s4924_s0 + $0xd4] sm:$0xf]  ;;  %v3054_v25 = vld [vmem:[%s4924_s0 + $0x2e0] sm:$0xf] }
 0x176   :  { %v2336_v32 = vmax.f32 %v2320_v13, %v2328_v0  ;;  %v2795_v0 = vor.u32 %v3241_v19, %v2792_v17  ;;  %v3338_v17 = vld [vmem:[%s4924_s0 + $0x3dc] sm:$0x30] }
 0x177   :  { %v2337_v1 = vmax.f32 %v2321_v8, %v2329_v22 }
 0x178   :  { %v2344_v9 = vadd.f32 %v2336_v32, %v3880_v40  ;;  %v2325_v32 = vmax.f32 %v4442_v23, %v4470_v57  ;;  %1988 = vmatpush.bf16.msrb.mxu3 %v2795_v0  ;;  %v2784_v23 = vld [vmem:[%s4924_s0 + $0x1d0] sm:$0xf0] }
 0x179   :  { %v2345_v48 = vadd.f32 %v2337_v1, %v3880_v40  ;;  %v2787_v10 = vor.u32 %v3240_v12, %v2784_v23 }
 0x17a   :  { %v2352_v26 = vmax.f32 %v2344_v9, 0.0  ;;  %v2783_v9 = vor.u32 %v3272_v54, %v2782_v37  ;;  %v3275_v37 = vld [vmem:[%s4924_s0 + $0x1e4] sm:$0xf0]  ;;  %v3243_v54 = vld [vmem:[%s4924_s0 + $0xec] sm:$0xf] }
 0x17b   :  { %v2353_v14 = vmax.f32 %v2345_v48, 0.0  ;;  %v1517_v34 = vpop.f32.mrf.mxu2  ;;  %v1482_v36 = vpop.f32.mrf.mxu0  ;;  %1950 = vmatpush.bf16.msrb.mxu1 %v2787_v10  ;;  %v2798_v10 = vld [vmem:[%s4924_s0 + $0xe0] sm:$0xf] }
 0x17c   :  { %v2330_v44 = vmax.f32 %v1479_v62, %v1517_v34  ;;  %v1536_v24 = vpop.f32.mrf.mxu3  ;;  %v1501_v31 = vpop.f32.mrf.mxu1  ;;  %1931 = vmatpush.bf16.msrb.mxu0 %v2783_v9 }
 0x17d   :  { %v2360_v35 = vpack.c.bf16 %v2353_v14, %v2352_v26  ;;  %v2331_v50 = vmax.f32 %v1498_v4, %v1536_v24  ;;  %v3064_v24 = vld [vmem:[%s4924_s0 + $0x3e8] sm:$0x30] }
 0x17e   :  { %v2338_v2 = vmax.f32 %v2322_v43, %v2330_v44  ;;  %3173 = vmatmul.msk.bf16.gmra.mxu0 %vm733_vm2, %v4238_v58  ;;  %3175 = vmatmul.msk.bf16.gmra.mxu1 %vm733_vm2, %v4238_v58  ;;  %v3063_v44 = vor.u32 %v3339_v52, %v3062_v56 }
 0x17f   :  { %2364 = vst [vmem:[%s4927_s3 + $0x18] sm:$0xff] %v2360_v35  ;;  %v2339_v38 = vmax.f32 %v2323_v47, %v2331_v50  ;;  %v3067_v35 = vor.u32 %v3307_v18, %v3064_v24  ;;  %v3078_v18 = vld [vmem:[%s4924_s0 + $0x2f8] sm:$0xf] }
 0x180   :  { %v2346_v55 = vadd.f32 %v2338_v2, %v3920_v28  ;;  %3177 = vmatmul.msk.bf16.gmra.mxu2 %vm733_vm2, %v4238_v58  ;;  %3179 = vmatmul.msk.bf16.gmra.mxu3 %vm733_vm2, %v4238_v58 }
 0x181   :  { %v2347_v11 = vadd.f32 %v2339_v38, %v3920_v28  ;;  %v919_v38 = vand.u32 %v3063_v44, %v3378_v5 }
 0x182   :  { %v2354_v53 = vmax.f32 %v2346_v55, 0.0 }
 0x183   :  { %v2355_v59 = vmax.f32 %v2347_v11, 0.0  ;;  %v1520_v62 = vpop.f32.mrf.mxu2  ;;  %v1484_v13 = vpop.f32.mrf.mxu0  ;;  %v922_v11 = vand.u32 %v3067_v35, %v3378_v5 }
 0x184   :  { %v2332_v4 = vmax.f32 %v1482_v36, %v1520_v62  ;;  %v1539_v8 = vpop.f32.mrf.mxu3  ;;  %v1503_v22 = vpop.f32.mrf.mxu1  ;;  %v3055_v62 = vor.u32 %v3338_v17, %v3054_v25 }
 0x185   :  { %v2361_v1 = vpack.c.bf16 %v2355_v59, %v2354_v53  ;;  %v2333_v20 = vmax.f32 %v1501_v31, %v1539_v8  ;;  %v3306_v59 = vld [vmem:[%s4924_s0 + $0x2e4] sm:$0xf] }
 0x186   :  { %v2340_v46 = vmax.f32 %v2324_v3, %v2332_v4  ;;  %v913_v3 = vand.u32 %v3055_v62, %v3378_v5 }
 0x187   :  { %2365 = vst [vmem:[%s4927_s3 + $0x58] sm:$0xff] %v2361_v1  ;;  %v2341_v57 = vmax.f32 %v2325_v32, %v2333_v20  ;;  %v2806_v20 = vld [vmem:[%s4924_s0 + $0xe8] sm:$0xf] }
 0x188   :  { %v2348_v61 = vadd.f32 %v2340_v46, %v3944_v33  ;;  %v2807_v12 = vor.u32 %v3275_v37, %v2806_v20  ;;  %v2808_v46 = vld [vmem:[%s4924_s0 + $0x1e8] sm:$0xf0] }
 0x189   :  { %v2349_v30 = vadd.f32 %v2341_v57, %v3944_v33  ;;  %v2811_v9 = vor.u32 %v3243_v54, %v2808_v46 }
 0x18a   :  { %v2356_v45 = vmax.f32 %v2348_v61, 0.0  ;;  %v3274_v61 = vld [vmem:[%s4924_s0 + $0x1dc] sm:$0xf0] }
 0x18b   :  { %v2357_v48 = vmax.f32 %v2349_v30, 0.0  ;;  %v1522_v60 = vpop.f32.mrf.mxu2  ;;  %v4594_v15 = vpop.f32.mrf.mxu0  ;;  %v3242_v30 = vld [vmem:[%s4924_s0 + $0xe4] sm:$0xf] }
 0x18c   :  { %v2334_v21 = vmax.f32 %v1484_v13, %v1522_v60  ;;  %v1541_v26 = vpop.f32.mrf.mxu3  ;;  %v4598_v27 = vpop.f32.mrf.mxu1  ;;  %v3056_v13 = vld [vmem:[%s4924_s0 + $0x3e0] sm:$0x30]  ;;  %v2799_v60 = vor.u32 %v3274_v61, %v2798_v10 }
 0x18d   :  { %v2362_v14 = vpack.c.bf16 %v2357_v48, %v2356_v45  ;;  %v2335_v34 = vmax.f32 %v1503_v22, %v1541_v26  ;;  %v3059_v0 = vor.u32 %v3306_v59, %v3056_v13 }
 0x18e   :  { %v2342_v36 = vmax.f32 %v2326_v29, %v2334_v21  ;;  %3180 = vmatmul.msk.bf16.vlgmr.msra.gmra.mxu0 %vm733_vm2, %v4187_v41  ;;  %3182 = vmatmul.msk.bf16.vlgmr.msra.gmra.mxu1 %vm733_vm2, %v4187_v41  ;;  %v2800_v29 = vld [vmem:[%s4924_s0 + $0x1e0] sm:$0xf0] }
 0x18f   :  { %2366 = vst [vmem:[%s4927_s3 + $0x98] sm:$0xff] %v2362_v14  ;;  %v2343_v39 = vmax.f32 %v2327_v63, %v2335_v34  ;;  %v916_v22 = vand.u32 %v3059_v0, %v3378_v5  ;;  %2006 = vmatpush.bf16.msra.mxu0 %v913_v3  ;;  %v2803_v21 = vor.u32 %v3242_v30, %v2800_v29  ;;  %v3245_v30 = vld [vmem:[%s4924_s0 + $0xfc] sm:$0xf] }
 0x190   :  { %v2350_v49 = vadd.f32 %v2342_v36, %v3978_v7  ;;  %3184 = vmatmul.msk.bf16.vlgmr.msra.gmra.mxu2 %vm733_vm2, %v4187_v41  ;;  %3186 = vmatmul.msk.bf16.vlgmr.msra.gmra.mxu3 %vm733_vm2, %v4187_v41  ;;  %v2824_v29 = vld [vmem:[%s4924_s0 + $0x1f8] sm:$0xf0] }
 0x191   :  { %v2351_v42 = vadd.f32 %v2343_v39, %v3978_v7  ;;  %2044 = vmatpush.bf16.msra.mxu2 %v919_v38  ;;  %2063 = vmatpush.bf16.msra.mxu3 %v922_v11  ;;  %v3072_v11 = vld [vmem:[%s4924_s0 + $0x3f0] sm:$0x30] }
 0x192   :  { %v2358_v43 = vmax.f32 %v2350_v49, 0.0  ;;  %2025 = vmatpush.bf16.msra.mxu1 %v916_v22 }
 0x193   :  { %v2359_v31 = vmax.f32 %v2351_v42, 0.0  ;;  %v4627_v6 = vpop.f32.mrf.mxu2  ;;  %v4629_v47 = vpop.f32.mrf.mxu0  ;;  %2007 = vmatpush.bf16.msra.mxu0 %v2799_v60 }
 0x194   :  { %v4631_v50 = vpop.f32.mrf.mxu3  ;;  %v4633_v2 = vpop.f32.mrf.mxu1  ;;  %v2368_v14 = vmax.f32 %v4594_v15, %v4627_v6  ;;  %v3309_v15 = vld [vmem:[%s4924_s0 + $0x2fc] sm:$0xf]  ;;  %v3340_v6 = vld [vmem:[%s4924_s0 + $0x3ec] sm:$0x30] }
 0x195   :  { %v2363_v55 = vpack.c.bf16 %v2359_v31, %v2358_v43  ;;  %2045 = vmatpush.bf16.msra.mxu2 %v2807_v12  ;;  %2064 = vmatpush.bf16.msra.mxu3 %v2811_v9  ;;  %v2369_v49 = vmax.f32 %v4598_v27, %v4631_v50  ;;  %v3341_v43 = vld [vmem:[%s4924_s0 + $0x3f4] sm:$0x30]  ;;  %v3080_v27 = vld [vmem:[%s4924_s0 + $0x3f8] sm:$0x30]  ;;  %v3070_v31 = vld [vmem:[%s4924_s0 + $0x2f0] sm:$0xf] }
 0x196   :  { %2026 = vmatpush.bf16.msra.mxu1 %v2803_v21  ;;  %v3079_v24 = vor.u32 %v3341_v43, %v3078_v18  ;;  %v3083_v50 = vor.u32 %v3309_v15, %v3080_v27  ;;  %v3071_v38 = vor.u32 %v3340_v6, %v3070_v31  ;;  %v2814_v18 = vld [vmem:[%s4924_s0 + $0xf0] sm:$0xf] }
 0x197   :  { %2367 = vst [vmem:[%s4927_s3 + $0xd8] sm:$0xff] %v2363_v55  ;;  %v3308_v55 = vld [vmem:[%s4924_s0 + $0x2f4] sm:$0xf]  ;;  %v3276_v43 = vld [vmem:[%s4924_s0 + $0x1ec] sm:$0xf0] }
 0x198   :  { %v931_v17 = vand.u32 %v3079_v24, %v3378_v5  ;;  %v3075_v59 = vor.u32 %v3308_v55, %v3072_v11  ;;  %v934_v3 = vand.u32 %v3083_v50, %v3378_v5  ;;  %v925_v22 = vand.u32 %v3071_v38, %v3378_v5 }
 0x199   :  { %v2815_v15 = vor.u32 %v3276_v43, %v2814_v18 }
 0x19a   :  { %v928_v46 = vand.u32 %v3075_v59, %v3378_v5 }
 0x19b   :  { %v4640_v16 = vpop.f32.mrf.mxu2  ;;  %v4642_v51 = vpop.f32.mrf.mxu0 }
 0x19c   :  { %v4644_v19 = vpop.f32.mrf.mxu3  ;;  %v4646_v53 = vpop.f32.mrf.mxu1  ;;  %v2370_v20 = vmax.f32 %v4629_v47, %v4640_v16  ;;  %v2822_v16 = vld [vmem:[%s4924_s0 + $0xf8] sm:$0xf] }
 0x19d   :  { %v2371_v9 = vmax.f32 %v4633_v2, %v4644_v19  ;;  %v3277_v19 = vld [vmem:[%s4924_s0 + $0x1f4] sm:$0xf0] }
 0x19e   :  { %3181 = vmatmul.msk.bf16.gmra.mxu0 %vm733_vm2, %v4238_v58  ;;  %3183 = vmatmul.msk.bf16.gmra.mxu1 %vm733_vm2, %v4238_v58  ;;  %v2823_v60 = vor.u32 %v3277_v19, %v2822_v16 }
 0x1a0   :  { %3185 = vmatmul.msk.bf16.gmra.mxu2 %vm733_vm2, %v4238_v58  ;;  %3187 = vmatmul.msk.bf16.gmra.mxu3 %vm733_vm2, %v4238_v58 }
 0x1a3   :  { %v4669_v4 = vpop.f32.mrf.mxu2  ;;  %v4671_v8 = vpop.f32.mrf.mxu0 }
 0x1a4   :  { %v4674_v32 = vpop.f32.mrf.mxu3  ;;  %v4676_v1 = vpop.f32.mrf.mxu1 }
 0x1ab   :  { %v4690_v23 = vpop.f32.mrf.mxu2  ;;  %v1629_v57 = vpop.f32.mrf.mxu0 }
 0x1ac   :  { %v4701_v45 = vpop.f32.mrf.mxu3  ;;  %v1648_v48 = vpop.f32.mrf.mxu1  ;;  %v2374_v38 = vmax.f32 %v4671_v8, %v4690_v23 }
 0x1ae   :  { %3188 = vmatmul.msk.bf16.vlgmr.msrb.gmra.mxu0 %vm733_vm2, %v4187_v41  ;;  %3190 = vmatmul.msk.bf16.vlgmr.msrb.gmra.mxu1 %vm733_vm2, %v4187_v41 }
 0x1af   :  { %2082 = vmatpush.bf16.msrb.mxu0 %v925_v22  ;;  %2101 = vmatpush.bf16.msrb.mxu1 %v928_v46 }
 0x1b0   :  { %3192 = vmatmul.msk.bf16.vlgmr.msrb.gmra.mxu2 %vm733_vm2, %v4187_v41  ;;  %3194 = vmatmul.msk.bf16.vlgmr.msrb.gmra.mxu3 %vm733_vm2, %v4187_v41 }
 0x1b1   :  { %2120 = vmatpush.bf16.msrb.mxu2 %v931_v17  ;;  %2139 = vmatpush.bf16.msrb.mxu3 %v934_v3  ;;  %v2375_v17 = vmax.f32 %v4676_v1, %v4701_v45 }
 0x1b3   :  { %v1667_v26 = vpop.f32.mrf.mxu2  ;;  %v1631_v63 = vpop.f32.mrf.mxu0  ;;  %2083 = vmatpush.bf16.msrb.mxu0 %v2815_v15 }
 0x1b4   :  { %v2376_v34 = vmax.f32 %v1629_v57, %v1667_v26  ;;  %v1686_v36 = vpop.f32.mrf.mxu3  ;;  %v1650_v39 = vpop.f32.mrf.mxu1 }
 0x1b5   :  { %v2377_v42 = vmax.f32 %v1648_v48, %v1686_v36  ;;  %2121 = vmatpush.bf16.msrb.mxu2 %v2823_v60 }
 0x1b6   :  { %v2384_v56 = vmax.f32 %v2368_v14, %v2376_v34  ;;  %v2827_v14 = vor.u32 %v3245_v30, %v2824_v29  ;;  %v2372_v34 = vmax.f32 %v4642_v51, %v4669_v4  ;;  %v3244_v51 = vld [vmem:[%s4924_s0 + $0xf4] sm:$0xf]  ;;  %v3348_v30 = vld [vmem:[%s4925_s1] sm:$0xff] }
 0x1b7   :  { %v2385_v52 = vmax.f32 %v2369_v49, %v2377_v42  ;;  %v2373_v42 = vmax.f32 %v4646_v53, %v4674_v32  ;;  %v2816_v53 = vld [vmem:[%s4924_s0 + $0x1f0] sm:$0xf0] }
 0x1b8   :  { %v2392_v44 = vadd.f32 %v2384_v56, %v3880_v40  ;;  %2140 = vmatpush.bf16.msrb.mxu3 %v2827_v14 }
 0x1b9   :  { %v2393_v35 = vadd.f32 %v2385_v52, %v3880_v40 }
 0x1ba   :  { %v2400_v25 = vmax.f32 %v2392_v44, 0.0  ;;  %v2819_v44 = vor.u32 %v3244_v51, %v2816_v53 }
 0x1bb   :  { %v2401_v62 = vmax.f32 %v2393_v35, 0.0  ;;  %v1669_v13 = vpop.f32.mrf.mxu2  ;;  %v1634_v0 = vpop.f32.mrf.mxu0 }
 0x1bc   :  { %v2378_v37 = vmax.f32 %v1631_v63, %v1669_v13  ;;  %v1688_v54 = vpop.f32.mrf.mxu3  ;;  %v1653_v12 = vpop.f32.mrf.mxu1  ;;  %2102 = vmatpush.bf16.msrb.mxu1 %v2819_v44 }
 0x1bd   :  { %v2408_v57 = vpack.c.bf16 %v2401_v62, %v2400_v25  ;;  %v2379_v10 = vmax.f32 %v1650_v39, %v1688_v54 }
 0x1be   :  { %v2386_v61 = vmax.f32 %v2370_v20, %v2378_v37  ;;  %3189 = vmatmul.msk.bf16.gmra.mxu0 %vm733_vm2, %v4238_v58  ;;  %3191 = vmatmul.msk.bf16.gmra.mxu1 %vm733_vm2, %v4238_v58 }
 0x1bf   :  { %2412 = vst [vmem:[%s4927_s3 + $0x20] sm:$0xff] %v2408_v57  ;;  %v2387_v47 = vmax.f32 %v2371_v9, %v2379_v10 }
 0x1c0   :  { %v2394_v5 = vadd.f32 %v2386_v61, %v3920_v28  ;;  %3193 = vmatmul.msk.bf16.gmra.mxu2 %vm733_vm2, %v4238_v58  ;;  %3195 = vmatmul.msk.bf16.gmra.mxu3 %vm733_vm2, %v4238_v58 }
 0x1c1   :  { %v2395_v2 = vadd.f32 %v2387_v47, %v3920_v28 }
 0x1c2   :  { %v2402_v48 = vmax.f32 %v2394_v5, 0.0 }
 0x1c3   :  { %v2403_v21 = vmax.f32 %v2395_v2, 0.0  ;;  %v1672_v26 = vpop.f32.mrf.mxu2  ;;  %v1636_v63 = vpop.f32.mrf.mxu0 }
 0x1c4   :  { %v2380_v36 = vmax.f32 %v1634_v0, %v1672_v26  ;;  %v1691_v39 = vpop.f32.mrf.mxu3  ;;  %v1655_v49 = vpop.f32.mrf.mxu1 }
 0x1c5   :  { %v2409_v56 = vpack.c.bf16 %v2403_v21, %v2402_v48  ;;  %v2381_v52 = vmax.f32 %v1653_v12, %v1691_v39 }
 0x1c6   :  { %v2388_v4 = vmax.f32 %v2372_v34, %v2380_v36 }
 0x1c7   :  { %2413 = vst [vmem:[%s4927_s3 + $0x60] sm:$0xff] %v2409_v56  ;;  %v2389_v32 = vmax.f32 %v2373_v42, %v2381_v52 }
 0x1c8   :  { %v2396_v24 = vadd.f32 %v2388_v4, %v3944_v33 }
 0x1c9   :  { %v2397_v27 = vadd.f32 %v2389_v32, %v3944_v33 }
 0x1ca   :  { %v2404_v31 = vmax.f32 %v2396_v24, 0.0 }
 0x1cb   :  { %v2405_v6 = vmax.f32 %v2397_v27, 0.0  ;;  %v1674_v35 = vpop.f32.mrf.mxu2  ;;  %v1705_v50 = vpop.f32.mrf.mxu0  ;;  %v3349_v27 = vld [vmem:[%s4925_s1 + $0x8] sm:$0xff] }
 0x1cc   :  { %v2382_v55 = vmax.f32 %v1636_v63, %v1674_v35  ;;  %v1693_v11 = vpop.f32.mrf.mxu3  ;;  %v1724_v25 = vpop.f32.mrf.mxu1 }
 0x1cd   :  { %v2410_v59 = vpack.c.bf16 %v2405_v6, %v2404_v31  ;;  %v2383_v62 = vmax.f32 %v1655_v49, %v1693_v11 }
 0x1ce   :  { %v2390_v13 = vmax.f32 %v2374_v38, %v2382_v55  ;;  %3196 = vmatmul.msk.bf16.vlgmr.msra.gmra.mxu0 %vm733_vm2, %v4187_v41  ;;  %3198 = vmatmul.msk.bf16.vlgmr.msra.gmra.mxu1 %vm733_vm2, %v4187_v41 }
 0x1cf   :  { %2414 = vst [vmem:[%s4927_s3 + $0xa0] sm:$0xff] %v2410_v59  ;;  %v2391_v0 = vmax.f32 %v2375_v17, %v2383_v62 }
 0x1d0   :  { %v2398_v8 = vadd.f32 %v2390_v13, %v3978_v7  ;;  %3200 = vmatmul.msk.bf16.vlgmr.msra.gmra.mxu2 %vm733_vm2, %v4187_v41  ;;  %3202 = vmatmul.msk.bf16.vlgmr.msra.gmra.mxu3 %vm733_vm2, %v4187_v41 }
 0x1d1   :  { %v2399_v1 = vadd.f32 %v2391_v0, %v3978_v7 }
 0x1d2   :  { %v2406_v23 = vmax.f32 %v2398_v8, 0.0 }
 0x1d3   :  { %v2407_v45 = vmax.f32 %v2399_v1, 0.0  ;;  %v1743_v3 = vpop.f32.mrf.mxu2  ;;  %v1707_v22 = vpop.f32.mrf.mxu0 }
 0x1d4   :  { %v1762_v20 = vpop.f32.mrf.mxu3  ;;  %v1726_v37 = vpop.f32.mrf.mxu1  ;;  %v2416_v60 = vmax.f32 %v1705_v50, %v1743_v3 }
 0x1d5   :  { %v2411_v54 = vpack.c.bf16 %v2407_v45, %v2406_v23  ;;  %v2417_v63 = vmax.f32 %v1724_v25, %v1762_v20 }
 0x1d7   :  { %2415 = vst [vmem:[%s4927_s3 + $0xe0] sm:$0xff] %v2411_v54 }
 0x1db   :  { %v1745_v12 = vpop.f32.mrf.mxu2  ;;  %v4818_v46 = vpop.f32.mrf.mxu0 }
 0x1dc   :  { %v1764_v9 = vpop.f32.mrf.mxu3  ;;  %v4820_v57 = vpop.f32.mrf.mxu1  ;;  %v2418_v43 = vmax.f32 %v1707_v22, %v1745_v12 }
 0x1dd   :  { %v2419_v53 = vmax.f32 %v1726_v37, %v1764_v9 }
 0x1de   :  { %3197 = vmatmul.msk.bf16.gmra.mxu0 %vm733_vm2, %v4238_v58  ;;  %3199 = vmatmul.msk.bf16.gmra.mxu1 %vm733_vm2, %v4238_v58 }
 0x1e0   :  { %3201 = vmatmul.msk.bf16.gmra.mxu2 %vm733_vm2, %v4238_v58  ;;  %3203 = vmatmul.msk.bf16.gmra.mxu3 %vm733_vm2, %v4238_v58 }
 0x1e3   :  { %v1748_v41 = vpop.f32.mrf.mxu2  ;;  %v4830_v10 = vpop.f32.mrf.mxu0 }
 0x1e4   :  { %v1767_v61 = vpop.f32.mrf.mxu3  ;;  %v4832_v47 = vpop.f32.mrf.mxu1  ;;  %v2420_v25 = vmax.f32 %v4818_v46, %v1748_v41 }
 0x1e5   :  { %v2421_v13 = vmax.f32 %v4820_v57, %v1767_v61 }
 0x1eb   :  { %v4834_v5 = vpop.f32.mrf.mxu2  ;;  %v1781_v2 = vpop.f32.mrf.mxu0 }
 0x1ec   :  { %v4836_v16 = vpop.f32.mrf.mxu3  ;;  %v1800_v19 = vpop.f32.mrf.mxu1  ;;  %v2422_v12 = vmax.f32 %v4830_v10, %v4834_v5 }
 0x1ed   :  { %v2423_v41 = vmax.f32 %v4832_v47, %v4836_v16 }
 0x1ee   :  { %3204 = vmatmul.msk.bf16.vlgmr.msrb.gmra.mxu0 %vm733_vm2, %v3348_v30  ;;  %3206 = vmatmul.msk.bf16.vlgmr.msrb.gmra.mxu1 %vm733_vm2, %v3348_v30 }
 0x1f0   :  { %3208 = vmatmul.msk.bf16.vlgmr.msrb.gmra.mxu2 %vm733_vm2, %v3348_v30  ;;  %3210 = vmatmul.msk.bf16.vlgmr.msrb.gmra.mxu3 %vm733_vm2, %v3348_v30 }
 0x1f3   :  { %v1819_v58 = vpop.f32.mrf.mxu2  ;;  %v1783_v48 = vpop.f32.mrf.mxu0 }
 0x1f4   :  { %v2424_v29 = vmax.f32 %v1781_v2, %v1819_v58  ;;  %v1838_v21 = vpop.f32.mrf.mxu3  ;;  %v1802_v26 = vpop.f32.mrf.mxu1 }
 0x1f5   :  { %v2425_v14 = vmax.f32 %v1800_v19, %v1838_v21 }
 0x1f6   :  { %v2432_v34 = vmax.f32 %v2416_v60, %v2424_v29 }
 0x1f7   :  { %v2433_v36 = vmax.f32 %v2417_v63, %v2425_v14 }
 0x1f8   :  { %v2440_v39 = vadd.f32 %v2432_v34, %v3880_v40 }
 0x1f9   :  { %v2441_v49 = vadd.f32 %v2433_v36, %v3880_v40 }
 0x1fa   :  { %v2448_v42 = vmax.f32 %v2440_v39, 0.0 }
 0x1fb   :  { %v2449_v56 = vmax.f32 %v2441_v49, 0.0  ;;  %v1821_v52 = vpop.f32.mrf.mxu2  ;;  %v1786_v18 = vpop.f32.mrf.mxu0 }
 0x1fc   :  { %v2426_v51 = vmax.f32 %v1783_v48, %v1821_v52  ;;  %v1840_v4 = vpop.f32.mrf.mxu3  ;;  %v1805_v15 = vpop.f32.mrf.mxu1 }
 0x1fd   :  { %v2456_v32 = vpack.c.bf16 %v2449_v56, %v2448_v42  ;;  %v2427_v44 = vmax.f32 %v1802_v26, %v1840_v4 }
 0x1fe   :  { %v2434_v24 = vmax.f32 %v2418_v43, %v2426_v51  ;;  %3205 = vmatmul.msk.bf16.gmra.mxu0 %vm733_vm2, %v3349_v27  ;;  %3207 = vmatmul.msk.bf16.gmra.mxu1 %vm733_vm2, %v3349_v27 }
 0x1ff   :  { %2460 = vst [vmem:[%s4927_s3 + $0x28] sm:$0xff] %v2456_v32  ;;  %v2435_v31 = vmax.f32 %v2419_v53, %v2427_v44 }
 0x200   :  { %v2442_v6 = vadd.f32 %v2434_v24, %v3920_v28  ;;  %3209 = vmatmul.msk.bf16.gmra.mxu2 %vm733_vm2, %v3349_v27  ;;  %3211 = vmatmul.msk.bf16.gmra.mxu3 %vm733_vm2, %v3349_v27 }
 0x201   :  { %v2443_v35 = vadd.f32 %v2435_v31, %v3920_v28 }
 0x202   :  { %v2450_v50 = vmax.f32 %v2442_v6, 0.0 }
 0x203   :  { %v2451_v38 = vmax.f32 %v2443_v35, 0.0  ;;  %v1824_v55 = vpop.f32.mrf.mxu2  ;;  %v1788_v11 = vpop.f32.mrf.mxu0 }
 0x204   :  { %v2428_v17 = vmax.f32 %v1786_v18, %v1824_v55  ;;  %v1843_v59 = vpop.f32.mrf.mxu3  ;;  %v1807_v62 = vpop.f32.mrf.mxu1 }
 0x205   :  { %v2457_v0 = vpack.c.bf16 %v2451_v38, %v2450_v50  ;;  %v2429_v8 = vmax.f32 %v1805_v15, %v1843_v59 }
 0x206   :  { %v2436_v1 = vmax.f32 %v2420_v25, %v2428_v17 }
 0x207   :  { %2461 = vst [vmem:[%s4927_s3 + $0x68] sm:$0xff] %v2457_v0  ;;  %v2437_v23 = vmax.f32 %v2421_v13, %v2429_v8 }
 0x208   :  { %v2444_v45 = vadd.f32 %v2436_v1, %v3944_v33 }
 0x209   :  { %v2445_v3 = vadd.f32 %v2437_v23, %v3944_v33 }
 0x20a   :  { %v2452_v22 = vmax.f32 %v2444_v45, 0.0 }
 0x20b   :  { %v2453_v20 = vmax.f32 %v2445_v3, 0.0  ;;  %v1826_v37 = vpop.f32.mrf.mxu2  ;;  %v1857_v54 = vpop.f32.mrf.mxu0 }
 0x20c   :  { %v2430_v46 = vmax.f32 %v1788_v11, %v1826_v37  ;;  %v1845_v9 = vpop.f32.mrf.mxu3  ;;  %v1876_v57 = vpop.f32.mrf.mxu1 }
 0x20d   :  { %v2458_v61 = vpack.c.bf16 %v2453_v20, %v2452_v22  ;;  %v2431_v2 = vmax.f32 %v1807_v62, %v1845_v9 }
 0x20e   :  { %v2438_v19 = vmax.f32 %v2422_v12, %v2430_v46 }
 0x20f   :  { %2462 = vst [vmem:[%s4927_s3 + $0xa8] sm:$0xff] %v2458_v61  ;;  %v2439_v30 = vmax.f32 %v2423_v41, %v2431_v2 }
 0x210   :  { %v2446_v58 = vadd.f32 %v2438_v19, %v3978_v7 }
 0x211   :  { %v2447_v48 = vadd.f32 %v2439_v30, %v3978_v7 }
 0x212   :  { %v2454_v60 = vmax.f32 %v2446_v58, 0.0 }
 0x213   :  { %v2455_v10 = vmax.f32 %v2447_v48, 0.0  ;;  %v1895_v5 = vpop.f32.mrf.mxu2  ;;  %v1859_v29 = vpop.f32.mrf.mxu0 }
 0x214   :  { %v1914_v21 = vpop.f32.mrf.mxu3  ;;  %v1878_v26 = vpop.f32.mrf.mxu1  ;;  %v2464_v15 = vmax.f32 %v1857_v54, %v1895_v5 }
 0x215   :  { %v2459_v63 = vpack.c.bf16 %v2455_v10, %v2454_v60  ;;  %v2465_v24 = vmax.f32 %v1876_v57, %v1914_v21 }
 0x217   :  { %2463 = vst [vmem:[%s4927_s3 + $0xe8] sm:$0xff] %v2459_v63 }
 0x21b   :  { %v1897_v47 = vpop.f32.mrf.mxu2  ;;  %v1862_v16 = vpop.f32.mrf.mxu0 }
 0x21c   :  { %v1916_v14 = vpop.f32.mrf.mxu3  ;;  %v1881_v34 = vpop.f32.mrf.mxu1  ;;  %v2466_v17 = vmax.f32 %v1859_v29, %v1897_v47 }
 0x21d   :  { %v2467_v0 = vmax.f32 %v1878_v26, %v1916_v14 }
 0x223   :  { %v1900_v36 = vpop.f32.mrf.mxu2  ;;  %v4878_v39 = vpop.f32.mrf.mxu0 }
 0x224   :  { %v1919_v49 = vpop.f32.mrf.mxu3  ;;  %v4880_v42 = vpop.f32.mrf.mxu1  ;;  %v2468_v46 = vmax.f32 %v1862_v16, %v1900_v36 }
 0x225   :  { %v2469_v61 = vmax.f32 %v1881_v34, %v1919_v49 }
 0x22b   :  { %v1902_v56 = vpop.f32.mrf.mxu2  ;;  %v1933_v52 = vpop.f32.mrf.mxu0 }
 0x22c   :  { %v1921_v18 = vpop.f32.mrf.mxu3  ;;  %v1952_v43 = vpop.f32.mrf.mxu1  ;;  %v2470_v26 = vmax.f32 %v4878_v39, %v1902_v56 }
 0x22d   :  { %v2471_v14 = vmax.f32 %v4880_v42, %v1921_v18 }
 0x233   :  { %v1971_v51 = vpop.f32.mrf.mxu2  ;;  %v1935_v4 = vpop.f32.mrf.mxu0 }
 0x234   :  { %v2472_v53 = vmax.f32 %v1933_v52, %v1971_v51  ;;  %v1990_v32 = vpop.f32.mrf.mxu3  ;;  %v1954_v44 = vpop.f32.mrf.mxu1 }
 0x235   :  { %v2473_v27 = vmax.f32 %v1952_v43, %v1990_v32 }
 0x236   :  { %v2480_v31 = vmax.f32 %v2464_v15, %v2472_v53 }
 0x237   :  { %v2481_v6 = vmax.f32 %v2465_v24, %v2473_v27 }
 0x238   :  { %v2488_v35 = vadd.f32 %v2480_v31, %v3880_v40 }
 0x239   :  { %v2489_v50 = vadd.f32 %v2481_v6, %v3880_v40 }
 0x23a   :  { %v2496_v38 = vmax.f32 %v2488_v35, 0.0 }
 0x23b   :  { %v2497_v55 = vmax.f32 %v2489_v50, 0.0  ;;  %v1973_v11 = vpop.f32.mrf.mxu2  ;;  %v1938_v25 = vpop.f32.mrf.mxu0 }
 0x23c   :  { %v2474_v59 = vmax.f32 %v1935_v4, %v1973_v11  ;;  %v1992_v62 = vpop.f32.mrf.mxu3  ;;  %v1957_v13 = vpop.f32.mrf.mxu1 }
 0x23d   :  { %v2504_v8 = vpack.c.bf16 %v2497_v55, %v2496_v38  ;;  %v2475_v1 = vmax.f32 %v1954_v44, %v1992_v62 }
 0x23e   :  { %v2482_v23 = vmax.f32 %v2466_v17, %v2474_v59 }
 0x23f   :  { %2508 = vst [vmem:[%s4927_s3 + $0x30] sm:$0xff] %v2504_v8  ;;  %v2483_v45 = vmax.f32 %v2467_v0, %v2475_v1 }
 0x240   :  { %v2490_v3 = vadd.f32 %v2482_v23, %v3920_v28 }
 0x241   :  { %v2491_v22 = vadd.f32 %v2483_v45, %v3920_v28 }
 0x242   :  { %v2498_v20 = vmax.f32 %v2490_v3, 0.0 }
 0x243   :  { %v2499_v37 = vmax.f32 %v2491_v22, 0.0  ;;  %v1976_v54 = vpop.f32.mrf.mxu2  ;;  %v1940_v12 = vpop.f32.mrf.mxu0 }
 0x244   :  { %v2476_v9 = vmax.f32 %v1938_v25, %v1976_v54  ;;  %v1995_v57 = vpop.f32.mrf.mxu3  ;;  %v1959_v41 = vpop.f32.mrf.mxu1 }
 0x245   :  { %v2505_v2 = vpack.c.bf16 %v2499_v37, %v2498_v20  ;;  %v2477_v19 = vmax.f32 %v1957_v13, %v1995_v57 }
 0x246   :  { %v2484_v30 = vmax.f32 %v2468_v46, %v2476_v9 }
 0x247   :  { %2509 = vst [vmem:[%s4927_s3 + $0x70] sm:$0xff] %v2505_v2  ;;  %v2485_v58 = vmax.f32 %v2469_v61, %v2477_v19 }
 0x248   :  { %v2492_v48 = vadd.f32 %v2484_v30, %v3944_v33 }
 0x249   :  { %v2493_v60 = vadd.f32 %v2485_v58, %v3944_v33 }
 0x24a   :  { %v2500_v10 = vmax.f32 %v2492_v48, 0.0 }
 0x24b   :  { %v2501_v5 = vmax.f32 %v2493_v60, 0.0  ;;  %v1978_v29 = vpop.f32.mrf.mxu2  ;;  %v2009_v21 = vpop.f32.mrf.mxu0 }
 0x24c   :  { %v2478_v63 = vmax.f32 %v1940_v12, %v1978_v29  ;;  %v1997_v47 = vpop.f32.mrf.mxu3  ;;  %v2028_v16 = vpop.f32.mrf.mxu1 }
 0x24d   :  { %v2506_v34 = vpack.c.bf16 %v2501_v5, %v2500_v10  ;;  %v2479_v36 = vmax.f32 %v1959_v41, %v1997_v47 }
 0x24e   :  { %v2486_v49 = vmax.f32 %v2470_v26, %v2478_v63 }
 0x24f   :  { %2510 = vst [vmem:[%s4927_s3 + $0xb0] sm:$0xff] %v2506_v34  ;;  %v2487_v52 = vmax.f32 %v2471_v14, %v2479_v36 }
 0x250   :  { %v2494_v43 = vadd.f32 %v2486_v49, %v3978_v7 }
 0x251   :  { %v2495_v51 = vadd.f32 %v2487_v52, %v3978_v7 }
 0x252   :  { %v2502_v4 = vmax.f32 %v2494_v43, 0.0 }
 0x253   :  { %v2503_v15 = vmax.f32 %v2495_v51, 0.0  ;;  %v2047_v39 = vpop.f32.mrf.mxu2  ;;  %v2011_v56 = vpop.f32.mrf.mxu0 }
 0x254   :  { %v2066_v53 = vpop.f32.mrf.mxu3  ;;  %v2030_v32 = vpop.f32.mrf.mxu1  ;;  %v2512_v59 = vmax.f32 %v2009_v21, %v2047_v39 }
 0x255   :  { %v2507_v44 = vpack.c.bf16 %v2503_v15, %v2502_v4  ;;  %v2513_v0 = vmax.f32 %v2028_v16, %v2066_v53 }
 0x257   :  { %2511 = vst [vmem:[%s4927_s3 + $0xf0] sm:$0xff] %v2507_v44 }
 0x25b   :  { %v2049_v42 = vpop.f32.mrf.mxu2  ;;  %v2014_v18 = vpop.f32.mrf.mxu0 }
 0x25c   :  { %v2068_v24 = vpop.f32.mrf.mxu3  ;;  %v2033_v27 = vpop.f32.mrf.mxu1  ;;  %v2514_v46 = vmax.f32 %v2011_v56, %v2049_v42 }
 0x25d   :  { %v2515_v41 = vmax.f32 %v2030_v32, %v2068_v24 }
 0x263   :  { %v2052_v31 = vpop.f32.mrf.mxu2  ;;  %v2016_v6 = vpop.f32.mrf.mxu0 }
 0x264   :  { %v2071_v35 = vpop.f32.mrf.mxu3  ;;  %v2035_v50 = vpop.f32.mrf.mxu1  ;;  %v2516_v21 = vmax.f32 %v2014_v18, %v2052_v31 }
 0x265   :  { %v2517_v47 = vmax.f32 %v2033_v27, %v2071_v35 }
 0x26b   :  { %v2054_v38 = vpop.f32.mrf.mxu2  ;;  %v2085_v11 = vpop.f32.mrf.mxu0 }
 0x26c   :  { %v2073_v55 = vpop.f32.mrf.mxu3  ;;  %v2104_v25 = vpop.f32.mrf.mxu1  ;;  %v2518_v15 = vmax.f32 %v2016_v6, %v2054_v38 }
 0x26d   :  { %v2519_v32 = vmax.f32 %v2035_v50, %v2073_v55 }
 0x273   :  { %v2123_v17 = vpop.f32.mrf.mxu2  ;;  %v2087_v45 = vpop.f32.mrf.mxu0 }
 0x274   :  { %v2520_v62 = vmax.f32 %v2085_v11, %v2123_v17  ;;  %v2142_v13 = vpop.f32.mrf.mxu3  ;;  %v2106_v22 = vpop.f32.mrf.mxu1 }
 0x275   :  { %v2521_v8 = vmax.f32 %v2104_v25, %v2142_v13 }
 0x276   :  { %v2528_v1 = vmax.f32 %v2512_v59, %v2520_v62 }
 0x277   :  { %v2529_v23 = vmax.f32 %v2513_v0, %v2521_v8 }
 0x278   :  { %v2536_v3 = vadd.f32 %v2528_v1, %v3880_v40 }
 0x279   :  { %v2537_v20 = vadd.f32 %v2529_v23, %v3880_v40 }
 0x27a   :  { %v2544_v37 = vmax.f32 %v2536_v3, 0.0 }
 0x27b   :  { %v2545_v54 = vmax.f32 %v2537_v20, 0.0  ;;  %v2125_v12 = vpop.f32.mrf.mxu2  ;;  %v2090_v40 = vpop.f32.mrf.mxu0 }
 0x27c   :  { %v2522_v9 = vmax.f32 %v2087_v45, %v2125_v12  ;;  %v2144_v57 = vpop.f32.mrf.mxu3  ;;  %v2109_v10 = vpop.f32.mrf.mxu1 }
 0x27d   :  { %v2552_v61 = vpack.c.bf16 %v2545_v54, %v2544_v37  ;;  %v2523_v2 = vmax.f32 %v2106_v22, %v2144_v57 }
 0x27e   :  { %v2530_v19 = vmax.f32 %v2514_v46, %v2522_v9 }
 0x27f   :  { %2556 = vst [vmem:[%s4927_s3 + $0x38] sm:$0xff] %v2552_v61  ;;  %v2531_v30 = vmax.f32 %v2515_v41, %v2523_v2 }
 0x280   :  { %v2538_v58 = vadd.f32 %v2530_v19, %v3920_v28 }
 0x281   :  { %v2539_v48 = vadd.f32 %v2531_v30, %v3920_v28 }
 0x282   :  { %v2546_v60 = vmax.f32 %v2538_v58, 0.0 }
 0x283   :  { %v2547_v5 = vmax.f32 %v2539_v48, 0.0  ;;  %v2128_v29 = vpop.f32.mrf.mxu2  ;;  %v2092_v51 = vpop.f32.mrf.mxu0 }
 0x284   :  { %v2524_v26 = vmax.f32 %v2090_v40, %v2128_v29  ;;  %v2147_v63 = vpop.f32.mrf.mxu3  ;;  %v2111_v39 = vpop.f32.mrf.mxu1 }
 0x285   :  { %v2553_v16 = vpack.c.bf16 %v2547_v5, %v2546_v60  ;;  %v2525_v14 = vmax.f32 %v2109_v10, %v2147_v63 }
 0x286   :  { %v2532_v34 = vmax.f32 %v2516_v21, %v2524_v26 }
 0x287   :  { %2557 = vst [vmem:[%s4927_s3 + $0x78] sm:$0xff] %v2553_v16  ;;  %v2533_v36 = vmax.f32 %v2517_v47, %v2525_v14 }
 0x288   :  { %v2540_v49 = vadd.f32 %v2532_v34, %v3944_v33 }
 0x289   :  { %v2541_v28 = vadd.f32 %v2533_v36, %v3944_v33 }
 0x28a   :  { %v2548_v52 = vmax.f32 %v2540_v49, 0.0 }
 0x28b   :  { %v2549_v43 = vmax.f32 %v2541_v28, 0.0  ;;  %v2130_v4 = vpop.f32.mrf.mxu2 }
 0x28c   :  { %v2526_v56 = vmax.f32 %v2092_v51, %v2130_v4  ;;  %v2149_v53 = vpop.f32.mrf.mxu3 }
 0x28d   :  { %v2554_v44 = vpack.c.bf16 %v2549_v43, %v2548_v52  ;;  %v2527_v42 = vmax.f32 %v2111_v39, %v2149_v53 }
 0x28e   :  { %v2534_v18 = vmax.f32 %v2518_v15, %v2526_v56 }
 0x28f   :  { %2558 = vst [vmem:[%s4927_s3 + $0xb8] sm:$0xff] %v2554_v44  ;;  %v2535_v24 = vmax.f32 %v2519_v32, %v2527_v42 }
 0x290   :  { %v2542_v27 = vadd.f32 %v2534_v18, %v3978_v7 }
 0x291   :  { %v2543_v33 = vadd.f32 %v2535_v24, %v3978_v7 }
 0x292   :  { %v2550_v31 = vmax.f32 %v2542_v27, 0.0 }
 0x293   :  { %v2551_v35 = vmax.f32 %v2543_v33, 0.0 }
 0x295   :  { %v2555_v11 = vpack.c.bf16 %v2551_v35, %v2550_v31 }
 0x297   :  { %2559 = vst [vmem:[%s4927_s3 + $0xf8] sm:$0xff] %v2555_v11 }

// kernel: _lambda_.5
= control target key start
LH: loop header
LB: loop body
LE: loop exit
PB: predicated region body
PF: predicated region fallthrough
CT: control target
= control target key end

     0   :  { %s4155_s1 = inlined_call_operand.vmem [shape: bf16[3584,128], index: 1, kind: input, shape index: {}]   ;;  %s4156_s0 = inlined_call_operand.vmem [shape: bf16[8,3584], index: 0, kind: input, shape index: {}]   ;;  %s4157_s2 = inlined_call_operand.vmem [shape: f32[1,128], index: 2, kind: input, shape index: {}]   ;;  %s4158_s3 = inlined_call_operand.vmem [shape: f32[8,128], index: 3, kind: output, shape index: {}]  }
   0x1   :  { %v3194_v0 = vld [vmem:[%s4155_s1 + $0x38] sm:$0xff]  ;;  %v3193_v4 = vld [vmem:[%s4155_s1 + $0x30] sm:$0xff]  ;;  %v3192_v8 = vld [vmem:[%s4155_s1 + $0x28] sm:$0xff] }
   0x2   :  { %v3202_v1 = vld [vmem:[%s4155_s1 + $0x78] sm:$0xff]  ;;  %1922 = vmatpush.bf16.msra.mxu0 %v3194_v0  ;;  %v3201_v5 = vld [vmem:[%s4155_s1 + $0x70] sm:$0xff]  ;;  %v3200_v9 = vld [vmem:[%s4155_s1 + $0x68] sm:$0xff] }
   0x3   :  { %v3210_v2 = vld [vmem:[%s4155_s1 + $0xb8] sm:$0xff]  ;;  %1935 = vmatpush.bf16.msra.mxu1 %v3202_v1  ;;  %v3209_v6 = vld [vmem:[%s4155_s1 + $0xb0] sm:$0xff]  ;;  %v3208_v10 = vld [vmem:[%s4155_s1 + $0xa8] sm:$0xff] }
   0x4   :  { %v3218_v3 = vld [vmem:[%s4155_s1 + $0xf8] sm:$0xff]  ;;  %1948 = vmatpush.bf16.msra.mxu2 %v3210_v2  ;;  %v3217_v7 = vld [vmem:[%s4155_s1 + $0xf0] sm:$0xff]  ;;  %v3216_v11 = vld [vmem:[%s4155_s1 + $0xe8] sm:$0xff] }
   0x5   :  { %1961 = vmatpush.bf16.msra.mxu3 %v3218_v3  ;;  %v3191_v12 = vld [vmem:[%s4155_s1 + $0x20] sm:$0xff]  ;;  %v3190_v16 = vld [vmem:[%s4155_s1 + $0x18] sm:$0xff]  ;;  %v3189_v20 = vld [vmem:[%s4155_s1 + $0x10] sm:$0xff] }
   0x6   :  { %1923 = vmatpush.bf16.msra.mxu0 %v3193_v4  ;;  %v3199_v13 = vld [vmem:[%s4155_s1 + $0x60] sm:$0xff]  ;;  %v3198_v17 = vld [vmem:[%s4155_s1 + $0x58] sm:$0xff]  ;;  %v3197_v21 = vld [vmem:[%s4155_s1 + $0x50] sm:$0xff] }
   0x7   :  { %1936 = vmatpush.bf16.msra.mxu1 %v3201_v5  ;;  %v3207_v14 = vld [vmem:[%s4155_s1 + $0xa0] sm:$0xff]  ;;  %v3206_v18 = vld [vmem:[%s4155_s1 + $0x98] sm:$0xff]  ;;  %v3205_v22 = vld [vmem:[%s4155_s1 + $0x90] sm:$0xff] }
   0x8   :  { %1949 = vmatpush.bf16.msra.mxu2 %v3209_v6  ;;  %v3215_v15 = vld [vmem:[%s4155_s1 + $0xe0] sm:$0xff]  ;;  %v3214_v19 = vld [vmem:[%s4155_s1 + $0xd8] sm:$0xff]  ;;  %v3213_v23 = vld [vmem:[%s4155_s1 + $0xd0] sm:$0xff] }
   0x9   :  { %1962 = vmatpush.bf16.msra.mxu3 %v3217_v7  ;;  %v3188_v24 = vld [vmem:[%s4155_s1 + $0x8] sm:$0xff]  ;;  %v14_v29 = vld [vmem:[%s4156_s0] sm:$0xff]  ;;  %v3226_v38 = vld [vmem:[%s4155_s1 + $0x138] sm:$0xff] }
   0xa   :  { %1924 = vmatpush.bf16.msra.mxu0 %v3192_v8  ;;  %v3196_v25 = vld [vmem:[%s4155_s1 + $0x48] sm:$0xff]  ;;  %v3187_v30 = vld [vmem:[%s4155_s1] sm:$0xff]  ;;  %v494_v33 = vunpack.c.l.b16 %v14_v29  ;;  %v495_v37 = vunpack.c.h.b16 %v14_v29  ;;  %v3234_v39 = vld [vmem:[%s4155_s1 + $0x178] sm:$0xff] }
   0xb   :  { %1937 = vmatpush.bf16.msra.mxu1 %v3200_v9  ;;  %v3204_v26 = vld [vmem:[%s4155_s1 + $0x88] sm:$0xff]  ;;  %v3195_v31 = vld [vmem:[%s4155_s1 + $0x40] sm:$0xff]  ;;  %v3242_v40 = vld [vmem:[%s4155_s1 + $0x1b8] sm:$0xff] }
   0xc   :  { %1950 = vmatpush.bf16.msra.mxu2 %v3208_v10  ;;  %v3212_v27 = vld [vmem:[%s4155_s1 + $0xc8] sm:$0xff]  ;;  %v3203_v34 = vld [vmem:[%s4155_s1 + $0x80] sm:$0xff]  ;;  %v3250_v41 = vld [vmem:[%s4155_s1 + $0x1f8] sm:$0xff]  ;;  %v522_v43 = vpack.c.b16 %v494_v33, %v494_v33  ;;  %v523_v45 = vpack.c.b16 %v495_v37, %v495_v37 }
   0xd   :  { %1963 = vmatpush.bf16.msra.mxu3 %v3216_v11  ;;  %v15_v28 = vld [vmem:[%s4156_s0 + $0x8] sm:$0xff]  ;;  %v3211_v35 = vld [vmem:[%s4155_s1 + $0xc0] sm:$0xff]  ;;  %v3225_v46 = vld [vmem:[%s4155_s1 + $0x130] sm:$0xff] }
   0xe   :  { %1925 = vmatpush.bf16.msra.mxu0 %v3191_v12  ;;  %v496_v32 = vunpack.c.l.b16 %v15_v28  ;;  %v497_v36 = vunpack.c.h.b16 %v15_v28  ;;  %v3233_v47 = vld [vmem:[%s4155_s1 + $0x170] sm:$0xff]  ;;  %v3224_v50 = vld [vmem:[%s4155_s1 + $0x128] sm:$0xff]  ;;  %v3223_v54 = vld [vmem:[%s4155_s1 + $0x120] sm:$0xff] }
   0xf   :  { %1938 = vmatpush.bf16.msra.mxu1 %v3199_v13  ;;  %v3241_v48 = vld [vmem:[%s4155_s1 + $0x1b0] sm:$0xff]  ;;  %v3232_v51 = vld [vmem:[%s4155_s1 + $0x168] sm:$0xff]  ;;  %v3231_v55 = vld [vmem:[%s4155_s1 + $0x160] sm:$0xff] }
  0x10   :  { %1951 = vmatpush.bf16.msra.mxu2 %v3207_v14  ;;  %v524_v42 = vpack.c.b16 %v496_v32, %v496_v32  ;;  %v525_v44 = vpack.c.b16 %v497_v36, %v497_v36  ;;  %v3249_v49 = vld [vmem:[%s4155_s1 + $0x1f0] sm:$0xff]  ;;  %v3240_v52 = vld [vmem:[%s4155_s1 + $0x1a8] sm:$0xff]  ;;  %v3239_v56 = vld [vmem:[%s4155_s1 + $0x1a0] sm:$0xff] }
  0x11   :  { %1964 = vmatpush.bf16.msra.mxu3 %v3215_v15  ;;  %v3248_v53 = vld [vmem:[%s4155_s1 + $0x1e8] sm:$0xff]  ;;  %v3247_v57 = vld [vmem:[%s4155_s1 + $0x1e0] sm:$0xff]  ;;  %v3222_v58 = vld [vmem:[%s4155_s1 + $0x118] sm:$0xff] }
  0x12   :  { %1926 = vmatpush.bf16.msra.mxu0 %v3190_v16  ;;  %v3230_v59 = vld [vmem:[%s4155_s1 + $0x158] sm:$0xff]  ;;  %v3221_v62 = vld [vmem:[%s4155_s1 + $0x110] sm:$0xff]  ;;  %v3220_v2 = vld [vmem:[%s4155_s1 + $0x108] sm:$0xff] }
  0x13   :  { %1939 = vmatpush.bf16.msra.mxu1 %v3198_v17  ;;  %v3238_v60 = vld [vmem:[%s4155_s1 + $0x198] sm:$0xff]  ;;  %v3229_v63 = vld [vmem:[%s4155_s1 + $0x150] sm:$0xff]  ;;  %v3228_v3 = vld [vmem:[%s4155_s1 + $0x148] sm:$0xff] }
  0x14   :  { %1952 = vmatpush.bf16.msra.mxu2 %v3206_v18  ;;  %v3246_v61 = vld [vmem:[%s4155_s1 + $0x1d8] sm:$0xff]  ;;  %v3237_v0 = vld [vmem:[%s4155_s1 + $0x190] sm:$0xff]  ;;  %v3236_v4 = vld [vmem:[%s4155_s1 + $0x188] sm:$0xff] }
  0x15   :  { %1965 = vmatpush.bf16.msra.mxu3 %v3214_v19  ;;  %v3245_v1 = vld [vmem:[%s4155_s1 + $0x1d0] sm:$0xff]  ;;  %v3244_v5 = vld [vmem:[%s4155_s1 + $0x1c8] sm:$0xff]  ;;  %v17_v6 = vld [vmem:[%s4156_s0 + $0x18] sm:$0xff] }
  0x16   :  { %1927 = vmatpush.bf16.msra.mxu0 %v3189_v20  ;;  %v16_v7 = vld [vmem:[%s4156_s0 + $0x10] sm:$0xff]  ;;  %v3219_v8 = vld [vmem:[%s4155_s1 + $0x100] sm:$0xff]  ;;  %v500_v10 = vunpack.c.l.b16 %v17_v6  ;;  %v501_v14 = vunpack.c.h.b16 %v17_v6  ;;  %v3258_v16 = vld [vmem:[%s4155_s1 + $0x238] sm:$0xff] }
  0x17   :  { %1940 = vmatpush.bf16.msra.mxu1 %v3197_v21  ;;  %v3227_v9 = vld [vmem:[%s4155_s1 + $0x140] sm:$0xff]  ;;  %v498_v11 = vunpack.c.l.b16 %v16_v7  ;;  %v499_v15 = vunpack.c.h.b16 %v16_v7  ;;  %v3266_v17 = vld [vmem:[%s4155_s1 + $0x278] sm:$0xff]  ;;  %v3256_v28 = vld [vmem:[%s4155_s1 + $0x228] sm:$0xff] }
  0x18   :  { %1953 = vmatpush.bf16.msra.mxu2 %v3205_v22  ;;  %v3235_v12 = vld [vmem:[%s4155_s1 + $0x180] sm:$0xff]  ;;  %v3274_v18 = vld [vmem:[%s4155_s1 + $0x2b8] sm:$0xff]  ;;  %v528_v20 = vpack.c.b16 %v500_v10, %v500_v10  ;;  %v529_v22 = vpack.c.b16 %v501_v14, %v501_v14  ;;  %v3264_v29 = vld [vmem:[%s4155_s1 + $0x268] sm:$0xff] }
  0x19   :  { %1966 = vmatpush.bf16.msra.mxu3 %v3213_v23  ;;  %v3243_v13 = vld [vmem:[%s4155_s1 + $0x1c0] sm:$0xff]  ;;  %v3282_v19 = vld [vmem:[%s4155_s1 + $0x2f8] sm:$0xff]  ;;  %v526_v21 = vpack.c.b16 %v498_v11, %v498_v11  ;;  %v527_v23 = vpack.c.b16 %v499_v15, %v499_v15  ;;  %v3288_v6 = vld [vmem:[%s4155_s1 + $0x328] sm:$0xff] }
  0x1a   :  { %1928 = vmatpush.bf16.msra.mxu0 %v3188_v24  ;;  %v3257_v24 = vld [vmem:[%s4155_s1 + $0x230] sm:$0xff]  ;;  %v3255_v32 = vld [vmem:[%s4155_s1 + $0x220] sm:$0xff]  ;;  %v3254_v36 = vld [vmem:[%s4155_s1 + $0x218] sm:$0xff] }
  0x1b   :  { %1941 = vmatpush.bf16.msra.mxu1 %v3196_v25  ;;  %v3265_v25 = vld [vmem:[%s4155_s1 + $0x270] sm:$0xff]  ;;  %v3263_v33 = vld [vmem:[%s4155_s1 + $0x260] sm:$0xff]  ;;  %v3262_v37 = vld [vmem:[%s4155_s1 + $0x258] sm:$0xff] }
  0x1c   :  { %1954 = vmatpush.bf16.msra.mxu2 %v3204_v26  ;;  %v3273_v26 = vld [vmem:[%s4155_s1 + $0x2b0] sm:$0xff]  ;;  %v3296_v7 = vld [vmem:[%s4155_s1 + $0x368] sm:$0xff]  ;;  %v3287_v10 = vld [vmem:[%s4155_s1 + $0x320] sm:$0xff] }
  0x1d   :  { %1967 = vmatpush.bf16.msra.mxu3 %v3212_v27  ;;  %v3281_v27 = vld [vmem:[%s4155_s1 + $0x2f0] sm:$0xff]  ;;  %v3295_v11 = vld [vmem:[%s4155_s1 + $0x360] sm:$0xff]  ;;  %v3286_v14 = vld [vmem:[%s4155_s1 + $0x318] sm:$0xff] }
  0x1e   :  { %1929 = vmatpush.bf16.msra.mxu0 %v3187_v30  ;;  %v3272_v30 = vld [vmem:[%s4155_s1 + $0x2a8] sm:$0xff]  ;;  %v3294_v15 = vld [vmem:[%s4155_s1 + $0x358] sm:$0xff] }
  0x1f   :  { %1942 = vmatpush.bf16.msra.mxu1 %v3195_v31  ;;  %v3280_v31 = vld [vmem:[%s4155_s1 + $0x2e8] sm:$0xff] }
  0x20   :  { %1955 = vmatpush.bf16.msra.mxu2 %v3203_v34  ;;  %v3271_v34 = vld [vmem:[%s4155_s1 + $0x2a0] sm:$0xff] }
  0x21   :  { %1968 = vmatpush.bf16.msra.mxu3 %v3211_v35  ;;  %1930 = vmatmul.bf16.vlgmr.msra.gmra.mxu0 %v522_v43  ;;  %v3279_v35 = vld [vmem:[%s4155_s1 + $0x2e0] sm:$0xff]  ;;  %v3277_v43 = vld [vmem:[%s4155_s1 + $0x2d0] sm:$0xff] }
  0x22   :  { %1974 = vmatpush.bf16.msrb.mxu0 %v3226_v38  ;;  %1943 = vmatmul.bf16.vlgmr.msra.gmra.mxu1 %v523_v45  ;;  %v3270_v38 = vld [vmem:[%s4155_s1 + $0x298] sm:$0xff]  ;;  %v3260_v45 = vld [vmem:[%s4155_s1 + $0x248] sm:$0xff] }
  0x23   :  { %1987 = vmatpush.bf16.msrb.mxu1 %v3234_v39  ;;  %1956 = vmatmul.bf16.vlgmr.msra.gmra.mxu2 %v524_v42  ;;  %v3278_v39 = vld [vmem:[%s4155_s1 + $0x2d8] sm:$0xff]  ;;  %v3269_v42 = vld [vmem:[%s4155_s1 + $0x290] sm:$0xff] }
  0x24   :  { %2000 = vmatpush.bf16.msrb.mxu2 %v3242_v40  ;;  %1969 = vmatmul.bf16.vlgmr.msra.gmra.mxu3 %v525_v44  ;;  %v3253_v40 = vld [vmem:[%s4155_s1 + $0x210] sm:$0xff]  ;;  %v3252_v44 = vld [vmem:[%s4155_s1 + $0x208] sm:$0xff] }
  0x25   :  { %2013 = vmatpush.bf16.msrb.mxu3 %v3250_v41  ;;  %v3261_v41 = vld [vmem:[%s4155_s1 + $0x250] sm:$0xff] }
  0x26   :  { %1975 = vmatpush.bf16.msrb.mxu0 %v3225_v46  ;;  %v3268_v46 = vld [vmem:[%s4155_s1 + $0x288] sm:$0xff] }
  0x27   :  { %1988 = vmatpush.bf16.msrb.mxu1 %v3233_v47  ;;  %v3276_v47 = vld [vmem:[%s4155_s1 + $0x2c8] sm:$0xff] }
  0x28   :  { %2001 = vmatpush.bf16.msrb.mxu2 %v3241_v48  ;;  %v18_v48 = vld [vmem:[%s4156_s0 + $0x20] sm:$0xff] }
  0x29   :  { %2014 = vmatpush.bf16.msrb.mxu3 %v3249_v49  ;;  %v19_v49 = vld [vmem:[%s4156_s0 + $0x28] sm:$0xff] }
  0x2a   :  { %1976 = vmatpush.bf16.msrb.mxu0 %v3224_v50  ;;  %v3251_v50 = vld [vmem:[%s4155_s1 + $0x200] sm:$0xff] }
  0x2b   :  { %1989 = vmatpush.bf16.msrb.mxu1 %v3232_v51  ;;  %v3259_v51 = vld [vmem:[%s4155_s1 + $0x240] sm:$0xff] }
  0x2c   :  { %2002 = vmatpush.bf16.msrb.mxu2 %v3240_v52  ;;  %v502_v52 = vunpack.c.l.b16 %v18_v48 }
  0x2d   :  { %2015 = vmatpush.bf16.msrb.mxu3 %v3248_v53  ;;  %v504_v53 = vunpack.c.l.b16 %v19_v49 }
  0x2e   :  { %1977 = vmatpush.bf16.msrb.mxu0 %v3223_v54  ;;  %v3267_v54 = vld [vmem:[%s4155_s1 + $0x280] sm:$0xff] }
  0x2f   :  { %1990 = vmatpush.bf16.msrb.mxu1 %v3231_v55  ;;  %v3275_v55 = vld [vmem:[%s4155_s1 + $0x2c0] sm:$0xff] }
  0x30   :  { %2003 = vmatpush.bf16.msrb.mxu2 %v3239_v56  ;;  %v503_v56 = vunpack.c.h.b16 %v18_v48  ;;  %v3320_v48 = vld [vmem:[%s4155_s1 + $0x428] sm:$0xff] }
  0x31   :  { %2016 = vmatpush.bf16.msrb.mxu3 %v3247_v57  ;;  %v505_v57 = vunpack.c.h.b16 %v19_v49  ;;  %v3328_v49 = vld [vmem:[%s4155_s1 + $0x468] sm:$0xff] }
  0x32   :  { %1978 = vmatpush.bf16.msrb.mxu0 %v3222_v58  ;;  %v3290_v58 = vld [vmem:[%s4155_s1 + $0x338] sm:$0xff] }
  0x33   :  { %1991 = vmatpush.bf16.msrb.mxu1 %v3230_v59  ;;  %v3298_v59 = vld [vmem:[%s4155_s1 + $0x378] sm:$0xff] }
  0x34   :  { %2004 = vmatpush.bf16.msrb.mxu2 %v3238_v60  ;;  %v3306_v60 = vld [vmem:[%s4155_s1 + $0x3b8] sm:$0xff] }
  0x35   :  { %2017 = vmatpush.bf16.msrb.mxu3 %v3246_v61  ;;  %v3314_v61 = vld [vmem:[%s4155_s1 + $0x3f8] sm:$0xff] }
  0x36   :  { %1979 = vmatpush.bf16.msrb.mxu0 %v3221_v62  ;;  %v530_v62 = vpack.c.b16 %v502_v52, %v502_v52  ;;  %v3319_v52 = vld [vmem:[%s4155_s1 + $0x420] sm:$0xff] }
  0x37   :  { %1992 = vmatpush.bf16.msrb.mxu1 %v3229_v63  ;;  %v532_v63 = vpack.c.b16 %v504_v53, %v504_v53  ;;  %v3327_v53 = vld [vmem:[%s4155_s1 + $0x460] sm:$0xff] }
  0x38   :  { %2005 = vmatpush.bf16.msrb.mxu2 %v3237_v0  ;;  %v531_v0 = vpack.c.b16 %v503_v56, %v503_v56  ;;  %v3318_v56 = vld [vmem:[%s4155_s1 + $0x418] sm:$0xff] }
  0x39   :  { %2018 = vmatpush.bf16.msrb.mxu3 %v3245_v1  ;;  %v533_v1 = vpack.c.b16 %v505_v57, %v505_v57  ;;  %v3326_v57 = vld [vmem:[%s4155_s1 + $0x458] sm:$0xff] }
  0x3a   :  { %1980 = vmatpush.bf16.msrb.mxu0 %v3220_v2  ;;  %v3289_v2 = vld [vmem:[%s4155_s1 + $0x330] sm:$0xff] }
  0x3b   :  { %1993 = vmatpush.bf16.msrb.mxu1 %v3228_v3  ;;  %v3297_v3 = vld [vmem:[%s4155_s1 + $0x370] sm:$0xff] }
  0x3c   :  { %2006 = vmatpush.bf16.msrb.mxu2 %v3236_v4  ;;  %v3305_v4 = vld [vmem:[%s4155_s1 + $0x3b0] sm:$0xff] }
  0x3d   :  { %2019 = vmatpush.bf16.msrb.mxu3 %v3244_v5  ;;  %v3313_v5 = vld [vmem:[%s4155_s1 + $0x3f0] sm:$0xff] }
  0x3e   :  { %1981 = vmatpush.bf16.msrb.mxu0 %v3219_v8  ;;  %v3304_v8 = vld [vmem:[%s4155_s1 + $0x3a8] sm:$0xff] }
  0x3f   :  { %1994 = vmatpush.bf16.msrb.mxu1 %v3227_v9  ;;  %v3312_v9 = vld [vmem:[%s4155_s1 + $0x3e8] sm:$0xff] }
  0x40   :  { %2007 = vmatpush.bf16.msrb.mxu2 %v3235_v12  ;;  %v3303_v12 = vld [vmem:[%s4155_s1 + $0x3a0] sm:$0xff] }
  0x41   :  { %2020 = vmatpush.bf16.msrb.mxu3 %v3243_v13  ;;  %1982 = vmatmul.bf16.vlgmr.msrb.gmra.mxu0 %v526_v21  ;;  %v3311_v13 = vld [vmem:[%s4155_s1 + $0x3e0] sm:$0xff]  ;;  %v3309_v21 = vld [vmem:[%s4155_s1 + $0x3d0] sm:$0xff] }
  0x42   :  { %2026 = vmatpush.bf16.msra.mxu0 %v3258_v16  ;;  %1995 = vmatmul.bf16.vlgmr.msrb.gmra.mxu1 %v527_v23  ;;  %v3302_v16 = vld [vmem:[%s4155_s1 + $0x398] sm:$0xff]  ;;  %v3292_v23 = vld [vmem:[%s4155_s1 + $0x348] sm:$0xff] }
  0x43   :  { %2039 = vmatpush.bf16.msra.mxu1 %v3266_v17  ;;  %2008 = vmatmul.bf16.vlgmr.msrb.gmra.mxu2 %v528_v20  ;;  %v3310_v17 = vld [vmem:[%s4155_s1 + $0x3d8] sm:$0xff]  ;;  %v3301_v20 = vld [vmem:[%s4155_s1 + $0x390] sm:$0xff] }
  0x44   :  { %2052 = vmatpush.bf16.msra.mxu2 %v3274_v18  ;;  %2021 = vmatmul.bf16.vlgmr.msrb.gmra.mxu3 %v529_v22  ;;  %v3285_v18 = vld [vmem:[%s4155_s1 + $0x310] sm:$0xff]  ;;  %v3284_v22 = vld [vmem:[%s4155_s1 + $0x308] sm:$0xff] }
  0x45   :  { %2065 = vmatpush.bf16.msra.mxu3 %v3282_v19  ;;  %v3293_v19 = vld [vmem:[%s4155_s1 + $0x350] sm:$0xff] }
  0x46   :  { %2027 = vmatpush.bf16.msra.mxu0 %v3257_v24  ;;  %v3300_v24 = vld [vmem:[%s4155_s1 + $0x388] sm:$0xff] }
  0x47   :  { %2040 = vmatpush.bf16.msra.mxu1 %v3265_v25  ;;  %v3308_v25 = vld [vmem:[%s4155_s1 + $0x3c8] sm:$0xff] }
  0x48   :  { %2053 = vmatpush.bf16.msra.mxu2 %v3273_v26  ;;  %v20_v26 = vld [vmem:[%s4156_s0 + $0x30] sm:$0xff] }
  0x49   :  { %2066 = vmatpush.bf16.msra.mxu3 %v3281_v27  ;;  %v21_v27 = vld [vmem:[%s4156_s0 + $0x38] sm:$0xff] }
  0x4a   :  { %2028 = vmatpush.bf16.msra.mxu0 %v3256_v28  ;;  %v3283_v28 = vld [vmem:[%s4155_s1 + $0x300] sm:$0xff] }
  0x4b   :  { %2041 = vmatpush.bf16.msra.mxu1 %v3264_v29  ;;  %v3291_v29 = vld [vmem:[%s4155_s1 + $0x340] sm:$0xff] }
  0x4c   :  { %2054 = vmatpush.bf16.msra.mxu2 %v3272_v30  ;;  %v506_v30 = vunpack.c.l.b16 %v20_v26 }
  0x4d   :  { %2067 = vmatpush.bf16.msra.mxu3 %v3280_v31  ;;  %v508_v31 = vunpack.c.l.b16 %v21_v27 }
  0x4e   :  { %2029 = vmatpush.bf16.msra.mxu0 %v3255_v32  ;;  %v3299_v32 = vld [vmem:[%s4155_s1 + $0x380] sm:$0xff] }
  0x4f   :  { %2042 = vmatpush.bf16.msra.mxu1 %v3263_v33  ;;  %v3307_v33 = vld [vmem:[%s4155_s1 + $0x3c0] sm:$0xff] }
  0x50   :  { %2055 = vmatpush.bf16.msra.mxu2 %v3271_v34  ;;  %v507_v34 = vunpack.c.h.b16 %v20_v26  ;;  %v3352_v26 = vld [vmem:[%s4155_s1 + $0x528] sm:$0xff] }
  0x51   :  { %2068 = vmatpush.bf16.msra.mxu3 %v3279_v35  ;;  %v509_v35 = vunpack.c.h.b16 %v21_v27  ;;  %v3360_v27 = vld [vmem:[%s4155_s1 + $0x568] sm:$0xff] }
  0x52   :  { %2030 = vmatpush.bf16.msra.mxu0 %v3254_v36  ;;  %v3322_v36 = vld [vmem:[%s4155_s1 + $0x438] sm:$0xff] }
  0x53   :  { %2043 = vmatpush.bf16.msra.mxu1 %v3262_v37  ;;  %v3330_v37 = vld [vmem:[%s4155_s1 + $0x478] sm:$0xff] }
  0x54   :  { %2056 = vmatpush.bf16.msra.mxu2 %v3270_v38  ;;  %v3338_v38 = vld [vmem:[%s4155_s1 + $0x4b8] sm:$0xff] }
  0x55   :  { %2069 = vmatpush.bf16.msra.mxu3 %v3278_v39  ;;  %v3346_v39 = vld [vmem:[%s4155_s1 + $0x4f8] sm:$0xff] }
  0x56   :  { %2031 = vmatpush.bf16.msra.mxu0 %v3253_v40  ;;  %v534_v40 = vpack.c.b16 %v506_v30, %v506_v30  ;;  %v3376_v30 = vld [vmem:[%s4155_s1 + $0x5e8] sm:$0xff] }
  0x57   :  { %2044 = vmatpush.bf16.msra.mxu1 %v3261_v41  ;;  %v536_v41 = vpack.c.b16 %v508_v31, %v508_v31 }
  0x58   :  { %2057 = vmatpush.bf16.msra.mxu2 %v3269_v42  ;;  %v535_v42 = vpack.c.b16 %v507_v34, %v507_v34 }
  0x59   :  { %2070 = vmatpush.bf16.msra.mxu3 %v3277_v43  ;;  %v537_v43 = vpack.c.b16 %v509_v35, %v509_v35 }
  0x5a   :  { %2032 = vmatpush.bf16.msra.mxu0 %v3252_v44  ;;  %v3321_v44 = vld [vmem:[%s4155_s1 + $0x430] sm:$0xff] }
  0x5b   :  { %2045 = vmatpush.bf16.msra.mxu1 %v3260_v45  ;;  %v3329_v45 = vld [vmem:[%s4155_s1 + $0x470] sm:$0xff] }
  0x5c   :  { %2058 = vmatpush.bf16.msra.mxu2 %v3268_v46  ;;  %v3337_v46 = vld [vmem:[%s4155_s1 + $0x4b0] sm:$0xff] }
  0x5d   :  { %2071 = vmatpush.bf16.msra.mxu3 %v3276_v47  ;;  %v3345_v47 = vld [vmem:[%s4155_s1 + $0x4f0] sm:$0xff] }
  0x5e   :  { %2033 = vmatpush.bf16.msra.mxu0 %v3251_v50  ;;  %v3336_v50 = vld [vmem:[%s4155_s1 + $0x4a8] sm:$0xff] }
  0x5f   :  { %2046 = vmatpush.bf16.msra.mxu1 %v3259_v51  ;;  %v3344_v51 = vld [vmem:[%s4155_s1 + $0x4e8] sm:$0xff] }
  0x60   :  { %2059 = vmatpush.bf16.msra.mxu2 %v3267_v54  ;;  %v3335_v54 = vld [vmem:[%s4155_s1 + $0x4a0] sm:$0xff] }
  0x61   :  { %2072 = vmatpush.bf16.msra.mxu3 %v3275_v55  ;;  %2034 = vmatmul.bf16.vlgmr.msra.gmra.mxu0 %v530_v62  ;;  %v3343_v55 = vld [vmem:[%s4155_s1 + $0x4e0] sm:$0xff]  ;;  %v3333_v62 = vld [vmem:[%s4155_s1 + $0x490] sm:$0xff] }
  0x62   :  { %2078 = vmatpush.bf16.msrb.mxu0 %v3290_v58  ;;  %2047 = vmatmul.bf16.vlgmr.msra.gmra.mxu1 %v531_v0  ;;  %v3334_v58 = vld [vmem:[%s4155_s1 + $0x498] sm:$0xff]  ;;  %v3316_v0 = vld [vmem:[%s4155_s1 + $0x408] sm:$0xff] }
  0x63   :  { %2091 = vmatpush.bf16.msrb.mxu1 %v3298_v59  ;;  %2060 = vmatmul.bf16.vlgmr.msra.gmra.mxu2 %v532_v63  ;;  %v3342_v59 = vld [vmem:[%s4155_s1 + $0x4d8] sm:$0xff]  ;;  %v3341_v63 = vld [vmem:[%s4155_s1 + $0x4d0] sm:$0xff] }
  0x64   :  { %2104 = vmatpush.bf16.msrb.mxu2 %v3306_v60  ;;  %2073 = vmatmul.bf16.vlgmr.msra.gmra.mxu3 %v533_v1  ;;  %v3317_v60 = vld [vmem:[%s4155_s1 + $0x410] sm:$0xff]  ;;  %v3324_v1 = vld [vmem:[%s4155_s1 + $0x448] sm:$0xff] }
  0x65   :  { %2117 = vmatpush.bf16.msrb.mxu3 %v3314_v61  ;;  %v3325_v61 = vld [vmem:[%s4155_s1 + $0x450] sm:$0xff] }
  0x66   :  { %2079 = vmatpush.bf16.msrb.mxu0 %v3289_v2  ;;  %v3332_v2 = vld [vmem:[%s4155_s1 + $0x488] sm:$0xff] }
  0x67   :  { %2092 = vmatpush.bf16.msrb.mxu1 %v3297_v3  ;;  %v3340_v3 = vld [vmem:[%s4155_s1 + $0x4c8] sm:$0xff] }
  0x68   :  { %2105 = vmatpush.bf16.msrb.mxu2 %v3305_v4  ;;  %v22_v4 = vld [vmem:[%s4156_s0 + $0x40] sm:$0xff] }
  0x69   :  { %2118 = vmatpush.bf16.msrb.mxu3 %v3313_v5  ;;  %v23_v5 = vld [vmem:[%s4156_s0 + $0x48] sm:$0xff] }
  0x6a   :  { %2080 = vmatpush.bf16.msrb.mxu0 %v3288_v6  ;;  %v3315_v6 = vld [vmem:[%s4155_s1 + $0x400] sm:$0xff] }
  0x6b   :  { %2093 = vmatpush.bf16.msrb.mxu1 %v3296_v7  ;;  %v3323_v7 = vld [vmem:[%s4155_s1 + $0x440] sm:$0xff] }
  0x6c   :  { %2106 = vmatpush.bf16.msrb.mxu2 %v3304_v8  ;;  %v510_v8 = vunpack.c.l.b16 %v22_v4 }
  0x6d   :  { %2119 = vmatpush.bf16.msrb.mxu3 %v3312_v9  ;;  %v512_v9 = vunpack.c.l.b16 %v23_v5 }
  0x6e   :  { %2081 = vmatpush.bf16.msrb.mxu0 %v3287_v10  ;;  %v3331_v10 = vld [vmem:[%s4155_s1 + $0x480] sm:$0xff] }
  0x6f   :  { %2094 = vmatpush.bf16.msrb.mxu1 %v3295_v11  ;;  %v3339_v11 = vld [vmem:[%s4155_s1 + $0x4c0] sm:$0xff] }
  0x70   :  { %2107 = vmatpush.bf16.msrb.mxu2 %v3303_v12  ;;  %v511_v12 = vunpack.c.h.b16 %v22_v4 }
  0x71   :  { %2120 = vmatpush.bf16.msrb.mxu3 %v3311_v13  ;;  %v513_v13 = vunpack.c.h.b16 %v23_v5  ;;  %v3386_v5 = vld [vmem:[%s4155_s1 + $0x638] sm:$0xff] }
  0x72   :  { %2082 = vmatpush.bf16.msrb.mxu0 %v3286_v14  ;;  %v3354_v14 = vld [vmem:[%s4155_s1 + $0x538] sm:$0xff] }
  0x73   :  { %2095 = vmatpush.bf16.msrb.mxu1 %v3294_v15  ;;  %v3362_v15 = vld [vmem:[%s4155_s1 + $0x578] sm:$0xff] }
  0x74   :  { %2108 = vmatpush.bf16.msrb.mxu2 %v3302_v16  ;;  %v3370_v16 = vld [vmem:[%s4155_s1 + $0x5b8] sm:$0xff] }
  0x75   :  { %2121 = vmatpush.bf16.msrb.mxu3 %v3310_v17  ;;  %v3378_v17 = vld [vmem:[%s4155_s1 + $0x5f8] sm:$0xff] }
  0x76   :  { %2083 = vmatpush.bf16.msrb.mxu0 %v3285_v18  ;;  %v538_v18 = vpack.c.b16 %v510_v8, %v510_v8  ;;  %v3410_v8 = vld [vmem:[%s4155_s1 + $0x6f8] sm:$0xff] }
  0x77   :  { %2096 = vmatpush.bf16.msrb.mxu1 %v3293_v19  ;;  %v540_v19 = vpack.c.b16 %v512_v9, %v512_v9 }
  0x78   :  { %2109 = vmatpush.bf16.msrb.mxu2 %v3301_v20  ;;  %v539_v20 = vpack.c.b16 %v511_v12, %v511_v12 }
  0x79   :  { %2122 = vmatpush.bf16.msrb.mxu3 %v3309_v21  ;;  %v541_v21 = vpack.c.b16 %v513_v13, %v513_v13  ;;  %v3385_v13 = vld [vmem:[%s4155_s1 + $0x630] sm:$0xff] }
  0x7a   :  { %2084 = vmatpush.bf16.msrb.mxu0 %v3284_v22  ;;  %v3353_v22 = vld [vmem:[%s4155_s1 + $0x530] sm:$0xff] }
  0x7b   :  { %2097 = vmatpush.bf16.msrb.mxu1 %v3292_v23  ;;  %v3361_v23 = vld [vmem:[%s4155_s1 + $0x570] sm:$0xff] }
  0x7c   :  { %2110 = vmatpush.bf16.msrb.mxu2 %v3300_v24  ;;  %v3369_v24 = vld [vmem:[%s4155_s1 + $0x5b0] sm:$0xff] }
  0x7d   :  { %2123 = vmatpush.bf16.msrb.mxu3 %v3308_v25  ;;  %v3377_v25 = vld [vmem:[%s4155_s1 + $0x5f0] sm:$0xff] }
  0x7e   :  { %2085 = vmatpush.bf16.msrb.mxu0 %v3283_v28  ;;  %v3411_v28 = vld [vmem:[%s4157_s2] ss:$0 sm:$0xff] }
  0x7f   :  { %2098 = vmatpush.bf16.msrb.mxu1 %v3291_v29  ;;  %v3368_v29 = vld [vmem:[%s4155_s1 + $0x5a8] sm:$0xff] }
  0x80   :  { %2111 = vmatpush.bf16.msrb.mxu2 %v3299_v32  ;;  %v3351_v32 = vld [vmem:[%s4155_s1 + $0x520] sm:$0xff] }
  0x81   :  { %2124 = vmatpush.bf16.msrb.mxu3 %v3307_v33  ;;  %2086 = vmatmul.bf16.vlgmr.msrb.gmra.mxu0 %v534_v40  ;;  %v3359_v33 = vld [vmem:[%s4155_s1 + $0x560] sm:$0xff]  ;;  %v3358_v40 = vld [vmem:[%s4155_s1 + $0x558] sm:$0xff] }
  0x82   :  { %2130 = vmatpush.bf16.msra.mxu0 %v3322_v36  ;;  %2099 = vmatmul.bf16.vlgmr.msrb.gmra.mxu1 %v535_v42  ;;  %v3367_v36 = vld [vmem:[%s4155_s1 + $0x5a0] sm:$0xff]  ;;  %v3374_v42 = vld [vmem:[%s4155_s1 + $0x5d8] sm:$0xff] }
  0x83   :  { %2143 = vmatpush.bf16.msra.mxu1 %v3330_v37  ;;  %2112 = vmatmul.bf16.vlgmr.msrb.gmra.mxu2 %v536_v41  ;;  %v3375_v37 = vld [vmem:[%s4155_s1 + $0x5e0] sm:$0xff]  ;;  %v3366_v41 = vld [vmem:[%s4155_s1 + $0x598] sm:$0xff] }
  0x84   :  { %2156 = vmatpush.bf16.msra.mxu2 %v3338_v38  ;;  %2125 = vmatmul.bf16.vlgmr.msrb.gmra.mxu3 %v537_v43 }
  0x85   :  { %2169 = vmatpush.bf16.msra.mxu3 %v3346_v39  ;;  %v3350_v39 = vld [vmem:[%s4155_s1 + $0x518] sm:$0xff] }
  0x86   :  { %2131 = vmatpush.bf16.msra.mxu0 %v3321_v44 }
  0x87   :  { %2144 = vmatpush.bf16.msra.mxu1 %v3329_v45 }
  0x88   :  { %2157 = vmatpush.bf16.msra.mxu2 %v3337_v46 }
  0x89   :  { %2170 = vmatpush.bf16.msra.mxu3 %v3345_v47  ;;  %v3349_v47 = vld [vmem:[%s4155_s1 + $0x510] sm:$0xff] }
  0x8a   :  { %2132 = vmatpush.bf16.msra.mxu0 %v3320_v48  ;;  %v3357_v48 = vld [vmem:[%s4155_s1 + $0x550] sm:$0xff] }
  0x8b   :  { %2145 = vmatpush.bf16.msra.mxu1 %v3328_v49 }
  0x8c   :  { %2158 = vmatpush.bf16.msra.mxu2 %v3336_v50 }
  0x8d   :  { %2171 = vmatpush.bf16.msra.mxu3 %v3344_v51  ;;  %v3365_v51 = vld [vmem:[%s4155_s1 + $0x590] sm:$0xff] }
  0x8e   :  { %2133 = vmatpush.bf16.msra.mxu0 %v3319_v52  ;;  %v3373_v52 = vld [vmem:[%s4155_s1 + $0x5d0] sm:$0xff] }
  0x8f   :  { %2146 = vmatpush.bf16.msra.mxu1 %v3327_v53  ;;  %v3348_v53 = vld [vmem:[%s4155_s1 + $0x508] sm:$0xff] }
  0x90   :  { %2159 = vmatpush.bf16.msra.mxu2 %v3335_v54  ;;  %v3356_v54 = vld [vmem:[%s4155_s1 + $0x548] sm:$0xff] }
  0x91   :  { %2172 = vmatpush.bf16.msra.mxu3 %v3343_v55  ;;  %v3364_v55 = vld [vmem:[%s4155_s1 + $0x588] sm:$0xff] }
  0x92   :  { %2134 = vmatpush.bf16.msra.mxu0 %v3318_v56  ;;  %v3372_v56 = vld [vmem:[%s4155_s1 + $0x5c8] sm:$0xff] }
  0x93   :  { %2147 = vmatpush.bf16.msra.mxu1 %v3326_v57  ;;  %v24_v57 = vld [vmem:[%s4156_s0 + $0x50] sm:$0xff] }
  0x94   :  { %2160 = vmatpush.bf16.msra.mxu2 %v3334_v58  ;;  %v25_v58 = vld [vmem:[%s4156_s0 + $0x58] sm:$0xff] }
  0x95   :  { %2173 = vmatpush.bf16.msra.mxu3 %v3342_v59  ;;  %v517_v4 = vunpack.c.h.b16 %v25_v58 }
  0x96   :  { %2135 = vmatpush.bf16.msra.mxu0 %v3317_v60 }
  0x97   :  { %2148 = vmatpush.bf16.msra.mxu1 %v3325_v61  ;;  %v3347_v61 = vld [vmem:[%s4155_s1 + $0x500] sm:$0xff]  ;;  %v545_v12 = vpack.c.b16 %v517_v4, %v517_v4 }
  0x98   :  { %2161 = vmatpush.bf16.msra.mxu2 %v3333_v62  ;;  %v3355_v62 = vld [vmem:[%s4155_s1 + $0x540] sm:$0xff] }
  0x99   :  { %2174 = vmatpush.bf16.msra.mxu3 %v3341_v63  ;;  %v514_v63 = vunpack.c.l.b16 %v24_v57 }
  0x9a   :  { %2136 = vmatpush.bf16.msra.mxu0 %v3316_v0  ;;  %v516_v0 = vunpack.c.l.b16 %v25_v58  ;;  %v3403_v58 = vld [vmem:[%s4155_s1 + $0x6c0] sm:$0xff] }
  0x9b   :  { %2149 = vmatpush.bf16.msra.mxu1 %v3324_v1  ;;  %v3363_v1 = vld [vmem:[%s4155_s1 + $0x580] sm:$0xff]  ;;  %v542_v9 = vpack.c.b16 %v514_v63, %v514_v63 }
  0x9c   :  { %2162 = vmatpush.bf16.msra.mxu2 %v3332_v2  ;;  %v3371_v2 = vld [vmem:[%s4155_s1 + $0x5c0] sm:$0xff] }
  0x9d   :  { %2175 = vmatpush.bf16.msra.mxu3 %v3340_v3  ;;  %v515_v3 = vunpack.c.h.b16 %v24_v57  ;;  %v3395_v57 = vld [vmem:[%s4155_s1 + $0x680] sm:$0xff] }
  0x9e   :  { %2137 = vmatpush.bf16.msra.mxu0 %v3315_v6  ;;  %v1931_v31 = vpop.f32.mrf.mxu0  ;;  %v3394_v6 = vld [vmem:[%s4155_s1 + $0x678] sm:$0xff] }
  0x9f   :  { %2150 = vmatpush.bf16.msra.mxu1 %v3323_v7  ;;  %v1932_v34 = vadd.f32 %v3411_v28, %v1931_v31  ;;  %v1944_v35 = vpop.f32.mrf.mxu1  ;;  %v3402_v7 = vld [vmem:[%s4155_s1 + $0x6b8] sm:$0xff] }
  0xa0   :  { %2163 = vmatpush.bf16.msra.mxu2 %v3331_v10  ;;  %v544_v10 = vpack.c.b16 %v516_v0, %v516_v0  ;;  %v3398_v31 = vld [vmem:[%s4155_s1 + $0x698] sm:$0xff] }
  0xa1   :  { %2176 = vmatpush.bf16.msra.mxu3 %v3339_v11  ;;  %2138 = vmatmul.bf16.vlgmr.msra.gmra.mxu0 %v538_v18  ;;  %v1945_v38 = vadd.f32 %v1944_v35, %v1932_v34  ;;  %v543_v11 = vpack.c.b16 %v515_v3, %v515_v3  ;;  %v3392_v18 = vld [vmem:[%s4155_s1 + $0x668] sm:$0xff] }
  0xa2   :  { %2182 = vmatpush.bf16.msrb.mxu0 %v3354_v14  ;;  %2151 = vmatmul.bf16.vlgmr.msra.gmra.mxu1 %v539_v20  ;;  %v3393_v14 = vld [vmem:[%s4155_s1 + $0x670] sm:$0xff]  ;;  %v3408_v20 = vld [vmem:[%s4155_s1 + $0x6e8] sm:$0xff] }
  0xa3   :  { %2195 = vmatpush.bf16.msrb.mxu1 %v3362_v15  ;;  %2164 = vmatmul.bf16.vlgmr.msra.gmra.mxu2 %v540_v19  ;;  %v3401_v15 = vld [vmem:[%s4155_s1 + $0x6b0] sm:$0xff]  ;;  %v3400_v19 = vld [vmem:[%s4155_s1 + $0x6a8] sm:$0xff] }
  0xa4   :  { %2208 = vmatpush.bf16.msrb.mxu2 %v3370_v16  ;;  %2177 = vmatmul.bf16.vlgmr.msra.gmra.mxu3 %v541_v21  ;;  %v3409_v16 = vld [vmem:[%s4155_s1 + $0x6f0] sm:$0xff] }
  0xa5   :  { %2221 = vmatpush.bf16.msrb.mxu3 %v3378_v17  ;;  %v3384_v17 = vld [vmem:[%s4155_s1 + $0x628] sm:$0xff] }
  0xa6   :  { %2183 = vmatpush.bf16.msrb.mxu0 %v3353_v22  ;;  %v1957_v43 = vpop.f32.mrf.mxu2  ;;  %v1933_v46 = vpop.f32.mrf.mxu0  ;;  %v3383_v22 = vld [vmem:[%s4155_s1 + $0x620] sm:$0xff] }
  0xa7   :  { %2196 = vmatpush.bf16.msrb.mxu1 %v3361_v23  ;;  %v1958_v44 = vadd.f32 %v1957_v43, %v1945_v38  ;;  %v1970_v45 = vpop.f32.mrf.mxu3  ;;  %v1946_v50 = vpop.f32.mrf.mxu1  ;;  %v3391_v23 = vld [vmem:[%s4155_s1 + $0x660] sm:$0xff]  ;;  %v3389_v38 = vld [vmem:[%s4155_s1 + $0x650] sm:$0xff]  ;;  %v3380_v43 = vld [vmem:[%s4155_s1 + $0x608] sm:$0xff] }
  0xa8   :  { %2209 = vmatpush.bf16.msrb.mxu2 %v3369_v24  ;;  %v3396_v46 = vld [vmem:[%s4155_s1 + $0x688] sm:$0xff] }
  0xa9   :  { %2222 = vmatpush.bf16.msrb.mxu3 %v3377_v25  ;;  %v4011_v49 = vadd.f32 %v1970_v45, %v1958_v44  ;;  %v3388_v44 = vld [vmem:[%s4155_s1 + $0x648] sm:$0xff]  ;;  %v26_v45 = vld [vmem:[%s4156_s0 + $0x60] sm:$0xff] }
  0xaa   :  { %2184 = vmatpush.bf16.msrb.mxu0 %v3352_v26  ;;  %v3399_v26 = vld [vmem:[%s4155_s1 + $0x6a0] sm:$0xff] }
  0xab   :  { %2197 = vmatpush.bf16.msrb.mxu1 %v3360_v27  ;;  %v3407_v27 = vld [vmem:[%s4155_s1 + $0x6e0] sm:$0xff] }
  0xac   :  { %2210 = vmatpush.bf16.msrb.mxu2 %v3368_v29  ;;  %v3382_v29 = vld [vmem:[%s4155_s1 + $0x618] sm:$0xff] }
  0xad   :  { %2223 = vmatpush.bf16.msrb.mxu3 %v3376_v30  ;;  %v3390_v30 = vld [vmem:[%s4155_s1 + $0x658] sm:$0xff] }
  0xae   :  { %2185 = vmatpush.bf16.msrb.mxu0 %v3351_v32  ;;  %v1959_v59 = vpop.f32.mrf.mxu2  ;;  %v3406_v32 = vld [vmem:[%s4155_s1 + $0x6d8] sm:$0xff] }
  0xaf   :  { %2198 = vmatpush.bf16.msrb.mxu1 %v3359_v33  ;;  %v1972_v60 = vpop.f32.mrf.mxu3 }
  0xb0   :  { %2211 = vmatpush.bf16.msrb.mxu2 %v3367_v36 }
  0xb1   :  { %2224 = vmatpush.bf16.msrb.mxu3 %v3375_v37  ;;  %v3381_v37 = vld [vmem:[%s4155_s1 + $0x610] sm:$0xff] }
  0xb2   :  { %2186 = vmatpush.bf16.msrb.mxu0 %v3350_v39 }
  0xb3   :  { %2199 = vmatpush.bf16.msrb.mxu1 %v3358_v40 }
  0xb4   :  { %2212 = vmatpush.bf16.msrb.mxu2 %v3366_v41  ;;  %v3397_v41 = vld [vmem:[%s4155_s1 + $0x690] sm:$0xff] }
  0xb5   :  { %2225 = vmatpush.bf16.msrb.mxu3 %v3374_v42  ;;  %v3405_v42 = vld [vmem:[%s4155_s1 + $0x6d0] sm:$0xff] }
  0xb6   :  { %2187 = vmatpush.bf16.msrb.mxu0 %v3349_v47  ;;  %v3404_v47 = vld [vmem:[%s4155_s1 + $0x6c8] sm:$0xff] }
  0xb7   :  { %2200 = vmatpush.bf16.msrb.mxu1 %v3357_v48  ;;  %v27_v48 = vld [vmem:[%s4156_s0 + $0x68] sm:$0xff] }
  0xb8   :  { %2213 = vmatpush.bf16.msrb.mxu2 %v3365_v51  ;;  %v518_v51 = vunpack.c.l.b16 %v26_v45 }
  0xb9   :  { %2226 = vmatpush.bf16.msrb.mxu3 %v3373_v52  ;;  %v519_v52 = vunpack.c.h.b16 %v26_v45 }
  0xba   :  { %2188 = vmatpush.bf16.msrb.mxu0 %v3348_v53  ;;  %v3379_v53 = vld [vmem:[%s4155_s1 + $0x600] sm:$0xff]  ;;  %v546_v59 = vpack.c.b16 %v518_v51, %v518_v51 }
  0xbb   :  { %2201 = vmatpush.bf16.msrb.mxu1 %v3356_v54  ;;  %v3387_v54 = vld [vmem:[%s4155_s1 + $0x640] sm:$0xff]  ;;  %v547_v60 = vpack.c.b16 %v519_v52, %v519_v52 }
  0xbc   :  { %2214 = vmatpush.bf16.msrb.mxu2 %v3364_v55  ;;  %v520_v55 = vunpack.c.l.b16 %v27_v48 }
  0xbd   :  { %2227 = vmatpush.bf16.msrb.mxu3 %v3372_v56  ;;  %v521_v56 = vunpack.c.h.b16 %v27_v48 }
  0xbe   :  { %2189 = vmatpush.bf16.msrb.mxu0 %v3347_v61  ;;  %v1983_v21 = vpop.f32.mrf.mxu0  ;;  %v548_v61 = vpack.c.b16 %v520_v55, %v520_v55 }
  0xbf   :  { %2202 = vmatpush.bf16.msrb.mxu1 %v3355_v62  ;;  %v1984_v24 = vadd.f32 %v1983_v21, %v4011_v49  ;;  %v1996_v25 = vpop.f32.mrf.mxu1  ;;  %v549_v62 = vpack.c.b16 %v521_v56, %v521_v56 }
  0xc0   :  { %2215 = vmatpush.bf16.msrb.mxu2 %v3363_v1 }
  0xc1   :  { %2228 = vmatpush.bf16.msrb.mxu3 %v3371_v2  ;;  %2190 = vmatmul.bf16.vlgmr.msrb.gmra.mxu0 %v542_v9  ;;  %v1997_v28 = vadd.f32 %v1996_v25, %v1984_v24 }
  0xc2   :  { %2234 = vmatpush.bf16.msra.mxu0 %v3386_v5  ;;  %2203 = vmatmul.bf16.vlgmr.msrb.gmra.mxu1 %v543_v11 }
  0xc3   :  { %2247 = vmatpush.bf16.msra.mxu1 %v3394_v6  ;;  %2216 = vmatmul.bf16.vlgmr.msrb.gmra.mxu2 %v544_v10 }
  0xc4   :  { %2260 = vmatpush.bf16.msra.mxu2 %v3402_v7  ;;  %2229 = vmatmul.bf16.vlgmr.msrb.gmra.mxu3 %v545_v12 }
  0xc5   :  { %2273 = vmatpush.bf16.msra.mxu3 %v3410_v8 }
  0xc6   :  { %2235 = vmatpush.bf16.msra.mxu0 %v3385_v13  ;;  %v2009_v33 = vpop.f32.mrf.mxu2  ;;  %v1985_v36 = vpop.f32.mrf.mxu0 }
  0xc7   :  { %2248 = vmatpush.bf16.msra.mxu1 %v3393_v14  ;;  %v2010_v34 = vadd.f32 %v2009_v33, %v1997_v28  ;;  %v2022_v35 = vpop.f32.mrf.mxu3  ;;  %v1998_v40 = vpop.f32.mrf.mxu1 }
  0xc8   :  { %2261 = vmatpush.bf16.msra.mxu2 %v3401_v15 }
  0xc9   :  { %2274 = vmatpush.bf16.msra.mxu3 %v3409_v16  ;;  %v2023_v39 = vadd.f32 %v2022_v35, %v2010_v34 }
  0xca   :  { %2236 = vmatpush.bf16.msra.mxu0 %v3384_v17 }
  0xcb   :  { %2249 = vmatpush.bf16.msra.mxu1 %v3392_v18 }
  0xcc   :  { %2262 = vmatpush.bf16.msra.mxu2 %v3400_v19 }
  0xcd   :  { %2275 = vmatpush.bf16.msra.mxu3 %v3408_v20 }
  0xce   :  { %2237 = vmatpush.bf16.msra.mxu0 %v3383_v22  ;;  %v2011_v49 = vpop.f32.mrf.mxu2 }
  0xcf   :  { %2250 = vmatpush.bf16.msra.mxu1 %v3391_v23  ;;  %v2024_v50 = vpop.f32.mrf.mxu3 }
  0xd0   :  { %2263 = vmatpush.bf16.msra.mxu2 %v3399_v26 }
  0xd1   :  { %2276 = vmatpush.bf16.msra.mxu3 %v3407_v27 }
  0xd2   :  { %2238 = vmatpush.bf16.msra.mxu0 %v3382_v29 }
  0xd3   :  { %2251 = vmatpush.bf16.msra.mxu1 %v3390_v30 }
  0xd4   :  { %2264 = vmatpush.bf16.msra.mxu2 %v3398_v31 }
  0xd5   :  { %2277 = vmatpush.bf16.msra.mxu3 %v3406_v32 }
  0xd6   :  { %2239 = vmatpush.bf16.msra.mxu0 %v3381_v37 }
  0xd7   :  { %2252 = vmatpush.bf16.msra.mxu1 %v3389_v38 }
  0xd8   :  { %2265 = vmatpush.bf16.msra.mxu2 %v3397_v41 }
  0xd9   :  { %2278 = vmatpush.bf16.msra.mxu3 %v3405_v42 }
  0xda   :  { %2240 = vmatpush.bf16.msra.mxu0 %v3380_v43 }
  0xdb   :  { %2253 = vmatpush.bf16.msra.mxu1 %v3388_v44 }
  0xdc   :  { %2266 = vmatpush.bf16.msra.mxu2 %v3396_v46 }
  0xdd   :  { %2279 = vmatpush.bf16.msra.mxu3 %v3404_v47 }
  0xde   :  { %2241 = vmatpush.bf16.msra.mxu0 %v3379_v53  ;;  %v2035_v63 = vpop.f32.mrf.mxu0 }
  0xdf   :  { %2254 = vmatpush.bf16.msra.mxu1 %v3387_v54  ;;  %v2036_v0 = vadd.f32 %v2035_v63, %v2023_v39  ;;  %v2048_v1 = vpop.f32.mrf.mxu1 }
  0xe0   :  { %2267 = vmatpush.bf16.msra.mxu2 %v3395_v57 }
  0xe1   :  { %2280 = vmatpush.bf16.msra.mxu3 %v3403_v58  ;;  %2242 = vmatmul.bf16.vlgmr.msra.gmra.mxu0 %v546_v59  ;;  %v2049_v2 = vadd.f32 %v2048_v1, %v2036_v0 }
  0xe2   :  { %2255 = vmatmul.bf16.vlgmr.msra.gmra.mxu1 %v547_v60 }
  0xe3   :  { %2268 = vmatmul.bf16.vlgmr.msra.gmra.mxu2 %v548_v61 }
  0xe4   :  { %2281 = vmatmul.bf16.vlgmr.msra.gmra.mxu3 %v549_v62 }
  0xe6   :  { %v2061_v3 = vpop.f32.mrf.mxu2  ;;  %v2037_v6 = vpop.f32.mrf.mxu0 }
  0xe7   :  { %v2062_v4 = vadd.f32 %v2061_v3, %v2049_v2  ;;  %v2074_v5 = vpop.f32.mrf.mxu3  ;;  %v2050_v8 = vpop.f32.mrf.mxu1 }
  0xe9   :  { %v2075_v7 = vadd.f32 %v2074_v5, %v2062_v4 }
  0xee   :  { %v2063_v9 = vpop.f32.mrf.mxu2 }
  0xef   :  { %v2076_v10 = vpop.f32.mrf.mxu3 }
  0xfe   :  { %v2087_v11 = vpop.f32.mrf.mxu0 }
  0xff   :  { %v2088_v12 = vadd.f32 %v2087_v11, %v2075_v7  ;;  %v2100_v13 = vpop.f32.mrf.mxu1 }
 0x101   :  { %v2101_v14 = vadd.f32 %v2100_v13, %v2088_v12 }
 0x106   :  { %v2113_v15 = vpop.f32.mrf.mxu2  ;;  %v2089_v18 = vpop.f32.mrf.mxu0 }
 0x107   :  { %v2114_v16 = vadd.f32 %v2113_v15, %v2101_v14  ;;  %v2126_v17 = vpop.f32.mrf.mxu3  ;;  %v2102_v20 = vpop.f32.mrf.mxu1 }
 0x109   :  { %v2127_v19 = vadd.f32 %v2126_v17, %v2114_v16 }
 0x10e   :  { %v2115_v21 = vpop.f32.mrf.mxu2 }
 0x10f   :  { %v2128_v22 = vpop.f32.mrf.mxu3 }
 0x11e   :  { %v2139_v23 = vpop.f32.mrf.mxu0 }
 0x11f   :  { %v2152_v24 = vpop.f32.mrf.mxu1  ;;  %v2140_v34 = vadd.f32 %v2139_v23, %v2127_v19 }
 0x121   :  { %v2153_v38 = vadd.f32 %v2152_v24, %v2140_v34 }
 0x126   :  { %v2165_v25 = vpop.f32.mrf.mxu2  ;;  %v2141_v27 = vpop.f32.mrf.mxu0 }
 0x127   :  { %v2178_v26 = vpop.f32.mrf.mxu3  ;;  %v2154_v28 = vpop.f32.mrf.mxu1  ;;  %v2166_v39 = vadd.f32 %v2165_v25, %v2153_v38 }
 0x129   :  { %v2179_v42 = vadd.f32 %v2178_v26, %v2166_v39 }
 0x12e   :  { %v2167_v29 = vpop.f32.mrf.mxu2 }
 0x12f   :  { %v2180_v30 = vpop.f32.mrf.mxu3 }
 0x13e   :  { %v2191_v31 = vpop.f32.mrf.mxu0 }
 0x13f   :  { %v2204_v32 = vpop.f32.mrf.mxu1  ;;  %v2192_v43 = vadd.f32 %v2191_v31, %v2179_v42 }
 0x141   :  { %v2205_v44 = vadd.f32 %v2204_v32, %v2192_v43 }
 0x146   :  { %v2217_v33 = vpop.f32.mrf.mxu2  ;;  %v2193_v36 = vpop.f32.mrf.mxu0 }
 0x147   :  { %v2230_v35 = vpop.f32.mrf.mxu3  ;;  %v2206_v37 = vpop.f32.mrf.mxu1  ;;  %v2218_v45 = vadd.f32 %v2217_v33, %v2205_v44 }
 0x149   :  { %v2231_v46 = vadd.f32 %v2230_v35, %v2218_v45 }
 0x14e   :  { %v2219_v40 = vpop.f32.mrf.mxu2 }
 0x14f   :  { %v2232_v41 = vpop.f32.mrf.mxu3 }
 0x15e   :  { %v2243_v47 = vpop.f32.mrf.mxu0 }
 0x15f   :  { %v2256_v48 = vpop.f32.mrf.mxu1  ;;  %v2244_v49 = vadd.f32 %v2243_v47, %v2231_v46 }
 0x161   :  { %v2257_v50 = vadd.f32 %v2256_v48, %v2244_v49 }
 0x166   :  { %v2269_v51 = vpop.f32.mrf.mxu2  ;;  %v2245_v54 = vpop.f32.mrf.mxu0 }
 0x167   :  { %v2282_v52 = vpop.f32.mrf.mxu3  ;;  %v2270_v53 = vadd.f32 %v2269_v51, %v2257_v50  ;;  %v2258_v55 = vpop.f32.mrf.mxu1 }
 0x169   :  { %v2283_v56 = vadd.f32 %v2282_v52, %v2270_v53 }
 0x16b   :  { %2286 = vst [vmem:[%s4158_s3] sm:$0xff] %v2283_v56 }
 0x16e   :  { %v2271_v57 = vpop.f32.mrf.mxu2 }
 0x16f   :  { %v2284_v58 = vpop.f32.mrf.mxu3 }

// kernel: _lambda_.4
= control target key start
LH: loop header
LB: loop body
LE: loop exit
PB: predicated region body
PF: predicated region fallthrough
CT: control target
= control target key end

     0   :  { %vm2287_vm0 = vcmask 261120   ;;  %vm4377_vm1 = vcmask 519168   ;;  %s10405_s1 = inlined_call_operand.vmem [shape: bf16[288,64], index: 1, kind: input, shape index: {}]   ;;  %s10406_s0 = inlined_call_operand.vmem [shape: bf16[1792,288], index: 0, kind: input, shape index: {}]   ;;  %s10407_s2 = inlined_call_operand.vmem [shape: f32[1,64], index: 2, kind: input, shape index: {}]   ;;  %s10408_s3 = inlined_call_operand.vmem [shape: bf16[448,64], index: 3, kind: output, shape index: {}]  }
   0x1   :  { %v6603_v0 = vld [vmem:[%s10405_s1 + $0x38] sm:$0xff]  ;;  %v6666_v2 = vld [vmem:[%s10405_s1 + $0x88] sm:$0xff]  ;;  %v6602_v3 = vld [vmem:[%s10405_s1 + $0x30] sm:$0xff] }
   0x2   :  { %v6611_v1 = vld [vmem:[%s10405_s1 + $0x78] sm:$0xff]  ;;  %2624 = vmatpush.bf16.msra.mxu0 %v6603_v0  ;;  %6614 = vmatpush.bf16.msra.mxu3 %v6603_v0  ;;  %v6610_v4 = vld [vmem:[%s10405_s1 + $0x70] sm:$0xff]  ;;  %v6678_v5 = vld [vmem:[%s10405_s1 + $0x80] sm:$0xff] }
   0x3   :  { %3193 = vmatpush.bf16.msra.mxu1 %v6611_v1  ;;  %3768 = vmatpush.bf16.msra.mxu2 %v6666_v2  ;;  %v4742_v6 = vld [vmem:[%s10406_s0 + $0x8] sm:$0xf]  ;;  %v6262_v7 = vld [vmem:[%s10406_s0 + $0x10] sm:$0xf0]  ;;  %v6600_v11 = vld [vmem:[%s10405_s1 + $0x20] sm:$0xff] }
   0x4   :  { %v4743_v8 = vor.u32 %v6262_v7, %v4742_v6  ;;  %v6601_v9 = vld [vmem:[%s10405_s1 + $0x28] sm:$0xff]  ;;  %v6608_v12 = vld [vmem:[%s10405_s1 + $0x60] sm:$0xff]  ;;  %v6599_v13 = vld [vmem:[%s10405_s1 + $0x18] sm:$0xff] }
   0x5   :  { %v6609_v10 = vld [vmem:[%s10405_s1 + $0x68] sm:$0xff]  ;;  %v6607_v14 = vld [vmem:[%s10405_s1 + $0x58] sm:$0xff]  ;;  %v6598_v15 = vld [vmem:[%s10405_s1 + $0x10] sm:$0xff] }
   0x6   :  { %2625 = vmatpush.bf16.msra.mxu0 %v6602_v3  ;;  %6615 = vmatpush.bf16.msra.mxu3 %v6602_v3  ;;  %v6606_v16 = vld [vmem:[%s10405_s1 + $0x50] sm:$0xff]  ;;  %v4754_v17 = vld [vmem:[%s10406_s0 + $0x20] sm:$0xf]  ;;  %v6265_v18 = vld [vmem:[%s10406_s0 + $0x28] sm:$0xf0] }
   0x7   :  { %3194 = vmatpush.bf16.msra.mxu1 %v6610_v4  ;;  %3769 = vmatpush.bf16.msra.mxu2 %v6678_v5  ;;  %v4755_v19 = vor.u32 %v6265_v18, %v4754_v17  ;;  %v6597_v20 = vld [vmem:[%s10405_s1 + $0x8] sm:$0xff]  ;;  %v6596_v22 = vld [vmem:[%s10405_s1] sm:$0xff]  ;;  %v4736_v29 = vld [vmem:[%s10406_s0 + $0xc] sm:$0xf0] }
   0x8   :  { %v6605_v21 = vld [vmem:[%s10405_s1 + $0x48] sm:$0xff]  ;;  %v6604_v23 = vld [vmem:[%s10405_s1 + $0x40] sm:$0xff]  ;;  %v4766_v33 = vld [vmem:[%s10406_s0 + $0x38] sm:$0xf] }
   0x9   :  { %v4734_v24 = vld [vmem:[%s10406_s0] sm:$0xf]  ;;  %v6261_v25 = vld [vmem:[%s10406_s0 + $0x8] sm:$0xf0]  ;;  %v6260_v28 = vld [vmem:[%s10406_s0 + $0x4] sm:$0xf] }
   0xa   :  { %6148 = vmatmul.msk.bf16.vlgmr.msra.gmra.mxu2 %vm2287_vm0, %v4743_v8  ;;  %2626 = vmatpush.bf16.msra.mxu0 %v6601_v9  ;;  %v5742_v26 = vld [vmem:[%s10406_s0 + $0x7e0] sm:$0xf]  ;;  %v6513_v27 = vld [vmem:[%s10406_s0 + $0x7e8] sm:$0xf0]  ;;  %v4735_v30 = vor.u32 %v6261_v25, %v4734_v24  ;;  %v4739_v32 = vor.u32 %v6260_v28, %v4736_v29  ;;  %v6268_v34 = vld [vmem:[%s10406_s0 + $0x40] sm:$0xf0] }
   0xb   :  { %6616 = vmatpush.bf16.msra.mxu3 %v6601_v9  ;;  %3195 = vmatpush.bf16.msra.mxu1 %v6609_v10  ;;  %v5743_v31 = vor.u32 %v6513_v27, %v5742_v26  ;;  %v4767_v35 = vor.u32 %v6268_v34, %v4766_v33  ;;  %v4746_v36 = vld [vmem:[%s10406_s0 + $0x18] sm:$0xf]  ;;  %v6264_v37 = vld [vmem:[%s10406_s0 + $0x20] sm:$0xf0]  ;;  %v6263_v40 = vld [vmem:[%s10406_s0 + $0x1c] sm:$0xf] }
   0xc   :  { %v5754_v38 = vld [vmem:[%s10406_s0 + $0x7f8] sm:$0xf]  ;;  %v6516_v39 = vld [vmem:[%s10406_s0 + $0x800] sm:$0xf0]  ;;  %v4748_v41 = vld [vmem:[%s10406_s0 + $0x24] sm:$0xf0]  ;;  %v4747_v42 = vor.u32 %v6264_v37, %v4746_v36 }
   0xd   :  { %v5755_v43 = vor.u32 %v6516_v39, %v5754_v38  ;;  %v4751_v44 = vor.u32 %v6263_v40, %v4748_v41  ;;  %v4778_v45 = vld [vmem:[%s10406_s0 + $0x50] sm:$0xf]  ;;  %v6271_v46 = vld [vmem:[%s10406_s0 + $0x58] sm:$0xf0]  ;;  %v6266_v52 = vld [vmem:[%s10406_s0 + $0x34] sm:$0xf] }
   0xe   :  { %2627 = vmatpush.bf16.msra.mxu0 %v6600_v11  ;;  %v4779_v47 = vor.u32 %v6271_v46, %v4778_v45  ;;  %v4758_v48 = vld [vmem:[%s10406_s0 + $0x30] sm:$0xf]  ;;  %v6267_v49 = vld [vmem:[%s10406_s0 + $0x38] sm:$0xf0]  ;;  %v4760_v53 = vld [vmem:[%s10406_s0 + $0x3c] sm:$0xf0] }
   0xf   :  { %6617 = vmatpush.bf16.msra.mxu3 %v6600_v11  ;;  %3196 = vmatpush.bf16.msra.mxu1 %v6608_v12  ;;  %v5766_v50 = vld [vmem:[%s10406_s0 + $0x810] sm:$0xf]  ;;  %v6519_v51 = vld [vmem:[%s10406_s0 + $0x818] sm:$0xf0]  ;;  %v4759_v54 = vor.u32 %v6267_v49, %v4758_v48  ;;  %v4763_v56 = vor.u32 %v6266_v52, %v4760_v53  ;;  %v4790_v57 = vld [vmem:[%s10406_s0 + $0x68] sm:$0xf] }
  0x10   :  { %v5767_v55 = vor.u32 %v6519_v51, %v5766_v50  ;;  %v6274_v58 = vld [vmem:[%s10406_s0 + $0x70] sm:$0xf0]  ;;  %v4770_v60 = vld [vmem:[%s10406_s0 + $0x48] sm:$0xf]  ;;  %v6269_v0 = vld [vmem:[%s10406_s0 + $0x4c] sm:$0xf] }
  0x11   :  { %v4791_v59 = vor.u32 %v6274_v58, %v4790_v57  ;;  %v6270_v61 = vld [vmem:[%s10406_s0 + $0x50] sm:$0xf0]  ;;  %v5778_v62 = vld [vmem:[%s10406_s0 + $0x828] sm:$0xf]  ;;  %v6277_v6 = vld [vmem:[%s10406_s0 + $0x88] sm:$0xf0] }
  0x12   :  { %2628 = vmatpush.bf16.msra.mxu0 %v6599_v13  ;;  %v6522_v63 = vld [vmem:[%s10406_s0 + $0x830] sm:$0xf0]  ;;  %v4782_v8 = vld [vmem:[%s10406_s0 + $0x60] sm:$0xf]  ;;  %v6273_v9 = vld [vmem:[%s10406_s0 + $0x68] sm:$0xf0] }
  0x13   :  { %6618 = vmatpush.bf16.msra.mxu3 %v6599_v13  ;;  %3197 = vmatpush.bf16.msra.mxu1 %v6607_v14  ;;  %v5779_v3 = vor.u32 %v6522_v63, %v5778_v62  ;;  %v6525_v11 = vld [vmem:[%s10406_s0 + $0x848] sm:$0xf0]  ;;  %v4784_v13 = vld [vmem:[%s10406_s0 + $0x6c] sm:$0xf0]  ;;  %v4814_v17 = vld [vmem:[%s10406_s0 + $0x98] sm:$0xf] }
  0x14   :  { %v6280_v18 = vld [vmem:[%s10406_s0 + $0xa0] sm:$0xf0]  ;;  %v6275_v24 = vld [vmem:[%s10406_s0 + $0x7c] sm:$0xf]  ;;  %v4796_v25 = vld [vmem:[%s10406_s0 + $0x84] sm:$0xf0] }
  0x15   :  { %v4799_v28 = vor.u32 %v6275_v24, %v4796_v25  ;;  %v4826_v29 = vld [vmem:[%s10406_s0 + $0xb0] sm:$0xf]  ;;  %v6279_v33 = vld [vmem:[%s10406_s0 + $0x98] sm:$0xf0]  ;;  %v6278_v36 = vld [vmem:[%s10406_s0 + $0x94] sm:$0xf] }
  0x16   :  { %2629 = vmatpush.bf16.msra.mxu0 %v6598_v15  ;;  %v5814_v34 = vld [vmem:[%s10406_s0 + $0x870] sm:$0xf]  ;;  %v4808_v37 = vld [vmem:[%s10406_s0 + $0x9c] sm:$0xf0]  ;;  %v4838_v41 = vld [vmem:[%s10406_s0 + $0xc8] sm:$0xf] }
  0x17   :  { %6619 = vmatpush.bf16.msra.mxu3 %v6598_v15  ;;  %3198 = vmatpush.bf16.msra.mxu1 %v6606_v16  ;;  %v4811_v40 = vor.u32 %v6278_v36, %v4808_v37  ;;  %v6282_v45 = vld [vmem:[%s10406_s0 + $0xb0] sm:$0xf0]  ;;  %v5826_v46 = vld [vmem:[%s10406_s0 + $0x888] sm:$0xf]  ;;  %v6281_v48 = vld [vmem:[%s10406_s0 + $0xac] sm:$0xf] }
  0x18   :  { %v4820_v49 = vld [vmem:[%s10406_s0 + $0xb4] sm:$0xf0]  ;;  %v4830_v58 = vld [vmem:[%s10406_s0 + $0xc0] sm:$0xf]  ;;  %v6284_v62 = vld [vmem:[%s10406_s0 + $0xc4] sm:$0xf] }
  0x19   :  { %v4823_v53 = vor.u32 %v6281_v48, %v4820_v49  ;;  %v4832_v63 = vld [vmem:[%s10406_s0 + $0xcc] sm:$0xf0] }
  0x1a   :  { %6149 = vmatmul.msk.bf16.gmra.mxu2 %vm2287_vm0, %v4755_v19  ;;  %2630 = vmatpush.bf16.msra.mxu0 %v6597_v20  ;;  %v4815_v19 = vor.u32 %v6280_v18, %v4814_v17  ;;  %v4842_v17 = vld [vmem:[%s10406_s0 + $0xd8] sm:$0xf]  ;;  %v6288_v18 = vld [vmem:[%s10406_s0 + $0xe0] sm:$0xf0] }
  0x1b   :  { %6620 = vmatpush.bf16.msra.mxu3 %v6597_v20  ;;  %3199 = vmatpush.bf16.msra.mxu1 %v6605_v21  ;;  %v4794_v20 = vld [vmem:[%s10406_s0 + $0x78] sm:$0xf]  ;;  %v4843_v25 = vor.u32 %v6288_v18, %v4842_v17 }
  0x1e   :  { %2631 = vmatpush.bf16.msra.mxu0 %v6596_v22 }
  0x1f   :  { %6621 = vmatpush.bf16.msra.mxu3 %v6596_v22  ;;  %3200 = vmatpush.bf16.msra.mxu1 %v6604_v23  ;;  %v5802_v22 = vld [vmem:[%s10406_s0 + $0x858] sm:$0xf] }
  0x21   :  { %2632 = vmatmul.bf16.vlgmr.msra.gmra.mxu0 %v4735_v30  ;;  %v6283_v30 = vld [vmem:[%s10406_s0 + $0xb8] sm:$0xf0] }
  0x22   :  { %3052 = vmatmul.bf16.vlgmr.msra.gmra.mxu3 %v5743_v31  ;;  %3201 = vmatmul.bf16.vlgmr.msra.gmra.mxu1 %v4739_v32  ;;  %v4827_v31 = vor.u32 %v6283_v30, %v4826_v29  ;;  %v4806_v32 = vld [vmem:[%s10406_s0 + $0x90] sm:$0xf] }
  0x23   :  { %6622 = vmatpush.bf16.msrb.mxu3 %v6611_v1  ;;  %v4772_v1 = vld [vmem:[%s10406_s0 + $0x54] sm:$0xf0]  ;;  %v4807_v38 = vor.u32 %v6279_v33, %v4806_v32  ;;  %v4874_v32 = vld [vmem:[%s10406_s0 + $0x110] sm:$0xf]  ;;  %v6295_v33 = vld [vmem:[%s10406_s0 + $0x118] sm:$0xf0] }
  0x24   :  { %v4875_v37 = vor.u32 %v6295_v33, %v4874_v32  ;;  %v5886_v32 = vld [vmem:[%s10406_s0 + $0x900] sm:$0xf]  ;;  %v6549_v33 = vld [vmem:[%s10406_s0 + $0x908] sm:$0xf0] }
  0x27   :  { %6623 = vmatpush.bf16.msrb.mxu3 %v6610_v4  ;;  %v4775_v4 = vor.u32 %v6269_v0, %v4772_v1 }
  0x2a   :  { %6150 = vmatmul.msk.bf16.gmra.mxu2 %vm2287_vm0, %v4767_v35  ;;  %v6531_v35 = vld [vmem:[%s10406_s0 + $0x878] sm:$0xf0] }
  0x2b   :  { %6624 = vmatpush.bf16.msrb.mxu3 %v6609_v10  ;;  %v5790_v10 = vld [vmem:[%s10406_s0 + $0x840] sm:$0xf]  ;;  %v5815_v39 = vor.u32 %v6531_v35, %v5814_v34 }
  0x2c   :  { %v5791_v15 = vor.u32 %v6525_v11, %v5790_v10 }
  0x2f   :  { %6625 = vmatpush.bf16.msrb.mxu3 %v6608_v12  ;;  %v6272_v12 = vld [vmem:[%s10406_s0 + $0x64] sm:$0xf] }
  0x31   :  { %2637 = vmatmul.bf16.gmra.mxu0 %v4747_v42  ;;  %v6286_v42 = vld [vmem:[%s10406_s0 + $0xd0] sm:$0xf0] }
  0x32   :  { %3057 = vmatmul.bf16.gmra.mxu3 %v5755_v43  ;;  %3206 = vmatmul.bf16.gmra.mxu1 %v4751_v44  ;;  %v4839_v43 = vor.u32 %v6286_v42, %v4838_v41  ;;  %v4818_v44 = vld [vmem:[%s10406_s0 + $0xa8] sm:$0xf]  ;;  %v4854_v41 = vld [vmem:[%s10406_s0 + $0xf0] sm:$0xf]  ;;  %v6291_v42 = vld [vmem:[%s10406_s0 + $0xf8] sm:$0xf0] }
  0x33   :  { %6626 = vmatpush.bf16.msrb.mxu3 %v6607_v14  ;;  %v4783_v14 = vor.u32 %v6273_v9, %v4782_v8  ;;  %v4819_v51 = vor.u32 %v6282_v45, %v4818_v44  ;;  %v4862_v8 = vld [vmem:[%s10406_s0 + $0xf8] sm:$0xf]  ;;  %v6292_v9 = vld [vmem:[%s10406_s0 + $0x100] sm:$0xf0]  ;;  %v6543_v44 = vld [vmem:[%s10406_s0 + $0x8d8] sm:$0xf0]  ;;  %v4855_v49 = vor.u32 %v6291_v42, %v4854_v41 }
  0x34   :  { %v6290_v45 = vld [vmem:[%s10406_s0 + $0xf4] sm:$0xf] }
  0x37   :  { %6627 = vmatpush.bf16.msrb.mxu3 %v6606_v16  ;;  %v4787_v16 = vor.u32 %v6272_v12, %v4784_v13  ;;  %v4863_v13 = vor.u32 %v6292_v9, %v4862_v8 }
  0x3a   :  { %6151 = vmatmul.msk.bf16.gmra.mxu2 %vm2287_vm0, %v4779_v47  ;;  %v6534_v47 = vld [vmem:[%s10406_s0 + $0x890] sm:$0xf0] }
  0x3b   :  { %6628 = vmatpush.bf16.msrb.mxu3 %v6605_v21  ;;  %v6276_v21 = vld [vmem:[%s10406_s0 + $0x80] sm:$0xf0]  ;;  %v5827_v52 = vor.u32 %v6534_v47, %v5826_v46  ;;  %v4856_v46 = vld [vmem:[%s10406_s0 + $0xfc] sm:$0xf0] }
  0x3c   :  { %v4795_v26 = vor.u32 %v6276_v21, %v4794_v20  ;;  %v6540_v20 = vld [vmem:[%s10406_s0 + $0x8c0] sm:$0xf0]  ;;  %v6287_v21 = vld [vmem:[%s10406_s0 + $0xdc] sm:$0xf] }
  0x3f   :  { %6629 = vmatpush.bf16.msrb.mxu3 %v6604_v23  ;;  %v6528_v23 = vld [vmem:[%s10406_s0 + $0x860] sm:$0xf0] }
  0x40   :  { %v5803_v27 = vor.u32 %v6528_v23, %v5802_v22  ;;  %v4844_v22 = vld [vmem:[%s10406_s0 + $0xe4] sm:$0xf0] }
  0x41   :  { %2642 = vmatmul.bf16.gmra.mxu0 %v4759_v54  ;;  %v4850_v54 = vld [vmem:[%s10406_s0 + $0xe0] sm:$0xf] }
  0x42   :  { %3062 = vmatmul.bf16.gmra.mxu3 %v5767_v55  ;;  %3211 = vmatmul.bf16.gmra.mxu1 %v4763_v56  ;;  %v6289_v55 = vld [vmem:[%s10406_s0 + $0xe8] sm:$0xf0] }
  0x43   :  { %6630 = vmatpush.bf16.msra.mxu3 %v6666_v2  ;;  %v4771_v2 = vor.u32 %v6270_v61, %v4770_v60  ;;  %v4851_v57 = vor.u32 %v6289_v55, %v4850_v54  ;;  %v5838_v60 = vld [vmem:[%s10406_s0 + $0x8a0] sm:$0xf]  ;;  %v6537_v61 = vld [vmem:[%s10406_s0 + $0x8a8] sm:$0xf0] }
  0x47   :  { %6631 = vmatpush.bf16.msra.mxu3 %v6678_v5  ;;  %v4802_v5 = vld [vmem:[%s10406_s0 + $0x80] sm:$0xf] }
  0x48   :  { %v4803_v7 = vor.u32 %v6277_v6, %v4802_v5 }
  0x4a   :  { %6152 = vmatmul.msk.bf16.gmra.mxu2 %vm2287_vm0, %v4791_v59  ;;  %v6285_v59 = vld [vmem:[%s10406_s0 + $0xc8] sm:$0xf0] }
  0x4b   :  { %v4831_v1 = vor.u32 %v6285_v59, %v4830_v58 }
  0x51   :  { %2647 = vmatmul.bf16.gmra.mxu0 %v4771_v2 }
  0x52   :  { %3067 = vmatmul.bf16.gmra.mxu3 %v5779_v3  ;;  %3216 = vmatmul.bf16.gmra.mxu1 %v4775_v4  ;;  %v5839_v3 = vor.u32 %v6537_v61, %v5838_v60  ;;  %v4835_v4 = vor.u32 %v6284_v62, %v4832_v63 }
  0x5a   :  { %6153 = vmatmul.msk.bf16.gmra.mxu2 %vm2287_vm0, %v4803_v7 }
  0x61   :  { %2652 = vmatmul.bf16.gmra.mxu0 %v4783_v14 }
  0x62   :  { %3072 = vmatmul.bf16.gmra.mxu3 %v5791_v15  ;;  %3221 = vmatmul.bf16.gmra.mxu1 %v4787_v16 }
  0x6a   :  { %6154 = vmatmul.msk.bf16.gmra.mxu2 %vm2287_vm0, %v4815_v19  ;;  %v5850_v19 = vld [vmem:[%s10406_s0 + $0x8b8] sm:$0xf] }
  0x71   :  { %2657 = vmatmul.bf16.gmra.mxu0 %v4795_v26 }
  0x72   :  { %3077 = vmatmul.bf16.gmra.mxu3 %v5803_v27  ;;  %3226 = vmatmul.bf16.gmra.mxu1 %v4799_v28  ;;  %v5851_v27 = vor.u32 %v6540_v20, %v5850_v19  ;;  %v4847_v28 = vor.u32 %v6287_v21, %v4844_v22  ;;  %v4898_v19 = vld [vmem:[%s10406_s0 + $0x140] sm:$0xf]  ;;  %v6301_v20 = vld [vmem:[%s10406_s0 + $0x148] sm:$0xf0] }
  0x7a   :  { %6155 = vmatmul.msk.bf16.gmra.mxu2 %vm2287_vm0, %v4827_v31 }
  0x81   :  { %2662 = vmatmul.bf16.gmra.mxu0 %v4807_v38 }
  0x82   :  { %3082 = vmatmul.bf16.gmra.mxu3 %v5815_v39  ;;  %3231 = vmatmul.bf16.gmra.mxu1 %v4811_v40 }
  0x8a   :  { %6156 = vmatmul.msk.bf16.gmra.mxu2 %vm2287_vm0, %v4839_v43  ;;  %v5862_v43 = vld [vmem:[%s10406_s0 + $0x8d0] sm:$0xf] }
  0x8d   :  { %v3771_v50 = vpop.f32.mrf.mxu2 }
  0x91   :  { %2667 = vmatmul.bf16.gmra.mxu0 %v4819_v51  ;;  %v5863_v51 = vor.u32 %v6543_v44, %v5862_v43  ;;  %v5887_v43 = vor.u32 %v6549_v33, %v5886_v32  ;;  %v4902_v33 = vld [vmem:[%s10406_s0 + $0x150] sm:$0xf] }
  0x92   :  { %3087 = vmatmul.bf16.gmra.mxu3 %v5827_v52  ;;  %3236 = vmatmul.bf16.gmra.mxu1 %v4823_v53  ;;  %v4859_v52 = vor.u32 %v6290_v45, %v4856_v46 }
  0x95   :  { %v3773_v56 = vpop.f32.mrf.mxu2 }
  0x9a   :  { %6157 = vmatmul.msk.bf16.gmra.mxu2 %vm2287_vm0, %v4851_v57  ;;  %v6298_v57 = vld [vmem:[%s10406_s0 + $0x130] sm:$0xf0] }
  0x9d   :  { %v3776_v0 = vpop.f32.mrf.mxu2 }
  0x9e   :  { %v2633_v2 = vpop.f32.mrf.mxu0 }
  0x9f   :  { %v3202_v5 = vpop.f32.mrf.mxu1 }
  0xa0   :  { %v3203_v6 = vadd.f32 %v3202_v5, %v2633_v2  ;;  %v6294_v2 = vld [vmem:[%s10406_s0 + $0x110] sm:$0xf0]  ;;  %v6293_v5 = vld [vmem:[%s10406_s0 + $0x10c] sm:$0xf] }
  0xa1   :  { %2672 = vmatmul.bf16.gmra.mxu0 %v4831_v1  ;;  %v4866_v1 = vld [vmem:[%s10406_s0 + $0x108] sm:$0xf] }
  0xa2   :  { %v6951_v7 = vadd.f32 %v3771_v50, %v3203_v6  ;;  %3092 = vmatmul.bf16.gmra.mxu3 %v5839_v3  ;;  %3241 = vmatmul.bf16.gmra.mxu1 %v4835_v4  ;;  %v5874_v3 = vld [vmem:[%s10406_s0 + $0x8e8] sm:$0xf]  ;;  %v6546_v4 = vld [vmem:[%s10406_s0 + $0x8f0] sm:$0xf0]  ;;  %v4868_v6 = vld [vmem:[%s10406_s0 + $0x114] sm:$0xf0] }
  0xa5   :  { %v6959_v10 = vpop.f32.mrf.mxu3  ;;  %v3778_v11 = vpop.f32.mrf.mxu2 }
  0xa6   :  { %10425 = vst [vmem:[#allocation2_spill] sm:$0xff] %v6959_v10  ;;  %v2635_v12 = vpop.f32.mrf.mxu0  ;;  %v6322_v10 = vld [vmem:[%s10406_s0 + $0x1f0] sm:$0xf0] }
  0xa7   :  { %v3204_v14 = vpop.f32.mrf.mxu1 }
  0xa8   :  { %v3205_v15 = vadd.f32 %v3204_v14, %v2635_v12  ;;  %v4871_v14 = vor.u32 %v6293_v5, %v4868_v6 }
  0xaa   :  { %v6961_v16 = vadd.f32 %v3773_v56, %v3205_v15  ;;  %6158 = vmatmul.msk.bf16.gmra.mxu2 %vm2287_vm0, %v4863_v13  ;;  %v4886_v56 = vld [vmem:[%s10406_s0 + $0x128] sm:$0xf]  ;;  %v5875_v13 = vor.u32 %v6546_v4, %v5874_v3 }
  0xab   :  { %v4887_v61 = vor.u32 %v6298_v57, %v4886_v56  ;;  %v4892_v3 = vld [vmem:[%s10406_s0 + $0x144] sm:$0xf0] }
  0xad   :  { %v6982_v23 = vpop.f32.mrf.mxu3  ;;  %v3781_v24 = vpop.f32.mrf.mxu2 }
  0xae   :  { %10426 = vst [vmem:[#allocation3_spill] sm:$0xff] %v6982_v23  ;;  %v2638_v26 = vpop.f32.mrf.mxu0  ;;  %v4982_v23 = vld [vmem:[%s10406_s0 + $0x1e8] sm:$0xf] }
  0xaf   :  { %v3207_v29 = vpop.f32.mrf.mxu1 }
  0xb0   :  { %v3208_v30 = vadd.f32 %v3207_v29, %v2638_v26  ;;  %v4878_v29 = vld [vmem:[%s10406_s0 + $0x120] sm:$0xf] }
  0xb1   :  { %2677 = vmatmul.bf16.gmra.mxu0 %v4843_v25  ;;  %v4899_v25 = vor.u32 %v6301_v20, %v4898_v19  ;;  %v4922_v19 = vld [vmem:[%s10406_s0 + $0x170] sm:$0xf]  ;;  %v6307_v20 = vld [vmem:[%s10406_s0 + $0x178] sm:$0xf0] }
  0xb2   :  { %v6984_v31 = vadd.f32 %v3776_v0, %v3208_v30  ;;  %3097 = vmatmul.bf16.gmra.mxu3 %v5851_v27  ;;  %3246 = vmatmul.bf16.gmra.mxu1 %v4847_v28  ;;  %v6297_v30 = vld [vmem:[%s10406_s0 + $0x128] sm:$0xf0] }
  0xb3   :  { %v4879_v41 = vor.u32 %v6297_v30, %v4878_v29 }
  0xb5   :  { %v6992_v34 = vpop.f32.mrf.mxu3  ;;  %v3783_v35 = vpop.f32.mrf.mxu2 }
  0xb6   :  { %10427 = vst [vmem:[#allocation4_spill] sm:$0xff] %v6992_v34  ;;  %v2640_v36 = vpop.f32.mrf.mxu0 }
  0xb7   :  { %v3209_v38 = vpop.f32.mrf.mxu1 }
  0xb8   :  { %v3210_v39 = vadd.f32 %v3209_v38, %v2640_v36  ;;  %v4880_v36 = vld [vmem:[%s10406_s0 + $0x12c] sm:$0xf0] }
  0xba   :  { %v6994_v40 = vadd.f32 %v3778_v11, %v3210_v39  ;;  %6159 = vmatmul.msk.bf16.gmra.mxu2 %vm2287_vm0, %v4875_v37  ;;  %v4867_v11 = vor.u32 %v6294_v2, %v4866_v1  ;;  %v6552_v1 = vld [vmem:[%s10406_s0 + $0x920] sm:$0xf0]  ;;  %v6299_v2 = vld [vmem:[%s10406_s0 + $0x13c] sm:$0xf] }
  0xbd   :  { %v7015_v47 = vpop.f32.mrf.mxu3  ;;  %v3786_v48 = vpop.f32.mrf.mxu2 }
  0xbe   :  { %10428 = vst [vmem:[#allocation5_spill] sm:$0xff] %v7015_v47  ;;  %v2643_v50 = vpop.f32.mrf.mxu0 }
  0xbf   :  { %v3212_v53 = vpop.f32.mrf.mxu1 }
  0xc0   :  { %v3213_v54 = vadd.f32 %v3212_v53, %v2643_v50  ;;  %v6304_v50 = vld [vmem:[%s10406_s0 + $0x160] sm:$0xf0] }
  0xc1   :  { %2682 = vmatmul.bf16.gmra.mxu0 %v4855_v49  ;;  %v4910_v49 = vld [vmem:[%s10406_s0 + $0x158] sm:$0xf] }
  0xc2   :  { %v7017_v55 = vadd.f32 %v3781_v24, %v3213_v54  ;;  %3102 = vmatmul.bf16.gmra.mxu3 %v5863_v51  ;;  %3251 = vmatmul.bf16.gmra.mxu1 %v4859_v52  ;;  %v4911_v56 = vor.u32 %v6304_v50, %v4910_v49 }
  0xc5   :  { %v7025_v58 = vpop.f32.mrf.mxu3  ;;  %v3788_v59 = vpop.f32.mrf.mxu2 }
  0xc6   :  { %v2645_v60 = vpop.f32.mrf.mxu0 }
  0xc7   :  { %v3214_v62 = vpop.f32.mrf.mxu1 }
  0xc8   :  { %v3215_v63 = vadd.f32 %v3214_v62, %v2645_v60  ;;  %v6300_v62 = vld [vmem:[%s10406_s0 + $0x140] sm:$0xf0] }
  0xca   :  { %v7027_v0 = vadd.f32 %v3783_v35, %v3215_v63  ;;  %6160 = vmatmul.msk.bf16.gmra.mxu2 %vm2287_vm0, %v4887_v61  ;;  %v6296_v35 = vld [vmem:[%s10406_s0 + $0x124] sm:$0xf]  ;;  %v4890_v61 = vld [vmem:[%s10406_s0 + $0x138] sm:$0xf] }
  0xcb   :  { %v4883_v44 = vor.u32 %v6296_v35, %v4880_v36  ;;  %v5898_v63 = vld [vmem:[%s10406_s0 + $0x918] sm:$0xf]  ;;  %v6303_v35 = vld [vmem:[%s10406_s0 + $0x158] sm:$0xf0]  ;;  %v5910_v36 = vld [vmem:[%s10406_s0 + $0x930] sm:$0xf] }
  0xcd   :  { %v7048_v8 = vpop.f32.mrf.mxu3  ;;  %v3791_v9 = vpop.f32.mrf.mxu2 }
  0xce   :  { %v2648_v12 = vpop.f32.mrf.mxu0 }
  0xcf   :  { %v3217_v15 = vpop.f32.mrf.mxu1 }
  0xd0   :  { %v3218_v17 = vadd.f32 %v3217_v15, %v2648_v12  ;;  %v5899_v12 = vor.u32 %v6552_v1, %v5898_v63 }
  0xd1   :  { %2687 = vmatmul.bf16.gmra.mxu0 %v4867_v11 }
  0xd2   :  { %v7050_v18 = vadd.f32 %v3786_v48, %v3218_v17  ;;  %3107 = vmatmul.bf16.gmra.mxu3 %v5875_v13  ;;  %3256 = vmatmul.bf16.gmra.mxu1 %v4871_v14  ;;  %v4895_v13 = vor.u32 %v6299_v2, %v4892_v3 }
  0xd5   :  { %v7058_v21 = vpop.f32.mrf.mxu3  ;;  %v3793_v22 = vpop.f32.mrf.mxu2 }
  0xd6   :  { %v2650_v24 = vpop.f32.mrf.mxu0 }
  0xd7   :  { %v3219_v26 = vpop.f32.mrf.mxu1 }
  0xd8   :  { %v3220_v27 = vadd.f32 %v3219_v26, %v2650_v24 }
  0xda   :  { %v7060_v28 = vadd.f32 %v3788_v59, %v3220_v27  ;;  %6161 = vmatmul.msk.bf16.gmra.mxu2 %vm2287_vm0, %v4899_v25  ;;  %v4923_v27 = vor.u32 %v6307_v20, %v4922_v19  ;;  %v6305_v19 = vld [vmem:[%s10406_s0 + $0x16c] sm:$0xf]  ;;  %v4916_v20 = vld [vmem:[%s10406_s0 + $0x174] sm:$0xf0] }
  0xdd   :  { %v7083_v38 = vpop.f32.mrf.mxu3  ;;  %v3796_v39 = vpop.f32.mrf.mxu2 }
  0xde   :  { %v2653_v42 = vpop.f32.mrf.mxu0 }
  0xdf   :  { %v3222_v45 = vpop.f32.mrf.mxu1 }
  0xe0   :  { %v3223_v46 = vadd.f32 %v3222_v45, %v2653_v42  ;;  %v4904_v42 = vld [vmem:[%s10406_s0 + $0x15c] sm:$0xf0] }
  0xe1   :  { %2692 = vmatmul.bf16.gmra.mxu0 %v4879_v41  ;;  %v6302_v41 = vld [vmem:[%s10406_s0 + $0x154] sm:$0xf] }
  0xe2   :  { %v7085_v48 = vadd.f32 %v3791_v9, %v3223_v46  ;;  %3112 = vmatmul.bf16.gmra.mxu3 %v5887_v43  ;;  %3261 = vmatmul.bf16.gmra.mxu1 %v4883_v44  ;;  %v4891_v9 = vor.u32 %v6300_v62, %v4890_v61  ;;  %v4903_v46 = vor.u32 %v6303_v35, %v4902_v33  ;;  %v6310_v61 = vld [vmem:[%s10406_s0 + $0x190] sm:$0xf0]  ;;  %v4970_v62 = vld [vmem:[%s10406_s0 + $0x1d0] sm:$0xf]  ;;  %v6319_v43 = vld [vmem:[%s10406_s0 + $0x1d8] sm:$0xf0] }
  0xe3   :  { %v4919_v35 = vor.u32 %v6305_v19, %v4916_v20  ;;  %v4958_v20 = vld [vmem:[%s10406_s0 + $0x1b8] sm:$0xf] }
  0xe5   :  { %v7095_v52 = vpop.f32.mrf.mxu3  ;;  %v3798_v53 = vpop.f32.mrf.mxu2 }
  0xe6   :  { %10429 = vst [vmem:[#allocation6_spill] sm:$0xff] %v7095_v52  ;;  %v2655_v54 = vpop.f32.mrf.mxu0 }
  0xe7   :  { %v3224_v57 = vpop.f32.mrf.mxu1 }
  0xe8   :  { %v3225_v59 = vadd.f32 %v3224_v57, %v2655_v54 }
  0xea   :  { %v7097_v60 = vadd.f32 %v3793_v22, %v3225_v59  ;;  %6162 = vmatmul.msk.bf16.gmra.mxu2 %vm2287_vm0, %v4911_v56  ;;  %v4934_v59 = vld [vmem:[%s10406_s0 + $0x188] sm:$0xf] }
  0xeb   :  { %v4935_v3 = vor.u32 %v6310_v61, %v4934_v59  ;;  %v5934_v59 = vld [vmem:[%s10406_s0 + $0x960] sm:$0xf]  ;;  %v6561_v61 = vld [vmem:[%s10406_s0 + $0x968] sm:$0xf0] }
  0xed   :  { %v7120_v5 = vpop.f32.mrf.mxu3  ;;  %v3801_v6 = vpop.f32.mrf.mxu2 }
  0xee   :  { %10430 = vst [vmem:[#allocation7_spill] sm:$0xff] %v7120_v5  ;;  %v2658_v11 = vpop.f32.mrf.mxu0 }
  0xef   :  { %v3227_v14 = vpop.f32.mrf.mxu1 }
  0xf0   :  { %v3228_v15 = vadd.f32 %v3227_v14, %v2658_v11  ;;  %v5922_v14 = vld [vmem:[%s10406_s0 + $0x948] sm:$0xf] }
  0xf1   :  { %2697 = vmatmul.bf16.gmra.mxu0 %v4891_v9 }
  0xf2   :  { %v7122_v17 = vadd.f32 %v3796_v39, %v3228_v15  ;;  %3117 = vmatmul.bf16.gmra.mxu3 %v5899_v12  ;;  %3266 = vmatmul.bf16.gmra.mxu1 %v4895_v13  ;;  %v6555_v39 = vld [vmem:[%s10406_s0 + $0x938] sm:$0xf0]  ;;  %v4914_v12 = vld [vmem:[%s10406_s0 + $0x168] sm:$0xf]  ;;  %v6306_v13 = vld [vmem:[%s10406_s0 + $0x170] sm:$0xf0] }
  0xf3   :  { %v5911_v50 = vor.u32 %v6555_v39, %v5910_v36  ;;  %v6558_v15 = vld [vmem:[%s10406_s0 + $0x950] sm:$0xf0]  ;;  %v4946_v39 = vld [vmem:[%s10406_s0 + $0x1a0] sm:$0xf] }
  0xf4   :  { %v5923_v33 = vor.u32 %v6558_v15, %v5922_v14  ;;  %v5935_v14 = vor.u32 %v6561_v61, %v5934_v59  ;;  %v5946_v59 = vld [vmem:[%s10406_s0 + $0x978] sm:$0xf]  ;;  %v6564_v61 = vld [vmem:[%s10406_s0 + $0x980] sm:$0xf0] }
  0xf5   :  { %v7132_v24 = vpop.f32.mrf.mxu3  ;;  %v3803_v25 = vpop.f32.mrf.mxu2 }
  0xf6   :  { %10431 = vst [vmem:[#allocation8_spill] sm:$0xff] %v7132_v24  ;;  %v2660_v26 = vpop.f32.mrf.mxu0 }
  0xf7   :  { %v3229_v29 = vpop.f32.mrf.mxu1 }
  0xf8   :  { %v3230_v30 = vadd.f32 %v3229_v29, %v2660_v26  ;;  %v4915_v29 = vor.u32 %v6306_v13, %v4914_v12 }
  0xfa   :  { %v7134_v32 = vadd.f32 %v3798_v53, %v3230_v30  ;;  %6163 = vmatmul.msk.bf16.gmra.mxu2 %vm2287_vm0, %v4923_v27  ;;  %v4907_v53 = vor.u32 %v6302_v41, %v4904_v42  ;;  %v6313_v41 = vld [vmem:[%s10406_s0 + $0x1a8] sm:$0xf0] }
  0xfd   :  { %v7157_v44 = vpop.f32.mrf.mxu3  ;;  %v7159_v45 = vpop.f32.mrf.mxu2 }
  0xfe   :  { %10432 = vst [vmem:[#allocation9_spill] sm:$0xff] %v7157_v44  ;;  %v2663_v49 = vpop.f32.mrf.mxu0  ;;  %v6406_v44 = vld [vmem:[%s10406_s0 + $0x490] sm:$0xf0] }
  0xff   :  { %v3232_v54 = vpop.f32.mrf.mxu1 }
 0x100   :  { %v3233_v56 = vadd.f32 %v3232_v54, %v2663_v49  ;;  %v4926_v54 = vld [vmem:[%s10406_s0 + $0x180] sm:$0xf] }
 0x101   :  { %2702 = vmatmul.bf16.gmra.mxu0 %v4903_v46 }
 0x102   :  { %v7161_v57 = vadd.f32 %v3801_v6, %v3233_v56  ;;  %3122 = vmatmul.bf16.gmra.mxu3 %v5911_v50  ;;  %3271 = vmatmul.bf16.gmra.mxu1 %v4907_v53  ;;  %v4947_v50 = vor.u32 %v6313_v41, %v4946_v39  ;;  %v6309_v56 = vld [vmem:[%s10406_s0 + $0x188] sm:$0xf0] }
 0x103   :  { %v4927_v12 = vor.u32 %v6309_v56, %v4926_v54  ;;  %v4938_v54 = vld [vmem:[%s10406_s0 + $0x198] sm:$0xf]  ;;  %v6312_v56 = vld [vmem:[%s10406_s0 + $0x1a0] sm:$0xf0] }
 0x105   :  { %v7171_v63 = vpop.f32.mrf.mxu3  ;;  %v7173_v1 = vpop.f32.mrf.mxu2 }
 0x106   :  { %10433 = vst [vmem:[#allocation10_spill] sm:$0xff] %v7171_v63  ;;  %v2665_v2 = vpop.f32.mrf.mxu0 }
 0x107   :  { %v3234_v6 = vpop.f32.mrf.mxu1 }
 0x108   :  { %v3235_v9 = vadd.f32 %v3234_v6, %v2665_v2  ;;  %v6308_v2 = vld [vmem:[%s10406_s0 + $0x184] sm:$0xf] }
 0x10a   :  { %v7175_v11 = vadd.f32 %v3803_v25, %v3235_v9  ;;  %6164 = vmatmul.msk.bf16.gmra.mxu2 %vm2287_vm0, %v4935_v3  ;;  %v4928_v3 = vld [vmem:[%s10406_s0 + $0x18c] sm:$0xf0] }
 0x10b   :  { %v4931_v15 = vor.u32 %v6308_v2, %v4928_v3  ;;  %v6311_v2 = vld [vmem:[%s10406_s0 + $0x19c] sm:$0xf]  ;;  %v4940_v3 = vld [vmem:[%s10406_s0 + $0x1a4] sm:$0xf0] }
 0x10d   :  { %v7198_v26 = vpop.f32.mrf.mxu3  ;;  %v7200_v27 = vpop.f32.mrf.mxu2 }
 0x10e   :  { %10434 = vst [vmem:[#allocation11_spill] sm:$0xff] %v7198_v26  ;;  %v7202_v30 = vpop.f32.mrf.mxu0 }
 0x10f   :  { %v7204_v36 = vpop.f32.mrf.mxu1 }
 0x111   :  { %2707 = vmatmul.bf16.gmra.mxu0 %v4915_v29  ;;  %v6316_v29 = vld [vmem:[%s10406_s0 + $0x1c0] sm:$0xf0] }
 0x112   :  { %3127 = vmatmul.bf16.gmra.mxu3 %v5923_v33  ;;  %3276 = vmatmul.bf16.gmra.mxu1 %v4919_v35  ;;  %v4959_v41 = vor.u32 %v6316_v29, %v4958_v20  ;;  %v5947_v29 = vor.u32 %v6564_v61, %v5946_v59  ;;  %v4971_v59 = vor.u32 %v6319_v43, %v4970_v62  ;;  %v6567_v43 = vld [vmem:[%s10406_s0 + $0x998] sm:$0xf0]  ;;  %v6314_v62 = vld [vmem:[%s10406_s0 + $0x1b4] sm:$0xf] }
 0x115   :  { %v7212_v42 = vpop.f32.mrf.mxu3  ;;  %v7214_v46 = vpop.f32.mrf.mxu2 }
 0x116   :  { %10435 = vst [vmem:[#allocation12_spill] sm:$0xff] %v7212_v42  ;;  %v7216_v49 = vpop.f32.mrf.mxu0 }
 0x117   :  { %v7218_v53 = vpop.f32.mrf.mxu1 }
 0x11a   :  { %6165 = vmatmul.msk.bf16.gmra.mxu2 %vm2287_vm0, %v4947_v50 }
 0x11d   :  { %v7239_v6 = vpop.f32.mrf.mxu3  ;;  %v7241_v9 = vpop.f32.mrf.mxu2 }
 0x11e   :  { %10436 = vst [vmem:[#allocation13_spill] sm:$0xff] %v7239_v6  ;;  %v7243_v13 = vpop.f32.mrf.mxu0 }
 0x11f   :  { %v7245_v19 = vpop.f32.mrf.mxu1 }
 0x121   :  { %2712 = vmatmul.bf16.gmra.mxu0 %v4927_v12 }
 0x122   :  { %3132 = vmatmul.bf16.gmra.mxu3 %v5935_v14  ;;  %3281 = vmatmul.bf16.gmra.mxu1 %v4931_v15  ;;  %v4939_v15 = vor.u32 %v6312_v56, %v4938_v54 }
 0x125   :  { %v7253_v33 = vpop.f32.mrf.mxu3  ;;  %v7255_v35 = vpop.f32.mrf.mxu2 }
 0x126   :  { %10437 = vst [vmem:[#allocation14_spill] sm:$0xff] %v7253_v33  ;;  %v7257_v39 = vpop.f32.mrf.mxu0 }
 0x127   :  { %v7259_v50 = vpop.f32.mrf.mxu1 }
 0x12a   :  { %6166 = vmatmul.msk.bf16.gmra.mxu2 %vm2287_vm0, %v4959_v41  ;;  %v4943_v41 = vor.u32 %v6311_v2, %v4940_v3  ;;  %v4950_v2 = vld [vmem:[%s10406_s0 + $0x1b0] sm:$0xf]  ;;  %v6315_v3 = vld [vmem:[%s10406_s0 + $0x1b8] sm:$0xf0] }
 0x12b   :  { %v4951_v4 = vor.u32 %v6315_v3, %v4950_v2  ;;  %v3238_v3 = vadd.f32 %v7204_v36, %v7202_v30  ;;  %v5970_v30 = vld [vmem:[%s10406_s0 + $0x9a8] sm:$0xf]  ;;  %v7358_v36 = vld [vmem:[%s10407_s2] ss:$0 sm:$0xff] }
 0x12d   :  { %v7280_v12 = vpop.f32.mrf.mxu3  ;;  %v7282_v14 = vpop.f32.mrf.mxu2 }
 0x12e   :  { %10438 = vst [vmem:[#allocation15_spill] sm:$0xff] %v7280_v12  ;;  %v7284_v20 = vpop.f32.mrf.mxu0 }
 0x12f   :  { %v7286_v25 = vpop.f32.mrf.mxu1 }
 0x131   :  { %2717 = vmatmul.bf16.gmra.mxu0 %v4939_v15  ;;  %v5958_v15 = vld [vmem:[%s10406_s0 + $0x990] sm:$0xf] }
 0x132   :  { %3137 = vmatmul.bf16.gmra.mxu3 %v5947_v29  ;;  %3286 = vmatmul.bf16.gmra.mxu1 %v4943_v41  ;;  %v4952_v29 = vld [vmem:[%s10406_s0 + $0x1bc] sm:$0xf0]  ;;  %v5959_v37 = vor.u32 %v6567_v43, %v5958_v15  ;;  %v4983_v43 = vor.u32 %v6322_v10, %v4982_v23  ;;  %v6570_v10 = vld [vmem:[%s10406_s0 + $0x9b0] sm:$0xf0]  ;;  %v6317_v23 = vld [vmem:[%s10406_s0 + $0x1cc] sm:$0xf] }
 0x133   :  { %v4955_v47 = vor.u32 %v6314_v62, %v4952_v29  ;;  %v4962_v29 = vld [vmem:[%s10406_s0 + $0x1c8] sm:$0xf]  ;;  %v5971_v33 = vor.u32 %v6570_v10, %v5970_v30  ;;  %v6573_v10 = vld [vmem:[%s10406_s0 + $0x9c8] sm:$0xf0] }
 0x135   :  { %v7294_v22 = vpop.f32.mrf.mxu3  ;;  %v3823_v54 = vpop.f32.mrf.mxu2 }
 0x136   :  { %10439 = vst [vmem:[#allocation16_spill] sm:$0xff] %v7294_v22  ;;  %v7296_v56 = vpop.f32.mrf.mxu0 }
 0x137   :  { %v7298_v61 = vpop.f32.mrf.mxu1 }
 0x13a   :  { %6167 = vmatmul.msk.bf16.gmra.mxu2 %vm2287_vm0, %v4971_v59 }
 0x13d   :  { %v7319_v41 = vpop.f32.mrf.mxu3  ;;  %v3826_v59 = vpop.f32.mrf.mxu2 }
 0x13e   :  { %10440 = vst [vmem:[#allocation17_spill] sm:$0xff] %v7319_v41  ;;  %v7321_v51 = vpop.f32.mrf.mxu0 }
 0x13f   :  { %v7323_v34 = vpop.f32.mrf.mxu1 }
 0x141   :  { %2722 = vmatmul.bf16.gmra.mxu0 %v4951_v4 }
 0x142   :  { %3142 = vmatmul.bf16.gmra.mxu3 %v5959_v37  ;;  %3291 = vmatmul.bf16.gmra.mxu1 %v4955_v47  ;;  %v3807_v47 = vadd.f32 %v7159_v45, %v3238_v3  ;;  %v4964_v45 = vld [vmem:[%s10406_s0 + $0x1d4] sm:$0xf0] }
 0x143   :  { %v4967_v6 = vor.u32 %v6317_v23, %v4964_v45 }
 0x145   :  { %v7331_v41 = vpop.f32.mrf.mxu3  ;;  %v3828_v2 = vpop.f32.mrf.mxu2 }
 0x146   :  { %10441 = vst [vmem:[#allocation18_spill] sm:$0xff] %v7331_v41  ;;  %v2685_v15 = vpop.f32.mrf.mxu0  ;;  %v6318_v41 = vld [vmem:[%s10406_s0 + $0x1d0] sm:$0xf0] }
 0x147   :  { %v3254_v62 = vpop.f32.mrf.mxu1 }
 0x148   :  { %v3255_v4 = vadd.f32 %v3254_v62, %v2685_v15  ;;  %v3240_v62 = vadd.f32 %v7218_v53, %v7216_v49 }
 0x14a   :  { %v3824_v37 = vadd.f32 %v3823_v54, %v3255_v4  ;;  %6168 = vmatmul.msk.bf16.gmra.mxu2 %vm2287_vm0, %v4983_v43  ;;  %v4963_v43 = vor.u32 %v6318_v41, %v4962_v29  ;;  %v10443_v4 = vmax.f32 %v6951_v7, %v7060_v28  ;;  %v4994_v7 = vld [vmem:[%s10406_s0 + $0x200] sm:$0xf]  ;;  %v6325_v28 = vld [vmem:[%s10406_s0 + $0x208] sm:$0xf0] }
 0x14b   :  { %v4974_v29 = vld [vmem:[%s10406_s0 + $0x1e0] sm:$0xf] }
 0x14c   :  { %v4342_v54 = vmax.f32 %v3807_v47, %v3824_v37  ;;  %v3809_v47 = vadd.f32 %v7173_v1, %v3240_v62  ;;  %v3243_v1 = vadd.f32 %v7245_v19, %v7243_v13  ;;  %v3245_v62 = vadd.f32 %v7259_v50, %v7257_v39 }
 0x14d   :  { %v7360_v3 = vpop.f32.mrf.mxu3  ;;  %v3831_v15 = vpop.f32.mrf.mxu2 }
 0x14e   :  { %10442 = vst [vmem:[#allocation19_spill] sm:$0xff] %v7360_v3  ;;  %v4349_v22 = vmax.f32 %v10443_v4, %v4342_v54  ;;  %v2688_v12 = vpop.f32.mrf.mxu0  ;;  %v3812_v13 = vadd.f32 %v7200_v27, %v3243_v1  ;;  %v6320_v27 = vld [vmem:[%s10406_s0 + $0x1e4] sm:$0xf]  ;;  %v10447_v4 = vmax.f32 %v6984_v31, %v7097_v60 }
 0x14f   :  { %v3257_v42 = vpop.f32.mrf.mxu1  ;;  %v6328_v31 = vld [vmem:[%s10406_s0 + $0x220] sm:$0xf0] }
 0x150   :  { %v4356_v26 = vadd.f32 %v7358_v36, %v4349_v22  ;;  %v3258_v63 = vadd.f32 %v3257_v42, %v2688_v12 }
 0x151   :  { %2727 = vmatmul.bf16.gmra.mxu0 %v4963_v43 }
 0x152   :  { %v4363_v37 = vmax.f32 %v4356_v26, 0.0  ;;  %v3827_v3 = vadd.f32 %v3826_v59, %v3258_v63  ;;  %3147 = vmatmul.bf16.gmra.mxu3 %v5971_v33  ;;  %3296 = vmatmul.bf16.gmra.mxu1 %v4967_v6  ;;  %v10445_v63 = vmax.f32 %v6961_v16, %v7085_v48  ;;  %v4995_v33 = vor.u32 %v6325_v28, %v4994_v7  ;;  %v6321_v16 = vld [vmem:[%s10406_s0 + $0x1e8] sm:$0xf0]  ;;  %v5982_v48 = vld [vmem:[%s10406_s0 + $0x9c0] sm:$0xf] }
 0x153   :  { %v4975_v43 = vor.u32 %v6321_v16, %v4974_v29  ;;  %v5983_v7 = vor.u32 %v6573_v10, %v5982_v48  ;;  %v4986_v16 = vld [vmem:[%s10406_s0 + $0x1f8] sm:$0xf]  ;;  %v6576_v10 = vld [vmem:[%s10406_s0 + $0x9e0] sm:$0xf0] }
 0x154   :  { %v4370_v49 = vpack.c.bf16 %v4363_v37, %v4363_v37  ;;  %v4343_v53 = vmax.f32 %v3809_v47, %v3827_v3 }
 0x155   :  { %v7375_v22 = vpop.f32.mrf.mxu3  ;;  %v3833_v42 = vpop.f32.mrf.mxu2 }
 0x156   :  { %10444 = vst [vmem:[#allocation20_spill] sm:$0xff] %v7375_v22  ;;  %v4350_v26 = vmax.f32 %v10445_v63, %v4343_v53  ;;  %v2690_v6 = vpop.f32.mrf.mxu0  ;;  %v3814_v63 = vadd.f32 %v7214_v46, %v3245_v62  ;;  %v3248_v46 = vadd.f32 %v7286_v25, %v7284_v20  ;;  %v3250_v62 = vadd.f32 %v7298_v61, %v7296_v56 }
 0x157   :  { %4378 = vst.msk [vmem:[%s10408_s3] sm:$0xf] %vm4377_vm1, %v4370_v49  ;;  %v3259_v12 = vpop.f32.mrf.mxu1 }
 0x158   :  { %v4357_v41 = vadd.f32 %v7358_v36, %v4350_v26  ;;  %v3260_v59 = vadd.f32 %v3259_v12, %v2690_v6  ;;  %v5006_v26 = vld [vmem:[%s10406_s0 + $0x218] sm:$0xf]  ;;  %v3817_v25 = vadd.f32 %v7241_v9, %v3248_v46  ;;  %v6323_v9 = vld [vmem:[%s10406_s0 + $0x1fc] sm:$0xf] }
 0x159   :  { %v5007_v29 = vor.u32 %v6328_v31, %v5006_v26 }
 0x15a   :  { %v4364_v19 = vmax.f32 %v4357_v41, 0.0  ;;  %v3829_v30 = vadd.f32 %v3828_v2, %v3260_v59  ;;  %6169 = vmatmul.msk.bf16.gmra.mxu2 %vm2287_vm0, %v4995_v33  ;;  %v4976_v2 = vld [vmem:[%s10406_s0 + $0x1ec] sm:$0xf0] }
 0x15b   :  { %v4979_v28 = vor.u32 %v6320_v27, %v4976_v2 }
 0x15c   :  { %v4371_v23 = vpack.c.bf16 %v4364_v19, %v4364_v19  ;;  %v4344_v45 = vmax.f32 %v3812_v13, %v3829_v30 }
 0x15d   :  { %v7407_v54 = vpop.f32.mrf.mxu3  ;;  %v3836_v3 = vpop.f32.mrf.mxu2 }
 0x15e   :  { %10446 = vst [vmem:[#allocation21_spill] sm:$0xff] %v7407_v54  ;;  %v4351_v47 = vmax.f32 %v10447_v4, %v4344_v45  ;;  %v2693_v37 = vpop.f32.mrf.mxu0  ;;  %v10451_v4 = vmax.f32 %v7017_v55, %v7134_v32  ;;  %v6331_v55 = vld [vmem:[%s10406_s0 + $0x238] sm:$0xf0] }
 0x15f   :  { %4379 = vst.msk [vmem:[%s10408_s3 + $0x4] sm:$0xf] %vm4377_vm1, %v4371_v23  ;;  %v3262_v49 = vpop.f32.mrf.mxu1 }
 0x160   :  { %v4358_v53 = vadd.f32 %v7358_v36, %v4351_v47  ;;  %v3263_v1 = vadd.f32 %v3262_v49, %v2693_v37 }
 0x161   :  { %2732 = vmatmul.bf16.gmra.mxu0 %v4975_v43 }
 0x162   :  { %v4365_v39 = vmax.f32 %v4358_v53, 0.0  ;;  %v3832_v50 = vadd.f32 %v3831_v15, %v3263_v1  ;;  %3152 = vmatmul.bf16.gmra.mxu3 %v5983_v7  ;;  %3301 = vmatmul.bf16.gmra.mxu1 %v4979_v28  ;;  %v10449_v15 = vmax.f32 %v6994_v40, %v7122_v17  ;;  %v6324_v40 = vld [vmem:[%s10406_s0 + $0x200] sm:$0xf0]  ;;  %v5994_v17 = vld [vmem:[%s10406_s0 + $0x9d8] sm:$0xf] }
 0x163   :  { %v4987_v43 = vor.u32 %v6324_v40, %v4986_v16  ;;  %v5995_v7 = vor.u32 %v6576_v10, %v5994_v17  ;;  %v10455_v40 = vmax.f32 %v7050_v18, %v7175_v11  ;;  %v6334_v18 = vld [vmem:[%s10406_s0 + $0x250] sm:$0xf0] }
 0x164   :  { %v4372_v60 = vpack.c.bf16 %v4365_v39, %v4365_v39  ;;  %v4345_v6 = vmax.f32 %v3814_v63, %v3832_v50  ;;  %v3819_v63 = vadd.f32 %v7255_v35, %v3250_v62  ;;  %v5018_v39 = vld [vmem:[%s10406_s0 + $0x230] sm:$0xf]  ;;  %v3253_v35 = vadd.f32 %v7323_v34, %v7321_v51 }
 0x165   :  { %v7426_v33 = vpop.f32.mrf.mxu3  ;;  %v3838_v12 = vpop.f32.mrf.mxu2  ;;  %v5019_v46 = vor.u32 %v6331_v55, %v5018_v39  ;;  %v6582_v39 = vld [vmem:[%s10406_s0 + $0xa10] sm:$0xf0]  ;;  %v6329_v55 = vld [vmem:[%s10406_s0 + $0x22c] sm:$0xf] }
 0x166   :  { %10448 = vst [vmem:[#allocation22_spill] sm:$0xff] %v7426_v33  ;;  %v4352_v41 = vmax.f32 %v10449_v15, %v4345_v6  ;;  %v2695_v59 = vpop.f32.mrf.mxu0  ;;  %v3822_v34 = vadd.f32 %v7282_v14, %v3253_v35  ;;  %v6326_v14 = vld [vmem:[%s10406_s0 + $0x214] sm:$0xf] }
 0x167   :  { %4380 = vst.msk [vmem:[%s10408_s3 + $0x8] sm:$0xf] %vm4377_vm1, %v4372_v60  ;;  %v3264_v13 = vpop.f32.mrf.mxu1 }
 0x168   :  { %v4359_v19 = vadd.f32 %v7358_v36, %v4352_v41  ;;  %v3265_v30 = vadd.f32 %v3264_v13, %v2695_v59 }
 0x16a   :  { %v4366_v20 = vmax.f32 %v4359_v19, 0.0  ;;  %v3834_v48 = vadd.f32 %v3833_v42, %v3265_v30  ;;  %6170 = vmatmul.msk.bf16.gmra.mxu2 %vm2287_vm0, %v5007_v29  ;;  %v4988_v42 = vld [vmem:[%s10406_s0 + $0x204] sm:$0xf0]  ;;  %v4998_v29 = vld [vmem:[%s10406_s0 + $0x210] sm:$0xf] }
 0x16b   :  { %v4991_v28 = vor.u32 %v6323_v9, %v4988_v42  ;;  %v6579_v19 = vld [vmem:[%s10406_s0 + $0x9f8] sm:$0xf0] }
 0x16c   :  { %v4373_v27 = vpack.c.bf16 %v4366_v20, %v4366_v20  ;;  %v4346_v2 = vmax.f32 %v3817_v25, %v3834_v48 }
 0x16d   :  { %v7458_v23 = vpop.f32.mrf.mxu3  ;;  %v3841_v45 = vpop.f32.mrf.mxu2 }
 0x16e   :  { %10450 = vst [vmem:[#allocation23_spill] sm:$0xff] %v7458_v23  ;;  %v4353_v47 = vmax.f32 %v10451_v4, %v4346_v2  ;;  %v2698_v37 = vpop.f32.mrf.mxu0 }
 0x16f   :  { %4381 = vst.msk [vmem:[%s10408_s3 + $0xc] sm:$0xf] %vm4377_vm1, %v4373_v27  ;;  %v3267_v49 = vpop.f32.mrf.mxu1 }
 0x170   :  { %v4360_v53 = vadd.f32 %v7358_v36, %v4353_v47  ;;  %v3268_v1 = vadd.f32 %v3267_v49, %v2698_v37  ;;  %v5030_v47 = vld [vmem:[%s10406_s0 + $0x248] sm:$0xf] }
 0x171   :  { %2737 = vmatmul.bf16.gmra.mxu0 %v4987_v43 }
 0x172   :  { %v4367_v56 = vmax.f32 %v4360_v53, 0.0  ;;  %v3837_v61 = vadd.f32 %v3836_v3, %v3268_v1  ;;  %3157 = vmatmul.bf16.gmra.mxu3 %v5995_v7  ;;  %3306 = vmatmul.bf16.gmra.mxu1 %v4991_v28  ;;  %v10453_v3 = vmax.f32 %v7027_v0, %v7161_v57  ;;  %v6327_v0 = vld [vmem:[%s10406_s0 + $0x218] sm:$0xf0]  ;;  %v6006_v57 = vld [vmem:[%s10406_s0 + $0x9f0] sm:$0xf]  ;;  %v5031_v28 = vor.u32 %v6334_v18, %v5030_v47 }
 0x173   :  { %v4999_v48 = vor.u32 %v6327_v0, %v4998_v29  ;;  %v6007_v9 = vor.u32 %v6579_v19, %v6006_v57  ;;  %v6337_v29 = vld [vmem:[%s10406_s0 + $0x268] sm:$0xf0]  ;;  %v5054_v18 = vld [vmem:[%s10406_s0 + $0x278] sm:$0xf] }
 0x174   :  { %v4374_v32 = vpack.c.bf16 %v4367_v56, %v4367_v56  ;;  %v4347_v50 = vmax.f32 %v3819_v63, %v3837_v61  ;;  %v5010_v63 = vld [vmem:[%s10406_s0 + $0x228] sm:$0xf]  ;;  %v6330_v56 = vld [vmem:[%s10406_s0 + $0x230] sm:$0xf0] }
 0x175   :  { %v7477_v26 = vpop.f32.mrf.mxu3  ;;  %v3843_v31 = vpop.f32.mrf.mxu2  ;;  %v6018_v61 = vld [vmem:[%s10406_s0 + $0xa08] sm:$0xf]  ;;  %v5011_v35 = vor.u32 %v6330_v56, %v5010_v63 }
 0x176   :  { %10452 = vst [vmem:[#allocation24_spill] sm:$0xff] %v7477_v26  ;;  %v4354_v60 = vmax.f32 %v10453_v3, %v4347_v50  ;;  %v2700_v6 = vpop.f32.mrf.mxu0 }
 0x177   :  { %4382 = vst.msk [vmem:[%s10408_s3 + $0x10] sm:$0xf] %vm4377_vm1, %v4374_v32  ;;  %v3269_v15 = vpop.f32.mrf.mxu1  ;;  %v5012_v32 = vld [vmem:[%s10406_s0 + $0x234] sm:$0xf0] }
 0x178   :  { %v4361_v41 = vadd.f32 %v7358_v36, %v4354_v60  ;;  %v3270_v59 = vadd.f32 %v3269_v15, %v2700_v6  ;;  %v6019_v60 = vor.u32 %v6582_v39, %v6018_v61  ;;  %v5015_v6 = vor.u32 %v6329_v55, %v5012_v32  ;;  %v5034_v61 = vld [vmem:[%s10406_s0 + $0x258] sm:$0xf]  ;;  %v6336_v39 = vld [vmem:[%s10406_s0 + $0x260] sm:$0xf0] }
 0x179   :  { %v6042_v55 = vld [vmem:[%s10406_s0 + $0xa38] sm:$0xf]  ;;  %v6588_v32 = vld [vmem:[%s10406_s0 + $0xa40] sm:$0xf0] }
 0x17a   :  { %v4368_v51 = vmax.f32 %v4361_v41, 0.0  ;;  %v3839_v13 = vadd.f32 %v3838_v12, %v3270_v59  ;;  %6171 = vmatmul.msk.bf16.gmra.mxu2 %vm2287_vm0, %v5019_v46  ;;  %v5000_v12 = vld [vmem:[%s10406_s0 + $0x21c] sm:$0xf0] }
 0x17b   :  { %v5003_v42 = vor.u32 %v6326_v14, %v5000_v12  ;;  %v5042_v59 = vld [vmem:[%s10406_s0 + $0x260] sm:$0xf] }
 0x17c   :  { %v4375_v30 = vpack.c.bf16 %v4368_v51, %v4368_v51  ;;  %v4348_v16 = vmax.f32 %v3822_v34, %v3839_v13  ;;  %v5043_v0 = vor.u32 %v6337_v29, %v5042_v59  ;;  %v5022_v12 = vld [vmem:[%s10406_s0 + $0x240] sm:$0xf] }
 0x17d   :  { %v7509_v25 = vpop.f32.mrf.mxu3  ;;  %v3846_v20 = vpop.f32.mrf.mxu2 }
 0x17e   :  { %10454 = vst [vmem:[#allocation25_spill] sm:$0xff] %v7509_v25  ;;  %v4355_v17 = vmax.f32 %v10455_v40, %v4348_v16  ;;  %v2703_v10 = vpop.f32.mrf.mxu0  ;;  %v6030_v16 = vld [vmem:[%s10406_s0 + $0xa20] sm:$0xf]  ;;  %v5024_v40 = vld [vmem:[%s10406_s0 + $0x24c] sm:$0xf0] }
 0x17f   :  { %4383 = vst.msk [vmem:[%s10408_s3 + $0x14] sm:$0xf] %vm4377_vm1, %v4375_v30  ;;  %v3272_v27 = vpop.f32.mrf.mxu1  ;;  %v6333_v30 = vld [vmem:[%s10406_s0 + $0x248] sm:$0xf0] }
 0x180   :  { %v4362_v2 = vadd.f32 %v7358_v36, %v4355_v17  ;;  %v3273_v43 = vadd.f32 %v3272_v27, %v2703_v10 }
 0x181   :  { %2742 = vmatmul.bf16.gmra.mxu0 %v4999_v48  ;;  %v6332_v48 = vld [vmem:[%s10406_s0 + $0x244] sm:$0xf] }
 0x182   :  { %v4369_v62 = vmax.f32 %v4362_v2, 0.0  ;;  %v7519_v4 = vadd.f32 %v3841_v45, %v3273_v43  ;;  %3162 = vmatmul.bf16.gmra.mxu3 %v6007_v9  ;;  %3311 = vmatmul.bf16.gmra.mxu1 %v5003_v42  ;;  %v5023_v9 = vor.u32 %v6333_v30, %v5022_v12  ;;  %v5027_v2 = vor.u32 %v6332_v48, %v5024_v40 }
 0x184   :  { %v4376_v11 = vpack.c.bf16 %v4369_v62, %v4369_v62 }
 0x185   :  { %v7527_v37 = vpop.f32.mrf.mxu3  ;;  %v3848_v7 = vpop.f32.mrf.mxu2 }
 0x186   :  { %10456 = vst [vmem:[#allocation26_spill] sm:$0xff] %v7527_v37  ;;  %v2705_v45 = vpop.f32.mrf.mxu0  ;;  %v6364_v37 = vld [vmem:[%s10406_s0 + $0x340] sm:$0xf0] }
 0x187   :  { %4384 = vst.msk [vmem:[%s10408_s3 + $0x18] sm:$0xf] %vm4377_vm1, %v4376_v11  ;;  %v3274_v49 = vpop.f32.mrf.mxu1  ;;  %v6340_v11 = vld [vmem:[%s10406_s0 + $0x280] sm:$0xf0] }
 0x188   :  { %v3275_v53 = vadd.f32 %v3274_v49, %v2705_v45  ;;  %v5055_v49 = vor.u32 %v6340_v11, %v5054_v18 }
 0x18a   :  { %v7533_v1 = vadd.f32 %v3843_v31, %v3275_v53  ;;  %6172 = vmatmul.msk.bf16.gmra.mxu2 %vm2287_vm0, %v5031_v28 }
 0x18d   :  { %v7554_v50 = vpop.f32.mrf.mxu3  ;;  %v3851_v31 = vpop.f32.mrf.mxu2 }
 0x18e   :  { %10457 = vst [vmem:[#allocation27_spill] sm:$0xff] %v7554_v50  ;;  %v2708_v3 = vpop.f32.mrf.mxu0  ;;  %v5150_v50 = vld [vmem:[%s10406_s0 + $0x338] sm:$0xf] }
 0x18f   :  { %v3277_v46 = vpop.f32.mrf.mxu1 }
 0x190   :  { %v3278_v15 = vadd.f32 %v3277_v46, %v2708_v3 }
 0x191   :  { %2747 = vmatmul.bf16.gmra.mxu0 %v5011_v35  ;;  %v5036_v35 = vld [vmem:[%s10406_s0 + $0x264] sm:$0xf0] }
 0x192   :  { %v7556_v41 = vadd.f32 %v3846_v20, %v3278_v15  ;;  %3167 = vmatmul.bf16.gmra.mxu3 %v6019_v60  ;;  %3316 = vmatmul.bf16.gmra.mxu1 %v5015_v6  ;;  %v6585_v20 = vld [vmem:[%s10406_s0 + $0xa28] sm:$0xf0]  ;;  %v5035_v6 = vor.u32 %v6336_v39, %v5034_v61  ;;  %v6043_v15 = vor.u32 %v6588_v32, %v6042_v55  ;;  %v5078_v55 = vld [vmem:[%s10406_s0 + $0x2a8] sm:$0xf]  ;;  %v6346_v32 = vld [vmem:[%s10406_s0 + $0x2b0] sm:$0xf0] }
 0x193   :  { %v6031_v27 = vor.u32 %v6585_v20, %v6030_v16 }
 0x195   :  { %v7564_v34 = vpop.f32.mrf.mxu3  ;;  %v3853_v51 = vpop.f32.mrf.mxu2 }
 0x196   :  { %10458 = vst [vmem:[#allocation28_spill] sm:$0xff] %v7564_v34  ;;  %v2710_v13 = vpop.f32.mrf.mxu0 }
 0x197   :  { %v3279_v57 = vpop.f32.mrf.mxu1 }
 0x198   :  { %v3280_v19 = vadd.f32 %v3279_v57, %v2710_v13  ;;  %v6343_v57 = vld [vmem:[%s10406_s0 + $0x298] sm:$0xf0] }
 0x19a   :  { %v7566_v14 = vadd.f32 %v3848_v7, %v3280_v19  ;;  %6173 = vmatmul.msk.bf16.gmra.mxu2 %vm2287_vm0, %v5043_v0  ;;  %v5066_v0 = vld [vmem:[%s10406_s0 + $0x290] sm:$0xf] }
 0x19b   :  { %v5067_v16 = vor.u32 %v6343_v57, %v5066_v0  ;;  %v6342_v0 = vld [vmem:[%s10406_s0 + $0x290] sm:$0xf0]  ;;  %v6066_v57 = vld [vmem:[%s10406_s0 + $0xa68] sm:$0xf] }
 0x19d   :  { %v7587_v17 = vpop.f32.mrf.mxu3  ;;  %v3856_v10 = vpop.f32.mrf.mxu2 }
 0x19e   :  { %10459 = vst [vmem:[#allocation29_spill] sm:$0xff] %v7587_v17  ;;  %v2713_v42 = vpop.f32.mrf.mxu0 }
 0x19f   :  { %v3282_v43 = vpop.f32.mrf.mxu1 }
 0x1a0   :  { %v3283_v62 = vadd.f32 %v3282_v43, %v2713_v42  ;;  %v6054_v42 = vld [vmem:[%s10406_s0 + $0xa50] sm:$0xf]  ;;  %v5048_v43 = vld [vmem:[%s10406_s0 + $0x27c] sm:$0xf0] }
 0x1a1   :  { %2752 = vmatmul.bf16.gmra.mxu0 %v5023_v9  ;;  %v6339_v9 = vld [vmem:[%s10406_s0 + $0x278] sm:$0xf0] }
 0x1a2   :  { %v7589_v47 = vadd.f32 %v3851_v31, %v3283_v62  ;;  %3172 = vmatmul.bf16.gmra.mxu3 %v6031_v27  ;;  %3321 = vmatmul.bf16.gmra.mxu1 %v5027_v2  ;;  %v6335_v31 = vld [vmem:[%s10406_s0 + $0x25c] sm:$0xf]  ;;  %v6338_v2 = vld [vmem:[%s10406_s0 + $0x274] sm:$0xf] }
 0x1a3   :  { %v5039_v59 = vor.u32 %v6335_v31, %v5036_v35  ;;  %v6591_v27 = vld [vmem:[%s10406_s0 + $0xa58] sm:$0xf0] }
 0x1a5   :  { %v7597_v7 = vpop.f32.mrf.mxu3  ;;  %v3858_v45 = vpop.f32.mrf.mxu2 }
 0x1a6   :  { %10460 = vst [vmem:[#allocation30_spill] sm:$0xff] %v7597_v7  ;;  %v2715_v28 = vpop.f32.mrf.mxu0 }
 0x1a7   :  { %v3284_v53 = vpop.f32.mrf.mxu1 }
 0x1a8   :  { %v3285_v63 = vadd.f32 %v3284_v53, %v2715_v28  ;;  %v5051_v53 = vor.u32 %v6338_v2, %v5048_v43 }
 0x1aa   :  { %v7599_v56 = vadd.f32 %v3853_v51, %v3285_v63  ;;  %6174 = vmatmul.msk.bf16.gmra.mxu2 %vm2287_vm0, %v5055_v49  ;;  %v6055_v49 = vor.u32 %v6591_v27, %v6054_v42 }
 0x1ad   :  { %v7620_v3 = vpop.f32.mrf.mxu3  ;;  %v3861_v60 = vpop.f32.mrf.mxu2 }
 0x1ae   :  { %10461 = vst [vmem:[#allocation31_spill] sm:$0xff] %v7620_v3  ;;  %v2718_v46 = vpop.f32.mrf.mxu0 }
 0x1af   :  { %v3287_v29 = vpop.f32.mrf.mxu1 }
 0x1b0   :  { %v3288_v51 = vadd.f32 %v3287_v29, %v2718_v46 }
 0x1b1   :  { %2757 = vmatmul.bf16.gmra.mxu0 %v5035_v6 }
 0x1b2   :  { %v7622_v13 = vadd.f32 %v3856_v10, %v3288_v51  ;;  %3177 = vmatmul.bf16.gmra.mxu3 %v6043_v15  ;;  %3326 = vmatmul.bf16.gmra.mxu1 %v5039_v59  ;;  %v5046_v10 = vld [vmem:[%s10406_s0 + $0x270] sm:$0xf]  ;;  %v5079_v15 = vor.u32 %v6346_v32, %v5078_v55  ;;  %v5058_v51 = vld [vmem:[%s10406_s0 + $0x288] sm:$0xf] }
 0x1b5   :  { %v7630_v19 = vpop.f32.mrf.mxu3  ;;  %v3863_v12 = vpop.f32.mrf.mxu2 }
 0x1b6   :  { %10462 = vst [vmem:[#allocation32_spill] sm:$0xff] %v7630_v19  ;;  %v2720_v30 = vpop.f32.mrf.mxu0 }
 0x1b7   :  { %v3289_v20 = vpop.f32.mrf.mxu1 }
 0x1b8   :  { %v3290_v48 = vadd.f32 %v3289_v20, %v2720_v30  ;;  %v6594_v30 = vld [vmem:[%s10406_s0 + $0xa70] sm:$0xf0] }
 0x1b9   :  { %v6067_v27 = vor.u32 %v6594_v30, %v6066_v57  ;;  %v5072_v57 = vld [vmem:[%s10406_s0 + $0x2ac] sm:$0xf0] }
 0x1ba   :  { %v7632_v40 = vadd.f32 %v3858_v45, %v3290_v48  ;;  %6175 = vmatmul.msk.bf16.gmra.mxu2 %vm2287_vm0, %v5067_v16  ;;  %v5047_v45 = vor.u32 %v6339_v9, %v5046_v10  ;;  %v5060_v16 = vld [vmem:[%s10406_s0 + $0x294] sm:$0xf0]  ;;  %v5059_v9 = vor.u32 %v6342_v0, %v5058_v51  ;;  %v6345_v51 = vld [vmem:[%s10406_s0 + $0x2a8] sm:$0xf0]  ;;  %v6344_v0 = vld [vmem:[%s10406_s0 + $0x2a4] sm:$0xf] }
 0x1bb   :  { %v5744_v30 = vld [vmem:[%s10406_s0 + $0x7ec] sm:$0xf0] }
 0x1bd   :  { %v7655_v18 = vpop.f32.mrf.mxu3  ;;  %v3866_v11 = vpop.f32.mrf.mxu2 }
 0x1be   :  { %10463 = vst [vmem:[#allocation33_spill] sm:$0xff] %v7655_v18  ;;  %v2723_v28 = vpop.f32.mrf.mxu0  ;;  %v5138_v18 = vld [vmem:[%s10406_s0 + $0x320] sm:$0xf] }
 0x1bf   :  { %v3292_v63 = vpop.f32.mrf.mxu1 }
 0x1c0   :  { %v3293_v61 = vadd.f32 %v3292_v63, %v2723_v28 }
 0x1c1   :  { %2762 = vmatmul.bf16.gmra.mxu0 %v5047_v45 }
 0x1c2   :  { %v7657_v39 = vadd.f32 %v3861_v60, %v3293_v61  ;;  %3182 = vmatmul.bf16.gmra.mxu3 %v6055_v49  ;;  %3331 = vmatmul.bf16.gmra.mxu1 %v5051_v53  ;;  %v5090_v49 = vld [vmem:[%s10406_s0 + $0x2c0] sm:$0xf]  ;;  %v6349_v53 = vld [vmem:[%s10406_s0 + $0x2c8] sm:$0xf0] }
 0x1c5   :  { %v7667_v35 = vpop.f32.mrf.mxu3  ;;  %v3868_v6 = vpop.f32.mrf.mxu2 }
 0x1c6   :  { %10464 = vst [vmem:[#allocation34_spill] sm:$0xff] %v7667_v35  ;;  %v2725_v46 = vpop.f32.mrf.mxu0 }
 0x1c7   :  { %v3294_v60 = vpop.f32.mrf.mxu1 }
 0x1c8   :  { %v3295_v59 = vadd.f32 %v3294_v60, %v2725_v46  ;;  %v5091_v46 = vor.u32 %v6349_v53, %v5090_v49 }
 0x1ca   :  { %v7669_v29 = vadd.f32 %v3863_v12, %v3295_v59  ;;  %6176 = vmatmul.msk.bf16.gmra.mxu2 %vm2287_vm0, %v5079_v15  ;;  %v6341_v12 = vld [vmem:[%s10406_s0 + $0x28c] sm:$0xf]  ;;  %v5070_v59 = vld [vmem:[%s10406_s0 + $0x2a0] sm:$0xf] }
 0x1cb   :  { %v5063_v2 = vor.u32 %v6341_v12, %v5060_v16 }
 0x1cd   :  { %v7692_v48 = vpop.f32.mrf.mxu3  ;;  %v3871_v10 = vpop.f32.mrf.mxu2 }
 0x1ce   :  { %10465 = vst [vmem:[#allocation35_spill] sm:$0xff] %v7692_v48  ;;  %v2728_v42 = vpop.f32.mrf.mxu0 }
 0x1cf   :  { %v3297_v43 = vpop.f32.mrf.mxu1 }
 0x1d0   :  { %v3298_v45 = vadd.f32 %v3297_v43, %v2728_v42  ;;  %v5071_v42 = vor.u32 %v6345_v51, %v5070_v59 }
 0x1d1   :  { %2767 = vmatmul.bf16.gmra.mxu0 %v5059_v9 }
 0x1d2   :  { %v7694_v28 = vadd.f32 %v3866_v11, %v3298_v45  ;;  %3187 = vmatmul.bf16.gmra.mxu3 %v6067_v27  ;;  %3336 = vmatmul.bf16.gmra.mxu1 %v5063_v2  ;;  %v5075_v2 = vor.u32 %v6344_v0, %v5072_v57 }
 0x1d5   :  { %v7704_v61 = vpop.f32.mrf.mxu3  ;;  %v3873_v55 = vpop.f32.mrf.mxu2 }
 0x1d6   :  { %10466 = vst [vmem:[#allocation36_spill] sm:$0xff] %v7704_v61  ;;  %v2730_v32 = vpop.f32.mrf.mxu0 }
 0x1d7   :  { %v3299_v11 = vpop.f32.mrf.mxu1 }
 0x1d8   :  { %v3300_v15 = vadd.f32 %v3299_v11, %v2730_v32  ;;  %v5102_v32 = vld [vmem:[%s10406_s0 + $0x2d8] sm:$0xf]  ;;  %v5114_v11 = vld [vmem:[%s10406_s0 + $0x2f0] sm:$0xf] }
 0x1da   :  { %v7706_v60 = vadd.f32 %v3868_v6, %v3300_v15  ;;  %6177 = vmatmul.msk.bf16.gmra.mxu2 %vm2287_vm0, %v5091_v46  ;;  %v6512_v6 = vld [vmem:[%s10406_s0 + $0x7e4] sm:$0xf] }
 0x1db   :  { %v5747_v43 = vor.u32 %v6512_v6, %v5744_v30  ;;  %v6352_v46 = vld [vmem:[%s10406_s0 + $0x2e0] sm:$0xf0]  ;;  %v5082_v30 = vld [vmem:[%s10406_s0 + $0x2b8] sm:$0xf] }
 0x1dd   :  { %v7729_v16 = vpop.f32.mrf.mxu3  ;;  %v7731_v9 = vpop.f32.mrf.mxu2 }
 0x1de   :  { %10467 = vst [vmem:[#allocation37_spill] sm:$0xff] %v7729_v16  ;;  %v2733_v27 = vpop.f32.mrf.mxu0 }
 0x1df   :  { %v3302_v45 = vpop.f32.mrf.mxu1 }
 0x1e0   :  { %v3303_v49 = vadd.f32 %v3302_v45, %v2733_v27  ;;  %v6347_v27 = vld [vmem:[%s10406_s0 + $0x2bc] sm:$0xf] }
 0x1e1   :  { %2772 = vmatmul.bf16.gmra.mxu0 %v5071_v42  ;;  %v6348_v42 = vld [vmem:[%s10406_s0 + $0x2c0] sm:$0xf0]  ;;  %v6355_v45 = vld [vmem:[%s10406_s0 + $0x2f8] sm:$0xf0] }
 0x1e2   :  { %v7733_v53 = vadd.f32 %v3871_v10, %v3303_v49  ;;  %3341 = vmatmul.bf16.gmra.mxu1 %v5075_v2  ;;  %3621 = vmatmul.bf16.vlgmr.msrb.gmra.mxu3 %v5747_v43  ;;  %v5103_v10 = vor.u32 %v6352_v46, %v5102_v32  ;;  %v5084_v2 = vld [vmem:[%s10406_s0 + $0x2c4] sm:$0xf0]  ;;  %v5083_v46 = vor.u32 %v6348_v42, %v5082_v30 }
 0x1e3   :  { %v5756_v43 = vld [vmem:[%s10406_s0 + $0x804] sm:$0xf0] }
 0x1e5   :  { %v7743_v15 = vpop.f32.mrf.mxu3  ;;  %v7745_v59 = vpop.f32.mrf.mxu2 }
 0x1e6   :  { %10468 = vst [vmem:[#allocation38_spill] sm:$0xff] %v7743_v15  ;;  %v2735_v51 = vpop.f32.mrf.mxu0 }
 0x1e7   :  { %v3304_v0 = vpop.f32.mrf.mxu1 }
 0x1e8   :  { %v3305_v57 = vadd.f32 %v3304_v0, %v2735_v51 }
 0x1ea   :  { %v7747_v6 = vadd.f32 %v3873_v55, %v3305_v57  ;;  %6178 = vmatmul.msk.bf16.gmra.mxu2 %vm2287_vm0, %v5103_v10  ;;  %v6515_v55 = vld [vmem:[%s10406_s0 + $0x7fc] sm:$0xf]  ;;  %v5087_v10 = vor.u32 %v6347_v27, %v5084_v2  ;;  %v5115_v27 = vor.u32 %v6355_v45, %v5114_v11  ;;  %v5096_v11 = vld [vmem:[%s10406_s0 + $0x2dc] sm:$0xf0]  ;;  %v6518_v45 = vld [vmem:[%s10406_s0 + $0x814] sm:$0xf] }
 0x1eb   :  { %v5759_v0 = vor.u32 %v6515_v55, %v5756_v43  ;;  %v5094_v55 = vld [vmem:[%s10406_s0 + $0x2d0] sm:$0xf]  ;;  %v6351_v43 = vld [vmem:[%s10406_s0 + $0x2d8] sm:$0xf0] }
 0x1ec   :  { %v5095_v63 = vor.u32 %v6351_v43, %v5094_v55 }
 0x1ed   :  { %v7770_v49 = vpop.f32.mrf.mxu3  ;;  %v7772_v32 = vpop.f32.mrf.mxu2 }
 0x1ee   :  { %10469 = vst [vmem:[#allocation39_spill] sm:$0xff] %v7770_v49  ;;  %v7774_v51 = vpop.f32.mrf.mxu0  ;;  %v5126_v49 = vld [vmem:[%s10406_s0 + $0x308] sm:$0xf] }
 0x1ef   :  { %v7776_v57 = vpop.f32.mrf.mxu1 }
 0x1f1   :  { %2777 = vmatmul.bf16.gmra.mxu0 %v5083_v46  ;;  %v6350_v46 = vld [vmem:[%s10406_s0 + $0x2d4] sm:$0xf] }
 0x1f2   :  { %3346 = vmatmul.bf16.gmra.mxu1 %v5087_v10  ;;  %3626 = vmatmul.bf16.gmra.mxu3 %v5759_v0  ;;  %v5768_v10 = vld [vmem:[%s10406_s0 + $0x81c] sm:$0xf0]  ;;  %v5099_v31 = vor.u32 %v6350_v46, %v5096_v11 }
 0x1f3   :  { %v5771_v62 = vor.u32 %v6518_v45, %v5768_v10  ;;  %v6521_v45 = vld [vmem:[%s10406_s0 + $0x82c] sm:$0xf]  ;;  %v5780_v10 = vld [vmem:[%s10406_s0 + $0x834] sm:$0xf0] }
 0x1f4   :  { %v5783_v48 = vor.u32 %v6521_v45, %v5780_v10  ;;  %v6524_v45 = vld [vmem:[%s10406_s0 + $0x844] sm:$0xf]  ;;  %v5792_v10 = vld [vmem:[%s10406_s0 + $0x84c] sm:$0xf0] }
 0x1f5   :  { %v7784_v12 = vpop.f32.mrf.mxu3  ;;  %v7786_v30 = vpop.f32.mrf.mxu2  ;;  %v5795_v17 = vor.u32 %v6524_v45, %v5792_v10  ;;  %v5130_v10 = vld [vmem:[%s10406_s0 + $0x318] sm:$0xf] }
 0x1f6   :  { %10470 = vst [vmem:[#allocation40_spill] sm:$0xff] %v7784_v12  ;;  %v7788_v42 = vpop.f32.mrf.mxu0 }
 0x1f7   :  { %v7790_v2 = vpop.f32.mrf.mxu1 }
 0x1fa   :  { %6179 = vmatmul.msk.bf16.gmra.mxu2 %vm2287_vm0, %v5115_v27 }
 0x1fd   :  { %v7811_v0 = vpop.f32.mrf.mxu3  ;;  %v7813_v27 = vpop.f32.mrf.mxu2 }
 0x1fe   :  { %10471 = vst [vmem:[#allocation41_spill] sm:$0xff] %v7811_v0  ;;  %v7815_v20 = vpop.f32.mrf.mxu0  ;;  %v6358_v0 = vld [vmem:[%s10406_s0 + $0x310] sm:$0xf0] }
 0x1ff   :  { %v7817_v12 = vpop.f32.mrf.mxu1  ;;  %v5127_v46 = vor.u32 %v6358_v0, %v5126_v49  ;;  %v5108_v49 = vld [vmem:[%s10406_s0 + $0x2f4] sm:$0xf0] }
 0x201   :  { %2782 = vmatmul.bf16.gmra.mxu0 %v5095_v63  ;;  %v6353_v63 = vld [vmem:[%s10406_s0 + $0x2ec] sm:$0xf] }
 0x202   :  { %3351 = vmatmul.bf16.gmra.mxu1 %v5099_v31  ;;  %3631 = vmatmul.bf16.gmra.mxu3 %v5771_v62  ;;  %v5106_v62 = vld [vmem:[%s10406_s0 + $0x2e8] sm:$0xf]  ;;  %v6354_v31 = vld [vmem:[%s10406_s0 + $0x2f0] sm:$0xf0]  ;;  %v5111_v61 = vor.u32 %v6353_v63, %v5108_v49 }
 0x205   :  { %v7825_v15 = vpop.f32.mrf.mxu3  ;;  %v7827_v55 = vpop.f32.mrf.mxu2 }
 0x206   :  { %10472 = vst [vmem:[#allocation42_spill] sm:$0xff] %v7825_v15  ;;  %v7829_v43 = vpop.f32.mrf.mxu0  ;;  %v5107_v15 = vor.u32 %v6354_v31, %v5106_v62 }
 0x207   :  { %v7831_v11 = vpop.f32.mrf.mxu1 }
 0x20a   :  { %6180 = vmatmul.msk.bf16.gmra.mxu2 %vm2287_vm0, %v5127_v46 }
 0x20d   :  { %v7852_v0 = vpop.f32.mrf.mxu3  ;;  %v7854_v46 = vpop.f32.mrf.mxu2 }
 0x20e   :  { %10473 = vst [vmem:[#allocation43_spill] sm:$0xff] %v7852_v0  ;;  %v7856_v16 = vpop.f32.mrf.mxu0  ;;  %v6361_v0 = vld [vmem:[%s10406_s0 + $0x328] sm:$0xf0] }
 0x20f   :  { %v7858_v35 = vpop.f32.mrf.mxu1  ;;  %v5139_v63 = vor.u32 %v6361_v0, %v5138_v18  ;;  %v5120_v18 = vld [vmem:[%s10406_s0 + $0x30c] sm:$0xf0] }
 0x211   :  { %2787 = vmatmul.bf16.gmra.mxu0 %v5107_v15  ;;  %v6356_v15 = vld [vmem:[%s10406_s0 + $0x304] sm:$0xf] }
 0x212   :  { %3356 = vmatmul.bf16.gmra.mxu1 %v5111_v61  ;;  %3636 = vmatmul.bf16.gmra.mxu3 %v5783_v48  ;;  %v5118_v48 = vld [vmem:[%s10406_s0 + $0x300] sm:$0xf]  ;;  %v6357_v61 = vld [vmem:[%s10406_s0 + $0x308] sm:$0xf0]  ;;  %v5123_v7 = vor.u32 %v6356_v15, %v5120_v18  ;;  %v5151_v18 = vor.u32 %v6364_v37, %v5150_v50  ;;  %v5132_v37 = vld [vmem:[%s10406_s0 + $0x324] sm:$0xf0] }
 0x213   :  { %v6527_v50 = vld [vmem:[%s10406_s0 + $0x85c] sm:$0xf] }
 0x215   :  { %v7866_v19 = vpop.f32.mrf.mxu3  ;;  %v3893_v62 = vpop.f32.mrf.mxu2 }
 0x216   :  { %10474 = vst [vmem:[#allocation44_spill] sm:$0xff] %v7866_v19  ;;  %v7868_v31 = vpop.f32.mrf.mxu0  ;;  %v5119_v19 = vor.u32 %v6357_v61, %v5118_v48  ;;  %v3308_v61 = vadd.f32 %v7776_v57, %v7774_v51  ;;  %v6359_v51 = vld [vmem:[%s10406_s0 + $0x31c] sm:$0xf] }
 0x217   :  { %v7870_v49 = vpop.f32.mrf.mxu1  ;;  %v5135_v26 = vor.u32 %v6359_v51, %v5132_v37  ;;  %v5142_v51 = vld [vmem:[%s10406_s0 + $0x330] sm:$0xf] }
 0x21a   :  { %6181 = vmatmul.msk.bf16.gmra.mxu2 %vm2287_vm0, %v5139_v63 }
 0x21d   :  { %v7891_v0 = vpop.f32.mrf.mxu3  ;;  %v3896_v63 = vpop.f32.mrf.mxu2 }
 0x21e   :  { %10475 = vst [vmem:[#allocation45_spill] sm:$0xff] %v7891_v0  ;;  %v7893_v3 = vpop.f32.mrf.mxu0 }
 0x21f   :  { %v7895_v34 = vpop.f32.mrf.mxu1 }
 0x221   :  { %2792 = vmatmul.bf16.gmra.mxu0 %v5119_v19 }
 0x222   :  { %3361 = vmatmul.bf16.gmra.mxu1 %v5123_v7  ;;  %3641 = vmatmul.bf16.gmra.mxu3 %v5795_v17  ;;  %v3877_v17 = vadd.f32 %v7731_v9, %v3308_v61  ;;  %v5804_v9 = vld [vmem:[%s10406_s0 + $0x864] sm:$0xf0] }
 0x223   :  { %v5807_v23 = vor.u32 %v6527_v50, %v5804_v9  ;;  %v5144_v50 = vld [vmem:[%s10406_s0 + $0x33c] sm:$0xf0] }
 0x225   :  { %v7903_v0 = vpop.f32.mrf.mxu3  ;;  %v3898_v48 = vpop.f32.mrf.mxu2 }
 0x226   :  { %10476 = vst [vmem:[#allocation46_spill] sm:$0xff] %v7903_v0  ;;  %v2755_v15 = vpop.f32.mrf.mxu0  ;;  %v6360_v0 = vld [vmem:[%s10406_s0 + $0x320] sm:$0xf0] }
 0x227   :  { %v3324_v45 = vpop.f32.mrf.mxu1 }
 0x228   :  { %v3325_v19 = vadd.f32 %v3324_v45, %v2755_v15  ;;  %v5131_v15 = vor.u32 %v6360_v0, %v5130_v10  ;;  %v10478_v45 = vmax.f32 %v7519_v4, %v7632_v40  ;;  %v6367_v4 = vld [vmem:[%s10406_s0 + $0x358] sm:$0xf0] }
 0x22a   :  { %v3894_v7 = vadd.f32 %v3893_v62, %v3325_v19  ;;  %6182 = vmatmul.msk.bf16.gmra.mxu2 %vm2287_vm0, %v5151_v18  ;;  %v3310_v18 = vadd.f32 %v7790_v2, %v7788_v42  ;;  %v5162_v42 = vld [vmem:[%s10406_s0 + $0x350] sm:$0xf] }
 0x22c   :  { %v4392_v57 = vmax.f32 %v3877_v17, %v3894_v7  ;;  %v3879_v17 = vadd.f32 %v7745_v59, %v3310_v18 }
 0x22d   :  { %v7927_v62 = vpop.f32.mrf.mxu3  ;;  %v3901_v61 = vpop.f32.mrf.mxu2 }
 0x22e   :  { %10477 = vst [vmem:[#allocation47_spill] sm:$0xff] %v7927_v62  ;;  %v4399_v19 = vmax.f32 %v10478_v45, %v4392_v57  ;;  %v2758_v25 = vpop.f32.mrf.mxu0  ;;  %v3315_v45 = vadd.f32 %v7831_v11, %v7829_v43 }
 0x22f   :  { %v3327_v33 = vpop.f32.mrf.mxu1 }
 0x230   :  { %v4406_v54 = vadd.f32 %v7358_v36, %v4399_v19  ;;  %v3328_v22 = vadd.f32 %v3327_v33, %v2758_v25  ;;  %v3313_v25 = vadd.f32 %v7817_v12, %v7815_v20  ;;  %v10482_v19 = vmax.f32 %v7556_v41, %v7669_v29  ;;  %v6370_v41 = vld [vmem:[%s10406_s0 + $0x370] sm:$0xf0] }
 0x231   :  { %2797 = vmatmul.bf16.gmra.mxu0 %v5131_v15 }
 0x232   :  { %v4413_v7 = vmax.f32 %v4406_v54, 0.0  ;;  %v3897_v62 = vadd.f32 %v3896_v63, %v3328_v22  ;;  %3366 = vmatmul.bf16.gmra.mxu1 %v5135_v26  ;;  %3646 = vmatmul.bf16.gmra.mxu3 %v5807_v23  ;;  %v10480_v22 = vmax.f32 %v7533_v1, %v7657_v39  ;;  %v5163_v26 = vor.u32 %v6367_v4, %v5162_v42  ;;  %v6363_v1 = vld [vmem:[%s10406_s0 + $0x338] sm:$0xf0]  ;;  %v6362_v39 = vld [vmem:[%s10406_s0 + $0x334] sm:$0xf] }
 0x233   :  { %v3882_v20 = vadd.f32 %v7772_v32, %v3313_v25  ;;  %v6530_v32 = vld [vmem:[%s10406_s0 + $0x874] sm:$0xf]  ;;  %v5143_v18 = vor.u32 %v6363_v1, %v5142_v51  ;;  %v5147_v42 = vor.u32 %v6362_v39, %v5144_v50  ;;  %v6365_v39 = vld [vmem:[%s10406_s0 + $0x34c] sm:$0xf]  ;;  %v5156_v50 = vld [vmem:[%s10406_s0 + $0x354] sm:$0xf0] }
 0x234   :  { %v4420_v40 = vpack.c.bf16 %v4413_v7, %v4413_v7  ;;  %v4393_v2 = vmax.f32 %v3879_v17, %v3897_v62 }
 0x235   :  { %v7942_v0 = vpop.f32.mrf.mxu3  ;;  %v3903_v33 = vpop.f32.mrf.mxu2 }
 0x236   :  { %10479 = vst [vmem:[#allocation48_spill] sm:$0xff] %v7942_v0  ;;  %v4400_v54 = vmax.f32 %v10480_v22, %v4393_v2  ;;  %v2760_v23 = vpop.f32.mrf.mxu0  ;;  %v3884_v22 = vadd.f32 %v7786_v30, %v3315_v45  ;;  %v3318_v30 = vadd.f32 %v7858_v35, %v7856_v16  ;;  %v5154_v16 = vld [vmem:[%s10406_s0 + $0x348] sm:$0xf]  ;;  %v3320_v45 = vadd.f32 %v7870_v49, %v7868_v31  ;;  %v5306_v0 = vld [vmem:[%s10406_s0 + $0x470] sm:$0xf] }
 0x237   :  { %4427 = vst.msk [vmem:[%s10408_s3 + $0x1c] sm:$0xf] %vm4377_vm1, %v4420_v40  ;;  %v3329_v59 = vpop.f32.mrf.mxu1 }
 0x238   :  { %v4407_v63 = vadd.f32 %v7358_v36, %v4400_v54  ;;  %v3330_v10 = vadd.f32 %v3329_v59, %v2760_v23  ;;  %v5174_v54 = vld [vmem:[%s10406_s0 + $0x368] sm:$0xf] }
 0x23a   :  { %v4414_v12 = vmax.f32 %v4407_v63, 0.0  ;;  %v3899_v37 = vadd.f32 %v3898_v48, %v3330_v10  ;;  %6183 = vmatmul.msk.bf16.gmra.mxu2 %vm2287_vm0, %v5163_v26  ;;  %v5816_v48 = vld [vmem:[%s10406_s0 + $0x87c] sm:$0xf0]  ;;  %v5175_v10 = vor.u32 %v6370_v41, %v5174_v54 }
 0x23b   :  { %v5819_v4 = vor.u32 %v6530_v32, %v5816_v48 }
 0x23c   :  { %v4421_v9 = vpack.c.bf16 %v4414_v12, %v4414_v12  ;;  %v4394_v57 = vmax.f32 %v3882_v20, %v3899_v37  ;;  %v8007_v20 = vld [vmem:[%s10407_s2] ss:$0 sm:$0xff]  ;;  %v3887_v37 = vadd.f32 %v7813_v27, %v3318_v30  ;;  %v6533_v27 = vld [vmem:[%s10406_s0 + $0x88c] sm:$0xf] }
 0x23d   :  { %v7974_v62 = vpop.f32.mrf.mxu3  ;;  %v3906_v15 = vpop.f32.mrf.mxu2 }
 0x23e   :  { %10481 = vst [vmem:[#allocation49_spill] sm:$0xff] %v7974_v62  ;;  %v4401_v17 = vmax.f32 %v10482_v19, %v4394_v57  ;;  %v2763_v7 = vpop.f32.mrf.mxu0  ;;  %v10486_v19 = vmax.f32 %v7589_v47, %v7706_v60  ;;  %v6373_v47 = vld [vmem:[%s10406_s0 + $0x388] sm:$0xf0] }
 0x23f   :  { %4428 = vst.msk [vmem:[%s10408_s3 + $0x20] sm:$0xf] %vm4377_vm1, %v4421_v9  ;;  %v3332_v40 = vpop.f32.mrf.mxu1 }
 0x240   :  { %v4408_v2 = vadd.f32 %v7358_v36, %v4401_v17  ;;  %v3333_v25 = vadd.f32 %v3332_v40, %v2763_v7 }
 0x241   :  { %2802 = vmatmul.bf16.gmra.mxu0 %v5143_v18 }
 0x242   :  { %v4415_v43 = vmax.f32 %v4408_v2, 0.0  ;;  %v3902_v11 = vadd.f32 %v3901_v61, %v3333_v25  ;;  %3371 = vmatmul.bf16.gmra.mxu1 %v5147_v42  ;;  %3651 = vmatmul.bf16.gmra.mxu3 %v5819_v4  ;;  %v10484_v61 = vmax.f32 %v7566_v14, %v7694_v28  ;;  %v6366_v28 = vld [vmem:[%s10406_s0 + $0x350] sm:$0xf0]  ;;  %v5159_v42 = vor.u32 %v6365_v39, %v5156_v50 }
 0x243   :  { %v5155_v18 = vor.u32 %v6366_v28, %v5154_v16  ;;  %v10490_v28 = vmax.f32 %v7622_v13, %v7747_v6  ;;  %v6376_v13 = vld [vmem:[%s10406_s0 + $0x3a0] sm:$0xf0] }
 0x244   :  { %v4422_v29 = vpack.c.bf16 %v4415_v43, %v4415_v43  ;;  %v4395_v23 = vmax.f32 %v3884_v22, %v3902_v11  ;;  %v3889_v22 = vadd.f32 %v7827_v55, %v3320_v45  ;;  %v5186_v43 = vld [vmem:[%s10406_s0 + $0x380] sm:$0xf]  ;;  %v3323_v55 = vadd.f32 %v7895_v34, %v7893_v3 }
 0x245   :  { %v7993_v26 = vpop.f32.mrf.mxu3  ;;  %v3908_v36 = vpop.f32.mrf.mxu2  ;;  %v5187_v30 = vor.u32 %v6373_v47, %v5186_v43  ;;  %v5180_v43 = vld [vmem:[%s10406_s0 + $0x384] sm:$0xf0]  ;;  %v6539_v47 = vld [vmem:[%s10406_s0 + $0x8bc] sm:$0xf] }
 0x246   :  { %10483 = vst [vmem:[#allocation50_spill] sm:$0xff] %v7993_v26  ;;  %v4402_v59 = vmax.f32 %v10484_v61, %v4395_v23  ;;  %v2765_v63 = vpop.f32.mrf.mxu0  ;;  %v3892_v34 = vadd.f32 %v7854_v46, %v3323_v55  ;;  %v6536_v46 = vld [vmem:[%s10406_s0 + $0x8a4] sm:$0xf] }
 0x247   :  { %4429 = vst.msk [vmem:[%s10408_s3 + $0x24] sm:$0xf] %vm4377_vm1, %v4422_v29  ;;  %v3334_v51 = vpop.f32.mrf.mxu1 }
 0x248   :  { %v4409_v12 = vadd.f32 %v8007_v20, %v4402_v59  ;;  %v3335_v35 = vadd.f32 %v3334_v51, %v2765_v63 }
 0x24a   :  { %v4416_v1 = vmax.f32 %v4409_v12, 0.0  ;;  %v3904_v14 = vadd.f32 %v3903_v33, %v3335_v35  ;;  %6184 = vmatmul.msk.bf16.gmra.mxu2 %vm2287_vm0, %v5175_v10  ;;  %v5828_v33 = vld [vmem:[%s10406_s0 + $0x894] sm:$0xf0]  ;;  %v5166_v10 = vld [vmem:[%s10406_s0 + $0x360] sm:$0xf] }
 0x24b   :  { %v5831_v4 = vor.u32 %v6533_v27, %v5828_v33  ;;  %v5168_v12 = vld [vmem:[%s10406_s0 + $0x36c] sm:$0xf0] }
 0x24c   :  { %v4423_v32 = vpack.c.bf16 %v4416_v1, %v4416_v1  ;;  %v4396_v48 = vmax.f32 %v3887_v37, %v3904_v14 }
 0x24d   :  { %v8030_v9 = vpop.f32.mrf.mxu3  ;;  %v3911_v57 = vpop.f32.mrf.mxu2 }
 0x24e   :  { %10485 = vst [vmem:[#allocation51_spill] sm:$0xff] %v8030_v9  ;;  %v4403_v17 = vmax.f32 %v10486_v19, %v4396_v48  ;;  %v2768_v7 = vpop.f32.mrf.mxu0 }
 0x24f   :  { %4430 = vst.msk [vmem:[%s10408_s3 + $0x28] sm:$0xf] %vm4377_vm1, %v4423_v32  ;;  %v3337_v40 = vpop.f32.mrf.mxu1 }
 0x250   :  { %v4410_v2 = vadd.f32 %v8007_v20, %v4403_v17  ;;  %v3338_v25 = vadd.f32 %v3337_v40, %v2768_v7  ;;  %v5198_v17 = vld [vmem:[%s10406_s0 + $0x398] sm:$0xf] }
 0x251   :  { %2807 = vmatmul.bf16.gmra.mxu0 %v5155_v18 }
 0x252   :  { %v4417_v31 = vmax.f32 %v4410_v2, 0.0  ;;  %v3907_v49 = vadd.f32 %v3906_v15, %v3338_v25  ;;  %3376 = vmatmul.bf16.gmra.mxu1 %v5159_v42  ;;  %3656 = vmatmul.bf16.gmra.mxu3 %v5831_v4  ;;  %v10488_v15 = vmax.f32 %v7599_v56, %v7733_v53  ;;  %v6369_v56 = vld [vmem:[%s10406_s0 + $0x368] sm:$0xf0]  ;;  %v6368_v53 = vld [vmem:[%s10406_s0 + $0x364] sm:$0xf]  ;;  %v5199_v4 = vor.u32 %v6376_v13, %v5198_v17 }
 0x253   :  { %v5167_v14 = vor.u32 %v6369_v56, %v5166_v10  ;;  %v5171_v27 = vor.u32 %v6368_v53, %v5168_v12  ;;  %v6379_v10 = vld [vmem:[%s10406_s0 + $0x3b8] sm:$0xf0]  ;;  %v5222_v13 = vld [vmem:[%s10406_s0 + $0x3c8] sm:$0xf] }
 0x254   :  { %v4424_v60 = vpack.c.bf16 %v4417_v31, %v4417_v31  ;;  %v4397_v11 = vmax.f32 %v3889_v22, %v3907_v49  ;;  %v5178_v22 = vld [vmem:[%s10406_s0 + $0x378] sm:$0xf]  ;;  %v6372_v31 = vld [vmem:[%s10406_s0 + $0x380] sm:$0xf0]  ;;  %v6371_v49 = vld [vmem:[%s10406_s0 + $0x37c] sm:$0xf] }
 0x255   :  { %v8049_v54 = vpop.f32.mrf.mxu3  ;;  %v3913_v41 = vpop.f32.mrf.mxu2  ;;  %v5179_v55 = vor.u32 %v6372_v31, %v5178_v22 }
 0x256   :  { %10487 = vst [vmem:[#allocation52_spill] sm:$0xff] %v8049_v54  ;;  %v4404_v29 = vmax.f32 %v10488_v15, %v4397_v11  ;;  %v2770_v23 = vpop.f32.mrf.mxu0 }
 0x257   :  { %4431 = vst.msk [vmem:[%s10408_s3 + $0x2c] sm:$0xf] %vm4377_vm1, %v4424_v60  ;;  %v3339_v61 = vpop.f32.mrf.mxu1  ;;  %v5852_v60 = vld [vmem:[%s10406_s0 + $0x8c4] sm:$0xf0] }
 0x258   :  { %v4411_v59 = vadd.f32 %v8007_v20, %v4404_v29  ;;  %v3340_v63 = vadd.f32 %v3339_v61, %v2770_v23  ;;  %v5183_v29 = vor.u32 %v6371_v49, %v5180_v43  ;;  %v5855_v23 = vor.u32 %v6539_v47, %v5852_v60  ;;  %v5202_v49 = vld [vmem:[%s10406_s0 + $0x3a8] sm:$0xf]  ;;  %v6378_v43 = vld [vmem:[%s10406_s0 + $0x3b0] sm:$0xf0]  ;;  %v6377_v47 = vld [vmem:[%s10406_s0 + $0x3ac] sm:$0xf] }
 0x259   :  { %v5204_v60 = vld [vmem:[%s10406_s0 + $0x3b4] sm:$0xf0] }
 0x25a   :  { %v4418_v3 = vmax.f32 %v4411_v59, 0.0  ;;  %v3909_v51 = vadd.f32 %v3908_v36, %v3340_v63  ;;  %6185 = vmatmul.msk.bf16.gmra.mxu2 %vm2287_vm0, %v5187_v30  ;;  %v5840_v36 = vld [vmem:[%s10406_s0 + $0x8ac] sm:$0xf0] }
 0x25b   :  { %v5843_v33 = vor.u32 %v6536_v46, %v5840_v36  ;;  %v5210_v63 = vld [vmem:[%s10406_s0 + $0x3b0] sm:$0xf] }
 0x25c   :  { %v4425_v35 = vpack.c.bf16 %v4418_v3, %v4418_v3  ;;  %v4398_v16 = vmax.f32 %v3892_v34, %v3909_v51  ;;  %v5211_v56 = vor.u32 %v6379_v10, %v5210_v63  ;;  %v5190_v36 = vld [vmem:[%s10406_s0 + $0x390] sm:$0xf] }
 0x25d   :  { %v8081_v37 = vpop.f32.mrf.mxu3  ;;  %v3916_v1 = vpop.f32.mrf.mxu2 }
 0x25e   :  { %10489 = vst [vmem:[#allocation53_spill] sm:$0xff] %v8081_v37  ;;  %v4405_v39 = vmax.f32 %v10490_v28, %v4398_v16  ;;  %v2773_v50 = vpop.f32.mrf.mxu0  ;;  %v6374_v16 = vld [vmem:[%s10406_s0 + $0x394] sm:$0xf]  ;;  %v5864_v28 = vld [vmem:[%s10406_s0 + $0x8dc] sm:$0xf0] }
 0x25f   :  { %4432 = vst.msk [vmem:[%s10408_s3 + $0x30] sm:$0xf] %vm4377_vm1, %v4425_v35  ;;  %v3342_v32 = vpop.f32.mrf.mxu1  ;;  %v6375_v35 = vld [vmem:[%s10406_s0 + $0x398] sm:$0xf0] }
 0x260   :  { %v4412_v48 = vadd.f32 %v8007_v20, %v4405_v39  ;;  %v3343_v18 = vadd.f32 %v3342_v32, %v2773_v50 }
 0x261   :  { %2812 = vmatmul.bf16.gmra.mxu0 %v5167_v14  ;;  %v6542_v14 = vld [vmem:[%s10406_s0 + $0x8d4] sm:$0xf] }
 0x262   :  { %v4419_v45 = vmax.f32 %v4412_v48, 0.0  ;;  %v8091_v19 = vadd.f32 %v3911_v57, %v3343_v18  ;;  %3381 = vmatmul.bf16.gmra.mxu1 %v5171_v27  ;;  %3661 = vmatmul.bf16.gmra.mxu3 %v5843_v33  ;;  %v5191_v27 = vor.u32 %v6375_v35, %v5190_v36  ;;  %v5867_v48 = vor.u32 %v6542_v14, %v5864_v28 }
 0x264   :  { %v4426_v6 = vpack.c.bf16 %v4419_v45, %v4419_v45 }
 0x265   :  { %v8099_v7 = vpop.f32.mrf.mxu3  ;;  %v3918_v42 = vpop.f32.mrf.mxu2 }
 0x266   :  { %10491 = vst [vmem:[#allocation54_spill] sm:$0xff] %v8099_v7  ;;  %v2775_v57 = vpop.f32.mrf.mxu0 }
 0x267   :  { %4433 = vst.msk [vmem:[%s10408_s3 + $0x34] sm:$0xf] %vm4377_vm1, %v4426_v6  ;;  %v3344_v40 = vpop.f32.mrf.mxu1  ;;  %v6382_v6 = vld [vmem:[%s10406_s0 + $0x3d0] sm:$0xf0] }
 0x268   :  { %v3345_v2 = vadd.f32 %v3344_v40, %v2775_v57  ;;  %v5223_v40 = vor.u32 %v6382_v6, %v5222_v13 }
 0x26a   :  { %v8105_v25 = vadd.f32 %v3913_v41, %v3345_v2  ;;  %6186 = vmatmul.msk.bf16.gmra.mxu2 %vm2287_vm0, %v5199_v4 }
 0x26d   :  { %v8126_v11 = vpop.f32.mrf.mxu3  ;;  %v3921_v41 = vpop.f32.mrf.mxu2 }
 0x26e   :  { %10492 = vst [vmem:[#allocation55_spill] sm:$0xff] %v8126_v11  ;;  %v2778_v15 = vpop.f32.mrf.mxu0  ;;  %v6400_v11 = vld [vmem:[%s10406_s0 + $0x460] sm:$0xf0] }
 0x26f   :  { %v3347_v30 = vpop.f32.mrf.mxu1 }
 0x270   :  { %v3348_v61 = vadd.f32 %v3347_v30, %v2778_v15 }
 0x271   :  { %2817 = vmatmul.bf16.gmra.mxu0 %v5179_v55  ;;  %v5876_v55 = vld [vmem:[%s10406_s0 + $0x8f4] sm:$0xf0] }
 0x272   :  { %v8128_v59 = vadd.f32 %v3916_v1, %v3348_v61  ;;  %3386 = vmatmul.bf16.gmra.mxu1 %v5183_v29  ;;  %3666 = vmatmul.bf16.gmra.mxu3 %v5855_v23  ;;  %v5192_v1 = vld [vmem:[%s10406_s0 + $0x39c] sm:$0xf0]  ;;  %v5203_v23 = vor.u32 %v6378_v43, %v5202_v49  ;;  %v5207_v61 = vor.u32 %v6377_v47, %v5204_v60  ;;  %v5246_v47 = vld [vmem:[%s10406_s0 + $0x3f8] sm:$0xf]  ;;  %v6388_v60 = vld [vmem:[%s10406_s0 + $0x400] sm:$0xf0] }
 0x273   :  { %v5195_v32 = vor.u32 %v6374_v16, %v5192_v1 }
 0x275   :  { %v8136_v34 = vpop.f32.mrf.mxu3  ;;  %v3923_v3 = vpop.f32.mrf.mxu2 }
 0x276   :  { %10493 = vst [vmem:[#allocation56_spill] sm:$0xff] %v8136_v34  ;;  %v2780_v51 = vpop.f32.mrf.mxu0  ;;  %v5294_v34 = vld [vmem:[%s10406_s0 + $0x458] sm:$0xf] }
 0x277   :  { %v3349_v53 = vpop.f32.mrf.mxu1 }
 0x278   :  { %v3350_v12 = vadd.f32 %v3349_v53, %v2780_v51  ;;  %v6385_v53 = vld [vmem:[%s10406_s0 + $0x3e8] sm:$0xf0] }
 0x27a   :  { %v8138_v46 = vadd.f32 %v3918_v42, %v3350_v12  ;;  %6187 = vmatmul.msk.bf16.gmra.mxu2 %vm2287_vm0, %v5211_v56  ;;  %v5234_v56 = vld [vmem:[%s10406_s0 + $0x3e0] sm:$0xf] }
 0x27b   :  { %v5235_v16 = vor.u32 %v6385_v53, %v5234_v56  ;;  %v6384_v56 = vld [vmem:[%s10406_s0 + $0x3e0] sm:$0xf0]  ;;  %v6383_v53 = vld [vmem:[%s10406_s0 + $0x3dc] sm:$0xf] }
 0x27d   :  { %v8159_v39 = vpop.f32.mrf.mxu3  ;;  %v3926_v50 = vpop.f32.mrf.mxu2 }
 0x27e   :  { %10494 = vst [vmem:[#allocation57_spill] sm:$0xff] %v8159_v39  ;;  %v2783_v33 = vpop.f32.mrf.mxu0 }
 0x27f   :  { %v3352_v18 = vpop.f32.mrf.mxu1 }
 0x280   :  { %v3353_v45 = vadd.f32 %v3352_v18, %v2783_v33  ;;  %v6380_v33 = vld [vmem:[%s10406_s0 + $0x3c4] sm:$0xf]  ;;  %v5888_v18 = vld [vmem:[%s10406_s0 + $0x90c] sm:$0xf0] }
 0x281   :  { %2822 = vmatmul.bf16.gmra.mxu0 %v5191_v27  ;;  %v6381_v27 = vld [vmem:[%s10406_s0 + $0x3c8] sm:$0xf0] }
 0x282   :  { %v8161_v17 = vadd.f32 %v3921_v41, %v3353_v45  ;;  %3391 = vmatmul.bf16.gmra.mxu1 %v5195_v32  ;;  %3671 = vmatmul.bf16.gmra.mxu3 %v5867_v48  ;;  %v6545_v41 = vld [vmem:[%s10406_s0 + $0x8ec] sm:$0xf]  ;;  %v5216_v32 = vld [vmem:[%s10406_s0 + $0x3cc] sm:$0xf0]  ;;  %v6548_v48 = vld [vmem:[%s10406_s0 + $0x904] sm:$0xf] }
 0x283   :  { %v5879_v63 = vor.u32 %v6545_v41, %v5876_v55 }
 0x285   :  { %v8169_v42 = vpop.f32.mrf.mxu3  ;;  %v3928_v57 = vpop.f32.mrf.mxu2 }
 0x286   :  { %v2785_v4 = vpop.f32.mrf.mxu0 }
 0x287   :  { %v3354_v2 = vpop.f32.mrf.mxu1 }
 0x288   :  { %v3355_v22 = vadd.f32 %v3354_v2, %v2785_v4  ;;  %v5891_v2 = vor.u32 %v6548_v48, %v5888_v18 }
 0x28a   :  { %v8171_v31 = vadd.f32 %v3923_v3, %v3355_v22  ;;  %6188 = vmatmul.msk.bf16.gmra.mxu2 %vm2287_vm0, %v5223_v40  ;;  %v5219_v40 = vor.u32 %v6380_v33, %v5216_v32 }
 0x28d   :  { %v8192_v15 = vpop.f32.mrf.mxu3  ;;  %v3931_v29 = vpop.f32.mrf.mxu2 }
 0x28e   :  { %v2788_v30 = vpop.f32.mrf.mxu0 }
 0x28f   :  { %v3357_v10 = vpop.f32.mrf.mxu1 }
 0x290   :  { %v3358_v3 = vadd.f32 %v3357_v10, %v2788_v30 }
 0x291   :  { %2827 = vmatmul.bf16.gmra.mxu0 %v5203_v23 }
 0x292   :  { %v8194_v51 = vadd.f32 %v3926_v50, %v3358_v3  ;;  %3396 = vmatmul.bf16.gmra.mxu1 %v5207_v61  ;;  %3676 = vmatmul.bf16.gmra.mxu3 %v5879_v63  ;;  %v5214_v50 = vld [vmem:[%s10406_s0 + $0x3c0] sm:$0xf]  ;;  %v5247_v61 = vor.u32 %v6388_v60, %v5246_v47  ;;  %v5226_v3 = vld [vmem:[%s10406_s0 + $0x3d8] sm:$0xf] }
 0x295   :  { %v8202_v12 = vpop.f32.mrf.mxu3  ;;  %v3933_v36 = vpop.f32.mrf.mxu2 }
 0x296   :  { %v2790_v35 = vpop.f32.mrf.mxu0 }
 0x297   :  { %v3359_v1 = vpop.f32.mrf.mxu1 }
 0x298   :  { %v3360_v14 = vadd.f32 %v3359_v1, %v2790_v35  ;;  %v5228_v35 = vld [vmem:[%s10406_s0 + $0x3e4] sm:$0xf0] }
 0x299   :  { %v5231_v32 = vor.u32 %v6383_v53, %v5228_v35  ;;  %v5240_v53 = vld [vmem:[%s10406_s0 + $0x3fc] sm:$0xf0] }
 0x29a   :  { %v8204_v28 = vadd.f32 %v3928_v57, %v3360_v14  ;;  %6189 = vmatmul.msk.bf16.gmra.mxu2 %vm2287_vm0, %v5235_v16  ;;  %v5215_v57 = vor.u32 %v6381_v27, %v5214_v50  ;;  %v5900_v16 = vld [vmem:[%s10406_s0 + $0x924] sm:$0xf0]  ;;  %v5227_v27 = vor.u32 %v6384_v56, %v5226_v3  ;;  %v6387_v3 = vld [vmem:[%s10406_s0 + $0x3f8] sm:$0xf0]  ;;  %v6386_v56 = vld [vmem:[%s10406_s0 + $0x3f4] sm:$0xf] }
 0x29b   :  { %v5912_v35 = vld [vmem:[%s10406_s0 + $0x93c] sm:$0xf0] }
 0x29d   :  { %v8227_v13 = vpop.f32.mrf.mxu3  ;;  %v3936_v6 = vpop.f32.mrf.mxu2 }
 0x29e   :  { %v2793_v4 = vpop.f32.mrf.mxu0 }
 0x29f   :  { %v3362_v22 = vpop.f32.mrf.mxu1 }
 0x2a0   :  { %v3363_v49 = vadd.f32 %v3362_v22, %v2793_v4 }
 0x2a1   :  { %2832 = vmatmul.bf16.gmra.mxu0 %v5215_v57 }
 0x2a2   :  { %v8229_v43 = vadd.f32 %v3931_v29, %v3363_v49  ;;  %3401 = vmatmul.bf16.gmra.mxu1 %v5219_v40  ;;  %3681 = vmatmul.bf16.gmra.mxu3 %v5891_v2  ;;  %v5258_v40 = vld [vmem:[%s10406_s0 + $0x410] sm:$0xf]  ;;  %v6391_v2 = vld [vmem:[%s10406_s0 + $0x418] sm:$0xf0] }
 0x2a5   :  { %v8239_v55 = vpop.f32.mrf.mxu3  ;;  %v3938_v23 = vpop.f32.mrf.mxu2 }
 0x2a6   :  { %10495 = vst [vmem:[#allocation58_spill] sm:$0xff] %v8239_v55  ;;  %v2795_v30 = vpop.f32.mrf.mxu0 }
 0x2a7   :  { %v3364_v29 = vpop.f32.mrf.mxu1 }
 0x2a8   :  { %v3365_v63 = vadd.f32 %v3364_v29, %v2795_v30  ;;  %v5259_v30 = vor.u32 %v6391_v2, %v5258_v40 }
 0x2aa   :  { %v8241_v10 = vadd.f32 %v3933_v36, %v3365_v63  ;;  %6190 = vmatmul.msk.bf16.gmra.mxu2 %vm2287_vm0, %v5247_v61  ;;  %v6551_v36 = vld [vmem:[%s10406_s0 + $0x91c] sm:$0xf]  ;;  %v5238_v63 = vld [vmem:[%s10406_s0 + $0x3f0] sm:$0xf] }
 0x2ab   :  { %v5903_v48 = vor.u32 %v6551_v36, %v5900_v16 }
 0x2ad   :  { %v8264_v14 = vpop.f32.mrf.mxu3  ;;  %v3941_v50 = vpop.f32.mrf.mxu2 }
 0x2ae   :  { %10496 = vst [vmem:[#allocation59_spill] sm:$0xff] %v8264_v14  ;;  %v2798_v33 = vpop.f32.mrf.mxu0 }
 0x2af   :  { %v3367_v18 = vpop.f32.mrf.mxu1 }
 0x2b0   :  { %v3368_v57 = vadd.f32 %v3367_v18, %v2798_v33  ;;  %v5239_v33 = vor.u32 %v6387_v3, %v5238_v63 }
 0x2b1   :  { %2837 = vmatmul.bf16.gmra.mxu0 %v5227_v27 }
 0x2b2   :  { %v8266_v4 = vadd.f32 %v3936_v6, %v3368_v57  ;;  %3406 = vmatmul.bf16.gmra.mxu1 %v5231_v32  ;;  %3686 = vmatmul.bf16.gmra.mxu3 %v5903_v48  ;;  %v5243_v48 = vor.u32 %v6386_v56, %v5240_v53 }
 0x2b5   :  { %v8276_v49 = vpop.f32.mrf.mxu3  ;;  %v3943_v47 = vpop.f32.mrf.mxu2 }
 0x2b6   :  { %10497 = vst [vmem:[#allocation60_spill] sm:$0xff] %v8276_v49  ;;  %v2800_v60 = vpop.f32.mrf.mxu0 }
 0x2b7   :  { %v3369_v6 = vpop.f32.mrf.mxu1 }
 0x2b8   :  { %v3370_v61 = vadd.f32 %v3369_v6, %v2800_v60  ;;  %v5270_v60 = vld [vmem:[%s10406_s0 + $0x428] sm:$0xf]  ;;  %v5282_v6 = vld [vmem:[%s10406_s0 + $0x440] sm:$0xf] }
 0x2ba   :  { %v8278_v29 = vadd.f32 %v3938_v23, %v3370_v61  ;;  %6191 = vmatmul.msk.bf16.gmra.mxu2 %vm2287_vm0, %v5259_v30  ;;  %v6554_v23 = vld [vmem:[%s10406_s0 + $0x934] sm:$0xf] }
 0x2bb   :  { %v5915_v18 = vor.u32 %v6554_v23, %v5912_v35  ;;  %v6394_v30 = vld [vmem:[%s10406_s0 + $0x430] sm:$0xf0]  ;;  %v5250_v35 = vld [vmem:[%s10406_s0 + $0x408] sm:$0xf] }
 0x2bd   :  { %v8301_v16 = vpop.f32.mrf.mxu3  ;;  %v8303_v27 = vpop.f32.mrf.mxu2 }
 0x2be   :  { %10498 = vst [vmem:[#allocation61_spill] sm:$0xff] %v8301_v16  ;;  %v2803_v32 = vpop.f32.mrf.mxu0  ;;  %v5318_v16 = vld [vmem:[%s10406_s0 + $0x488] sm:$0xf] }
 0x2bf   :  { %v3372_v57 = vpop.f32.mrf.mxu1 }
 0x2c0   :  { %v3373_v40 = vadd.f32 %v3372_v57, %v2803_v32  ;;  %v6389_v32 = vld [vmem:[%s10406_s0 + $0x40c] sm:$0xf] }
 0x2c1   :  { %2842 = vmatmul.bf16.gmra.mxu0 %v5239_v33  ;;  %v6390_v33 = vld [vmem:[%s10406_s0 + $0x410] sm:$0xf0]  ;;  %v6397_v57 = vld [vmem:[%s10406_s0 + $0x448] sm:$0xf0] }
 0x2c2   :  { %v8305_v2 = vadd.f32 %v3941_v50, %v3373_v40  ;;  %3411 = vmatmul.bf16.gmra.mxu1 %v5243_v48  ;;  %3691 = vmatmul.bf16.gmra.mxu3 %v5915_v18  ;;  %v5271_v50 = vor.u32 %v6394_v30, %v5270_v60  ;;  %v5252_v48 = vld [vmem:[%s10406_s0 + $0x414] sm:$0xf0]  ;;  %v5251_v30 = vor.u32 %v6390_v33, %v5250_v35 }
 0x2c3   :  { %v5924_v18 = vld [vmem:[%s10406_s0 + $0x954] sm:$0xf0] }
 0x2c5   :  { %v8315_v61 = vpop.f32.mrf.mxu3  ;;  %v8317_v63 = vpop.f32.mrf.mxu2 }
 0x2c6   :  { %10499 = vst [vmem:[#allocation62_spill] sm:$0xff] %v8315_v61  ;;  %v2805_v3 = vpop.f32.mrf.mxu0 }
 0x2c7   :  { %v3374_v56 = vpop.f32.mrf.mxu1 }
 0x2c8   :  { %v3375_v53 = vadd.f32 %v3374_v56, %v2805_v3 }
 0x2ca   :  { %v8319_v23 = vadd.f32 %v3943_v47, %v3375_v53  ;;  %6192 = vmatmul.msk.bf16.gmra.mxu2 %vm2287_vm0, %v5271_v50  ;;  %v6557_v47 = vld [vmem:[%s10406_s0 + $0x94c] sm:$0xf]  ;;  %v5255_v50 = vor.u32 %v6389_v32, %v5252_v48  ;;  %v5283_v32 = vor.u32 %v6397_v57, %v5282_v6  ;;  %v5264_v6 = vld [vmem:[%s10406_s0 + $0x42c] sm:$0xf0]  ;;  %v6560_v57 = vld [vmem:[%s10406_s0 + $0x964] sm:$0xf] }
 0x2cb   :  { %v5927_v56 = vor.u32 %v6557_v47, %v5924_v18  ;;  %v5262_v47 = vld [vmem:[%s10406_s0 + $0x420] sm:$0xf]  ;;  %v6393_v18 = vld [vmem:[%s10406_s0 + $0x428] sm:$0xf0] }
 0x2cc   :  { %v5263_v22 = vor.u32 %v6393_v18, %v5262_v47 }
 0x2cd   :  { %v8342_v40 = vpop.f32.mrf.mxu3  ;;  %v8344_v60 = vpop.f32.mrf.mxu2 }
 0x2ce   :  { %10500 = vst [vmem:[#allocation63_spill] sm:$0xff] %v8342_v40  ;;  %v8346_v3 = vpop.f32.mrf.mxu0 }
 0x2cf   :  { %v8348_v53 = vpop.f32.mrf.mxu1 }
 0x2d1   :  { %2847 = vmatmul.bf16.gmra.mxu0 %v5251_v30  ;;  %v6392_v30 = vld [vmem:[%s10406_s0 + $0x424] sm:$0xf] }
 0x2d2   :  { %3416 = vmatmul.bf16.gmra.mxu1 %v5255_v50  ;;  %3696 = vmatmul.bf16.gmra.mxu3 %v5927_v56  ;;  %v5936_v50 = vld [vmem:[%s10406_s0 + $0x96c] sm:$0xf0]  ;;  %v5267_v41 = vor.u32 %v6392_v30, %v5264_v6  ;;  %v5295_v30 = vor.u32 %v6400_v11, %v5294_v34  ;;  %v5276_v11 = vld [vmem:[%s10406_s0 + $0x444] sm:$0xf0]  ;;  %v6563_v34 = vld [vmem:[%s10406_s0 + $0x97c] sm:$0xf] }
 0x2d3   :  { %v5939_v45 = vor.u32 %v6560_v57, %v5936_v50  ;;  %v5948_v57 = vld [vmem:[%s10406_s0 + $0x984] sm:$0xf0] }
 0x2d4   :  { %v5951_v26 = vor.u32 %v6563_v34, %v5948_v57  ;;  %v6566_v34 = vld [vmem:[%s10406_s0 + $0x994] sm:$0xf]  ;;  %v5960_v57 = vld [vmem:[%s10406_s0 + $0x99c] sm:$0xf0] }
 0x2d5   :  { %v8356_v36 = vpop.f32.mrf.mxu3  ;;  %v8358_v35 = vpop.f32.mrf.mxu2  ;;  %v5963_v40 = vor.u32 %v6566_v34, %v5960_v57  ;;  %v5298_v57 = vld [vmem:[%s10406_s0 + $0x468] sm:$0xf] }
 0x2d6   :  { %10501 = vst [vmem:[#allocation64_spill] sm:$0xff] %v8356_v36  ;;  %v8360_v33 = vpop.f32.mrf.mxu0 }
 0x2d7   :  { %v8362_v48 = vpop.f32.mrf.mxu1 }
 0x2da   :  { %6193 = vmatmul.msk.bf16.gmra.mxu2 %vm2287_vm0, %v5283_v32 }
 0x2dd   :  { %v8383_v56 = vpop.f32.mrf.mxu3  ;;  %v8385_v32 = vpop.f32.mrf.mxu2 }
 0x2de   :  { %10502 = vst [vmem:[#allocation65_spill] sm:$0xff] %v8383_v56  ;;  %v8387_v1 = vpop.f32.mrf.mxu0 }
 0x2df   :  { %v8389_v39 = vpop.f32.mrf.mxu1 }
 0x2e1   :  { %2852 = vmatmul.bf16.gmra.mxu0 %v5263_v22  ;;  %v6395_v22 = vld [vmem:[%s10406_s0 + $0x43c] sm:$0xf] }
 0x2e2   :  { %3421 = vmatmul.bf16.gmra.mxu1 %v5267_v41  ;;  %3701 = vmatmul.bf16.gmra.mxu3 %v5939_v45  ;;  %v5274_v45 = vld [vmem:[%s10406_s0 + $0x438] sm:$0xf]  ;;  %v6396_v41 = vld [vmem:[%s10406_s0 + $0x440] sm:$0xf0]  ;;  %v5279_v9 = vor.u32 %v6395_v22, %v5276_v11 }
 0x2e3   :  { %v5275_v37 = vor.u32 %v6396_v41, %v5274_v45 }
 0x2e5   :  { %v8397_v7 = vpop.f32.mrf.mxu3  ;;  %v8399_v47 = vpop.f32.mrf.mxu2 }
 0x2e6   :  { %10503 = vst [vmem:[#allocation66_spill] sm:$0xff] %v8397_v7  ;;  %v8401_v18 = vpop.f32.mrf.mxu0 }
 0x2e7   :  { %v8403_v6 = vpop.f32.mrf.mxu1 }
 0x2ea   :  { %6194 = vmatmul.msk.bf16.gmra.mxu2 %vm2287_vm0, %v5295_v30 }
 0x2ed   :  { %v8424_v50 = vpop.f32.mrf.mxu3  ;;  %v8426_v30 = vpop.f32.mrf.mxu2 }
 0x2ee   :  { %10504 = vst [vmem:[#allocation67_spill] sm:$0xff] %v8424_v50  ;;  %v8428_v54 = vpop.f32.mrf.mxu0  ;;  %v6403_v50 = vld [vmem:[%s10406_s0 + $0x478] sm:$0xf0] }
 0x2ef   :  { %v8430_v62 = vpop.f32.mrf.mxu1  ;;  %v5307_v22 = vor.u32 %v6403_v50, %v5306_v0  ;;  %v5288_v0 = vld [vmem:[%s10406_s0 + $0x45c] sm:$0xf0] }
 0x2f1   :  { %2857 = vmatmul.bf16.gmra.mxu0 %v5275_v37  ;;  %v6398_v37 = vld [vmem:[%s10406_s0 + $0x454] sm:$0xf] }
 0x2f2   :  { %3426 = vmatmul.bf16.gmra.mxu1 %v5279_v9  ;;  %3706 = vmatmul.bf16.gmra.mxu3 %v5951_v26  ;;  %v5286_v26 = vld [vmem:[%s10406_s0 + $0x450] sm:$0xf]  ;;  %v6399_v9 = vld [vmem:[%s10406_s0 + $0x458] sm:$0xf0]  ;;  %v5291_v36 = vor.u32 %v6398_v37, %v5288_v0  ;;  %v5319_v0 = vor.u32 %v6406_v44, %v5318_v16  ;;  %v5300_v44 = vld [vmem:[%s10406_s0 + $0x474] sm:$0xf0] }
 0x2f3   :  { %v6569_v16 = vld [vmem:[%s10406_s0 + $0x9ac] sm:$0xf] }
 0x2f5   :  { %v8438_v7 = vpop.f32.mrf.mxu3  ;;  %v3963_v45 = vpop.f32.mrf.mxu2 }
 0x2f6   :  { %10505 = vst [vmem:[#allocation68_spill] sm:$0xff] %v8438_v7  ;;  %v8440_v41 = vpop.f32.mrf.mxu0  ;;  %v5287_v7 = vor.u32 %v6399_v9, %v5286_v26  ;;  %v3378_v9 = vadd.f32 %v8348_v53, %v8346_v3  ;;  %v6401_v3 = vld [vmem:[%s10406_s0 + $0x46c] sm:$0xf] }
 0x2f7   :  { %v8442_v11 = vpop.f32.mrf.mxu1  ;;  %v5303_v24 = vor.u32 %v6401_v3, %v5300_v44  ;;  %v5310_v3 = vld [vmem:[%s10406_s0 + $0x480] sm:$0xf] }
 0x2fa   :  { %6195 = vmatmul.msk.bf16.gmra.mxu2 %vm2287_vm0, %v5307_v22 }
 0x2fd   :  { %v8463_v50 = vpop.f32.mrf.mxu3  ;;  %v3966_v22 = vpop.f32.mrf.mxu2 }
 0x2fe   :  { %10506 = vst [vmem:[#allocation69_spill] sm:$0xff] %v8463_v50  ;;  %v8465_v56 = vpop.f32.mrf.mxu0 }
 0x2ff   :  { %v8467_v61 = vpop.f32.mrf.mxu1 }
 0x301   :  { %2862 = vmatmul.bf16.gmra.mxu0 %v5287_v7 }
 0x302   :  { %3431 = vmatmul.bf16.gmra.mxu1 %v5291_v36  ;;  %3711 = vmatmul.bf16.gmra.mxu3 %v5963_v40  ;;  %v3947_v36 = vadd.f32 %v8303_v27, %v3378_v9  ;;  %v5972_v27 = vld [vmem:[%s10406_s0 + $0x9b4] sm:$0xf0] }
 0x303   :  { %v5975_v14 = vor.u32 %v6569_v16, %v5972_v27  ;;  %v5312_v16 = vld [vmem:[%s10406_s0 + $0x48c] sm:$0xf0] }
 0x305   :  { %v8475_v50 = vpop.f32.mrf.mxu3  ;;  %v3968_v26 = vpop.f32.mrf.mxu2 }
 0x306   :  { %10507 = vst [vmem:[#allocation70_spill] sm:$0xff] %v8475_v50  ;;  %v2825_v37 = vpop.f32.mrf.mxu0  ;;  %v6402_v50 = vld [vmem:[%s10406_s0 + $0x470] sm:$0xf0] }
 0x307   :  { %v3394_v34 = vpop.f32.mrf.mxu1 }
 0x308   :  { %v3395_v7 = vadd.f32 %v3394_v34, %v2825_v37  ;;  %v5299_v37 = vor.u32 %v6402_v50, %v5298_v57  ;;  %v10509_v34 = vmax.f32 %v8091_v19, %v8204_v28  ;;  %v6409_v19 = vld [vmem:[%s10406_s0 + $0x4a8] sm:$0xf0] }
 0x30a   :  { %v3964_v40 = vadd.f32 %v3963_v45, %v3395_v7  ;;  %6196 = vmatmul.msk.bf16.gmra.mxu2 %vm2287_vm0, %v5319_v0  ;;  %v3380_v0 = vadd.f32 %v8362_v48, %v8360_v33  ;;  %v5330_v33 = vld [vmem:[%s10406_s0 + $0x4a0] sm:$0xf] }
 0x30c   :  { %v4441_v53 = vmax.f32 %v3947_v36, %v3964_v40  ;;  %v3949_v36 = vadd.f32 %v8317_v63, %v3380_v0 }
 0x30d   :  { %v8499_v45 = vpop.f32.mrf.mxu3  ;;  %v3971_v9 = vpop.f32.mrf.mxu2 }
 0x30e   :  { %10508 = vst [vmem:[#allocation71_spill] sm:$0xff] %v8499_v45  ;;  %v4448_v7 = vmax.f32 %v10509_v34, %v4441_v53  ;;  %v2828_v49 = vpop.f32.mrf.mxu0  ;;  %v3385_v34 = vadd.f32 %v8403_v6, %v8401_v18 }
 0x30f   :  { %v3397_v5 = vpop.f32.mrf.mxu1 }
 0x310   :  { %v4455_v55 = vadd.f32 %v8007_v20, %v4448_v7  ;;  %v3398_v52 = vadd.f32 %v3397_v5, %v2828_v49  ;;  %v3383_v49 = vadd.f32 %v8389_v39, %v8387_v1  ;;  %v10511_v7 = vmax.f32 %v8128_v59, %v8241_v10  ;;  %v6412_v59 = vld [vmem:[%s10406_s0 + $0x4c0] sm:$0xf0] }
 0x311   :  { %2867 = vmatmul.bf16.gmra.mxu0 %v5299_v37 }
 0x312   :  { %v4462_v40 = vmax.f32 %v4455_v55, 0.0  ;;  %v3967_v45 = vadd.f32 %v3966_v22, %v3398_v52  ;;  %3436 = vmatmul.bf16.gmra.mxu1 %v5303_v24  ;;  %3716 = vmatmul.bf16.gmra.mxu3 %v5975_v14  ;;  %v10510_v52 = vmax.f32 %v8105_v25, %v8229_v43  ;;  %v5331_v14 = vor.u32 %v6409_v19, %v5330_v33  ;;  %v6405_v25 = vld [vmem:[%s10406_s0 + $0x488] sm:$0xf0]  ;;  %v6404_v43 = vld [vmem:[%s10406_s0 + $0x484] sm:$0xf] }
 0x313   :  { %v3952_v39 = vadd.f32 %v8344_v60, %v3383_v49  ;;  %v6572_v60 = vld [vmem:[%s10406_s0 + $0x9c4] sm:$0xf]  ;;  %v5311_v0 = vor.u32 %v6405_v25, %v5310_v3  ;;  %v5315_v33 = vor.u32 %v6404_v43, %v5312_v16  ;;  %v5322_v25 = vld [vmem:[%s10406_s0 + $0x498] sm:$0xf]  ;;  %v5324_v16 = vld [vmem:[%s10406_s0 + $0x4a4] sm:$0xf0] }
 0x314   :  { %v4469_v28 = vpack.c.bf16 %v4462_v40, %v4462_v40  ;;  %v4442_v48 = vmax.f32 %v3949_v36, %v3967_v45 }
 0x315   :  { %v8514_v50 = vpop.f32.mrf.mxu3  ;;  %v3973_v5 = vpop.f32.mrf.mxu2 }
 0x316   :  { %4476 = vst.msk [vmem:[%s10408_s3 + $0x38] sm:$0xf] %vm4377_vm1, %v4469_v28  ;;  %v4449_v24 = vmax.f32 %v10510_v52, %v4442_v48  ;;  %v2830_v55 = vpop.f32.mrf.mxu0  ;;  %v3954_v52 = vadd.f32 %v8358_v35, %v3385_v34  ;;  %v3388_v35 = vadd.f32 %v8430_v62, %v8428_v54  ;;  %v3390_v34 = vadd.f32 %v8442_v11, %v8440_v41 }
 0x317   :  { %v3399_v63 = vpop.f32.mrf.mxu1 }
 0x318   :  { %v4456_v22 = vadd.f32 %v8007_v20, %v4449_v24  ;;  %v3400_v57 = vadd.f32 %v3399_v63, %v2830_v55  ;;  %v5342_v24 = vld [vmem:[%s10406_s0 + $0x4b8] sm:$0xf]  ;;  %v3957_v62 = vadd.f32 %v8385_v32, %v3388_v35  ;;  %v6575_v32 = vld [vmem:[%s10406_s0 + $0x9dc] sm:$0xf] }
 0x319   :  { %v5343_v3 = vor.u32 %v6412_v59, %v5342_v24 }
 0x31a   :  { %v4463_v1 = vmax.f32 %v4456_v22, 0.0  ;;  %v3969_v44 = vadd.f32 %v3968_v26, %v3400_v57  ;;  %6197 = vmatmul.msk.bf16.gmra.mxu2 %vm2287_vm0, %v5331_v14  ;;  %v5984_v26 = vld [vmem:[%s10406_s0 + $0x9cc] sm:$0xf0] }
 0x31b   :  { %v5987_v19 = vor.u32 %v6572_v60, %v5984_v26 }
 0x31c   :  { %v4470_v27 = vpack.c.bf16 %v4463_v1, %v4463_v1  ;;  %v4443_v53 = vmax.f32 %v3952_v39, %v3969_v44 }
 0x31d   :  { %v8546_v45 = vpop.f32.mrf.mxu3  ;;  %v3976_v37 = vpop.f32.mrf.mxu2 }
 0x31e   :  { %4477 = vst.msk [vmem:[%s10408_s3 + $0x3c] sm:$0xf] %vm4377_vm1, %v4470_v27  ;;  %v4450_v36 = vmax.f32 %v10511_v7, %v4443_v53  ;;  %v2833_v40 = vpop.f32.mrf.mxu0  ;;  %v10515_v7 = vmax.f32 %v8161_v17, %v8278_v29  ;;  %v6415_v17 = vld [vmem:[%s10406_s0 + $0x4d8] sm:$0xf0] }
 0x31f   :  { %v3402_v28 = vpop.f32.mrf.mxu1 }
 0x320   :  { %v4457_v48 = vadd.f32 %v8007_v20, %v4450_v36  ;;  %v3403_v49 = vadd.f32 %v3402_v28, %v2833_v40 }
 0x321   :  { %2872 = vmatmul.bf16.gmra.mxu0 %v5311_v0 }
 0x322   :  { %v4464_v18 = vmax.f32 %v4457_v48, 0.0  ;;  %v3972_v6 = vadd.f32 %v3971_v9, %v3403_v49  ;;  %3441 = vmatmul.bf16.gmra.mxu1 %v5315_v33  ;;  %3721 = vmatmul.bf16.gmra.mxu3 %v5987_v19  ;;  %v10513_v9 = vmax.f32 %v8138_v46, %v8266_v4  ;;  %v6408_v46 = vld [vmem:[%s10406_s0 + $0x4a0] sm:$0xf0]  ;;  %v6407_v4 = vld [vmem:[%s10406_s0 + $0x49c] sm:$0xf] }
 0x323   :  { %v5323_v0 = vor.u32 %v6408_v46, %v5322_v25  ;;  %v5327_v33 = vor.u32 %v6407_v4, %v5324_v16  ;;  %v10519_v46 = vmax.f32 %v8194_v51, %v8319_v23  ;;  %v6418_v51 = vld [vmem:[%s10406_s0 + $0x4f0] sm:$0xf0] }
 0x324   :  { %v4471_v10 = vpack.c.bf16 %v4464_v18, %v4464_v18  ;;  %v4444_v55 = vmax.f32 %v3954_v52, %v3972_v6  ;;  %v3959_v52 = vadd.f32 %v8399_v47, %v3390_v34  ;;  %v5354_v18 = vld [vmem:[%s10406_s0 + $0x4d0] sm:$0xf]  ;;  %v3393_v47 = vadd.f32 %v8467_v61, %v8465_v56 }
 0x325   :  { %v8565_v14 = vpop.f32.mrf.mxu3  ;;  %v3978_v63 = vpop.f32.mrf.mxu2  ;;  %v5355_v35 = vor.u32 %v6415_v17, %v5354_v18  ;;  %v6581_v18 = vld [vmem:[%s10406_s0 + $0xa0c] sm:$0xf]  ;;  %v6020_v17 = vld [vmem:[%s10406_s0 + $0xa14] sm:$0xf0] }
 0x326   :  { %10512 = vst [vmem:[#allocation72_spill] sm:$0xff] %v8565_v14  ;;  %v4451_v22 = vmax.f32 %v10513_v9, %v4444_v55  ;;  %v2835_v57 = vpop.f32.mrf.mxu0  ;;  %v3962_v61 = vadd.f32 %v8426_v30, %v3393_v47  ;;  %v6578_v30 = vld [vmem:[%s10406_s0 + $0x9f4] sm:$0xf]  ;;  %v9081_v14 = vld [vmem:[%s10407_s2] ss:$0 sm:$0xff] }
 0x327   :  { %4478 = vst.msk [vmem:[%s10408_s3 + $0x40] sm:$0xf] %vm4377_vm1, %v4471_v10  ;;  %v3404_v39 = vpop.f32.mrf.mxu1 }
 0x328   :  { %v4458_v1 = vadd.f32 %v8007_v20, %v4451_v22  ;;  %v3405_v44 = vadd.f32 %v3404_v39, %v2835_v57 }
 0x32a   :  { %v4465_v54 = vmax.f32 %v4458_v1, 0.0  ;;  %v3974_v43 = vadd.f32 %v3973_v5, %v3405_v44  ;;  %6198 = vmatmul.msk.bf16.gmra.mxu2 %vm2287_vm0, %v5343_v3  ;;  %v5996_v5 = vld [vmem:[%s10406_s0 + $0x9e4] sm:$0xf0]  ;;  %v5334_v3 = vld [vmem:[%s10406_s0 + $0x4b0] sm:$0xf] }
 0x32b   :  { %v5999_v19 = vor.u32 %v6575_v32, %v5996_v5  ;;  %v5336_v1 = vld [vmem:[%s10406_s0 + $0x4bc] sm:$0xf0] }
 0x32c   :  { %v4472_v60 = vpack.c.bf16 %v4465_v54, %v4465_v54  ;;  %v4445_v26 = vmax.f32 %v3957_v62, %v3974_v43 }
 0x32d   :  { %v8597_v27 = vpop.f32.mrf.mxu3  ;;  %v3981_v53 = vpop.f32.mrf.mxu2 }
 0x32e   :  { %10514 = vst [vmem:[#allocation73_spill] sm:$0xff] %v8597_v27  ;;  %v4452_v36 = vmax.f32 %v10515_v7, %v4445_v26  ;;  %v2838_v40 = vpop.f32.mrf.mxu0 }
 0x32f   :  { %4479 = vst.msk [vmem:[%s10408_s3 + $0x44] sm:$0xf] %vm4377_vm1, %v4472_v60  ;;  %v3407_v28 = vpop.f32.mrf.mxu1 }
 0x330   :  { %v4459_v48 = vadd.f32 %v8007_v20, %v4452_v36  ;;  %v3408_v49 = vadd.f32 %v3407_v28, %v2838_v40  ;;  %v5366_v36 = vld [vmem:[%s10406_s0 + $0x4e8] sm:$0xf] }
 0x331   :  { %2877 = vmatmul.bf16.gmra.mxu0 %v5323_v0 }
 0x332   :  { %v4466_v41 = vmax.f32 %v4459_v48, 0.0  ;;  %v3977_v11 = vadd.f32 %v3976_v37, %v3408_v49  ;;  %3446 = vmatmul.bf16.gmra.mxu1 %v5327_v33  ;;  %3726 = vmatmul.bf16.gmra.mxu3 %v5999_v19  ;;  %v10517_v37 = vmax.f32 %v8171_v31, %v8305_v2  ;;  %v6411_v31 = vld [vmem:[%s10406_s0 + $0x4b8] sm:$0xf0]  ;;  %v6410_v2 = vld [vmem:[%s10406_s0 + $0x4b4] sm:$0xf] }
 0x333   :  { %v5335_v43 = vor.u32 %v6411_v31, %v5334_v3  ;;  %v5339_v32 = vor.u32 %v6410_v2, %v5336_v1  ;;  %v5346_v49 = vld [vmem:[%s10406_s0 + $0x4c8] sm:$0xf] }
 0x334   :  { %v4473_v29 = vpack.c.bf16 %v4466_v41, %v4466_v41  ;;  %v4446_v6 = vmax.f32 %v3959_v52, %v3977_v11  ;;  %v6414_v52 = vld [vmem:[%s10406_s0 + $0x4d0] sm:$0xf0]  ;;  %v6413_v41 = vld [vmem:[%s10406_s0 + $0x4cc] sm:$0xf]  ;;  %v5348_v11 = vld [vmem:[%s10406_s0 + $0x4d4] sm:$0xf0] }
 0x335   :  { %v8616_v24 = vpop.f32.mrf.mxu3  ;;  %v3983_v59 = vpop.f32.mrf.mxu2 }
 0x336   :  { %10516 = vst [vmem:[#allocation74_spill] sm:$0xff] %v8616_v24  ;;  %v4453_v10 = vmax.f32 %v10517_v37, %v4446_v6  ;;  %v2840_v55 = vpop.f32.mrf.mxu0  ;;  %v5351_v37 = vor.u32 %v6413_v41, %v5348_v11  ;;  %v6420_v41 = vld [vmem:[%s10406_s0 + $0x500] sm:$0xf0]  ;;  %v6419_v11 = vld [vmem:[%s10406_s0 + $0x4fc] sm:$0xf] }
 0x337   :  { %4480 = vst.msk [vmem:[%s10408_s3 + $0x48] sm:$0xf] %vm4377_vm1, %v4473_v29  ;;  %v3409_v9 = vpop.f32.mrf.mxu1 }
 0x338   :  { %v4460_v22 = vadd.f32 %v8007_v20, %v4453_v10  ;;  %v3410_v57 = vadd.f32 %v3409_v9, %v2840_v55  ;;  %v6023_v10 = vor.u32 %v6581_v18, %v6020_v17  ;;  %v5372_v18 = vld [vmem:[%s10406_s0 + $0x504] sm:$0xf0]  ;;  %v6587_v17 = vld [vmem:[%s10406_s0 + $0xa3c] sm:$0xf] }
 0x33a   :  { %v4467_v56 = vmax.f32 %v4460_v22, 0.0  ;;  %v3979_v39 = vadd.f32 %v3978_v63, %v3410_v57  ;;  %6199 = vmatmul.msk.bf16.gmra.mxu2 %vm2287_vm0, %v5355_v35  ;;  %v6008_v63 = vld [vmem:[%s10406_s0 + $0x9fc] sm:$0xf0]  ;;  %v6421_v57 = vld [vmem:[%s10406_s0 + $0x508] sm:$0xf0] }
 0x33b   :  { %v6011_v5 = vor.u32 %v6578_v30, %v6008_v63  ;;  %v5378_v22 = vld [vmem:[%s10406_s0 + $0x500] sm:$0xf]  ;;  %v6417_v63 = vld [vmem:[%s10406_s0 + $0x4e8] sm:$0xf0] }
 0x33c   :  { %v4474_v44 = vpack.c.bf16 %v4467_v56, %v4467_v56  ;;  %v4447_v25 = vmax.f32 %v3962_v61, %v3979_v39  ;;  %v5379_v39 = vor.u32 %v6421_v57, %v5378_v22  ;;  %v5358_v30 = vld [vmem:[%s10406_s0 + $0x4e0] sm:$0xf] }
 0x33d   :  { %v8648_v62 = vpop.f32.mrf.mxu3  ;;  %v3986_v54 = vpop.f32.mrf.mxu2 }
 0x33e   :  { %10518 = vst [vmem:[#allocation75_spill] sm:$0xff] %v8648_v62  ;;  %v4454_v4 = vmax.f32 %v10519_v46, %v4447_v25  ;;  %v2843_v16 = vpop.f32.mrf.mxu0  ;;  %v5360_v25 = vld [vmem:[%s10406_s0 + $0x4ec] sm:$0xf0] }
 0x33f   :  { %4481 = vst.msk [vmem:[%s10408_s3 + $0x4c] sm:$0xf] %vm4377_vm1, %v4474_v44  ;;  %v3412_v60 = vpop.f32.mrf.mxu1  ;;  %v6416_v44 = vld [vmem:[%s10406_s0 + $0x4e4] sm:$0xf] }
 0x340   :  { %v4461_v26 = vadd.f32 %v8007_v20, %v4454_v4  ;;  %v3413_v0 = vadd.f32 %v3412_v60, %v2843_v16  ;;  %v5359_v16 = vor.u32 %v6417_v63, %v5358_v30 }
 0x341   :  { %2882 = vmatmul.bf16.gmra.mxu0 %v5335_v43  ;;  %v6032_v43 = vld [vmem:[%s10406_s0 + $0xa2c] sm:$0xf0] }
 0x342   :  { %v4468_v34 = vmax.f32 %v4461_v26, 0.0  ;;  %v8658_v7 = vadd.f32 %v3981_v53, %v3413_v0  ;;  %3451 = vmatmul.bf16.gmra.mxu1 %v5339_v32  ;;  %3731 = vmatmul.bf16.gmra.mxu3 %v6011_v5  ;;  %v5367_v53 = vor.u32 %v6418_v51, %v5366_v36  ;;  %v5363_v5 = vor.u32 %v6416_v44, %v5360_v25  ;;  %v5390_v36 = vld [vmem:[%s10406_s0 + $0x518] sm:$0xf]  ;;  %v6424_v51 = vld [vmem:[%s10406_s0 + $0x520] sm:$0xf0] }
 0x344   :  { %v4475_v23 = vpack.c.bf16 %v4468_v34, %v4468_v34 }
 0x345   :  { %v8666_v40 = vpop.f32.mrf.mxu3  ;;  %v3988_v33 = vpop.f32.mrf.mxu2 }
 0x346   :  { %10520 = vst [vmem:[#allocation76_spill] sm:$0xff] %v8666_v40  ;;  %v2845_v20 = vpop.f32.mrf.mxu0 }
 0x347   :  { %4482 = vst.msk [vmem:[%s10408_s3 + $0x50] sm:$0xf] %vm4377_vm1, %v4475_v23  ;;  %v3414_v19 = vpop.f32.mrf.mxu1 }
 0x348   :  { %v3415_v28 = vadd.f32 %v3414_v19, %v2845_v20 }
 0x34a   :  { %v8672_v48 = vadd.f32 %v3983_v59, %v3415_v28  ;;  %6200 = vmatmul.msk.bf16.gmra.mxu2 %vm2287_vm0, %v5367_v53  ;;  %v5347_v59 = vor.u32 %v6414_v52, %v5346_v49  ;;  %v5391_v53 = vor.u32 %v6424_v51, %v5390_v36  ;;  %v5370_v52 = vld [vmem:[%s10406_s0 + $0x4f8] sm:$0xf] }
 0x34d   :  { %v8693_v29 = vpop.f32.mrf.mxu3  ;;  %v3991_v6 = vpop.f32.mrf.mxu2 }
 0x34e   :  { %10521 = vst [vmem:[#allocation77_spill] sm:$0xff] %v8693_v29  ;;  %v2848_v47 = vpop.f32.mrf.mxu0 }
 0x34f   :  { %v3417_v55 = vpop.f32.mrf.mxu1 }
 0x350   :  { %v3418_v35 = vadd.f32 %v3417_v55, %v2848_v47  ;;  %v5375_v55 = vor.u32 %v6419_v11, %v5372_v18  ;;  %v6430_v11 = vld [vmem:[%s10406_s0 + $0x550] sm:$0xf0] }
 0x351   :  { %2887 = vmatmul.bf16.gmra.mxu0 %v5347_v59 }
 0x352   :  { %v8695_v9 = vadd.f32 %v3986_v54, %v3418_v35  ;;  %3456 = vmatmul.bf16.gmra.mxu1 %v5351_v37  ;;  %3736 = vmatmul.bf16.gmra.mxu3 %v6023_v10  ;;  %v6584_v54 = vld [vmem:[%s10406_s0 + $0xa24] sm:$0xf]  ;;  %v5371_v37 = vor.u32 %v6420_v41, %v5370_v52  ;;  %v5414_v41 = vld [vmem:[%s10406_s0 + $0x548] sm:$0xf] }
 0x353   :  { %v6035_v60 = vor.u32 %v6584_v54, %v6032_v43  ;;  %v5382_v43 = vld [vmem:[%s10406_s0 + $0x510] sm:$0xf] }
 0x355   :  { %v8703_v3 = vpop.f32.mrf.mxu3  ;;  %v3993_v61 = vpop.f32.mrf.mxu2 }
 0x356   :  { %10522 = vst [vmem:[#allocation78_spill] sm:$0xff] %v8703_v3  ;;  %v2850_v56 = vpop.f32.mrf.mxu0  ;;  %v5486_v3 = vld [vmem:[%s10406_s0 + $0x5d8] sm:$0xf] }
 0x357   :  { %v3419_v31 = vpop.f32.mrf.mxu1 }
 0x358   :  { %v3420_v2 = vadd.f32 %v3419_v31, %v2850_v56  ;;  %v5402_v56 = vld [vmem:[%s10406_s0 + $0x530] sm:$0xf] }
 0x35a   :  { %v8705_v1 = vadd.f32 %v3988_v33, %v3420_v2  ;;  %6201 = vmatmul.msk.bf16.gmra.mxu2 %vm2287_vm0, %v5379_v39  ;;  %v6427_v39 = vld [vmem:[%s10406_s0 + $0x538] sm:$0xf0] }
 0x35b   :  { %v5403_v63 = vor.u32 %v6427_v39, %v5402_v56  ;;  %v6425_v56 = vld [vmem:[%s10406_s0 + $0x52c] sm:$0xf]  ;;  %v5396_v39 = vld [vmem:[%s10406_s0 + $0x534] sm:$0xf0] }
 0x35d   :  { %v8726_v46 = vpop.f32.mrf.mxu3  ;;  %v3996_v4 = vpop.f32.mrf.mxu2 }
 0x35e   :  { %10523 = vst [vmem:[#allocation79_spill] sm:$0xff] %v8726_v46  ;;  %v2853_v32 = vpop.f32.mrf.mxu0 }
 0x35f   :  { %v3422_v26 = vpop.f32.mrf.mxu1 }
 0x360   :  { %v3423_v0 = vadd.f32 %v3422_v26, %v2853_v32  ;;  %v5384_v32 = vld [vmem:[%s10406_s0 + $0x51c] sm:$0xf0] }
 0x361   :  { %2892 = vmatmul.bf16.gmra.mxu0 %v5359_v16  ;;  %v6422_v16 = vld [vmem:[%s10406_s0 + $0x514] sm:$0xf] }
 0x362   :  { %v8728_v34 = vadd.f32 %v3991_v6, %v3423_v0  ;;  %3461 = vmatmul.bf16.gmra.mxu1 %v5363_v5  ;;  %3741 = vmatmul.bf16.gmra.mxu3 %v6035_v60  ;;  %v6044_v6 = vld [vmem:[%s10406_s0 + $0xa44] sm:$0xf0]  ;;  %v6590_v5 = vld [vmem:[%s10406_s0 + $0xa54] sm:$0xf]  ;;  %v6056_v60 = vld [vmem:[%s10406_s0 + $0xa5c] sm:$0xf0] }
 0x363   :  { %v6047_v35 = vor.u32 %v6587_v17, %v6044_v6 }
 0x365   :  { %v8736_v23 = vpop.f32.mrf.mxu3  ;;  %v3998_v33 = vpop.f32.mrf.mxu2 }
 0x366   :  { %10524 = vst [vmem:[#allocation80_spill] sm:$0xff] %v8736_v23  ;;  %v2855_v20 = vpop.f32.mrf.mxu0 }
 0x367   :  { %v3424_v19 = vpop.f32.mrf.mxu1 }
 0x368   :  { %v3425_v28 = vadd.f32 %v3424_v19, %v2855_v20  ;;  %v5387_v20 = vor.u32 %v6422_v16, %v5384_v32  ;;  %v5399_v16 = vor.u32 %v6425_v56, %v5396_v39  ;;  %v6520_v56 = vld [vmem:[%s10406_s0 + $0x820] sm:$0xf0] }
 0x36a   :  { %v8738_v49 = vadd.f32 %v3993_v61, %v3425_v28  ;;  %6202 = vmatmul.msk.bf16.gmra.mxu2 %vm2287_vm0, %v5391_v53  ;;  %v6059_v53 = vor.u32 %v6590_v5, %v6056_v60 }
 0x36d   :  { %v8759_v59 = vpop.f32.mrf.mxu3  ;;  %v4001_v47 = vpop.f32.mrf.mxu2 }
 0x36e   :  { %10525 = vst [vmem:[#allocation81_spill] sm:$0xff] %v8759_v59  ;;  %v2858_v10 = vpop.f32.mrf.mxu0 }
 0x36f   :  { %v3427_v22 = vpop.f32.mrf.mxu1 }
 0x370   :  { %v3428_v57 = vadd.f32 %v3427_v22, %v2858_v10  ;;  %v5415_v10 = vor.u32 %v6430_v11, %v5414_v41  ;;  %v5394_v22 = vld [vmem:[%s10406_s0 + $0x528] sm:$0xf] }
 0x371   :  { %2897 = vmatmul.bf16.gmra.mxu0 %v5371_v37 }
 0x372   :  { %v8761_v61 = vadd.f32 %v3996_v4, %v3428_v57  ;;  %3466 = vmatmul.bf16.gmra.mxu1 %v5375_v55  ;;  %3746 = vmatmul.bf16.gmra.mxu3 %v6047_v35  ;;  %v6423_v4 = vld [vmem:[%s10406_s0 + $0x518] sm:$0xf0]  ;;  %v6426_v57 = vld [vmem:[%s10406_s0 + $0x530] sm:$0xf0] }
 0x373   :  { %v5383_v51 = vor.u32 %v6423_v4, %v5382_v43  ;;  %v5395_v43 = vor.u32 %v6426_v57, %v5394_v22  ;;  %v6428_v22 = vld [vmem:[%s10406_s0 + $0x544] sm:$0xf]  ;;  %v5408_v57 = vld [vmem:[%s10406_s0 + $0x54c] sm:$0xf0] }
 0x375   :  { %v8769_v31 = vpop.f32.mrf.mxu3  ;;  %v4003_v2 = vpop.f32.mrf.mxu2 }
 0x376   :  { %10526 = vst [vmem:[#allocation82_spill] sm:$0xff] %v8769_v31  ;;  %v2860_v30 = vpop.f32.mrf.mxu0 }
 0x377   :  { %v3429_v44 = vpop.f32.mrf.mxu1 }
 0x378   :  { %v3430_v25 = vadd.f32 %v3429_v44, %v2860_v30  ;;  %v6068_v30 = vld [vmem:[%s10406_s0 + $0xa74] sm:$0xf0] }
 0x37a   :  { %v8771_v54 = vadd.f32 %v3998_v33, %v3430_v25  ;;  %6203 = vmatmul.msk.bf16.gmra.mxu2 %vm2287_vm0, %v5403_v63 }
 0x37d   :  { %v8794_v0 = vpop.f32.mrf.mxu3  ;;  %v4006_v36 = vpop.f32.mrf.mxu2 }
 0x37e   :  { %10527 = vst [vmem:[#allocation83_spill] sm:$0xff] %v8794_v0  ;;  %v2863_v33 = vpop.f32.mrf.mxu0 }
 0x37f   :  { %v3432_v19 = vpop.f32.mrf.mxu1 }
 0x380   :  { %v3433_v28 = vadd.f32 %v3432_v19, %v2863_v33  ;;  %v5426_v33 = vld [vmem:[%s10406_s0 + $0x560] sm:$0xf] }
 0x381   :  { %2902 = vmatmul.bf16.gmra.mxu0 %v5383_v51 }
 0x382   :  { %v8796_v52 = vadd.f32 %v4001_v47, %v3433_v28  ;;  %3471 = vmatmul.bf16.gmra.mxu1 %v5387_v20  ;;  %3751 = vmatmul.bf16.gmra.mxu3 %v6059_v53  ;;  %v6433_v20 = vld [vmem:[%s10406_s0 + $0x568] sm:$0xf0] }
 0x383   :  { %v5427_v11 = vor.u32 %v6433_v20, %v5426_v33  ;;  %v5438_v20 = vld [vmem:[%s10406_s0 + $0x578] sm:$0xf] }
 0x385   :  { %v8806_v17 = vpop.f32.mrf.mxu3  ;;  %v4008_v6 = vpop.f32.mrf.mxu2 }
 0x386   :  { %10528 = vst [vmem:[#allocation84_spill] sm:$0xff] %v8806_v17  ;;  %v2865_v37 = vpop.f32.mrf.mxu0  ;;  %v5474_v17 = vld [vmem:[%s10406_s0 + $0x5c0] sm:$0xf] }
 0x387   :  { %v3434_v47 = vpop.f32.mrf.mxu1 }
 0x388   :  { %v3435_v55 = vadd.f32 %v3434_v47, %v2865_v37  ;;  %v5406_v47 = vld [vmem:[%s10406_s0 + $0x540] sm:$0xf] }
 0x38a   :  { %v8808_v35 = vadd.f32 %v4003_v2, %v3435_v55  ;;  %6204 = vmatmul.msk.bf16.gmra.mxu2 %vm2287_vm0, %v5415_v10  ;;  %v6593_v2 = vld [vmem:[%s10406_s0 + $0xa6c] sm:$0xf] }
 0x38b   :  { %v6071_v32 = vor.u32 %v6593_v2, %v6068_v30  ;;  %v6429_v55 = vld [vmem:[%s10406_s0 + $0x548] sm:$0xf0] }
 0x38d   :  { %v8831_v44 = vpop.f32.mrf.mxu3  ;;  %v4011_v25 = vpop.f32.mrf.mxu2 }
 0x38e   :  { %10529 = vst [vmem:[#allocation85_spill] sm:$0xff] %v8831_v44  ;;  %v2868_v4 = vpop.f32.mrf.mxu0 }
 0x38f   :  { %v3437_v5 = vpop.f32.mrf.mxu1 }
 0x390   :  { %v3438_v60 = vadd.f32 %v3437_v5, %v2868_v4 }
 0x391   :  { %2907 = vmatmul.bf16.gmra.mxu0 %v5395_v43  ;;  %v5407_v43 = vor.u32 %v6429_v55, %v5406_v47 }
 0x392   :  { %v8833_v51 = vadd.f32 %v4006_v36, %v3438_v60  ;;  %3476 = vmatmul.bf16.gmra.mxu1 %v5399_v16  ;;  %3756 = vmatmul.bf16.gmra.mxu3 %v6071_v32  ;;  %v5411_v16 = vor.u32 %v6428_v22, %v5408_v57 }
 0x395   :  { %v8843_v19 = vpop.f32.mrf.mxu3  ;;  %v4013_v28 = vpop.f32.mrf.mxu2 }
 0x396   :  { %10530 = vst [vmem:[#allocation86_spill] sm:$0xff] %v8843_v19  ;;  %v2870_v41 = vpop.f32.mrf.mxu0 }
 0x397   :  { %v3439_v36 = vpop.f32.mrf.mxu1 }
 0x398   :  { %v3440_v37 = vadd.f32 %v3439_v36, %v2870_v41  ;;  %v6436_v41 = vld [vmem:[%s10406_s0 + $0x580] sm:$0xf0] }
 0x399   :  { %v5439_v47 = vor.u32 %v6436_v41, %v5438_v20 }
 0x39a   :  { %v8845_v10 = vadd.f32 %v4008_v6, %v3440_v37  ;;  %6205 = vmatmul.msk.bf16.gmra.mxu2 %vm2287_vm0, %v5427_v11  ;;  %v5774_v6 = vld [vmem:[%s10406_s0 + $0x818] sm:$0xf] }
 0x39b   :  { %v5775_v32 = vor.u32 %v6520_v56, %v5774_v6  ;;  %v5418_v6 = vld [vmem:[%s10406_s0 + $0x558] sm:$0xf]  ;;  %v6432_v56 = vld [vmem:[%s10406_s0 + $0x560] sm:$0xf0] }
 0x39c   :  { %v5419_v20 = vor.u32 %v6432_v56, %v5418_v6 }
 0x39d   :  { %v8868_v2 = vpop.f32.mrf.mxu3  ;;  %v8870_v30 = vpop.f32.mrf.mxu2 }
 0x39e   :  { %10531 = vst [vmem:[#allocation87_spill] sm:$0xff] %v8868_v2  ;;  %v2873_v4 = vpop.f32.mrf.mxu0 }
 0x39f   :  { %v3442_v5 = vpop.f32.mrf.mxu1 }
 0x3a0   :  { %v3443_v60 = vadd.f32 %v3442_v5, %v2873_v4  ;;  %v5420_v4 = vld [vmem:[%s10406_s0 + $0x564] sm:$0xf0] }
 0x3a1   :  { %2912 = vmatmul.bf16.gmra.mxu0 %v5407_v43  ;;  %v6431_v43 = vld [vmem:[%s10406_s0 + $0x55c] sm:$0xf] }
 0x3a2   :  { %v8872_v33 = vadd.f32 %v4011_v25, %v3443_v60  ;;  %3481 = vmatmul.bf16.gmra.mxu1 %v5411_v16  ;;  %6234 = vmatmul.msk.bf16.vlgmr.msra.gmra.mxu3 %vm2287_vm0, %v5775_v32  ;;  %v6523_v16 = vld [vmem:[%s10406_s0 + $0x838] sm:$0xf0] }
 0x3a3   :  { %v6439_v32 = vld [vmem:[%s10406_s0 + $0x598] sm:$0xf0] }
 0x3a5   :  { %v8883_v36 = vpop.f32.mrf.mxu3  ;;  %v8885_v37 = vpop.f32.mrf.mxu2 }
 0x3a6   :  { %10532 = vst [vmem:[#allocation88_spill] sm:$0xff] %v8883_v36  ;;  %v2875_v25 = vpop.f32.mrf.mxu0 }
 0x3a7   :  { %v3444_v55 = vpop.f32.mrf.mxu1 }
 0x3a8   :  { %v3445_v22 = vadd.f32 %v3444_v55, %v2875_v25  ;;  %v5423_v25 = vor.u32 %v6431_v43, %v5420_v4 }
 0x3aa   :  { %v8887_v57 = vadd.f32 %v4013_v28, %v3445_v22  ;;  %6206 = vmatmul.msk.bf16.gmra.mxu2 %vm2287_vm0, %v5439_v47  ;;  %v5786_v28 = vld [vmem:[%s10406_s0 + $0x830] sm:$0xf] }
 0x3ab   :  { %v5787_v47 = vor.u32 %v6523_v16, %v5786_v28  ;;  %v5450_v22 = vld [vmem:[%s10406_s0 + $0x590] sm:$0xf]  ;;  %v6435_v16 = vld [vmem:[%s10406_s0 + $0x578] sm:$0xf0] }
 0x3ac   :  { %v5451_v43 = vor.u32 %v6439_v32, %v5450_v22  ;;  %v5430_v28 = vld [vmem:[%s10406_s0 + $0x570] sm:$0xf]  ;;  %v5432_v32 = vld [vmem:[%s10406_s0 + $0x57c] sm:$0xf0] }
 0x3ad   :  { %v8910_v5 = vpop.f32.mrf.mxu3  ;;  %v8912_v60 = vpop.f32.mrf.mxu2  ;;  %v5431_v39 = vor.u32 %v6435_v16, %v5430_v28 }
 0x3ae   :  { %10533 = vst [vmem:[#allocation89_spill] sm:$0xff] %v8910_v5  ;;  %v8914_v41 = vpop.f32.mrf.mxu0 }
 0x3af   :  { %v8916_v55 = vpop.f32.mrf.mxu1 }
 0x3b1   :  { %2917 = vmatmul.bf16.gmra.mxu0 %v5419_v20  ;;  %v6434_v20 = vld [vmem:[%s10406_s0 + $0x574] sm:$0xf] }
 0x3b2   :  { %3486 = vmatmul.bf16.gmra.mxu1 %v5423_v25  ;;  %6235 = vmatmul.msk.bf16.gmra.mxu3 %vm2287_vm0, %v5787_v47  ;;  %v5798_v25 = vld [vmem:[%s10406_s0 + $0x848] sm:$0xf]  ;;  %v6526_v47 = vld [vmem:[%s10406_s0 + $0x850] sm:$0xf0]  ;;  %v5435_v63 = vor.u32 %v6434_v20, %v5432_v32 }
 0x3b3   :  { %v5799_v18 = vor.u32 %v6526_v47, %v5798_v25  ;;  %v5810_v25 = vld [vmem:[%s10406_s0 + $0x860] sm:$0xf]  ;;  %v6529_v47 = vld [vmem:[%s10406_s0 + $0x868] sm:$0xf0] }
 0x3b4   :  { %v5811_v19 = vor.u32 %v6529_v47, %v5810_v25  ;;  %v5822_v25 = vld [vmem:[%s10406_s0 + $0x878] sm:$0xf]  ;;  %v6532_v47 = vld [vmem:[%s10406_s0 + $0x880] sm:$0xf0] }
 0x3b5   :  { %v8925_v11 = vpop.f32.mrf.mxu3  ;;  %v8927_v6 = vpop.f32.mrf.mxu2  ;;  %v5823_v23 = vor.u32 %v6532_v47, %v5822_v25  ;;  %v5466_v47 = vld [vmem:[%s10406_s0 + $0x5b8] sm:$0xf] }
 0x3b6   :  { %10534 = vst [vmem:[#allocation90_spill] sm:$0xff] %v8925_v11  ;;  %v8929_v56 = vpop.f32.mrf.mxu0  ;;  %v5462_v11 = vld [vmem:[%s10406_s0 + $0x5a8] sm:$0xf] }
 0x3b7   :  { %v8931_v4 = vpop.f32.mrf.mxu1 }
 0x3ba   :  { %6207 = vmatmul.msk.bf16.gmra.mxu2 %vm2287_vm0, %v5451_v43 }
 0x3bd   :  { %v8952_v22 = vpop.f32.mrf.mxu3  ;;  %v8954_v43 = vpop.f32.mrf.mxu2 }
 0x3be   :  { %10535 = vst [vmem:[#allocation91_spill] sm:$0xff] %v8952_v22  ;;  %v8956_v53 = vpop.f32.mrf.mxu0  ;;  %v6442_v22 = vld [vmem:[%s10406_s0 + $0x5b0] sm:$0xf0] }
 0x3bf   :  { %v8958_v26 = vpop.f32.mrf.mxu1  ;;  %v5463_v20 = vor.u32 %v6442_v22, %v5462_v11  ;;  %v5444_v11 = vld [vmem:[%s10406_s0 + $0x594] sm:$0xf0] }
 0x3c1   :  { %2922 = vmatmul.bf16.gmra.mxu0 %v5431_v39  ;;  %v6437_v39 = vld [vmem:[%s10406_s0 + $0x58c] sm:$0xf] }
 0x3c2   :  { %3491 = vmatmul.bf16.gmra.mxu1 %v5435_v63  ;;  %6236 = vmatmul.msk.bf16.gmra.mxu3 %vm2287_vm0, %v5799_v18  ;;  %v5442_v18 = vld [vmem:[%s10406_s0 + $0x588] sm:$0xf]  ;;  %v6438_v63 = vld [vmem:[%s10406_s0 + $0x590] sm:$0xf0]  ;;  %v5447_v2 = vor.u32 %v6437_v39, %v5444_v11 }
 0x3c5   :  { %v8967_v5 = vpop.f32.mrf.mxu3  ;;  %v8969_v28 = vpop.f32.mrf.mxu2 }
 0x3c6   :  { %10536 = vst [vmem:[#allocation92_spill] sm:$0xff] %v8967_v5  ;;  %v8971_v16 = vpop.f32.mrf.mxu0  ;;  %v5443_v5 = vor.u32 %v6438_v63, %v5442_v18 }
 0x3c7   :  { %v8973_v32 = vpop.f32.mrf.mxu1 }
 0x3ca   :  { %6208 = vmatmul.msk.bf16.gmra.mxu2 %vm2287_vm0, %v5463_v20 }
 0x3cd   :  { %v8994_v22 = vpop.f32.mrf.mxu3  ;;  %v8996_v20 = vpop.f32.mrf.mxu2 }
 0x3ce   :  { %10537 = vst [vmem:[#allocation93_spill] sm:$0xff] %v8994_v22  ;;  %v8998_v36 = vpop.f32.mrf.mxu0  ;;  %v6445_v22 = vld [vmem:[%s10406_s0 + $0x5c8] sm:$0xf0] }
 0x3cf   :  { %v9000_v44 = vpop.f32.mrf.mxu1  ;;  %v5475_v39 = vor.u32 %v6445_v22, %v5474_v17  ;;  %v5456_v17 = vld [vmem:[%s10406_s0 + $0x5ac] sm:$0xf0] }
 0x3d1   :  { %2927 = vmatmul.bf16.gmra.mxu0 %v5443_v5  ;;  %v6440_v5 = vld [vmem:[%s10406_s0 + $0x5a4] sm:$0xf] }
 0x3d2   :  { %3496 = vmatmul.bf16.gmra.mxu1 %v5447_v2  ;;  %6237 = vmatmul.msk.bf16.gmra.mxu3 %vm2287_vm0, %v5811_v19  ;;  %v5454_v19 = vld [vmem:[%s10406_s0 + $0x5a0] sm:$0xf]  ;;  %v6441_v2 = vld [vmem:[%s10406_s0 + $0x5a8] sm:$0xf0]  ;;  %v5459_v59 = vor.u32 %v6440_v5, %v5456_v17 }
 0x3d5   :  { %v9009_v0 = vpop.f32.mrf.mxu3  ;;  %v4033_v18 = vpop.f32.mrf.mxu2 }
 0x3d6   :  { %10538 = vst [vmem:[#allocation94_spill] sm:$0xff] %v9009_v0  ;;  %v9011_v63 = vpop.f32.mrf.mxu0  ;;  %v5455_v0 = vor.u32 %v6441_v2, %v5454_v19  ;;  %v3448_v2 = vadd.f32 %v8916_v55, %v8914_v41  ;;  %v6443_v41 = vld [vmem:[%s10406_s0 + $0x5bc] sm:$0xf] }
 0x3d7   :  { %v9013_v11 = vpop.f32.mrf.mxu1  ;;  %v6535_v55 = vld [vmem:[%s10406_s0 + $0x898] sm:$0xf0] }
 0x3da   :  { %6209 = vmatmul.msk.bf16.gmra.mxu2 %vm2287_vm0, %v5475_v39 }
 0x3dd   :  { %v9034_v22 = vpop.f32.mrf.mxu3  ;;  %v4036_v39 = vpop.f32.mrf.mxu2 }
 0x3de   :  { %10539 = vst [vmem:[#allocation95_spill] sm:$0xff] %v9034_v22  ;;  %v9036_v31 = vpop.f32.mrf.mxu0  ;;  %v6448_v22 = vld [vmem:[%s10406_s0 + $0x5e0] sm:$0xf0] }
 0x3df   :  { %v9038_v46 = vpop.f32.mrf.mxu1  ;;  %v5487_v17 = vor.u32 %v6448_v22, %v5486_v3  ;;  %v5468_v3 = vld [vmem:[%s10406_s0 + $0x5c4] sm:$0xf0] }
 0x3e0   :  { %v5471_v62 = vor.u32 %v6443_v41, %v5468_v3 }
 0x3e1   :  { %2932 = vmatmul.bf16.gmra.mxu0 %v5455_v0 }
 0x3e2   :  { %3501 = vmatmul.bf16.gmra.mxu1 %v5459_v59  ;;  %6238 = vmatmul.msk.bf16.gmra.mxu3 %vm2287_vm0, %v5823_v23  ;;  %v4017_v23 = vadd.f32 %v8870_v30, %v3448_v2  ;;  %v5834_v30 = vld [vmem:[%s10406_s0 + $0x890] sm:$0xf] }
 0x3e3   :  { %v5835_v24 = vor.u32 %v6535_v55, %v5834_v30 }
 0x3e5   :  { %v9047_v29 = vpop.f32.mrf.mxu3  ;;  %v4038_v19 = vpop.f32.mrf.mxu2 }
 0x3e6   :  { %10540 = vst [vmem:[#allocation96_spill] sm:$0xff] %v9047_v29  ;;  %v2895_v5 = vpop.f32.mrf.mxu0  ;;  %v6444_v29 = vld [vmem:[%s10406_s0 + $0x5c0] sm:$0xf0] }
 0x3e7   :  { %v3464_v0 = vpop.f32.mrf.mxu1 }
 0x3e8   :  { %v3465_v59 = vadd.f32 %v3464_v0, %v2895_v5  ;;  %v5467_v5 = vor.u32 %v6444_v29, %v5466_v47  ;;  %v10542_v0 = vmax.f32 %v8658_v7, %v8771_v54  ;;  %v5498_v7 = vld [vmem:[%s10406_s0 + $0x5f0] sm:$0xf]  ;;  %v6451_v54 = vld [vmem:[%s10406_s0 + $0x5f8] sm:$0xf0] }
 0x3ea   :  { %v4034_v25 = vadd.f32 %v4033_v18, %v3465_v59  ;;  %6210 = vmatmul.msk.bf16.gmra.mxu2 %vm2287_vm0, %v5487_v17  ;;  %v3450_v17 = vadd.f32 %v8931_v4, %v8929_v56 }
 0x3ec   :  { %v4490_v18 = vmax.f32 %v4017_v23, %v4034_v25  ;;  %v4019_v29 = vadd.f32 %v8885_v37, %v3450_v17 }
 0x3ed   :  { %v9071_v22 = vpop.f32.mrf.mxu3  ;;  %v4041_v2 = vpop.f32.mrf.mxu2 }
 0x3ee   :  { %10541 = vst [vmem:[#allocation97_spill] sm:$0xff] %v9071_v22  ;;  %v4497_v59 = vmax.f32 %v10542_v0, %v4490_v18  ;;  %v2898_v40 = vpop.f32.mrf.mxu0  ;;  %v5480_v0 = vld [vmem:[%s10406_s0 + $0x5dc] sm:$0xf0] }
 0x3ef   :  { %v3467_v27 = vpop.f32.mrf.mxu1 }
 0x3f0   :  { %v4504_v23 = vadd.f32 %v9081_v14, %v4497_v59  ;;  %v3468_v25 = vadd.f32 %v3467_v27, %v2898_v40  ;;  %v3453_v40 = vadd.f32 %v8958_v26, %v8956_v53 }
 0x3f1   :  { %2937 = vmatmul.bf16.gmra.mxu0 %v5467_v5  ;;  %v5478_v5 = vld [vmem:[%s10406_s0 + $0x5d0] sm:$0xf] }
 0x3f2   :  { %v4511_v56 = vmax.f32 %v4504_v23, 0.0  ;;  %v4037_v4 = vadd.f32 %v4036_v39, %v3468_v25  ;;  %3506 = vmatmul.bf16.gmra.mxu1 %v5471_v62  ;;  %6239 = vmatmul.msk.bf16.gmra.mxu3 %vm2287_vm0, %v5835_v24  ;;  %v10544_v24 = vmax.f32 %v8672_v48, %v8796_v52  ;;  %v5499_v39 = vor.u32 %v6451_v54, %v5498_v7  ;;  %v6447_v48 = vld [vmem:[%s10406_s0 + $0x5d8] sm:$0xf0]  ;;  %v6446_v52 = vld [vmem:[%s10406_s0 + $0x5d4] sm:$0xf] }
 0x3f3   :  { %v4022_v26 = vadd.f32 %v8912_v60, %v3453_v40  ;;  %v5846_v60 = vld [vmem:[%s10406_s0 + $0x8a8] sm:$0xf]  ;;  %v10546_v7 = vmax.f32 %v8695_v9, %v8808_v35  ;;  %v6454_v35 = vld [vmem:[%s10406_s0 + $0x610] sm:$0xf0] }
 0x3f4   :  { %v4518_v47 = vpack.c.bf16 %v4511_v56, %v4511_v56  ;;  %v4491_v41 = vmax.f32 %v4019_v29, %v4037_v4  ;;  %v5479_v56 = vor.u32 %v6447_v48, %v5478_v5  ;;  %v3455_v4 = vadd.f32 %v8973_v32, %v8971_v16  ;;  %v5510_v9 = vld [vmem:[%s10406_s0 + $0x608] sm:$0xf] }
 0x3f5   :  { %v9092_v3 = vpop.f32.mrf.mxu3  ;;  %v4043_v27 = vpop.f32.mrf.mxu2 }
 0x3f6   :  { %10543 = vst [vmem:[#allocation98_spill] sm:$0xff] %v9092_v3  ;;  %v4498_v62 = vmax.f32 %v10544_v24, %v4491_v41  ;;  %v2900_v37 = vpop.f32.mrf.mxu0  ;;  %v5483_v41 = vor.u32 %v6446_v52, %v5480_v0 }
 0x3f7   :  { %4525 = vst.msk [vmem:[%s10408_s3 + $0x54] sm:$0xf] %vm4377_vm1, %v4518_v47  ;;  %v3469_v30 = vpop.f32.mrf.mxu1 }
 0x3f8   :  { %v4505_v55 = vadd.f32 %v9081_v14, %v4498_v62  ;;  %v3470_v18 = vadd.f32 %v3469_v30, %v2900_v37 }
 0x3fa   :  { %v4512_v53 = vmax.f32 %v4505_v55, 0.0  ;;  %v4039_v17 = vadd.f32 %v4038_v19, %v3470_v18  ;;  %6211 = vmatmul.msk.bf16.gmra.mxu2 %vm2287_vm0, %v5499_v39  ;;  %v6538_v19 = vld [vmem:[%s10406_s0 + $0x8b0] sm:$0xf0]  ;;  %v4024_v39 = vadd.f32 %v8927_v6, %v3455_v4  ;;  %v3458_v6 = vadd.f32 %v9000_v44, %v8998_v36 }
 0x3fb   :  { %v5847_v40 = vor.u32 %v6538_v19, %v5846_v60  ;;  %v5490_v60 = vld [vmem:[%s10406_s0 + $0x5e8] sm:$0xf] }
 0x3fc   :  { %v4519_v59 = vpack.c.bf16 %v4512_v53, %v4512_v53  ;;  %v4492_v23 = vmax.f32 %v4022_v26, %v4039_v17  ;;  %v5511_v17 = vor.u32 %v6454_v35, %v5510_v9  ;;  %v4027_v44 = vadd.f32 %v8954_v43, %v3458_v6  ;;  %v5858_v43 = vld [vmem:[%s10406_s0 + $0x8c0] sm:$0xf] }
 0x3fd   :  { %v9124_v25 = vpop.f32.mrf.mxu3  ;;  %v4046_v29 = vpop.f32.mrf.mxu2 }
 0x3fe   :  { %10545 = vst [vmem:[#allocation99_spill] sm:$0xff] %v9124_v25  ;;  %v4499_v54 = vmax.f32 %v10546_v7, %v4492_v23  ;;  %v2903_v47 = vpop.f32.mrf.mxu0 }
 0x3ff   :  { %4526 = vst.msk [vmem:[%s10408_s3 + $0x58] sm:$0xf] %vm4377_vm1, %v4519_v59  ;;  %v3472_v24 = vpop.f32.mrf.mxu1  ;;  %v5492_v59 = vld [vmem:[%s10406_s0 + $0x5f4] sm:$0xf0] }
 0x400   :  { %v4506_v62 = vadd.f32 %v9081_v14, %v4499_v54  ;;  %v3473_v37 = vadd.f32 %v3472_v24, %v2903_v47  ;;  %v3460_v47 = vadd.f32 %v9013_v11, %v9011_v63 }
 0x401   :  { %2942 = vmatmul.bf16.gmra.mxu0 %v5479_v56 }
 0x402   :  { %v4513_v16 = vmax.f32 %v4506_v62, 0.0  ;;  %v4042_v32 = vadd.f32 %v4041_v2, %v3473_v37  ;;  %3511 = vmatmul.bf16.gmra.mxu1 %v5483_v41  ;;  %6240 = vmatmul.msk.bf16.gmra.mxu3 %vm2287_vm0, %v5847_v40  ;;  %v10548_v2 = vmax.f32 %v8705_v1, %v8833_v51  ;;  %v6450_v1 = vld [vmem:[%s10406_s0 + $0x5f0] sm:$0xf0]  ;;  %v6449_v51 = vld [vmem:[%s10406_s0 + $0x5ec] sm:$0xf]  ;;  %v10550_v41 = vmax.f32 %v8728_v34, %v8845_v10 }
 0x403   :  { %v5491_v54 = vor.u32 %v6450_v1, %v5490_v60  ;;  %v5495_v62 = vor.u32 %v6449_v51, %v5492_v59  ;;  %v4029_v9 = vadd.f32 %v8969_v28, %v3460_v47  ;;  %v5522_v34 = vld [vmem:[%s10406_s0 + $0x620] sm:$0xf]  ;;  %v6457_v10 = vld [vmem:[%s10406_s0 + $0x628] sm:$0xf0]  ;;  %v3463_v28 = vadd.f32 %v9038_v46, %v9036_v31 }
 0x404   :  { %v4520_v30 = vpack.c.bf16 %v4513_v16, %v4513_v16  ;;  %v4493_v55 = vmax.f32 %v4024_v39, %v4042_v32 }
 0x405   :  { %v9144_v18 = vpop.f32.mrf.mxu3  ;;  %v4048_v5 = vpop.f32.mrf.mxu2  ;;  %v4032_v46 = vadd.f32 %v8996_v20, %v3463_v28  ;;  %v5870_v20 = vld [vmem:[%s10406_s0 + $0x8d8] sm:$0xf]  ;;  %v6547_v28 = vld [vmem:[%s10406_s0 + $0x8f8] sm:$0xf0] }
 0x406   :  { %10547 = vst [vmem:[#allocation100_spill] sm:$0xff] %v9144_v18  ;;  %v4500_v26 = vmax.f32 %v10548_v2, %v4493_v55  ;;  %v2905_v53 = vpop.f32.mrf.mxu0 }
 0x407   :  { %4527 = vst.msk [vmem:[%s10408_s3 + $0x5c] sm:$0xf] %vm4377_vm1, %v4520_v30  ;;  %v3474_v48 = vpop.f32.mrf.mxu1 }
 0x408   :  { %v4507_v52 = vadd.f32 %v9081_v14, %v4500_v26  ;;  %v3475_v0 = vadd.f32 %v3474_v48, %v2905_v53  ;;  %v5523_v53 = vor.u32 %v6457_v10, %v5522_v34 }
 0x40a   :  { %v4514_v36 = vmax.f32 %v4507_v52, 0.0  ;;  %v4044_v19 = vadd.f32 %v4043_v27, %v3475_v0  ;;  %6212 = vmatmul.msk.bf16.gmra.mxu2 %vm2287_vm0, %v5511_v17  ;;  %v6541_v27 = vld [vmem:[%s10406_s0 + $0x8c8] sm:$0xf0]  ;;  %v5502_v0 = vld [vmem:[%s10406_s0 + $0x600] sm:$0xf] }
 0x40b   :  { %v5859_v37 = vor.u32 %v6541_v27, %v5858_v43  ;;  %v10554_v43 = vmax.f32 %v8761_v61, %v8887_v57  ;;  %v6460_v61 = vld [vmem:[%s10406_s0 + $0x640] sm:$0xf0]  ;;  %v3633_v57 = vadd.f32 %v8169_v42, %v7025_v58  ;;  %v5514_v58 = vld [vmem:[%s10406_s0 + $0x618] sm:$0xf] }
 0x40c   :  { %v4521_v23 = vpack.c.bf16 %v4514_v36, %v4514_v36  ;;  %v4494_v56 = vmax.f32 %v4027_v44, %v4044_v19  ;;  %v5504_v44 = vld [vmem:[%s10406_s0 + $0x60c] sm:$0xf0]  ;;  %v6456_v42 = vld [vmem:[%s10406_s0 + $0x620] sm:$0xf0] }
 0x40d   :  { %v9176_v4 = vpop.f32.mrf.mxu3  ;;  %v4051_v7 = vpop.f32.mrf.mxu2 }
 0x40e   :  { %10549 = vst [vmem:[#allocation101_spill] sm:$0xff] %v9176_v4  ;;  %v4501_v40 = vmax.f32 %v10550_v41, %v4494_v56  ;;  %v2908_v24 = vpop.f32.mrf.mxu0 }
 0x40f   :  { %4528 = vst.msk [vmem:[%s10408_s3 + $0x60] sm:$0xf] %vm4377_vm1, %v4521_v23  ;;  %v3477_v39 = vpop.f32.mrf.mxu1 }
 0x410   :  { %v4508_v16 = vadd.f32 %v9081_v14, %v4501_v40  ;;  %v3478_v32 = vadd.f32 %v3477_v39, %v2908_v24 }
 0x411   :  { %2947 = vmatmul.bf16.gmra.mxu0 %v5491_v54 }
 0x412   :  { %v4515_v63 = vmax.f32 %v4508_v16, 0.0  ;;  %v4047_v11 = vadd.f32 %v4046_v29, %v3478_v32  ;;  %3516 = vmatmul.bf16.gmra.mxu1 %v5495_v62  ;;  %6241 = vmatmul.msk.bf16.gmra.mxu3 %vm2287_vm0, %v5859_v37  ;;  %v10552_v29 = vmax.f32 %v8738_v49, %v8872_v33  ;;  %v6453_v49 = vld [vmem:[%s10406_s0 + $0x608] sm:$0xf0]  ;;  %v6452_v33 = vld [vmem:[%s10406_s0 + $0x604] sm:$0xf] }
 0x413   :  { %v5503_v59 = vor.u32 %v6453_v49, %v5502_v0  ;;  %v5507_v56 = vor.u32 %v6452_v33, %v5504_v44  ;;  %v5534_v37 = vld [vmem:[%s10406_s0 + $0x638] sm:$0xf]  ;;  %v3638_v49 = vadd.f32 %v8202_v12, %v7058_v21  ;;  %v6459_v21 = vld [vmem:[%s10406_s0 + $0x638] sm:$0xf0]  ;;  %v6458_v12 = vld [vmem:[%s10406_s0 + $0x634] sm:$0xf] }
 0x414   :  { %v4522_v35 = vpack.c.bf16 %v4515_v63, %v4515_v63  ;;  %v4495_v30 = vmax.f32 %v4029_v9, %v4047_v11  ;;  %v5535_v63 = vor.u32 %v6460_v61, %v5534_v37 }
 0x415   :  { %v9196_v55 = vpop.f32.mrf.mxu3  ;;  %v4053_v6 = vpop.f32.mrf.mxu2 }
 0x416   :  { %10551 = vst [vmem:[#allocation102_spill] sm:$0xff] %v9196_v55  ;;  %v4502_v2 = vmax.f32 %v10552_v29, %v4495_v30  ;;  %v2910_v26 = vpop.f32.mrf.mxu0  ;;  %v5516_v30 = vld [vmem:[%s10406_s0 + $0x624] sm:$0xf0]  ;;  %v3635_v29 = vadd.f32 %v8192_v15, %v7048_v8  ;;  %v5546_v8 = vld [vmem:[%s10406_s0 + $0x650] sm:$0xf] }
 0x417   :  { %4529 = vst.msk [vmem:[%s10408_s3 + $0x64] sm:$0xf] %vm4377_vm1, %v4522_v35  ;;  %v3479_v17 = vpop.f32.mrf.mxu1  ;;  %v6455_v35 = vld [vmem:[%s10406_s0 + $0x61c] sm:$0xf] }
 0x418   :  { %v4509_v48 = vadd.f32 %v9081_v14, %v4502_v2  ;;  %v3480_v52 = vadd.f32 %v3479_v17, %v2910_v26  ;;  %v6463_v15 = vld [vmem:[%s10406_s0 + $0x658] sm:$0xf0] }
 0x41a   :  { %v4516_v31 = vmax.f32 %v4509_v48, 0.0  ;;  %v4049_v60 = vadd.f32 %v4048_v5, %v3480_v52  ;;  %6213 = vmatmul.msk.bf16.gmra.mxu2 %vm2287_vm0, %v5523_v53  ;;  %v6544_v5 = vld [vmem:[%s10406_s0 + $0x8e0] sm:$0xf0]  ;;  %v5515_v53 = vor.u32 %v6456_v42, %v5514_v58  ;;  %v5519_v52 = vor.u32 %v6455_v35, %v5516_v30 }
 0x41b   :  { %v5871_v54 = vor.u32 %v6544_v5, %v5870_v20 }
 0x41c   :  { %v4523_v36 = vpack.c.bf16 %v4516_v31, %v4516_v31  ;;  %v4496_v19 = vmax.f32 %v4032_v46, %v4049_v60 }
 0x41d   :  { %v9228_v1 = vpop.f32.mrf.mxu3  ;;  %v4056_v51 = vpop.f32.mrf.mxu2 }
 0x41e   :  { %10553 = vst [vmem:[#allocation103_spill] sm:$0xff] %v9228_v1  ;;  %v4503_v27 = vmax.f32 %v10554_v43, %v4496_v19  ;;  %v2913_v23 = vpop.f32.mrf.mxu0  ;;  %v5526_v43 = vld [vmem:[%s10406_s0 + $0x630] sm:$0xf] }
 0x41f   :  { %4530 = vst.msk [vmem:[%s10408_s3 + $0x68] sm:$0xf] %vm4377_vm1, %v4523_v36  ;;  %v3482_v47 = vpop.f32.mrf.mxu1  ;;  %v5547_v36 = vor.u32 %v6463_v15, %v5546_v8 }
 0x420   :  { %v4510_v41 = vadd.f32 %v9081_v14, %v4503_v27  ;;  %v3483_v40 = vadd.f32 %v3482_v47, %v2913_v23  ;;  %v5528_v27 = vld [vmem:[%s10406_s0 + $0x63c] sm:$0xf0]  ;;  %v5894_v23 = vld [vmem:[%s10406_s0 + $0x908] sm:$0xf] }
 0x421   :  { %2952 = vmatmul.bf16.gmra.mxu0 %v5503_v59  ;;  %v5531_v61 = vor.u32 %v6458_v12, %v5528_v27  ;;  %v5570_v12 = vld [vmem:[%s10406_s0 + $0x680] sm:$0xf]  ;;  %v6469_v27 = vld [vmem:[%s10406_s0 + $0x688] sm:$0xf0] }
 0x422   :  { %v4517_v24 = vmax.f32 %v4510_v41, 0.0  ;;  %v9238_v62 = vadd.f32 %v4051_v7, %v3483_v40  ;;  %3521 = vmatmul.bf16.gmra.mxu1 %v5507_v56  ;;  %6242 = vmatmul.msk.bf16.gmra.mxu3 %vm2287_vm0, %v5871_v54  ;;  %v6550_v56 = vld [vmem:[%s10406_s0 + $0x910] sm:$0xf0]  ;;  %v3640_v54 = vadd.f32 %v8227_v13, %v7083_v38  ;;  %v5527_v40 = vor.u32 %v6459_v21, %v5526_v43  ;;  %v5558_v38 = vld [vmem:[%s10406_s0 + $0x668] sm:$0xf] }
 0x423   :  { %v6466_v13 = vld [vmem:[%s10406_s0 + $0x670] sm:$0xf0] }
 0x424   :  { %v4524_v39 = vpack.c.bf16 %v4517_v24, %v4517_v24  ;;  %v5559_v30 = vor.u32 %v6466_v13, %v5558_v38  ;;  %v5550_v38 = vld [vmem:[%s10406_s0 + $0x660] sm:$0xf]  ;;  %v6465_v13 = vld [vmem:[%s10406_s0 + $0x668] sm:$0xf0] }
 0x425   :  { %v4058_v16 = vpop.f32.mrf.mxu2  ;;  %v4201_v32 = vpop.f32.mrf.mxu3 }
 0x426   :  { %4531 = vst.msk [vmem:[%s10408_s3 + $0x6c] sm:$0xf] %vm4377_vm1, %v4524_v39  ;;  %v9253_v7 = vadd.f32 %v4201_v32, %v3633_v57  ;;  %v2915_v9 = vpop.f32.mrf.mxu0  ;;  %v5895_v57 = vor.u32 %v6550_v56, %v5894_v23  ;;  %v10564_v23 = vld [vmem:[#allocation8_spill] sm:$0xff] }
 0x427   :  { %v3484_v11 = vpop.f32.mrf.mxu1  ;;  %v10565_v56 = vld [vmem:[#allocation60_spill] sm:$0xff] }
 0x428   :  { %v3485_v34 = vadd.f32 %v3484_v11, %v2915_v9  ;;  %v10556_v9 = vld [vmem:[#allocation6_spill] sm:$0xff] }
 0x42a   :  { %v9255_v10 = vadd.f32 %v4053_v6, %v3485_v34  ;;  %6214 = vmatmul.msk.bf16.gmra.mxu2 %vm2287_vm0, %v5535_v63  ;;  %v5882_v6 = vld [vmem:[%s10406_s0 + $0x8f0] sm:$0xf]  ;;  %v10557_v63 = vld [vmem:[#allocation58_spill] sm:$0xff] }
 0x42b   :  { %v5883_v0 = vor.u32 %v6547_v28, %v5882_v6  ;;  %v3643_v11 = vadd.f32 %v10557_v63, %v10556_v9  ;;  %v6464_v9 = vld [vmem:[%s10406_s0 + $0x664] sm:$0xf]  ;;  %v5552_v63 = vld [vmem:[%s10406_s0 + $0x66c] sm:$0xf0] }
 0x42d   :  { %v4061_v2 = vpop.f32.mrf.mxu2  ;;  %v4203_v26 = vpop.f32.mrf.mxu3 }
 0x42e   :  { %v9278_v17 = vadd.f32 %v4203_v26, %v3635_v29  ;;  %v2918_v48 = vpop.f32.mrf.mxu0  ;;  %v6462_v26 = vld [vmem:[%s10406_s0 + $0x650] sm:$0xf0] }
 0x42f   :  { %v3487_v46 = vpop.f32.mrf.mxu1 }
 0x430   :  { %v3488_v31 = vadd.f32 %v3487_v46, %v2918_v48  ;;  %v5540_v48 = vld [vmem:[%s10406_s0 + $0x654] sm:$0xf0]  ;;  %v10560_v46 = vld [vmem:[#allocation7_spill] sm:$0xff] }
 0x431   :  { %2957 = vmatmul.bf16.gmra.mxu0 %v5515_v53  ;;  %v6461_v53 = vld [vmem:[%s10406_s0 + $0x64c] sm:$0xf] }
 0x432   :  { %v9280_v60 = vadd.f32 %v4056_v51, %v3488_v31  ;;  %3526 = vmatmul.bf16.gmra.mxu1 %v5519_v52  ;;  %6243 = vmatmul.msk.bf16.gmra.mxu3 %vm2287_vm0, %v5883_v0  ;;  %v5906_v52 = vld [vmem:[%s10406_s0 + $0x920] sm:$0xf]  ;;  %v6553_v0 = vld [vmem:[%s10406_s0 + $0x928] sm:$0xf0] }
 0x433   :  { %v10561_v31 = vld [vmem:[#allocation59_spill] sm:$0xff] }
 0x434   :  { %v3645_v8 = vadd.f32 %v10561_v31, %v10560_v46 }
 0x435   :  { %v4063_v33 = vpop.f32.mrf.mxu2  ;;  %v4206_v44 = vpop.f32.mrf.mxu3 }
 0x436   :  { %v9291_v20 = vadd.f32 %v4206_v44, %v3638_v49  ;;  %v2920_v5 = vpop.f32.mrf.mxu0 }
 0x437   :  { %v3489_v19 = vpop.f32.mrf.mxu1 }
 0x438   :  { %v3490_v51 = vadd.f32 %v3489_v19, %v2920_v5  ;;  %v5907_v19 = vor.u32 %v6553_v0, %v5906_v52  ;;  %v5555_v52 = vor.u32 %v6464_v9, %v5552_v63  ;;  %v6559_v9 = vld [vmem:[%s10406_s0 + $0x958] sm:$0xf0]  ;;  %v10571_v63 = vld [vmem:[#allocation11_spill] sm:$0xff] }
 0x43a   :  { %v9293_v59 = vadd.f32 %v4058_v16, %v3490_v51  ;;  %6215 = vmatmul.msk.bf16.gmra.mxu2 %vm2287_vm0, %v5547_v36  ;;  %v5543_v36 = vor.u32 %v6461_v53, %v5540_v48 }
 0x43d   :  { %v4066_v47 = vpop.f32.mrf.mxu2  ;;  %v4208_v41 = vpop.f32.mrf.mxu3 }
 0x43e   :  { %v9316_v24 = vadd.f32 %v4208_v41, %v3640_v54  ;;  %v2923_v37 = vpop.f32.mrf.mxu0  ;;  %v3648_v54 = vadd.f32 %v10565_v56, %v10564_v23 }
 0x43f   :  { %v3492_v39 = vpop.f32.mrf.mxu1 }
 0x440   :  { %10555 = vst [vmem:[#allocation104_spill] sm:$0xff] %v9316_v24  ;;  %v3493_v16 = vadd.f32 %v3492_v39, %v2923_v37 }
 0x441   :  { %2962 = vmatmul.bf16.gmra.mxu0 %v5527_v40 }
 0x442   :  { %v9318_v32 = vadd.f32 %v4061_v2, %v3493_v16  ;;  %3531 = vmatmul.bf16.gmra.mxu1 %v5531_v61  ;;  %6244 = vmatmul.msk.bf16.gmra.mxu3 %vm2287_vm0, %v5895_v57  ;;  %v5538_v2 = vld [vmem:[%s10406_s0 + $0x648] sm:$0xf]  ;;  %v5571_v61 = vor.u32 %v6469_v27, %v5570_v12 }
 0x445   :  { %v4068_v34 = vpop.f32.mrf.mxu2  ;;  %v4211_v58 = vpop.f32.mrf.mxu3 }
 0x446   :  { %v9329_v42 = vadd.f32 %v4211_v58, %v3643_v11  ;;  %v2925_v35 = vpop.f32.mrf.mxu0  ;;  %v5918_v11 = vld [vmem:[%s10406_s0 + $0x938] sm:$0xf] }
 0x447   :  { %v3494_v6 = vpop.f32.mrf.mxu1  ;;  %v10567_v58 = vld [vmem:[#allocation9_spill] sm:$0xff] }
 0x448   :  { %10558 = vst [vmem:[#allocation6_spill] sm:$0xff] %v9329_v42  ;;  %v3495_v28 = vadd.f32 %v3494_v6, %v2925_v35  ;;  %v10568_v35 = vld [vmem:[#allocation61_spill] sm:$0xff] }
 0x44a   :  { %v9331_v29 = vadd.f32 %v4063_v33, %v3495_v28  ;;  %6216 = vmatmul.msk.bf16.gmra.mxu2 %vm2287_vm0, %v5559_v30  ;;  %v5539_v33 = vor.u32 %v6462_v26, %v5538_v2  ;;  %v3650_v30 = vadd.f32 %v10568_v35, %v10567_v58  ;;  %v5551_v26 = vor.u32 %v6465_v13, %v5550_v38  ;;  %v6467_v38 = vld [vmem:[%s10406_s0 + $0x67c] sm:$0xf]  ;;  %v5564_v13 = vld [vmem:[%s10406_s0 + $0x684] sm:$0xf0] }
 0x44c   :  { %10559 = vst [vmem:[#allocation58_spill] sm:$0xff] %v9331_v29 }
 0x44d   :  { %v4071_v15 = vpop.f32.mrf.mxu2  ;;  %v4213_v49 = vpop.f32.mrf.mxu3 }
 0x44e   :  { %v9354_v44 = vadd.f32 %v4213_v49, %v3645_v8  ;;  %v2928_v5 = vpop.f32.mrf.mxu0 }
 0x44f   :  { %v3497_v51 = vpop.f32.mrf.mxu1 }
 0x450   :  { %10562 = vst [vmem:[#allocation7_spill] sm:$0xff] %v9354_v44  ;;  %v3498_v43 = vadd.f32 %v3497_v51, %v2928_v5  ;;  %v6472_v5 = vld [vmem:[%s10406_s0 + $0x6a0] sm:$0xf0] }
 0x451   :  { %2967 = vmatmul.bf16.gmra.mxu0 %v5539_v33  ;;  %v5582_v33 = vld [vmem:[%s10406_s0 + $0x698] sm:$0xf] }
 0x452   :  { %v9356_v21 = vadd.f32 %v4066_v47, %v3498_v43  ;;  %3536 = vmatmul.bf16.gmra.mxu1 %v5543_v36  ;;  %6245 = vmatmul.msk.bf16.gmra.mxu3 %vm2287_vm0, %v5907_v19  ;;  %v10569_v36 = vld [vmem:[#allocation10_spill] sm:$0xff]  ;;  %v5583_v56 = vor.u32 %v6472_v5, %v5582_v33 }
 0x453   :  { %v10570_v19 = vld [vmem:[#allocation62_spill] sm:$0xff] }
 0x454   :  { %10563 = vst [vmem:[#allocation59_spill] sm:$0xff] %v9356_v21  ;;  %v3653_v51 = vadd.f32 %v10570_v19, %v10569_v36  ;;  %v5594_v36 = vld [vmem:[%s10406_s0 + $0x6b0] sm:$0xf]  ;;  %v6475_v19 = vld [vmem:[%s10406_s0 + $0x6b8] sm:$0xf0] }
 0x455   :  { %v4073_v41 = vpop.f32.mrf.mxu2  ;;  %v4216_v40 = vpop.f32.mrf.mxu3  ;;  %v6484_v43 = vld [vmem:[%s10406_s0 + $0x700] sm:$0xf0] }
 0x456   :  { %v9367_v37 = vadd.f32 %v4216_v40, %v3648_v54  ;;  %v2930_v47 = vpop.f32.mrf.mxu0  ;;  %v5630_v40 = vld [vmem:[%s10406_s0 + $0x6f8] sm:$0xf] }
 0x457   :  { %v3499_v57 = vpop.f32.mrf.mxu1 }
 0x458   :  { %10566 = vst [vmem:[#allocation8_spill] sm:$0xff] %v9367_v37  ;;  %v3500_v39 = vadd.f32 %v3499_v57, %v2930_v47  ;;  %v5562_v57 = vld [vmem:[%s10406_s0 + $0x678] sm:$0xf] }
 0x45a   :  { %v9369_v16 = vadd.f32 %v4068_v34, %v3500_v39  ;;  %6217 = vmatmul.msk.bf16.gmra.mxu2 %vm2287_vm0, %v5571_v61  ;;  %v6556_v34 = vld [vmem:[%s10406_s0 + $0x940] sm:$0xf0] }
 0x45b   :  { %v5919_v0 = vor.u32 %v6556_v34, %v5918_v11  ;;  %v6468_v39 = vld [vmem:[%s10406_s0 + $0x680] sm:$0xf0]  ;;  %v10572_v11 = vld [vmem:[#allocation63_spill] sm:$0xff] }
 0x45c   :  { %v3655_v34 = vadd.f32 %v10572_v11, %v10571_v63  ;;  %v6471_v63 = vld [vmem:[%s10406_s0 + $0x698] sm:$0xf0]  ;;  %v6470_v11 = vld [vmem:[%s10406_s0 + $0x694] sm:$0xf] }
 0x45d   :  { %v4076_v28 = vpop.f32.mrf.mxu2  ;;  %v4218_v2 = vpop.f32.mrf.mxu3 }
 0x45e   :  { %v9394_v53 = vadd.f32 %v4218_v2, %v3650_v30  ;;  %v2933_v48 = vpop.f32.mrf.mxu0  ;;  %v5563_v2 = vor.u32 %v6468_v39, %v5562_v57  ;;  %v5595_v39 = vor.u32 %v6475_v19, %v5594_v36 }
 0x45f   :  { %v3502_v46 = vpop.f32.mrf.mxu1 }
 0x460   :  { %v3503_v8 = vadd.f32 %v3502_v46, %v2933_v48 }
 0x461   :  { %2972 = vmatmul.bf16.gmra.mxu0 %v5551_v26 }
 0x462   :  { %v9398_v49 = vadd.f32 %v4071_v15, %v3503_v8  ;;  %3541 = vmatmul.bf16.gmra.mxu1 %v5555_v52  ;;  %6246 = vmatmul.msk.bf16.gmra.mxu3 %vm2287_vm0, %v5919_v0  ;;  %v5567_v52 = vor.u32 %v6467_v38, %v5564_v13 }
 0x465   :  { %v4078_v12 = vpop.f32.mrf.mxu2  ;;  %v4221_v15 = vpop.f32.mrf.mxu3 }
 0x466   :  { %v9411_v27 = vadd.f32 %v4221_v15, %v3653_v51  ;;  %v2935_v23 = vpop.f32.mrf.mxu0  ;;  %v10573_v51 = vld [vmem:[#allocation12_spill] sm:$0xff] }
 0x467   :  { %v3504_v54 = vpop.f32.mrf.mxu1  ;;  %v10574_v15 = vld [vmem:[#allocation64_spill] sm:$0xff] }
 0x468   :  { %v3505_v47 = vadd.f32 %v3504_v54, %v2935_v23  ;;  %v3658_v23 = vadd.f32 %v10574_v15, %v10573_v51 }
 0x46a   :  { %v9415_v61 = vadd.f32 %v4073_v41, %v3505_v47  ;;  %6218 = vmatmul.msk.bf16.gmra.mxu2 %vm2287_vm0, %v5583_v56  ;;  %v5930_v41 = vld [vmem:[%s10406_s0 + $0x950] sm:$0xf] }
 0x46b   :  { %v5931_v0 = vor.u32 %v6559_v9, %v5930_v41  ;;  %v5574_v9 = vld [vmem:[%s10406_s0 + $0x690] sm:$0xf] }
 0x46c   :  { %v5575_v36 = vor.u32 %v6471_v63, %v5574_v9  ;;  %v10580_v9 = vld [vmem:[#allocation14_spill] sm:$0xff] }
 0x46d   :  { %v4081_v35 = vpop.f32.mrf.mxu2  ;;  %v4223_v30 = vpop.f32.mrf.mxu3  ;;  %v10581_v63 = vld [vmem:[#allocation66_spill] sm:$0xff] }
 0x46e   :  { %v9440_v26 = vadd.f32 %v4223_v30, %v3655_v34  ;;  %v2938_v48 = vpop.f32.mrf.mxu0  ;;  %v5576_v34 = vld [vmem:[%s10406_s0 + $0x69c] sm:$0xf0]  ;;  %v6562_v30 = vld [vmem:[%s10406_s0 + $0x970] sm:$0xf0] }
 0x46f   :  { %v3507_v46 = vpop.f32.mrf.mxu1  ;;  %v5579_v15 = vor.u32 %v6470_v11, %v5576_v34  ;;  %v3663_v11 = vadd.f32 %v10581_v63, %v10580_v9 }
 0x470   :  { %v3508_v33 = vadd.f32 %v3507_v46, %v2938_v48  ;;  %v10577_v48 = vld [vmem:[#allocation65_spill] sm:$0xff] }
 0x471   :  { %2977 = vmatmul.bf16.gmra.mxu0 %v5563_v2  ;;  %v10576_v2 = vld [vmem:[#allocation13_spill] sm:$0xff] }
 0x472   :  { %v9444_v5 = vadd.f32 %v4076_v28, %v3508_v33  ;;  %3546 = vmatmul.bf16.gmra.mxu1 %v5567_v52  ;;  %6247 = vmatmul.msk.bf16.gmra.mxu3 %vm2287_vm0, %v5931_v0  ;;  %v3660_v52 = vadd.f32 %v10577_v48, %v10576_v2 }
 0x475   :  { %v4083_v54 = vpop.f32.mrf.mxu2  ;;  %v4226_v28 = vpop.f32.mrf.mxu3 }
 0x476   :  { %v9457_v47 = vadd.f32 %v4226_v28, %v3658_v23  ;;  %v2940_v57 = vpop.f32.mrf.mxu0 }
 0x477   :  { %v3509_v38 = vpop.f32.mrf.mxu1 }
 0x478   :  { %10575 = vst [vmem:[#allocation60_spill] sm:$0xff] %v9457_v47  ;;  %v3510_v13 = vadd.f32 %v3509_v38, %v2940_v57  ;;  %v5606_v38 = vld [vmem:[%s10406_s0 + $0x6c8] sm:$0xf] }
 0x47a   :  { %v9459_v41 = vadd.f32 %v4078_v12, %v3510_v13  ;;  %6219 = vmatmul.msk.bf16.gmra.mxu2 %vm2287_vm0, %v5595_v39  ;;  %v5942_v12 = vld [vmem:[%s10406_s0 + $0x968] sm:$0xf]  ;;  %v6478_v13 = vld [vmem:[%s10406_s0 + $0x6d0] sm:$0xf0] }
 0x47b   :  { %v5943_v23 = vor.u32 %v6562_v30, %v5942_v12  ;;  %v5607_v48 = vor.u32 %v6478_v13, %v5606_v38  ;;  %v10584_v38 = vld [vmem:[#allocation15_spill] sm:$0xff] }
 0x47c   :  { %v10585_v13 = vld [vmem:[#allocation67_spill] sm:$0xff] }
 0x47d   :  { %v9484_v46 = vpop.f32.mrf.mxu2  ;;  %v4228_v33 = vpop.f32.mrf.mxu3  ;;  %v3665_v9 = vadd.f32 %v10585_v13, %v10584_v38  ;;  %v5618_v38 = vld [vmem:[%s10406_s0 + $0x6e0] sm:$0xf] }
 0x47e   :  { %v9486_v19 = vadd.f32 %v4228_v33, %v3660_v52  ;;  %v2943_v51 = vpop.f32.mrf.mxu0 }
 0x47f   :  { %v3512_v28 = vpop.f32.mrf.mxu1 }
 0x480   :  { %10578 = vst [vmem:[#allocation9_spill] sm:$0xff] %v9486_v19  ;;  %v3513_v57 = vadd.f32 %v3512_v28, %v2943_v51  ;;  %v5586_v51 = vld [vmem:[%s10406_s0 + $0x6a8] sm:$0xf]  ;;  %v5588_v28 = vld [vmem:[%s10406_s0 + $0x6b4] sm:$0xf0] }
 0x481   :  { %2982 = vmatmul.bf16.gmra.mxu0 %v5575_v36 }
 0x482   :  { %v9488_v39 = vadd.f32 %v4081_v35, %v3513_v57  ;;  %3551 = vmatmul.bf16.gmra.mxu1 %v5579_v15  ;;  %6248 = vmatmul.msk.bf16.gmra.mxu3 %vm2287_vm0, %v5943_v23  ;;  %v6474_v15 = vld [vmem:[%s10406_s0 + $0x6b0] sm:$0xf0]  ;;  %v6473_v23 = vld [vmem:[%s10406_s0 + $0x6ac] sm:$0xf] }
 0x483   :  { %v6565_v57 = vld [vmem:[%s10406_s0 + $0x988] sm:$0xf0] }
 0x484   :  { %10579 = vst [vmem:[#allocation61_spill] sm:$0xff] %v9488_v39 }
 0x485   :  { %v9501_v12 = vpop.f32.mrf.mxu2  ;;  %v4231_v35 = vpop.f32.mrf.mxu3 }
 0x486   :  { %v9503_v30 = vadd.f32 %v4231_v35, %v3663_v11  ;;  %v2945_v2 = vpop.f32.mrf.mxu0 }
 0x487   :  { %v3514_v52 = vpop.f32.mrf.mxu1 }
 0x488   :  { %10582 = vst [vmem:[#allocation10_spill] sm:$0xff] %v9503_v30  ;;  %v3515_v33 = vadd.f32 %v3514_v52, %v2945_v2  ;;  %v5587_v2 = vor.u32 %v6474_v15, %v5586_v51  ;;  %v6481_v51 = vld [vmem:[%s10406_s0 + $0x6e8] sm:$0xf0] }
 0x48a   :  { %v9505_v36 = vadd.f32 %v4083_v54, %v3515_v33  ;;  %6220 = vmatmul.msk.bf16.gmra.mxu2 %vm2287_vm0, %v5607_v48  ;;  %v5954_v54 = vld [vmem:[%s10406_s0 + $0x980] sm:$0xf]  ;;  %v5591_v33 = vor.u32 %v6473_v23, %v5588_v28  ;;  %v5619_v28 = vor.u32 %v6481_v51, %v5618_v38 }
 0x48b   :  { %v5955_v34 = vor.u32 %v6565_v57, %v5954_v54  ;;  %v6477_v57 = vld [vmem:[%s10406_s0 + $0x6c8] sm:$0xf0] }
 0x48c   :  { %10583 = vst [vmem:[#allocation62_spill] sm:$0xff] %v9505_v36 }
 0x48d   :  { %v9530_v11 = vpop.f32.mrf.mxu2  ;;  %v4233_v35 = vpop.f32.mrf.mxu3 }
 0x48e   :  { %v9532_v48 = vadd.f32 %v4233_v35, %v3665_v9  ;;  %v9534_v52 = vpop.f32.mrf.mxu0  ;;  %v6476_v9 = vld [vmem:[%s10406_s0 + $0x6c4] sm:$0xf]  ;;  %v5600_v35 = vld [vmem:[%s10406_s0 + $0x6cc] sm:$0xf0] }
 0x48f   :  { %v9536_v0 = vpop.f32.mrf.mxu1  ;;  %v5603_v56 = vor.u32 %v6476_v9, %v5600_v35  ;;  %v5631_v9 = vor.u32 %v6484_v43, %v5630_v40  ;;  %v5612_v43 = vld [vmem:[%s10406_s0 + $0x6e4] sm:$0xf0]  ;;  %v5978_v40 = vld [vmem:[%s10406_s0 + $0x9b0] sm:$0xf] }
 0x490   :  { %10586 = vst [vmem:[#allocation11_spill] sm:$0xff] %v9532_v48 }
 0x491   :  { %2987 = vmatmul.bf16.gmra.mxu0 %v5587_v2  ;;  %v5966_v2 = vld [vmem:[%s10406_s0 + $0x998] sm:$0xf] }
 0x492   :  { %3556 = vmatmul.bf16.gmra.mxu1 %v5591_v33  ;;  %6249 = vmatmul.msk.bf16.gmra.mxu3 %vm2287_vm0, %v5955_v34  ;;  %v5598_v34 = vld [vmem:[%s10406_s0 + $0x6c0] sm:$0xf]  ;;  %v6568_v33 = vld [vmem:[%s10406_s0 + $0x9a0] sm:$0xf0] }
 0x493   :  { %v5967_v8 = vor.u32 %v6568_v33, %v5966_v2  ;;  %v6479_v2 = vld [vmem:[%s10406_s0 + $0x6dc] sm:$0xf] }
 0x494   :  { %v6571_v33 = vld [vmem:[%s10406_s0 + $0x9b8] sm:$0xf0]  ;;  %v5615_v55 = vor.u32 %v6479_v2, %v5612_v43 }
 0x495   :  { %v9545_v15 = vpop.f32.mrf.mxu2  ;;  %v9547_v13 = vpop.f32.mrf.mxu3  ;;  %v5979_v4 = vor.u32 %v6571_v33, %v5978_v40  ;;  %v5622_v33 = vld [vmem:[%s10406_s0 + $0x6f0] sm:$0xf] }
 0x496   :  { %v9549_v23 = vpop.f32.mrf.mxu0 }
 0x497   :  { %v9551_v54 = vpop.f32.mrf.mxu1 }
 0x49a   :  { %6221 = vmatmul.msk.bf16.gmra.mxu2 %vm2287_vm0, %v5619_v28  ;;  %v5599_v28 = vor.u32 %v6477_v57, %v5598_v34 }
 0x49d   :  { %v9572_v38 = vpop.f32.mrf.mxu2  ;;  %v9574_v51 = vpop.f32.mrf.mxu3 }
 0x49e   :  { %v9576_v63 = vpop.f32.mrf.mxu0 }
 0x49f   :  { %v9578_v58 = vpop.f32.mrf.mxu1 }
 0x4a1   :  { %2992 = vmatmul.bf16.gmra.mxu0 %v5599_v28  ;;  %v10587_v28 = vld [vmem:[#allocation19_spill] sm:$0xff] }
 0x4a2   :  { %3561 = vmatmul.bf16.gmra.mxu1 %v5603_v56  ;;  %6250 = vmatmul.msk.bf16.gmra.mxu3 %vm2287_vm0, %v5967_v8  ;;  %v5610_v8 = vld [vmem:[%s10406_s0 + $0x6d8] sm:$0xf]  ;;  %v6480_v56 = vld [vmem:[%s10406_s0 + $0x6e0] sm:$0xf0] }
 0x4a3   :  { %v5611_v42 = vor.u32 %v6480_v56, %v5610_v8 }
 0x4a5   :  { %v9587_v31 = vpop.f32.mrf.mxu2  ;;  %v9589_v34 = vpop.f32.mrf.mxu3 }
 0x4a6   :  { %v9591_v57 = vpop.f32.mrf.mxu0 }
 0x4a7   :  { %v9593_v35 = vpop.f32.mrf.mxu1 }
 0x4aa   :  { %6222 = vmatmul.msk.bf16.gmra.mxu2 %vm2287_vm0, %v5631_v9  ;;  %v10588_v9 = vld [vmem:[#allocation71_spill] sm:$0xff] }
 0x4ab   :  { %v3675_v6 = vadd.f32 %v10588_v9, %v10587_v28  ;;  %v5642_v28 = vld [vmem:[%s10406_s0 + $0x710] sm:$0xf]  ;;  %v6482_v9 = vld [vmem:[%s10406_s0 + $0x6f4] sm:$0xf] }
 0x4ad   :  { %v9616_v37 = vpop.f32.mrf.mxu2  ;;  %v4243_v44 = vpop.f32.mrf.mxu3 }
 0x4ae   :  { %10589 = vst [vmem:[#allocation63_spill] sm:$0xff] %v9616_v37  ;;  %v9618_v24 = vadd.f32 %v4243_v44, %v3675_v6  ;;  %v9620_v1 = vpop.f32.mrf.mxu0  ;;  %v6487_v44 = vld [vmem:[%s10406_s0 + $0x718] sm:$0xf0]  ;;  %v10591_v6 = vld [vmem:[#allocation20_spill] sm:$0xff] }
 0x4af   :  { %v9622_v18 = vpop.f32.mrf.mxu1  ;;  %v3678_v8 = vadd.f32 %v8514_v50, %v10591_v6  ;;  %v6483_v50 = vld [vmem:[%s10406_s0 + $0x6f8] sm:$0xf0]  ;;  %v6574_v6 = vld [vmem:[%s10406_s0 + $0x9d0] sm:$0xf0] }
 0x4b0   :  { %10590 = vst [vmem:[#allocation12_spill] sm:$0xff] %v9618_v24  ;;  %v5623_v25 = vor.u32 %v6483_v50, %v5622_v33  ;;  %v10595_v33 = vld [vmem:[#allocation22_spill] sm:$0xff]  ;;  %v10596_v50 = vld [vmem:[#allocation72_spill] sm:$0xff] }
 0x4b1   :  { %2997 = vmatmul.bf16.gmra.mxu0 %v5611_v42 }
 0x4b2   :  { %3566 = vmatmul.bf16.gmra.mxu1 %v5615_v55  ;;  %6251 = vmatmul.msk.bf16.gmra.mxu3 %vm2287_vm0, %v5979_v4  ;;  %v5643_v55 = vor.u32 %v6487_v44, %v5642_v28  ;;  %v5624_v28 = vld [vmem:[%s10406_s0 + $0x6fc] sm:$0xf0]  ;;  %v5990_v44 = vld [vmem:[%s10406_s0 + $0x9c8] sm:$0xf] }
 0x4b3   :  { %v5627_v24 = vor.u32 %v6482_v9, %v5624_v28  ;;  %v5991_v47 = vor.u32 %v6574_v6, %v5990_v44  ;;  %v3683_v9 = vadd.f32 %v10596_v50, %v10595_v33  ;;  %v5634_v33 = vld [vmem:[%s10406_s0 + $0x708] sm:$0xf] }
 0x4b5   :  { %v4103_v56 = vpop.f32.mrf.mxu2  ;;  %v4246_v2 = vpop.f32.mrf.mxu3 }
 0x4b6   :  { %v9635_v43 = vadd.f32 %v4246_v2, %v3678_v8  ;;  %v9637_v40 = vpop.f32.mrf.mxu0  ;;  %v10593_v8 = vld [vmem:[#allocation21_spill] sm:$0xff] }
 0x4b7   :  { %v9639_v42 = vpop.f32.mrf.mxu1  ;;  %v3680_v2 = vadd.f32 %v8546_v45, %v10593_v8  ;;  %v5654_v45 = vld [vmem:[%s10406_s0 + $0x728] sm:$0xf] }
 0x4b8   :  { %10592 = vst [vmem:[#allocation64_spill] sm:$0xff] %v9635_v43 }
 0x4ba   :  { %6223 = vmatmul.msk.bf16.gmra.mxu2 %vm2287_vm0, %v5643_v55 }
 0x4bd   :  { %v4106_v55 = vpop.f32.mrf.mxu2  ;;  %v4248_v4 = vpop.f32.mrf.mxu3 }
 0x4be   :  { %v9664_v43 = vadd.f32 %v4248_v4, %v3680_v2  ;;  %v9666_v19 = vpop.f32.mrf.mxu0  ;;  %v6490_v4 = vld [vmem:[%s10406_s0 + $0x730] sm:$0xf0] }
 0x4bf   :  { %v9668_v3 = vpop.f32.mrf.mxu1  ;;  %v5655_v6 = vor.u32 %v6490_v4, %v5654_v45  ;;  %v10598_v45 = vld [vmem:[#allocation16_spill] sm:$0xff] }
 0x4c0   :  { %10594 = vst [vmem:[#allocation13_spill] sm:$0xff] %v9664_v43  ;;  %v10599_v4 = vld [vmem:[#allocation68_spill] sm:$0xff] }
 0x4c1   :  { %3002 = vmatmul.bf16.gmra.mxu0 %v5623_v25  ;;  %v3518_v25 = vadd.f32 %v9536_v0, %v9534_v52  ;;  %v6486_v0 = vld [vmem:[%s10406_s0 + $0x710] sm:$0xf0]  ;;  %v6485_v52 = vld [vmem:[%s10406_s0 + $0x70c] sm:$0xf]  ;;  %v3668_v50 = vadd.f32 %v10599_v4, %v10598_v45 }
 0x4c2   :  { %3571 = vmatmul.bf16.gmra.mxu1 %v5627_v24  ;;  %6252 = vmatmul.msk.bf16.gmra.mxu3 %vm2287_vm0, %v5991_v47  ;;  %v5635_v2 = vor.u32 %v6486_v0, %v5634_v33  ;;  %v10603_v33 = vmax.f32 %v9253_v7, %v9394_v53 }
 0x4c3   :  { %v4087_v43 = vadd.f32 %v9484_v46, %v3518_v25  ;;  %v6002_v46 = vld [vmem:[%s10406_s0 + $0x9e0] sm:$0xf] }
 0x4c5   :  { %v9681_v28 = vpop.f32.mrf.mxu2  ;;  %v4251_v44 = vpop.f32.mrf.mxu3 }
 0x4c6   :  { %v9685_v24 = vadd.f32 %v4251_v44, %v3683_v9  ;;  %v2965_v47 = vpop.f32.mrf.mxu0  ;;  %v10600_v9 = vld [vmem:[#allocation23_spill] sm:$0xff]  ;;  %v10601_v44 = vld [vmem:[#allocation73_spill] sm:$0xff] }
 0x4c7   :  { %v3534_v8 = vpop.f32.mrf.mxu1  ;;  %v3685_v25 = vadd.f32 %v10601_v44, %v10600_v9 }
 0x4c8   :  { %10597 = vst [vmem:[#allocation65_spill] sm:$0xff] %v9685_v24  ;;  %v3535_v22 = vadd.f32 %v3534_v8, %v2965_v47  ;;  %v3520_v8 = vadd.f32 %v9551_v54, %v9549_v23  ;;  %v10602_v24 = vmax.f32 %v9238_v62, %v9369_v16  ;;  %v10604_v62 = vld [vmem:[#allocation17_spill] sm:$0xff] }
 0x4c9   :  { %v10605_v16 = vld [vmem:[#allocation69_spill] sm:$0xff] }
 0x4ca   :  { %v4104_v30 = vadd.f32 %v4103_v56, %v3535_v22  ;;  %6224 = vmatmul.msk.bf16.gmra.mxu2 %vm2287_vm0, %v5655_v6  ;;  %v5636_v22 = vld [vmem:[%s10406_s0 + $0x714] sm:$0xf0]  ;;  %v6577_v56 = vld [vmem:[%s10406_s0 + $0x9e8] sm:$0xf0]  ;;  %v4237_v6 = vadd.f32 %v9547_v13, %v3668_v50  ;;  %v4089_v23 = vadd.f32 %v9501_v12, %v3520_v8  ;;  %v10607_v12 = vld [vmem:[#allocation74_spill] sm:$0xff] }
 0x4cb   :  { %v5639_v37 = vor.u32 %v6485_v52, %v5636_v22  ;;  %v6003_v39 = vor.u32 %v6577_v56, %v6002_v46  ;;  %v10608_v46 = vmax.f32 %v9255_v10, %v9398_v49  ;;  %v5646_v8 = vld [vmem:[%s10406_s0 + $0x720] sm:$0xf]  ;;  %v6489_v10 = vld [vmem:[%s10406_s0 + $0x728] sm:$0xf0]  ;;  %v6488_v49 = vld [vmem:[%s10406_s0 + $0x724] sm:$0xf] }
 0x4cc   :  { %v4539_v47 = vmax.f32 %v4087_v43, %v4104_v30 }
 0x4cd   :  { %v9716_v45 = vpop.f32.mrf.mxu2  ;;  %v4253_v4 = vpop.f32.mrf.mxu3 }
 0x4ce   :  { %v4546_v48 = vmax.f32 %v10602_v24, %v4539_v47  ;;  %v4254_v36 = vadd.f32 %v4253_v4, %v3685_v25  ;;  %v2968_v21 = vpop.f32.mrf.mxu0  ;;  %v3670_v24 = vadd.f32 %v10605_v16, %v10604_v62  ;;  %v10613_v62 = vld [vmem:[#allocation75_spill] sm:$0xff] }
 0x4cf   :  { %v3537_v29 = vpop.f32.mrf.mxu1 }
 0x4d0   :  { %v4553_v30 = vadd.f32 %v9081_v14, %v4546_v48  ;;  %v4641_v43 = vmax.f32 %v4237_v6, %v4254_v36  ;;  %v3538_v13 = vadd.f32 %v3537_v29, %v2968_v21  ;;  %v5666_v36 = vld [vmem:[%s10406_s0 + $0x740] sm:$0xf]  ;;  %v6493_v29 = vld [vmem:[%s10406_s0 + $0x748] sm:$0xf0]  ;;  %v10606_v21 = vld [vmem:[#allocation24_spill] sm:$0xff] }
 0x4d1   :  { %3007 = vmatmul.bf16.gmra.mxu0 %v5635_v2  ;;  %v3688_v48 = vadd.f32 %v10607_v12, %v10606_v21  ;;  %v5667_v44 = vor.u32 %v6493_v29, %v5666_v36  ;;  %v3525_v21 = vadd.f32 %v9593_v35, %v9591_v57 }
 0x4d2   :  { %v4560_v54 = vmax.f32 %v4553_v30, 0.0  ;;  %v4648_v0 = vmax.f32 %v10603_v33, %v4641_v43  ;;  %v4107_v50 = vadd.f32 %v4106_v55, %v3538_v13  ;;  %3576 = vmatmul.bf16.gmra.mxu1 %v5639_v37  ;;  %6253 = vmatmul.msk.bf16.gmra.mxu3 %vm2287_vm0, %v6003_v39  ;;  %v4239_v39 = vadd.f32 %v9574_v51, %v3670_v24  ;;  %v10610_v33 = vld [vmem:[#allocation18_spill] sm:$0xff] }
 0x4d3   :  { %v3523_v55 = vadd.f32 %v9578_v58, %v9576_v63  ;;  %v9753_v58 = vld [vmem:[%s10407_s2] ss:$0 sm:$0xff]  ;;  %v10609_v43 = vmax.f32 %v9278_v17, %v9411_v27  ;;  %v6580_v17 = vld [vmem:[%s10406_s0 + $0xa00] sm:$0xf0]  ;;  %v10612_v27 = vld [vmem:[#allocation25_spill] sm:$0xff] }
 0x4d4   :  { %v4567_v7 = vpack.c.bf16 %v4560_v54, %v4560_v54  ;;  %v4655_v53 = vadd.f32 %v9081_v14, %v4648_v0  ;;  %v4540_v37 = vmax.f32 %v4089_v23, %v4107_v50  ;;  %v5648_v54 = vld [vmem:[%s10406_s0 + $0x72c] sm:$0xf0]  ;;  %v6014_v50 = vld [vmem:[%s10406_s0 + $0x9f8] sm:$0xf] }
 0x4d5   :  { %v9741_v2 = vpop.f32.mrf.mxu2  ;;  %v4256_v52 = vpop.f32.mrf.mxu3  ;;  %v4092_v4 = vadd.f32 %v9530_v11, %v3523_v55  ;;  %v10611_v11 = vld [vmem:[#allocation70_spill] sm:$0xff] }
 0x4d6   :  { %4574 = vst.msk [vmem:[%s10408_s3 + $0x70] sm:$0xf] %vm4377_vm1, %v4567_v7  ;;  %v4662_v22 = vmax.f32 %v4655_v53, 0.0  ;;  %v4547_v56 = vmax.f32 %v10608_v46, %v4540_v37  ;;  %v4257_v14 = vadd.f32 %v4256_v52, %v3688_v48  ;;  %v2970_v9 = vpop.f32.mrf.mxu0  ;;  %v3673_v0 = vadd.f32 %v10611_v11, %v10610_v33 }
 0x4d7   :  { %v3539_v51 = vpop.f32.mrf.mxu1  ;;  %v5647_v7 = vor.u32 %v6489_v10, %v5646_v8  ;;  %v5651_v53 = vor.u32 %v6488_v49, %v5648_v54 }
 0x4d8   :  { %v4669_v25 = vpack.c.bf16 %v4662_v22, %v4662_v22  ;;  %v4554_v63 = vadd.f32 %v9753_v58, %v4547_v56  ;;  %v4642_v47 = vmax.f32 %v4239_v39, %v4257_v14  ;;  %v3540_v6 = vadd.f32 %v3539_v51, %v2970_v9 }
 0x4d9   :  { %v4242_v29 = vadd.f32 %v9589_v34, %v3673_v0  ;;  %v10614_v39 = vmax.f32 %v9280_v60, %v9415_v61  ;;  %v6015_v22 = vor.u32 %v6580_v17, %v6014_v50  ;;  %v4094_v9 = vadd.f32 %v9545_v15, %v3525_v21  ;;  %v5678_v15 = vld [vmem:[%s10406_s0 + $0x758] sm:$0xf]  ;;  %v6492_v50 = vld [vmem:[%s10406_s0 + $0x740] sm:$0xf0] }
 0x4da   :  { %4676 = vst.msk [vmem:[%s10408_s3 + $0xb8] sm:$0xf] %vm4377_vm1, %v4669_v25  ;;  %v4561_v30 = vmax.f32 %v4554_v63, 0.0  ;;  %v4649_v13 = vmax.f32 %v10609_v43, %v4642_v47  ;;  %v4109_v23 = vadd.f32 %v9681_v28, %v3540_v6  ;;  %6225 = vmatmul.msk.bf16.gmra.mxu2 %vm2287_vm0, %v5667_v44  ;;  %v3690_v28 = vadd.f32 %v10613_v62, %v10612_v27  ;;  %v6496_v25 = vld [vmem:[%s10406_s0 + $0x760] sm:$0xf0]  ;;  %v10617_v47 = vld [vmem:[#allocation76_spill] sm:$0xff] }
 0x4db   :  { %v10615_v60 = vmax.f32 %v9291_v20, %v9440_v26  ;;  %v10616_v63 = vld [vmem:[#allocation26_spill] sm:$0xff]  ;;  %v5679_v54 = vor.u32 %v6496_v25, %v5678_v15  ;;  %v5658_v0 = vld [vmem:[%s10406_s0 + $0x738] sm:$0xf]  ;;  %v6491_v27 = vld [vmem:[%s10406_s0 + $0x73c] sm:$0xf]  ;;  %v3530_v21 = vadd.f32 %v9639_v42, %v9637_v40 }
 0x4dc   :  { %v4568_v16 = vpack.c.bf16 %v4561_v30, %v4561_v30  ;;  %v4656_v24 = vadd.f32 %v9753_v58, %v4649_v13  ;;  %v4541_v36 = vmax.f32 %v4092_v4, %v4109_v23  ;;  %v3693_v6 = vadd.f32 %v10617_v47, %v10616_v63  ;;  %v5660_v62 = vld [vmem:[%s10406_s0 + $0x744] sm:$0xf0]  ;;  %v10624_v15 = vld [vmem:[#allocation58_spill] sm:$0xff]  ;;  %v10625_v25 = vld [vmem:[#allocation61_spill] sm:$0xff] }
 0x4dd   :  { %v9792_v12 = vpop.f32.mrf.mxu2  ;;  %v4258_v48 = vpop.f32.mrf.mxu3  ;;  %v10618_v30 = vmax.f32 %v9293_v59, %v9444_v5  ;;  %v10626_v63 = vmax.f32 %v10624_v15, %v10625_v25  ;;  %v10635_v15 = vld [vmem:[#allocation31_spill] sm:$0xff]  ;;  %v10636_v25 = vld [vmem:[#allocation81_spill] sm:$0xff] }
 0x4de   :  { %4575 = vst.msk [vmem:[%s10408_s3 + $0x74] sm:$0xf] %vm4377_vm1, %v4568_v16  ;;  %v4663_v37 = vmax.f32 %v4656_v24, 0.0  ;;  %v4548_v55 = vmax.f32 %v10614_v39, %v4541_v36  ;;  %v4259_v52 = vadd.f32 %v4258_v48, %v3690_v28  ;;  %v2973_v34 = vpop.f32.mrf.mxu0  ;;  %v6583_v28 = vld [vmem:[%s10406_s0 + $0xa18] sm:$0xf0]  ;;  %v10619_v16 = vld [vmem:[#allocation27_spill] sm:$0xff] }
 0x4df   :  { %v3542_v46 = vpop.f32.mrf.mxu1 }
 0x4e0   :  { %v4670_v57 = vpack.c.bf16 %v4663_v37, %v4663_v37  ;;  %v4555_v35 = vadd.f32 %v9753_v58, %v4548_v55  ;;  %v4643_v56 = vmax.f32 %v4242_v29, %v4259_v52  ;;  %v3543_v14 = vadd.f32 %v3542_v46, %v2973_v34 }
 0x4e1   :  { %3012 = vmatmul.bf16.gmra.mxu0 %v5647_v7  ;;  %v10621_v37 = vmax.f32 %v9318_v32, %v9459_v41  ;;  %v5663_v34 = vor.u32 %v6491_v27, %v5660_v62  ;;  %v5690_v32 = vld [vmem:[%s10406_s0 + $0x770] sm:$0xf]  ;;  %v6499_v41 = vld [vmem:[%s10406_s0 + $0x778] sm:$0xf0]  ;;  %v10630_v62 = vld [vmem:[#allocation59_spill] sm:$0xff] }
 0x4e2   :  { %4677 = vst.msk [vmem:[%s10408_s3 + $0xbc] sm:$0xf] %vm4377_vm1, %v4670_v57  ;;  %v4562_v44 = vmax.f32 %v4555_v35, 0.0  ;;  %v4650_v61 = vmax.f32 %v10615_v60, %v4643_v56  ;;  %v4112_v51 = vadd.f32 %v9716_v45, %v3543_v14  ;;  %3581 = vmatmul.bf16.gmra.mxu1 %v5651_v53  ;;  %6254 = vmatmul.msk.bf16.gmra.mxu3 %vm2287_vm0, %v6015_v22  ;;  %v10622_v14 = vld [vmem:[#allocation28_spill] sm:$0xff] }
 0x4e3   :  { %v3528_v45 = vadd.f32 %v9622_v18, %v9620_v1  ;;  %v5659_v53 = vor.u32 %v6492_v50, %v5658_v0  ;;  %v4099_v57 = vadd.f32 %v9587_v31, %v3530_v21 }
 0x4e4   :  { %v4569_v8 = vpack.c.bf16 %v4562_v44, %v4562_v44  ;;  %v4657_v20 = vadd.f32 %v9753_v58, %v4650_v61  ;;  %v4542_v26 = vmax.f32 %v4094_v9, %v4112_v51  ;;  %v10623_v9 = vld [vmem:[#allocation78_spill] sm:$0xff] }
 0x4e5   :  { %v9823_v10 = vpop.f32.mrf.mxu2  ;;  %v4261_v49 = vpop.f32.mrf.mxu3  ;;  %v4097_v59 = vadd.f32 %v9572_v38, %v3528_v45  ;;  %v6026_v38 = vld [vmem:[%s10406_s0 + $0xa10] sm:$0xf]  ;;  %v3698_v44 = vadd.f32 %v10623_v9, %v10622_v14 }
 0x4e6   :  { %4576 = vst.msk [vmem:[%s10408_s3 + $0x78] sm:$0xf] %vm4377_vm1, %v4569_v8  ;;  %v4664_v4 = vmax.f32 %v4657_v20, 0.0  ;;  %v4549_v43 = vmax.f32 %v10618_v30, %v4542_v26  ;;  %v9832_v13 = vadd.f32 %v4261_v49, %v3693_v6  ;;  %v2975_v23 = vpop.f32.mrf.mxu0  ;;  %v6027_v22 = vor.u32 %v6583_v28, %v6026_v38  ;;  %v10631_v38 = vld [vmem:[#allocation62_spill] sm:$0xff] }
 0x4e7   :  { %v3544_v33 = vpop.f32.mrf.mxu1  ;;  %v5691_v20 = vor.u32 %v6499_v41, %v5690_v32  ;;  %v10632_v28 = vmax.f32 %v10630_v62, %v10631_v38  ;;  %v6501_v62 = vld [vmem:[%s10406_s0 + $0x788] sm:$0xf0]  ;;  %v6500_v38 = vld [vmem:[%s10406_s0 + $0x784] sm:$0xf] }
 0x4e8   :  { %v4671_v11 = vpack.c.bf16 %v4664_v4, %v4664_v4  ;;  %v4556_v18 = vadd.f32 %v9753_v58, %v4549_v43  ;;  %v3545_v1 = vadd.f32 %v3544_v33, %v2975_v23  ;;  %v6495_v23 = vld [vmem:[%s10406_s0 + $0x758] sm:$0xf0]  ;;  %v5672_v33 = vld [vmem:[%s10406_s0 + $0x75c] sm:$0xf0] }
 0x4ea   :  { %4678 = vst.msk [vmem:[%s10408_s3 + $0xc0] sm:$0xf] %vm4377_vm1, %v4671_v11  ;;  %v4563_v5 = vmax.f32 %v4556_v18, 0.0  ;;  %v4114_v17 = vadd.f32 %v9741_v2, %v3545_v1  ;;  %6226 = vmatmul.msk.bf16.gmra.mxu2 %vm2287_vm0, %v5679_v54  ;;  %v10620_v2 = vld [vmem:[#allocation77_spill] sm:$0xff]  ;;  %v6494_v54 = vld [vmem:[%s10406_s0 + $0x754] sm:$0xf] }
 0x4eb   :  { %v3695_v24 = vadd.f32 %v10620_v2, %v10619_v16  ;;  %v6038_v11 = vld [vmem:[%s10406_s0 + $0xa28] sm:$0xf]  ;;  %v10628_v18 = vld [vmem:[#allocation29_spill] sm:$0xff] }
 0x4ec   :  { %v4570_v36 = vpack.c.bf16 %v4563_v5, %v4563_v5  ;;  %v4543_v29 = vmax.f32 %v4097_v59, %v4114_v17  ;;  %v10629_v1 = vld [vmem:[#allocation79_spill] sm:$0xff] }
 0x4ed   :  { %v4121_v48 = vpop.f32.mrf.mxu2  ;;  %v4263_v7 = vpop.f32.mrf.mxu3  ;;  %v3700_v0 = vadd.f32 %v10629_v1, %v10628_v18 }
 0x4ee   :  { %4577 = vst.msk [vmem:[%s10408_s3 + $0x7c] sm:$0xf] %vm4377_vm1, %v4570_v36  ;;  %v4550_v39 = vmax.f32 %v10621_v37, %v4543_v29  ;;  %v9871_v55 = vadd.f32 %v4263_v7, %v3695_v24  ;;  %v2978_v52 = vpop.f32.mrf.mxu0  ;;  %v5675_v36 = vor.u32 %v6494_v54, %v5672_v33  ;;  %v10637_v54 = vld [vmem:[#allocation32_spill] sm:$0xff]  ;;  %v10638_v33 = vld [vmem:[#allocation82_spill] sm:$0xff] }
 0x4ef   :  { %v3547_v46 = vpop.f32.mrf.mxu1 }
 0x4f0   :  { %v4557_v40 = vadd.f32 %v9753_v58, %v4550_v39  ;;  %v3548_v42 = vadd.f32 %v3547_v46, %v2978_v52  ;;  %v5702_v52 = vld [vmem:[%s10406_s0 + $0x788] sm:$0xf]  ;;  %v10634_v46 = vld [vmem:[#allocation80_spill] sm:$0xff] }
 0x4f1   :  { %3017 = vmatmul.bf16.gmra.mxu0 %v5659_v53 }
 0x4f2   :  { %v4564_v35 = vmax.f32 %v4557_v40, 0.0  ;;  %v4117_v56 = vadd.f32 %v9792_v12, %v3548_v42  ;;  %3586 = vmatmul.bf16.gmra.mxu1 %v5663_v34  ;;  %6255 = vmatmul.msk.bf16.gmra.mxu3 %vm2287_vm0, %v6027_v22  ;;  %v3533_v12 = vadd.f32 %v9668_v3, %v9666_v19  ;;  %v5670_v3 = vld [vmem:[%s10406_s0 + $0x750] sm:$0xf]  ;;  %v10627_v19 = vld [vmem:[#allocation63_spill] sm:$0xff]  ;;  %v6502_v34 = vld [vmem:[%s10406_s0 + $0x790] sm:$0xf0] }
 0x4f3   :  { %v5671_v27 = vor.u32 %v6495_v23, %v5670_v3  ;;  %v10633_v22 = vld [vmem:[#allocation30_spill] sm:$0xff]  ;;  %v5703_v32 = vor.u32 %v6502_v34, %v5702_v52  ;;  %v6505_v23 = vld [vmem:[%s10406_s0 + $0x7a8] sm:$0xf0] }
 0x4f4   :  { %v4571_v60 = vpack.c.bf16 %v4564_v35, %v4564_v35  ;;  %v4544_v61 = vmax.f32 %v4099_v57, %v4117_v56  ;;  %v4102_v4 = vadd.f32 %v10627_v19, %v3533_v12  ;;  %v3703_v40 = vadd.f32 %v10634_v46, %v10633_v22  ;;  %v6589_v12 = vld [vmem:[%s10406_s0 + $0xa48] sm:$0xf0] }
 0x4f5   :  { %v4123_v31 = vpop.f32.mrf.mxu2  ;;  %v4266_v51 = vpop.f32.mrf.mxu3 }
 0x4f6   :  { %4578 = vst.msk [vmem:[%s10408_s3 + $0x80] sm:$0xf] %vm4377_vm1, %v4571_v60  ;;  %v4551_v47 = vmax.f32 %v10626_v63, %v4544_v61  ;;  %v9894_v6 = vadd.f32 %v4266_v51, %v3698_v44  ;;  %v2980_v8 = vpop.f32.mrf.mxu0  ;;  %v5682_v44 = vld [vmem:[%s10406_s0 + $0x768] sm:$0xf]  ;;  %v6498_v60 = vld [vmem:[%s10406_s0 + $0x770] sm:$0xf0]  ;;  %v3705_v63 = vadd.f32 %v10636_v25, %v10635_v15 }
 0x4f7   :  { %v3549_v26 = vpop.f32.mrf.mxu1  ;;  %v6497_v61 = vld [vmem:[%s10406_s0 + $0x76c] sm:$0xf]  ;;  %v5684_v51 = vld [vmem:[%s10406_s0 + $0x774] sm:$0xf0] }
 0x4f8   :  { %v4558_v45 = vadd.f32 %v9753_v58, %v4551_v47  ;;  %v3550_v49 = vadd.f32 %v3549_v26, %v2980_v8 }
 0x4fa   :  { %v4565_v30 = vmax.f32 %v4558_v45, 0.0  ;;  %v4119_v43 = vadd.f32 %v9823_v10, %v3550_v49  ;;  %6227 = vmatmul.msk.bf16.gmra.mxu2 %vm2287_vm0, %v5691_v20  ;;  %v6586_v10 = vld [vmem:[%s10406_s0 + $0xa30] sm:$0xf0]  ;;  %v5683_v20 = vor.u32 %v6498_v60, %v5682_v44  ;;  %v5687_v49 = vor.u32 %v6497_v61, %v5684_v51 }
 0x4fb   :  { %v6039_v29 = vor.u32 %v6586_v10, %v6038_v11  ;;  %v3708_v11 = vadd.f32 %v10638_v33, %v10637_v54 }
 0x4fc   :  { %v4572_v50 = vpack.c.bf16 %v4565_v30, %v4565_v30  ;;  %v4545_v59 = vmax.f32 %v4102_v4, %v4119_v43  ;;  %v5714_v43 = vld [vmem:[%s10406_s0 + $0x7a0] sm:$0xf] }
 0x4fd   :  { %v4126_v5 = vpop.f32.mrf.mxu2  ;;  %v4268_v17 = vpop.f32.mrf.mxu3 }
 0x4fe   :  { %4579 = vst.msk [vmem:[%s10408_s3 + $0x84] sm:$0xf] %vm4377_vm1, %v4572_v50  ;;  %v4552_v16 = vmax.f32 %v10632_v28, %v4545_v59  ;;  %v9927_v2 = vadd.f32 %v4268_v17, %v3700_v0  ;;  %v2983_v24 = vpop.f32.mrf.mxu0  ;;  %v5715_v50 = vor.u32 %v6505_v23, %v5714_v43  ;;  %v5696_v28 = vld [vmem:[%s10406_s0 + $0x78c] sm:$0xf0]  ;;  %v10645_v43 = vld [vmem:[#allocation85_spill] sm:$0xff] }
 0x4ff   :  { %v3552_v21 = vpop.f32.mrf.mxu1  ;;  %v5699_v22 = vor.u32 %v6500_v38, %v5696_v28  ;;  %v5738_v38 = vld [vmem:[%s10406_s0 + $0x7d0] sm:$0xf]  ;;  %v6511_v28 = vld [vmem:[%s10406_s0 + $0x7d8] sm:$0xf0] }
 0x500   :  { %v4559_v7 = vadd.f32 %v9753_v58, %v4552_v16  ;;  %v3553_v53 = vadd.f32 %v3552_v21, %v2983_v24  ;;  %v6062_v16 = vld [vmem:[%s10406_s0 + $0xa58] sm:$0xf]  ;;  %v6592_v24 = vld [vmem:[%s10406_s0 + $0xa60] sm:$0xf0] }
 0x501   :  { %3022 = vmatmul.bf16.gmra.mxu0 %v5671_v27  ;;  %v5694_v27 = vld [vmem:[%s10406_s0 + $0x780] sm:$0xf]  ;;  %v6063_v46 = vor.u32 %v6592_v24, %v6062_v16  ;;  %v10647_v16 = vld [vmem:[#allocation36_spill] sm:$0xff] }
 0x502   :  { %v4566_v37 = vmax.f32 %v4559_v7, 0.0  ;;  %v9930_v39 = vadd.f32 %v4121_v48, %v3553_v53  ;;  %3591 = vmatmul.bf16.gmra.mxu1 %v5675_v36  ;;  %6256 = vmatmul.msk.bf16.gmra.mxu3 %vm2287_vm0, %v6039_v29  ;;  %v10639_v36 = vld [vmem:[#allocation33_spill] sm:$0xff]  ;;  %v10640_v29 = vld [vmem:[#allocation83_spill] sm:$0xff]  ;;  %v10648_v24 = vld [vmem:[#allocation86_spill] sm:$0xff] }
 0x503   :  { %v3710_v21 = vadd.f32 %v10640_v29, %v10639_v36  ;;  %v3718_v36 = vadd.f32 %v10648_v24, %v10647_v16 }
 0x504   :  { %v4573_v42 = vpack.c.bf16 %v4566_v37, %v4566_v37  ;;  %v5695_v37 = vor.u32 %v6501_v62, %v5694_v27 }
 0x505   :  { %v4128_v57 = vpop.f32.mrf.mxu2  ;;  %v4271_v35 = vpop.f32.mrf.mxu3 }
 0x506   :  { %4580 = vst.msk [vmem:[%s10408_s3 + $0x88] sm:$0xf] %vm4377_vm1, %v4573_v42  ;;  %v9945_v48 = vadd.f32 %v4271_v35, %v3703_v40  ;;  %v2985_v56 = vpop.f32.mrf.mxu0 }
 0x507   :  { %v3554_v41 = vpop.f32.mrf.mxu1 }
 0x508   :  { %v3555_v14 = vadd.f32 %v3554_v41, %v2985_v56  ;;  %v5726_v56 = vld [vmem:[%s10406_s0 + $0x7b8] sm:$0xf]  ;;  %v10641_v41 = vld [vmem:[#allocation34_spill] sm:$0xff] }
 0x50a   :  { %v9947_v9 = vadd.f32 %v4123_v31, %v3555_v14  ;;  %6228 = vmatmul.msk.bf16.gmra.mxu2 %vm2287_vm0, %v5703_v32  ;;  %v6050_v31 = vld [vmem:[%s10406_s0 + $0xa40] sm:$0xf]  ;;  %v6508_v32 = vld [vmem:[%s10406_s0 + $0x7c0] sm:$0xf0]  ;;  %v10642_v14 = vld [vmem:[#allocation84_spill] sm:$0xff] }
 0x50b   :  { %v6051_v3 = vor.u32 %v6589_v12, %v6050_v31  ;;  %v3713_v44 = vadd.f32 %v10642_v14, %v10641_v41  ;;  %v5727_v12 = vor.u32 %v6508_v32, %v5726_v56  ;;  %v6507_v56 = vld [vmem:[%s10406_s0 + $0x7b8] sm:$0xf0]  ;;  %v6506_v32 = vld [vmem:[%s10406_s0 + $0x7b4] sm:$0xf]  ;;  %v5720_v41 = vld [vmem:[%s10406_s0 + $0x7bc] sm:$0xf0] }
 0x50c   :  { %v10649_v14 = vld [vmem:[#allocation37_spill] sm:$0xff] }
 0x50d   :  { %v4131_v47 = vpop.f32.mrf.mxu2  ;;  %v4273_v8 = vpop.f32.mrf.mxu3 }
 0x50e   :  { %v9970_v26 = vadd.f32 %v4273_v8, %v3705_v63  ;;  %v2988_v45 = vpop.f32.mrf.mxu0  ;;  %v5706_v8 = vld [vmem:[%s10406_s0 + $0x798] sm:$0xf] }
 0x50f   :  { %v3557_v19 = vpop.f32.mrf.mxu1 }
 0x510   :  { %v3558_v4 = vadd.f32 %v3557_v19, %v2988_v45  ;;  %v6503_v45 = vld [vmem:[%s10406_s0 + $0x79c] sm:$0xf] }
 0x511   :  { %3027 = vmatmul.bf16.gmra.mxu0 %v5683_v20  ;;  %v6504_v20 = vld [vmem:[%s10406_s0 + $0x7a0] sm:$0xf0]  ;;  %v6595_v19 = vld [vmem:[%s10406_s0 + $0xa78] sm:$0xf0] }
 0x512   :  { %v9972_v30 = vadd.f32 %v4126_v5, %v3558_v4  ;;  %3596 = vmatmul.bf16.gmra.mxu1 %v5687_v49  ;;  %6257 = vmatmul.msk.bf16.gmra.mxu3 %vm2287_vm0, %v6051_v3  ;;  %v5708_v49 = vld [vmem:[%s10406_s0 + $0x7a4] sm:$0xf0]  ;;  %v6074_v3 = vld [vmem:[%s10406_s0 + $0xa70] sm:$0xf] }
 0x513   :  { %v10644_v4 = vld [vmem:[#allocation35_spill] sm:$0xff] }
 0x514   :  { %v3715_v23 = vadd.f32 %v10645_v43, %v10644_v4  ;;  %v5750_v4 = vld [vmem:[%s10406_s0 + $0x7e8] sm:$0xf]  ;;  %v6514_v43 = vld [vmem:[%s10406_s0 + $0x7f0] sm:$0xf0] }
 0x515   :  { %v4133_v10 = vpop.f32.mrf.mxu2  ;;  %v4276_v18 = vpop.f32.mrf.mxu3 }
 0x516   :  { %v9983_v1 = vadd.f32 %v4276_v18, %v3708_v11  ;;  %v2990_v0 = vpop.f32.mrf.mxu0  ;;  %v5707_v11 = vor.u32 %v6504_v20, %v5706_v8  ;;  %v5723_v20 = vor.u32 %v6506_v32, %v5720_v41 }
 0x517   :  { %v3559_v59 = vpop.f32.mrf.mxu1 }
 0x518   :  { %v3560_v5 = vadd.f32 %v3559_v59, %v2990_v0  ;;  %v5711_v0 = vor.u32 %v6503_v45, %v5708_v49 }
 0x51a   :  { %v9985_v17 = vadd.f32 %v4128_v57, %v3560_v5  ;;  %6229 = vmatmul.msk.bf16.gmra.mxu2 %vm2287_vm0, %v5715_v50  ;;  %v6075_v50 = vor.u32 %v6595_v19, %v6074_v3 }
 0x51d   :  { %v4136_v7 = vpop.f32.mrf.mxu2  ;;  %v4278_v53 = vpop.f32.mrf.mxu3 }
 0x51e   :  { %v10008_v52 = vadd.f32 %v4278_v53, %v3710_v21  ;;  %v2993_v34 = vpop.f32.mrf.mxu0 }
 0x51f   :  { %v3562_v40 = vpop.f32.mrf.mxu1 }
 0x520   :  { %v4679_v42 = vmax.f32 %v9832_v13, %v10008_v52  ;;  %v3563_v57 = vadd.f32 %v3562_v40, %v2993_v34 }
 0x521   :  { %3032 = vmatmul.bf16.gmra.mxu0 %v5695_v37  ;;  %v5739_v37 = vor.u32 %v6511_v28, %v5738_v38 }
 0x522   :  { %v10012_v35 = vadd.f32 %v4131_v47, %v3563_v57  ;;  %3601 = vmatmul.bf16.gmra.mxu1 %v5699_v22  ;;  %6258 = vmatmul.msk.bf16.gmra.mxu3 %vm2287_vm0, %v6063_v46  ;;  %v5718_v57 = vld [vmem:[%s10406_s0 + $0x7b0] sm:$0xf] }
 0x525   :  { %v4138_v60 = vpop.f32.mrf.mxu2  ;;  %v4281_v61 = vpop.f32.mrf.mxu3 }
 0x526   :  { %v10023_v51 = vadd.f32 %v4281_v61, %v3713_v44  ;;  %v2995_v31 = vpop.f32.mrf.mxu0  ;;  %v10650_v44 = vld [vmem:[#allocation87_spill] sm:$0xff] }
 0x527   :  { %v3564_v15 = vpop.f32.mrf.mxu1 }
 0x528   :  { %v3565_v63 = vadd.f32 %v3564_v15, %v2995_v31  ;;  %v5719_v15 = vor.u32 %v6507_v56, %v5718_v57  ;;  %v10667_v52 = vmax.f32 %v9871_v55, %v10023_v51 }
 0x52a   :  { %v10027_v47 = vadd.f32 %v4133_v10, %v3565_v63  ;;  %6230 = vmatmul.msk.bf16.gmra.mxu2 %vm2287_vm0, %v5727_v12 }
 0x52c   :  { %10643 = vst [vmem:[#allocation14_spill] sm:$0xff] %v10027_v47  ;;  %v10666_v47 = vld [vmem:[#allocation98_spill] sm:$0xff] }
 0x52d   :  { %v4141_v54 = vpop.f32.mrf.mxu2  ;;  %v4283_v33 = vpop.f32.mrf.mxu3 }
 0x52e   :  { %v10050_v10 = vadd.f32 %v4283_v33, %v3715_v23  ;;  %v2998_v18 = vpop.f32.mrf.mxu0  ;;  %v10651_v23 = vld [vmem:[#allocation38_spill] sm:$0xff]  ;;  %v10652_v33 = vld [vmem:[#allocation88_spill] sm:$0xff] }
 0x52f   :  { %v3567_v59 = vpop.f32.mrf.mxu1 }
 0x530   :  { %v3568_v27 = vadd.f32 %v3567_v59, %v2998_v18  ;;  %v10674_v51 = vmax.f32 %v9894_v6, %v10050_v10 }
 0x531   :  { %3037 = vmatmul.bf16.gmra.mxu0 %v5707_v11  ;;  %v3723_v11 = vadd.f32 %v10652_v33, %v10651_v23 }
 0x532   :  { %v10054_v62 = vadd.f32 %v4136_v7, %v3568_v27  ;;  %3606 = vmatmul.bf16.gmra.mxu1 %v5711_v0  ;;  %6259 = vmatmul.msk.bf16.gmra.mxu3 %vm2287_vm0, %v6075_v50  ;;  %v5751_v27 = vor.u32 %v6514_v43, %v5750_v4  ;;  %v10660_v4 = vld [vmem:[#allocation47_spill] sm:$0xff] }
 0x534   :  { %10646 = vst [vmem:[#allocation66_spill] sm:$0xff] %v10054_v62  ;;  %v10663_v62 = vld [vmem:[#allocation41_spill] sm:$0xff] }
 0x535   :  { %v4143_v29 = vpop.f32.mrf.mxu2  ;;  %v4286_v21 = vpop.f32.mrf.mxu3 }
 0x536   :  { %v10065_v53 = vadd.f32 %v4286_v21, %v3718_v36  ;;  %v3000_v7 = vpop.f32.mrf.mxu0  ;;  %v5730_v36 = vld [vmem:[%s10406_s0 + $0x7c8] sm:$0xf]  ;;  %v6510_v21 = vld [vmem:[%s10406_s0 + $0x7d0] sm:$0xf0] }
 0x537   :  { %v3569_v34 = vpop.f32.mrf.mxu1  ;;  %v5731_v41 = vor.u32 %v6510_v21, %v5730_v36 }
 0x538   :  { %v3570_v46 = vadd.f32 %v3569_v34, %v3000_v7  ;;  %v6509_v7 = vld [vmem:[%s10406_s0 + $0x7cc] sm:$0xf]  ;;  %v10654_v34 = vld [vmem:[#allocation89_spill] sm:$0xff] }
 0x53a   :  { %v10069_v40 = vadd.f32 %v4138_v60, %v3570_v46  ;;  %6231 = vmatmul.msk.bf16.gmra.mxu2 %vm2287_vm0, %v5739_v37  ;;  %v3720_v60 = vadd.f32 %v10650_v44, %v10649_v14  ;;  %v5732_v37 = vld [vmem:[%s10406_s0 + $0x7d4] sm:$0xf0] }
 0x53d   :  { %v4146_v31 = vpop.f32.mrf.mxu2  ;;  %v4288_v12 = vpop.f32.mrf.mxu3 }
 0x53e   :  { %v10088_v63 = vadd.f32 %v4288_v12, %v3720_v60  ;;  %v3003_v8 = vpop.f32.mrf.mxu0  ;;  %v5735_v60 = vor.u32 %v6509_v7, %v5732_v37 }
 0x53f   :  { %v3572_v45 = vpop.f32.mrf.mxu1 }
 0x540   :  { %v3573_v3 = vadd.f32 %v3572_v45, %v3003_v8  ;;  %v5762_v45 = vld [vmem:[%s10406_s0 + $0x800] sm:$0xf] }
 0x541   :  { %3042 = vmatmul.bf16.gmra.mxu0 %v5719_v15  ;;  %v10661_v15 = vld [vmem:[#allocation97_spill] sm:$0xff] }
 0x542   :  { %v10092_v19 = vadd.f32 %v4141_v54, %v3573_v3  ;;  %3611 = vmatmul.bf16.gmra.mxu1 %v5723_v20  ;;  %v6517_v3 = vld [vmem:[%s10406_s0 + $0x808] sm:$0xf0]  ;;  %v3745_v57 = vadd.f32 %v10661_v15, %v10660_v4 }
 0x545   :  { %v4148_v0 = vpop.f32.mrf.mxu2  ;;  %v4291_v50 = vpop.f32.mrf.mxu3 }
 0x546   :  { %v10104_v59 = vadd.f32 %v4291_v50, %v3723_v11  ;;  %v3005_v54 = vpop.f32.mrf.mxu0  ;;  %v5763_v11 = vor.u32 %v6517_v3, %v5762_v45 }
 0x547   :  { %v3574_v38 = vpop.f32.mrf.mxu1 }
 0x548   :  { %v3575_v16 = vadd.f32 %v3574_v38, %v3005_v54 }
 0x54a   :  { %v10108_v24 = vadd.f32 %v4143_v29, %v3575_v16  ;;  %6232 = vmatmul.msk.bf16.gmra.mxu2 %vm2287_vm0, %v5751_v27  ;;  %v10653_v29 = vld [vmem:[#allocation39_spill] sm:$0xff] }
 0x54b   :  { %v3725_v46 = vadd.f32 %v10654_v34, %v10653_v29  ;;  %v10659_v29 = vld [vmem:[#allocation90_spill] sm:$0xff] }
 0x54d   :  { %v4151_v56 = vpop.f32.mrf.mxu2  ;;  %v4293_v32 = vpop.f32.mrf.mxu3 }
 0x54e   :  { %v10127_v14 = vadd.f32 %v4293_v32, %v3725_v46  ;;  %v3008_v44 = vpop.f32.mrf.mxu0 }
 0x54f   :  { %v3577_v12 = vpop.f32.mrf.mxu1 }
 0x550   :  { %v3578_v8 = vadd.f32 %v3577_v12, %v3008_v44 }
 0x551   :  { %3047 = vmatmul.bf16.gmra.mxu0 %v5731_v41 }
 0x552   :  { %v10131_v20 = vadd.f32 %v4146_v31, %v3578_v8  ;;  %3616 = vmatmul.bf16.gmra.mxu1 %v5735_v60  ;;  %v10658_v60 = vld [vmem:[#allocation40_spill] sm:$0xff] }
 0x553   :  { %v3728_v27 = vadd.f32 %v10659_v29, %v10658_v60  ;;  %v10665_v60 = vld [vmem:[#allocation48_spill] sm:$0xff] }
 0x554   :  { %v3748_v15 = vadd.f32 %v10666_v47, %v10665_v60  ;;  %v10669_v47 = vld [vmem:[#allocation92_spill] sm:$0xff] }
 0x555   :  { %v4153_v43 = vpop.f32.mrf.mxu2  ;;  %v4296_v23 = vpop.f32.mrf.mxu3 }
 0x556   :  { %v3010_v33 = vpop.f32.mrf.mxu0  ;;  %v4297_v49 = vadd.f32 %v4296_v23, %v3728_v27 }
 0x557   :  { %v3579_v50 = vpop.f32.mrf.mxu1 }
 0x558   :  { %v3580_v54 = vadd.f32 %v3579_v50, %v3010_v33 }
 0x55a   :  { %v10141_v31 = vadd.f32 %v4148_v0, %v3580_v54  ;;  %6233 = vmatmul.msk.bf16.gmra.mxu2 %vm2287_vm0, %v5763_v11 }
 0x55d   :  { %v10146_v38 = vpop.f32.mrf.mxu2  ;;  %v4298_v16 = vpop.f32.mrf.mxu3 }
 0x55e   :  { %v3013_v36 = vpop.f32.mrf.mxu0 }
 0x55f   :  { %v3582_v21 = vpop.f32.mrf.mxu1 }
 0x560   :  { %v3583_v7 = vadd.f32 %v3582_v21, %v3013_v36 }
 0x562   :  { %v10148_v37 = vadd.f32 %v4151_v56, %v3583_v7 }
 0x564   :  { %10655 = vst [vmem:[#allocation15_spill] sm:$0xff] %v10148_v37  ;;  %v10664_v37 = vld [vmem:[#allocation91_spill] sm:$0xff] }
 0x565   :  { %v10152_v34 = vpop.f32.mrf.mxu2  ;;  %v4301_v0 = vpop.f32.mrf.mxu3  ;;  %v3730_v29 = vadd.f32 %v10664_v37, %v10663_v62  ;;  %v10671_v37 = vld [vmem:[#allocation99_spill] sm:$0xff] }
 0x566   :  { %v3015_v46 = vpop.f32.mrf.mxu0 }
 0x567   :  { %v3584_v32 = vpop.f32.mrf.mxu1 }
 0x568   :  { %v3585_v41 = vadd.f32 %v3584_v32, %v3015_v46 }
 0x56a   :  { %v10154_v44 = vadd.f32 %v4153_v43, %v3585_v41 }
 0x56c   :  { %10656 = vst [vmem:[#allocation67_spill] sm:$0xff] %v10154_v44 }
 0x56d   :  { %v10158_v12 = vpop.f32.mrf.mxu2  ;;  %v4303_v8 = vpop.f32.mrf.mxu3 }
 0x56e   :  { %v3018_v45 = vpop.f32.mrf.mxu0 }
 0x56f   :  { %v3587_v56 = vpop.f32.mrf.mxu1 }
 0x575   :  { %v10160_v3 = vpop.f32.mrf.mxu2  ;;  %v10162_v33 = vpop.f32.mrf.mxu3 }
 0x576   :  { %v10164_v11 = vpop.f32.mrf.mxu0 }
 0x577   :  { %v10166_v50 = vpop.f32.mrf.mxu1 }
 0x57d   :  { %v10168_v54 = vpop.f32.mrf.mxu2  ;;  %v10170_v43 = vpop.f32.mrf.mxu3 }
 0x57e   :  { %v10172_v36 = vpop.f32.mrf.mxu0 }
 0x57f   :  { %v10174_v21 = vpop.f32.mrf.mxu1 }
 0x585   :  { %v10176_v7 = vpop.f32.mrf.mxu2  ;;  %v10178_v46 = vpop.f32.mrf.mxu3 }
 0x586   :  { %10657 = vst [vmem:[#allocation19_spill] sm:$0xff] %v10176_v7  ;;  %v10180_v32 = vpop.f32.mrf.mxu0 }
 0x587   :  { %v10182_v41 = vpop.f32.mrf.mxu1 }
 0x58d   :  { %v10188_v28 = vpop.f32.mrf.mxu2  ;;  %v4313_v18 = vpop.f32.mrf.mxu3 }
 0x58e   :  { %10662 = vst [vmem:[#allocation71_spill] sm:$0xff] %v10188_v28  ;;  %v4314_v61 = vadd.f32 %v4313_v18, %v3745_v57  ;;  %v10190_v22 = vpop.f32.mrf.mxu0  ;;  %v4299_v18 = vadd.f32 %v4298_v16, %v3730_v29  ;;  %v10670_v16 = vld [vmem:[#allocation49_spill] sm:$0xff] }
 0x58f   :  { %v10192_v5 = vpop.f32.mrf.mxu1 }
 0x590   :  { %v4686_v25 = vmax.f32 %v4297_v49, %v4314_v61 }
 0x592   :  { %v4693_v44 = vmax.f32 %v4679_v42, %v4686_v25  ;;  %v10668_v25 = vld [vmem:[#allocation42_spill] sm:$0xff] }
 0x593   :  { %v3733_v62 = vadd.f32 %v10669_v47, %v10668_v25  ;;  %v10677_v25 = vld [vmem:[#allocation50_spill] sm:$0xff]  ;;  %v10678_v47 = vld [vmem:[#allocation100_spill] sm:$0xff] }
 0x594   :  { %v4700_v4 = vadd.f32 %v9753_v58, %v4693_v44  ;;  %v3750_v44 = vadd.f32 %v10671_v37, %v10670_v16 }
 0x595   :  { %v4173_v28 = vpop.f32.mrf.mxu2  ;;  %v4316_v23 = vpop.f32.mrf.mxu3 }
 0x596   :  { %v4707_v57 = vmax.f32 %v4700_v4, 0.0  ;;  %v4317_v27 = vadd.f32 %v4316_v23, %v3748_v15  ;;  %v10202_v7 = vpop.f32.mrf.mxu0  ;;  %v4302_v4 = vadd.f32 %v4301_v0, %v3733_v62  ;;  %v3753_v62 = vadd.f32 %v10678_v47, %v10677_v25 }
 0x597   :  { %v10204_v61 = vpop.f32.mrf.mxu1 }
 0x598   :  { %v4714_v49 = vpack.c.bf16 %v4707_v57, %v4707_v57  ;;  %v4687_v13 = vmax.f32 %v4299_v18, %v4317_v27 }
 0x59a   :  { %4721 = vst.msk [vmem:[%s10408_s3 + $0xc4] sm:$0xf] %vm4377_vm1, %v4714_v49  ;;  %v4694_v42 = vmax.f32 %v10667_v52, %v4687_v13  ;;  %v10675_v52 = vld [vmem:[#allocation43_spill] sm:$0xff] }
 0x59c   :  { %v4701_v29 = vadd.f32 %v9753_v58, %v4694_v42  ;;  %v10676_v42 = vld [vmem:[#allocation93_spill] sm:$0xff] }
 0x59d   :  { %v4176_v60 = vpop.f32.mrf.mxu2  ;;  %v4318_v15 = vpop.f32.mrf.mxu3  ;;  %v3735_v0 = vadd.f32 %v10676_v42, %v10675_v52  ;;  %v10682_v52 = vld [vmem:[#allocation51_spill] sm:$0xff]  ;;  %v10683_v42 = vld [vmem:[#allocation101_spill] sm:$0xff] }
 0x59e   :  { %v4708_v23 = vmax.f32 %v4701_v29, 0.0  ;;  %v4319_v18 = vadd.f32 %v4318_v15, %v3750_v44  ;;  %v10218_v57 = vpop.f32.mrf.mxu0  ;;  %v3588_v15 = vadd.f32 %v3587_v56, %v3018_v45  ;;  %v10680_v45 = vld [vmem:[#allocation44_spill] sm:$0xff]  ;;  %v10681_v56 = vld [vmem:[#allocation94_spill] sm:$0xff] }
 0x59f   :  { %10672 = vst [vmem:[#allocation20_spill] sm:$0xff] %v10218_v57  ;;  %v10220_v27 = vpop.f32.mrf.mxu1  ;;  %v4304_v29 = vadd.f32 %v4303_v8, %v3735_v0  ;;  %v3755_v0 = vadd.f32 %v10683_v42, %v10682_v52 }
 0x5a0   :  { %10673 = vst [vmem:[#allocation21_spill] sm:$0xff] %v10220_v27  ;;  %v4715_v49 = vpack.c.bf16 %v4708_v23, %v4708_v23  ;;  %v4688_v55 = vmax.f32 %v4302_v4, %v4319_v18  ;;  %v4157_v10 = vadd.f32 %v10146_v38, %v3588_v15 }
 0x5a2   :  { %4722 = vst.msk [vmem:[%s10408_s3 + $0xc8] sm:$0xf] %vm4377_vm1, %v4715_v49  ;;  %v4695_v13 = vmax.f32 %v10674_v51, %v4688_v55  ;;  %v10679_v55 = vmax.f32 %v9927_v2, %v10065_v53  ;;  %v10684_v53 = vmax.f32 %v9930_v39, %v10069_v40  ;;  %v10685_v39 = vmax.f32 %v9945_v48, %v10088_v63 }
 0x5a3   :  { %v10690_v63 = vmax.f32 %v9947_v9, %v10092_v19  ;;  %v10691_v9 = vmax.f32 %v9970_v26, %v10104_v59  ;;  %v10696_v59 = vmax.f32 %v9972_v30, %v10108_v24  ;;  %v10697_v30 = vmax.f32 %v9983_v1, %v10127_v14 }
 0x5a4   :  { %v4702_v16 = vadd.f32 %v9753_v58, %v4695_v13  ;;  %v3738_v13 = vadd.f32 %v10681_v56, %v10680_v45  ;;  %v10698_v1 = vmax.f32 %v9985_v17, %v10131_v20 }
 0x5a5   :  { %v4178_v37 = vpop.f32.mrf.mxu2  ;;  %v4321_v44 = vpop.f32.mrf.mxu3 }
 0x5a6   :  { %v4709_v4 = vmax.f32 %v4702_v16, 0.0  ;;  %v4322_v23 = vadd.f32 %v4321_v44, %v3753_v62  ;;  %v3035_v18 = vpop.f32.mrf.mxu0  ;;  %v4307_v38 = vadd.f32 %v10162_v33, %v3738_v13 }
 0x5a7   :  { %v3604_v49 = vpop.f32.mrf.mxu1 }
 0x5a8   :  { %v4716_v27 = vpack.c.bf16 %v4709_v4, %v4709_v4  ;;  %v4689_v57 = vmax.f32 %v4304_v29, %v4322_v23  ;;  %v3605_v6 = vadd.f32 %v3604_v49, %v3035_v18  ;;  %v10686_v49 = vld [vmem:[#allocation45_spill] sm:$0xff] }
 0x5aa   :  { %4723 = vst.msk [vmem:[%s10408_s3 + $0xcc] sm:$0xf] %vm4377_vm1, %v4716_v27  ;;  %v4696_v51 = vmax.f32 %v10679_v55, %v4689_v57  ;;  %v4174_v8 = vadd.f32 %v4173_v28, %v3605_v6  ;;  %v3590_v27 = vadd.f32 %v10166_v50, %v10164_v11  ;;  %v10687_v6 = vld [vmem:[#allocation95_spill] sm:$0xff]  ;;  %v10688_v55 = vld [vmem:[#allocation52_spill] sm:$0xff] }
 0x5ac   :  { %v4703_v25 = vadd.f32 %v9753_v58, %v4696_v51  ;;  %v4588_v47 = vmax.f32 %v4157_v10, %v4174_v8  ;;  %v4159_v33 = vadd.f32 %v10152_v34, %v3590_v27  ;;  %v3740_v10 = vadd.f32 %v10687_v6, %v10686_v49  ;;  %v10689_v51 = vld [vmem:[#allocation102_spill] sm:$0xff] }
 0x5ad   :  { %v10248_v62 = vpop.f32.mrf.mxu2  ;;  %v4323_v16 = vpop.f32.mrf.mxu3  ;;  %v3758_v8 = vadd.f32 %v10689_v51, %v10688_v55 }
 0x5ae   :  { %v4710_v2 = vmax.f32 %v4703_v25, 0.0  ;;  %v4595_v28 = vmax.f32 %v10684_v53, %v4588_v47  ;;  %v4324_v57 = vadd.f32 %v4323_v16, %v3755_v0  ;;  %v3038_v44 = vpop.f32.mrf.mxu0  ;;  %v4309_v13 = vadd.f32 %v10170_v43, %v3740_v10 }
 0x5af   :  { %v3607_v29 = vpop.f32.mrf.mxu1  ;;  %v3593_v0 = vadd.f32 %v10174_v21, %v10172_v36 }
 0x5b0   :  { %v4717_v15 = vpack.c.bf16 %v4710_v2, %v4710_v2  ;;  %v4602_v4 = vadd.f32 %v9753_v58, %v4595_v28  ;;  %v4690_v23 = vmax.f32 %v4307_v38, %v4324_v57  ;;  %v3608_v18 = vadd.f32 %v3607_v29, %v3038_v44  ;;  %v10692_v28 = vld [vmem:[#allocation46_spill] sm:$0xff]  ;;  %v10693_v57 = vld [vmem:[#allocation96_spill] sm:$0xff]  ;;  %v10694_v29 = vld [vmem:[#allocation53_spill] sm:$0xff] }
 0x5b1   :  { %v4162_v36 = vadd.f32 %v10158_v12, %v3593_v0  ;;  %v3743_v44 = vadd.f32 %v10693_v57, %v10692_v28  ;;  %v10703_v57 = vld [vmem:[#allocation19_spill] sm:$0xff] }
 0x5b2   :  { %4724 = vst.msk [vmem:[%s10408_s3 + $0xd0] sm:$0xf] %vm4377_vm1, %v4717_v15  ;;  %v4609_v11 = vmax.f32 %v4602_v4, 0.0  ;;  %v4697_v40 = vmax.f32 %v10685_v39, %v4690_v23  ;;  %v4177_v50 = vadd.f32 %v4176_v60, %v3608_v18  ;;  %v10695_v15 = vld [vmem:[#allocation103_spill] sm:$0xff] }
 0x5b3   :  { %v3760_v4 = vadd.f32 %v10695_v15, %v10694_v29  ;;  %v10705_v29 = vld [vmem:[#allocation12_spill] sm:$0xff] }
 0x5b4   :  { %v4616_v45 = vpack.c.bf16 %v4609_v11, %v4609_v11  ;;  %v4704_v34 = vadd.f32 %v9753_v58, %v4697_v40  ;;  %v4589_v56 = vmax.f32 %v4159_v33, %v4177_v50  ;;  %v4312_v33 = vadd.f32 %v10178_v46, %v3743_v44 }
 0x5b5   :  { %v4183_v52 = vpop.f32.mrf.mxu2  ;;  %v4326_v42 = vpop.f32.mrf.mxu3  ;;  %v3595_v40 = vadd.f32 %v10182_v41, %v10180_v32 }
 0x5b6   :  { %4623 = vst.msk [vmem:[%s10408_s3 + $0x8c] sm:$0xf] %vm4377_vm1, %v4616_v45  ;;  %v4711_v48 = vmax.f32 %v4704_v34, 0.0  ;;  %v4596_v60 = vmax.f32 %v10690_v63, %v4589_v56  ;;  %v4327_v25 = vadd.f32 %v4326_v42, %v3758_v8  ;;  %v3040_v47 = vpop.f32.mrf.mxu0 }
 0x5b7   :  { %v3609_v38 = vpop.f32.mrf.mxu1  ;;  %v4164_v32 = vadd.f32 %v10160_v3, %v3595_v40  ;;  %v3598_v3 = vadd.f32 %v10192_v5, %v10190_v22 }
 0x5b8   :  { %v4718_v16 = vpack.c.bf16 %v4711_v48, %v4711_v48  ;;  %v4603_v43 = vadd.f32 %v9753_v58, %v4596_v60  ;;  %v4691_v27 = vmax.f32 %v4309_v13, %v4327_v25  ;;  %v3610_v2 = vadd.f32 %v3609_v38, %v3040_v47  ;;  %v10699_v47 = vld [vmem:[#allocation2_spill] sm:$0xff] }
 0x5b9   :  { %v4167_v25 = vadd.f32 %v10168_v54, %v3598_v3  ;;  %v10700_v38 = vld [vmem:[#allocation54_spill] sm:$0xff]  ;;  %v10701_v54 = vmax.f32 %v10012_v35, %v10141_v31  ;;  %v10716_v3 = vld [vmem:[#allocation9_spill] sm:$0xff] }
 0x5ba   :  { %4725 = vst.msk [vmem:[%s10408_s3 + $0xd4] sm:$0xf] %vm4377_vm1, %v4718_v16  ;;  %v4610_v21 = vmax.f32 %v4603_v43, 0.0  ;;  %v4698_v19 = vmax.f32 %v10691_v9, %v4691_v27  ;;  %v4179_v53 = vadd.f32 %v4178_v37, %v3610_v2  ;;  %v3623_v16 = vadd.f32 %v10700_v38, %v10699_v47  ;;  %v10721_v38 = vld [vmem:[#allocation66_spill] sm:$0xff] }
 0x5bb   :  { %v3600_v27 = vadd.f32 %v10204_v61, %v10202_v7  ;;  %v10704_v61 = vld [vmem:[#allocation60_spill] sm:$0xff] }
 0x5bc   :  { %v4617_v23 = vpack.c.bf16 %v4610_v21, %v4610_v21  ;;  %v4705_v12 = vadd.f32 %v9753_v58, %v4698_v19  ;;  %v4590_v18 = vmax.f32 %v4162_v36, %v4179_v53  ;;  %v10702_v19 = vld [vmem:[#allocation104_spill] sm:$0xff]  ;;  %v10706_v15 = vmax.f32 %v10704_v61, %v10705_v29 }
 0x5bd   :  { %v4186_v11 = vpop.f32.mrf.mxu2  ;;  %v4328_v39 = vpop.f32.mrf.mxu3  ;;  %v4169_v44 = vadd.f32 %v10703_v57, %v3600_v27 }
 0x5be   :  { %4624 = vst.msk [vmem:[%s10408_s3 + $0x90] sm:$0xf] %vm4377_vm1, %v4617_v23  ;;  %v4712_v26 = vmax.f32 %v4705_v12, 0.0  ;;  %v4597_v37 = vmax.f32 %v10696_v59, %v4590_v18  ;;  %v4329_v50 = vadd.f32 %v4328_v39, %v3760_v4  ;;  %v3043_v49 = vpop.f32.mrf.mxu0  ;;  %v10707_v12 = vld [vmem:[#allocation3_spill] sm:$0xff]  ;;  %v10710_v59 = vld [vmem:[#allocation21_spill] sm:$0xff] }
 0x5bf   :  { %v3612_v6 = vpop.f32.mrf.mxu1  ;;  %v10708_v18 = vld [vmem:[#allocation55_spill] sm:$0xff] }
 0x5c0   :  { %v4719_v10 = vpack.c.bf16 %v4712_v26, %v4712_v26  ;;  %v4604_v46 = vadd.f32 %v9753_v58, %v4597_v37  ;;  %v4692_v55 = vmax.f32 %v4312_v33, %v4329_v50  ;;  %v3613_v51 = vadd.f32 %v3612_v6, %v3043_v49  ;;  %v10709_v26 = vld [vmem:[#allocation20_spill] sm:$0xff]  ;;  %v10711_v49 = vld [vmem:[#allocation14_spill] sm:$0xff]  ;;  %v10712_v6 = vld [vmem:[#allocation15_spill] sm:$0xff] }
 0x5c1   :  { %v3625_v35 = vadd.f32 %v10708_v18, %v10707_v12  ;;  %v3603_v37 = vadd.f32 %v10710_v59, %v10709_v26  ;;  %v10731_v18 = vld [vmem:[#allocation11_spill] sm:$0xff] }
 0x5c2   :  { %4726 = vst.msk [vmem:[%s10408_s3 + $0xd8] sm:$0xf] %vm4377_vm1, %v4719_v10  ;;  %v4611_v41 = vmax.f32 %v4604_v46, 0.0  ;;  %v4699_v24 = vmax.f32 %v10697_v30, %v4692_v55  ;;  %v4182_v8 = vadd.f32 %v10248_v62, %v3613_v51  ;;  %v10714_v30 = vld [vmem:[#allocation6_spill] sm:$0xff] }
 0x5c4   :  { %v4618_v45 = vpack.c.bf16 %v4611_v41, %v4611_v41  ;;  %v4706_v34 = vadd.f32 %v9753_v58, %v4699_v24  ;;  %v4591_v56 = vmax.f32 %v4164_v32, %v4182_v8 }
 0x5c5   :  { %v4188_v13 = vpop.f32.mrf.mxu2 }
 0x5c6   :  { %4625 = vst.msk [vmem:[%s10408_s3 + $0x94] sm:$0xf] %vm4377_vm1, %v4618_v45  ;;  %v4713_v42 = vmax.f32 %v4706_v34, 0.0  ;;  %v4598_v14 = vmax.f32 %v10698_v1, %v4591_v56  ;;  %v3045_v0 = vpop.f32.mrf.mxu0  ;;  %v10715_v45 = vld [vmem:[#allocation71_spill] sm:$0xff] }
 0x5c7   :  { %v3614_v62 = vpop.f32.mrf.mxu1  ;;  %v4172_v34 = vadd.f32 %v10715_v45, %v3603_v37 }
 0x5c8   :  { %v4720_v48 = vpack.c.bf16 %v4713_v42, %v4713_v42  ;;  %v4605_v63 = vadd.f32 %v9753_v58, %v4598_v14  ;;  %v3615_v60 = vadd.f32 %v3614_v62, %v3045_v0  ;;  %v10717_v42 = vld [vmem:[#allocation64_spill] sm:$0xff] }
 0x5c9   :  { %v10718_v1 = vmax.f32 %v10716_v3, %v10717_v42  ;;  %v10719_v62 = vld [vmem:[#allocation4_spill] sm:$0xff] }
 0x5ca   :  { %4727 = vst.msk [vmem:[%s10408_s3 + $0xdc] sm:$0xf] %vm4377_vm1, %v4720_v48  ;;  %v4612_v5 = vmax.f32 %v4605_v63, 0.0  ;;  %v4184_v22 = vadd.f32 %v4183_v52, %v3615_v60  ;;  %v10720_v48 = vld [vmem:[#allocation56_spill] sm:$0xff] }
 0x5cb   :  { %v3628_v63 = vadd.f32 %v10720_v48, %v10719_v62 }
 0x5cc   :  { %v4619_v17 = vpack.c.bf16 %v4612_v5, %v4612_v5  ;;  %v4592_v20 = vmax.f32 %v4167_v25, %v4184_v22 }
 0x5cd   :  { %v4191_v43 = vpop.f32.mrf.mxu2 }
 0x5ce   :  { %4626 = vst.msk [vmem:[%s10408_s3 + $0x98] sm:$0xf] %vm4377_vm1, %v4619_v17  ;;  %v4599_v2 = vmax.f32 %v10701_v54, %v4592_v20  ;;  %v4192_v36 = vadd.f32 %v4191_v43, %v3623_v16  ;;  %v3048_v52 = vpop.f32.mrf.mxu0  ;;  %v10722_v16 = vld [vmem:[#allocation67_spill] sm:$0xff] }
 0x5cf   :  { %v3617_v21 = vpop.f32.mrf.mxu1  ;;  %v10723_v17 = vmax.f32 %v10721_v38, %v10722_v16  ;;  %v10724_v54 = vld [vmem:[#allocation7_spill] sm:$0xff] }
 0x5d0   :  { %v4606_v9 = vadd.f32 %v9753_v58, %v4599_v2  ;;  %v4630_v53 = vmax.f32 %v4192_v36, %v10702_v19  ;;  %v3618_v28 = vadd.f32 %v3617_v21, %v3048_v52  ;;  %v10725_v52 = vld [vmem:[#allocation10_spill] sm:$0xff]  ;;  %v10726_v21 = vld [vmem:[#allocation13_spill] sm:$0xff] }
 0x5d2   :  { %v4613_v7 = vmax.f32 %v4606_v9, 0.0  ;;  %v4644_v4 = vmax.f32 %v4630_v53, %v10706_v15  ;;  %v4187_v23 = vadd.f32 %v4186_v11, %v3618_v28  ;;  %v10713_v11 = vmax.f32 %v10711_v49, %v10712_v6  ;;  %v10728_v53 = vld [vmem:[#allocation5_spill] sm:$0xff] }
 0x5d3   :  { %v10727_v9 = vmax.f32 %v10725_v52, %v10726_v21  ;;  %v10729_v28 = vld [vmem:[#allocation57_spill] sm:$0xff] }
 0x5d4   :  { %v4620_v31 = vpack.c.bf16 %v4613_v7, %v4613_v7  ;;  %v4651_v33 = vadd.f32 %v9753_v58, %v4644_v4  ;;  %v4593_v39 = vmax.f32 %v4169_v44, %v4187_v23  ;;  %v6636_v58 = vld [vmem:[%s10407_s2] ss:$0 sm:$0xff]  ;;  %v3630_v57 = vadd.f32 %v10729_v28, %v10728_v53  ;;  %v10730_v23 = vld [vmem:[#allocation8_spill] sm:$0xff] }
 0x5d5   :  { %v4193_v40 = vpop.f32.mrf.mxu2 }
 0x5d6   :  { %4627 = vst.msk [vmem:[%s10408_s3 + $0x9c] sm:$0xf] %vm4377_vm1, %v4620_v31  ;;  %v4658_v50 = vmax.f32 %v4651_v33, 0.0  ;;  %v4600_v10 = vmax.f32 %v10713_v11, %v4593_v39  ;;  %v4194_v46 = vadd.f32 %v4193_v40, %v3625_v35  ;;  %v3050_v55 = vpop.f32.mrf.mxu0  ;;  %v10732_v35 = vld [vmem:[#allocation65_spill] sm:$0xff] }
 0x5d7   :  { %v3619_v51 = vpop.f32.mrf.mxu1  ;;  %v10733_v31 = vmax.f32 %v10731_v18, %v10732_v35 }
 0x5d8   :  { %v4665_v32 = vpack.c.bf16 %v4658_v50, %v4658_v50  ;;  %v4607_v41 = vadd.f32 %v6636_v58, %v4600_v10  ;;  %v4631_v24 = vmax.f32 %v4194_v46, %v10714_v30  ;;  %v3620_v8 = vadd.f32 %v3619_v51, %v3050_v55 }
 0x5da   :  { %4672 = vst.msk [vmem:[%s10408_s3 + $0xa8] sm:$0xf] %vm4377_vm1, %v4665_v32  ;;  %v4614_v56 = vmax.f32 %v4607_v41, 0.0  ;;  %v4645_v14 = vmax.f32 %v4631_v24, %v10718_v1  ;;  %v4189_v0 = vadd.f32 %v4188_v13, %v3620_v8 }
 0x5dc   :  { %v4621_v60 = vpack.c.bf16 %v4614_v56, %v4614_v56  ;;  %v4652_v25 = vadd.f32 %v6636_v58, %v4645_v14  ;;  %v4594_v5 = vmax.f32 %v4172_v34, %v4189_v0 }
 0x5dd   :  { %v4196_v22 = vpop.f32.mrf.mxu2 }
 0x5de   :  { %4628 = vst.msk [vmem:[%s10408_s3 + $0xa0] sm:$0xf] %vm4377_vm1, %v4621_v60  ;;  %v4659_v47 = vmax.f32 %v4652_v25, 0.0  ;;  %v4601_v20 = vmax.f32 %v10723_v17, %v4594_v5  ;;  %v4197_v43 = vadd.f32 %v4196_v22, %v3628_v63 }
 0x5e0   :  { %v4666_v27 = vpack.c.bf16 %v4659_v47, %v4659_v47  ;;  %v4608_v13 = vadd.f32 %v6636_v58, %v4601_v20  ;;  %v4632_v2 = vmax.f32 %v4197_v43, %v10724_v54 }
 0x5e2   :  { %4673 = vst.msk [vmem:[%s10408_s3 + $0xac] sm:$0xf] %vm4377_vm1, %v4666_v27  ;;  %v4615_v36 = vmax.f32 %v4608_v13, 0.0  ;;  %v4646_v19 = vmax.f32 %v4632_v2, %v10727_v9 }
 0x5e4   :  { %v4622_v44 = vpack.c.bf16 %v4615_v36, %v4615_v36  ;;  %v4653_v7 = vadd.f32 %v6636_v58, %v4646_v19 }
 0x5e5   :  { %v4198_v61 = vpop.f32.mrf.mxu2 }
 0x5e6   :  { %4629 = vst.msk [vmem:[%s10408_s3 + $0xa4] sm:$0xf] %vm4377_vm1, %v4622_v44  ;;  %v4660_v29 = vmax.f32 %v4653_v7, 0.0  ;;  %v4199_v15 = vadd.f32 %v4198_v61, %v3630_v57 }
 0x5e8   :  { %v4667_v4 = vpack.c.bf16 %v4660_v29, %v4660_v29  ;;  %v4633_v12 = vmax.f32 %v4199_v15, %v10730_v23 }
 0x5ea   :  { %4674 = vst.msk [vmem:[%s10408_s3 + $0xb0] sm:$0xf] %vm4377_vm1, %v4667_v4  ;;  %v4647_v33 = vmax.f32 %v4633_v12, %v10733_v31 }
 0x5ec   :  { %v4654_v39 = vadd.f32 %v6636_v58, %v4647_v33 }
 0x5ee   :  { %v4661_v40 = vmax.f32 %v4654_v39, 0.0 }
 0x5f0   :  { %v4668_v26 = vpack.c.bf16 %v4661_v40, %v4661_v40 }
 0x5f2   :  { %4675 = vst.msk [vmem:[%s10408_s3 + $0xb4] sm:$0xf] %vm4377_vm1, %v4668_v26 }

</bundles_post_ra>
